<compile_context>
chip_gen: v7x
topology: tpu7x:2x2x1
jax: 0.10.0
libtpu: 0.0.40
codegen_flags: <defaults>
</compile_context>

<pallas_src>
import functools

import jax
import jax.numpy as jnp
from jax.experimental import pallas as pl
from jax.experimental.pallas import tpu as pltpu

NEG_SLOPE = 0.2            # LeakyReLU(0.2)
BN_EPS = 1e-5              # nn.BatchNorm2d default eps
KW = 4                     # discriminator kernel size
PAD = 1                    # discriminator conv padding


def _round_up(x, m):
    return ((x + m - 1) // m) * m


# ---------------------------------------------------------------------------
# Pallas kernels
# ---------------------------------------------------------------------------
def _mm_bias_act_kernel(a_ref, b_ref, bias_ref, o_ref, acc_ref, *, leaky):
    """Tiled matmul (K-reduction grid axis) + fused bias + optional LeakyReLU."""
    k = pl.program_id(2)

    @pl.when(k == 0)
    def _():
        acc_ref[...] = jnp.zeros_like(acc_ref)

    acc_ref[...] += jnp.dot(a_ref[...], b_ref[...],
                            preferred_element_type=jnp.float32)

    @pl.when(k == pl.num_programs(2) - 1)
    def _():
        out = acc_ref[...] + bias_ref[...]          # (tm,tn) + (1,tn)
        if leaky:
            out = jnp.where(out >= 0, out, NEG_SLOPE * out)
        o_ref[...] = out.astype(o_ref.dtype)


def _mm_bn_stats_kernel(a_ref, b_ref, o_ref, sum_ref, sq_ref, acc_ref):
    """Tiled matmul (no bias) with BatchNorm batch statistics fused into the
    epilogue: per-column sum and sum-of-squares of the output tile."""
    k = pl.program_id(2)

    @pl.when(k == 0)
    def _():
        acc_ref[...] = jnp.zeros_like(acc_ref)

    acc_ref[...] += jnp.dot(a_ref[...], b_ref[...],
                            preferred_element_type=jnp.float32)

    @pl.when(k == pl.num_programs(2) - 1)
    def _():
        out = acc_ref[...]
        o_ref[...] = out
        sum_ref[...] = jnp.sum(out, axis=0, keepdims=True)
        sq_ref[...] = jnp.sum(out * out, axis=0, keepdims=True)


def _affine_leaky_kernel(x_ref, scale_ref, shift_ref, o_ref):
    """Per-channel affine (folded BatchNorm) + LeakyReLU(0.2)."""
    y = x_ref[...] * scale_ref[...] + shift_ref[...]
    o_ref[...] = jnp.where(y >= 0, y, NEG_SLOPE * y)


def _head_conv_kernel(x_ref, w_ref, b_ref, o_ref):
    """1-output-channel conv head as a VPU multiply + lane reduce."""
    o_ref[...] = jnp.sum(x_ref[...] * w_ref[...], axis=1, keepdims=True) + b_ref[0]


def _absdiff_sum_kernel(x_ref, y_ref, o_ref):
    """Accumulates sum(|x - y|) across the row-tiled grid into SMEM."""
    s = jnp.sum(jnp.abs(x_ref[...] - y_ref[...]))

    @pl.when(pl.program_id(0) == 0)
    def _():
        o_ref[0, 0] = s

    @pl.when(pl.program_id(0) > 0)
    def _():
        o_ref[0, 0] += s


def _kl_sum_kernel(mu_ref, lv_ref, o_ref):
    """Accumulates 0.5 * sum(mu^2 + exp(lv) - 1 - lv) across the grid."""
    mu = mu_ref[...]
    lv = lv_ref[...]
    s = 0.5 * jnp.sum(mu * mu + jnp.exp(lv) - 1.0 - lv)

    @pl.when(pl.program_id(0) == 0)
    def _():
        o_ref[0, 0] = s

    @pl.when(pl.program_id(0) > 0)
    def _():
        o_ref[0, 0] += s


# ---------------------------------------------------------------------------
# Pallas wrappers (shape-aware tiling)
# ---------------------------------------------------------------------------
def _pad_2d(x, rows, cols):
    pr, pc = rows - x.shape[0], cols - x.shape[1]
    if pr or pc:
        x = jnp.pad(x, ((0, pr), (0, pc)))
    return x


def _tile_k(K, cap=2048):
    return (K, K) if K <= cap else (cap, _round_up(K, cap))


def _tile_n(N, cap=256):
    return (N, N) if N <= cap else (cap, _round_up(N, cap))


def pallas_matmul_bias_act(a, b, bias, *, leaky, tm_cap=256):
    """a:(M,K) f32, b:(K,N) packed weights, bias:(N,).
    bf16 MXU inputs, f32 accumulation. Returns row-padded (Mp,N) f32."""
    M, K = a.shape
    _, N = b.shape
    a = a.astype(jnp.bfloat16)
    b = b.astype(jnp.bfloat16)

    if M <= tm_cap:
        tm = _round_up(M, 16)
        Mp = tm
    else:
        tm = tm_cap
        Mp = _round_up(M, tm)
    tk, Kp = _tile_k(K)
    tn, Np = _tile_n(N)

    a_p = _pad_2d(a, Mp, Kp)
    b_p = _pad_2d(b, Kp, Np)
    bias_p = _pad_2d(bias.reshape(1, N).astype(jnp.float32), 1, Np)
    grid = (Mp // tm, Np // tn, Kp // tk)

    out = pl.pallas_call(
        functools.partial(_mm_bias_act_kernel, leaky=leaky),
        out_shape=jax.ShapeDtypeStruct((Mp, Np), jnp.float32),
        grid_spec=pltpu.PrefetchScalarGridSpec(
            num_scalar_prefetch=0,
            grid=grid,
            in_specs=[
                pl.BlockSpec((tm, tk), lambda i, j, k: (i, k)),
                pl.BlockSpec((tk, tn), lambda i, j, k: (k, j)),
                pl.BlockSpec((1, tn), lambda i, j, k: (0, j)),
            ],
            out_specs=pl.BlockSpec((tm, tn), lambda i, j, k: (i, j)),
            scratch_shapes=[pltpu.VMEM((tm, tn), jnp.float32)],
        ),
        compiler_params=pltpu.CompilerParams(
            dimension_semantics=("parallel", "parallel", "arbitrary")),
    )(a_p, b_p, bias_p)
    if Np != N:
        out = out[:, :N]
    return out


def pallas_matmul_bn_stats(a, b, *, m_single_tile_cap=1024):
    """Conv matmul (no bias) with BatchNorm batch stats fused in the epilogue.
    Returns (row-padded (Mp,N) f32 output, col_sum (N,), col_sumsq (N,)).
    Zero-padded rows contribute exactly 0 to both sums (no bias)."""
    M, K = a.shape
    _, N = b.shape
    Mp = _round_up(M, 16)
    if Mp > m_single_tile_cap:
        # TODO(synk): multi-M-tile stat accumulation needs revisit-safe stat
        # blocks; fall back to a plain matmul + JAX column stats at huge M.
        out = pallas_matmul_bias_act(a, b, jnp.zeros((N,), jnp.float32),
                                     leaky=False)
        o = out[:M]
        return out, jnp.sum(o, axis=0), jnp.sum(o * o, axis=0)

    a = a.astype(jnp.bfloat16)
    b = b.astype(jnp.bfloat16)
    tm = Mp                       # single M tile => stats computed in one pass
    tk, Kp = _tile_k(K)
    tn, Np = _tile_n(N)
    a_p = _pad_2d(a, Mp, Kp)
    b_p = _pad_2d(b, Kp, Np)
    grid = (1, Np // tn, Kp // tk)

    out, col_sum, col_sq = pl.pallas_call(
        _mm_bn_stats_kernel,
        out_shape=(jax.ShapeDtypeStruct((Mp, Np), jnp.float32),
                   jax.ShapeDtypeStruct((1, Np), jnp.float32),
                   jax.ShapeDtypeStruct((1, Np), jnp.float32)),
        grid_spec=pltpu.PrefetchScalarGridSpec(
            num_scalar_prefetch=0,
            grid=grid,
            in_specs=[
                pl.BlockSpec((tm, tk), lambda i, j, k: (i, k)),
                pl.BlockSpec((tk, tn), lambda i, j, k: (k, j)),
            ],
            out_specs=(
                pl.BlockSpec((tm, tn), lambda i, j, k: (i, j)),
                pl.BlockSpec((1, tn), lambda i, j, k: (0, j)),
                pl.BlockSpec((1, tn), lambda i, j, k: (0, j)),
            ),
            scratch_shapes=[pltpu.VMEM((tm, tn), jnp.float32)],
        ),
        compiler_params=pltpu.CompilerParams(
            dimension_semantics=("parallel", "parallel", "arbitrary")),
    )(a_p, b_p)
    if Np != N:
        out = out[:, :N]
        col_sum = col_sum[:, :N]
        col_sq = col_sq[:, :N]
    return out, col_sum[0], col_sq[0]


def pallas_affine_leaky(x, scale, shift, *, tm=512):
    """x:(Mp,N) f32 (row-padded ok); scale/shift:(N,). Fused BN-affine + LeakyReLU."""
    Mp, N = x.shape
    tm = min(tm, _round_up(Mp, 8))
    Mp2 = _round_up(Mp, tm)
    if Mp2 != Mp:
        x = jnp.pad(x, ((0, Mp2 - Mp), (0, 0)))
    out = pl.pallas_call(
        _affine_leaky_kernel,
        out_shape=jax.ShapeDtypeStruct((Mp2, N), jnp.float32),
        grid=(Mp2 // tm,),
        in_specs=[
            pl.BlockSpec((tm, N), lambda i: (i, 0)),
            pl.BlockSpec((1, N), lambda i: (0, 0)),
            pl.BlockSpec((1, N), lambda i: (0, 0)),
        ],
        out_specs=pl.BlockSpec((tm, N), lambda i: (i, 0)),
        compiler_params=pltpu.CompilerParams(
            dimension_semantics=("parallel",)),
    )(x, scale.reshape(1, N).astype(jnp.float32),
      shift.reshape(1, N).astype(jnp.float32))
    return out[:Mp]


def pallas_head_conv(patches, wvec, bias):
    """Final Conv2d(->1 channel) as a VPU multiply-reduce (no wasted MXU cols).
    patches:(M,K) f32, wvec:(1,K), bias:(1,). Returns (M,1) logits."""
    M, K = patches.shape
    tm = min(128, _round_up(M, 8))
    Mp = _round_up(M, tm)
    x = patches.astype(jnp.float32)
    if Mp != M:
        x = jnp.pad(x, ((0, Mp - M), (0, 0)))
    out = pl.pallas_call(
        _head_conv_kernel,
        out_shape=jax.ShapeDtypeStruct((Mp, 1), jnp.float32),
        grid=(Mp // tm,),
        in_specs=[
            pl.BlockSpec((tm, K), lambda i: (i, 0)),
            pl.BlockSpec((1, K), lambda i: (0, 0)),
            pl.BlockSpec(memory_space=pltpu.MemorySpace.SMEM),
        ],
        out_specs=pl.BlockSpec((tm, 1), lambda i: (i, 0)),
        compiler_params=pltpu.CompilerParams(
            dimension_semantics=("parallel",)),
    )(x, wvec.astype(jnp.float32), bias.reshape(1).astype(jnp.float32))
    return out[:M]


def _as_lanes(x):
    """Flatten to (rows, 128) f32, zero-padding the tail."""
    flat = x.reshape(-1).astype(jnp.float32)
    n = flat.shape[0]
    rows = -(-n // 128)
    pad = rows * 128 - n
    if pad:
        flat = jnp.pad(flat, (0, pad))
    return flat.reshape(rows, 128)


def _tiled_scalar_reduce(kernel, arrays, tile_rows=1024):
    """Row-tiled scalar reduction accumulating into an SMEM (1,1) output."""
    mats = [_as_lanes(a) for a in arrays]
    R = mats[0].shape[0]
    tr = min(tile_rows, _round_up(R, 8))
    Rp = _round_up(R, tr)
    if Rp != R:
        mats = [jnp.pad(m, ((0, Rp - R), (0, 0))) for m in mats]
    out = pl.pallas_call(
        kernel,
        out_shape=jax.ShapeDtypeStruct((1, 1), jnp.float32),
        grid=(Rp // tr,),
        in_specs=[pl.BlockSpec((tr, 128), lambda i: (i, 0)) for _ in mats],
        out_specs=pl.BlockSpec(memory_space=pltpu.MemorySpace.SMEM),
        compiler_params=pltpu.CompilerParams(
            dimension_semantics=("arbitrary",)),
    )(*mats)
    return out[0, 0]


def pallas_absdiff_sum(x, y):
    """sum(|x - y|) over all elements (zero padding contributes 0)."""
    return _tiled_scalar_reduce(_absdiff_sum_kernel, [x, y])


def pallas_kl_sum(mean, logvar):
    """DiagonalGaussian KL vs N(0,1): 0.5*sum(mu^2 + exp(lv) - 1 - lv);
    zero padding contributes exactly 0 to the sum."""
    return _tiled_scalar_reduce(_kl_sum_kernel, [mean, logvar])


# ---------------------------------------------------------------------------
# Conv2d(4x4, pad 1) via NHWC im2col + Pallas matmul
# ---------------------------------------------------------------------------
def im2col_nhwc(x, stride):
    """x:(B,H,W,C) NHWC. Returns ((B*Ho*Wo, 16*C) patches, (B,Ho,Wo)).
    K ordering is (ki, kj, c), matching pack_conv_weight."""
    B, H, W, C = x.shape
    Ho = (H + 2 * PAD - KW) // stride + 1
    Wo = (W + 2 * PAD - KW) // stride + 1
    xp = jnp.pad(x, ((0, 0), (PAD, PAD), (PAD, PAD), (0, 0)))
    cols = []
    for ki in range(KW):
        for kj in range(KW):
            cols.append(xp[:, ki:ki + stride * Ho:stride,
                           kj:kj + stride * Wo:stride, :])
    # TODO(synk): fold this patch gather into the matmul kernel (K grid axis
    # over (ki,kj) with pl.ds offsets) to avoid materializing the 16x-expanded
    # tensor in HBM at production image sizes.
    patches = jnp.concatenate(cols, axis=-1)               # (B,Ho,Wo,16*C)
    return patches.reshape(B * Ho * Wo, KW * KW * C), (B, Ho, Wo)


def pack_conv_weight(w):
    """(Cout,Cin,4,4) -> (16*Cin, Cout), K index ordering = (ki, kj, cin)."""
    cout, cin, kh, kw = w.shape
    return w.transpose(2, 3, 1, 0).reshape(kh * kw * cin, cout)


# ---------------------------------------------------------------------------
# NLayerDiscriminator (input_nc=3, ndf=64, n_layers=3, BatchNorm, train mode)
# ---------------------------------------------------------------------------
def init_discriminator_params(key, input_nc=3, ndf=64, n_layers=3):
    """weights_init: conv weight ~ N(0,0.02); BN gamma ~ N(1,0.02), beta = 0.
    Conv biases use zeros here (PyTorch default init is uniform; immaterial
    for the kernel demo). Conv weights are pre-packed (im2col layout, bf16)."""
    keys = jax.random.split(key, 2 * (n_layers + 2))
    ki = 0

    def normal(shape, std, mean=0.0):
        nonlocal ki
        k = keys[ki]
        ki += 1
        return mean + std * jax.random.normal(k, shape, jnp.float32)

    params = {}
    w0 = normal((ndf, input_nc, 4, 4), 0.02)
    params["wm0"] = pack_conv_weight(w0).astype(jnp.bfloat16)
    params["b0"] = jnp.zeros((ndf,), jnp.float32)

    nf_mult = 1
    for n in range(1, n_layers + 1):
        nf_mult_prev = nf_mult
        nf_mult = min(2 ** n, 8)
        cin, cout = ndf * nf_mult_prev, ndf * nf_mult
        wn = normal((cout, cin, 4, 4), 0.02)
        params[f"wm{n}"] = pack_conv_weight(wn).astype(jnp.bfloat16)
        params[f"gamma{n}"] = normal((cout,), 0.02, mean=1.0)
        params[f"beta{n}"] = jnp.zeros((cout,), jnp.float32)

    w_out = normal((1, ndf * nf_mult, 4, 4), 0.02)
    params["w_out_vec"] = pack_conv_weight(w_out).T        # (1, 16*Cin) f32
    params["b_out"] = jnp.zeros((1,), jnp.float32)
    return params


def discriminator_forward(x_nchw, params, n_layers=3):
    """PatchGAN discriminator; activations stay NHWC between layers."""
    x = jnp.transpose(x_nchw, (0, 2, 3, 1)).astype(jnp.float32)   # NHWC once

    # Conv(3->64, s2, bias) + LeakyReLU(0.2) -- fused epilogue
    patches, (B, Ho, Wo) = im2col_nhwc(x, stride=2)
    M = patches.shape[0]
    out = pallas_matmul_bias_act(patches, params["wm0"], params["b0"], leaky=True)
    x = out[:M].reshape(B, Ho, Wo, -1)

    # [Conv(s2)+BN+LReLU] x (n_layers-1), then Conv(s1)+BN+LReLU
    strides = [2] * (n_layers - 1) + [1]
    for n in range(1, n_layers + 1):
        patches, (B, Ho, Wo) = im2col_nhwc(x, stride=strides[n - 1])
        M = patches.shape[0]
        out_p, col_sum, col_sq = pallas_matmul_bn_stats(patches, params[f"wm{n}"])
        # BatchNorm2d train-mode batch stats (biased variance over N*H*W);
        # padded rows are exactly zero (no bias), so dividing by true M is exact.
        mean = col_sum / M
        var = jnp.maximum(col_sq / M - mean * mean, 0.0)
        scale = params[f"gamma{n}"] * jax.lax.rsqrt(var + BN_EPS)
        shift = params[f"beta{n}"] - mean * scale
        out_p = pallas_affine_leaky(out_p, scale, shift)
        x = out_p[:M].reshape(B, Ho, Wo, -1)

    # Conv(-> 1 channel, s1) + bias, no activation (VPU reduce, not MXU).
    patches, (B, Ho, Wo) = im2col_nhwc(x, stride=1)
    logits = pallas_head_conv(patches, params["w_out_vec"], params["b_out"])
    return logits.reshape(B, Ho, Wo, 1).transpose(0, 3, 1, 2)     # NCHW logits


# ---------------------------------------------------------------------------
# LPIPSWithDiscriminator forward
# ---------------------------------------------------------------------------
def adopt_weight(weight, global_step, threshold=0, value=0.0):
    # jit-safe (no Python branch on a possibly-traced global_step)
    return jnp.where(global_step < threshold, value, weight)


def hinge_d_loss(logits_real, logits_fake):
    loss_real = jnp.mean(jax.nn.relu(1.0 - logits_real))
    loss_fake = jnp.mean(jax.nn.relu(1.0 + logits_fake))
    return 0.5 * (loss_real + loss_fake)


def lpips_with_discriminator_forward(
        params, inputs, reconstructions, post_mean, post_logvar,
        global_step, *, optimizer_idx,
        logvar=0.0, kl_weight=1.0, disc_factor=1.0, disc_weight=1.0,
        disc_start=0):
    B = inputs.shape[0]
    n_elem = inputs.size

    # TODO(synk): LPIPS perceptual loss requires pretrained VGG16 feature
    # weights (external checkpoint); omitted here (== perceptual_weight=0).
    rec_sum = pallas_absdiff_sum(inputs, reconstructions)
    logvar = jnp.asarray(logvar, jnp.float32)
    # logvar is a scalar parameter => sum(rec/exp(lv)+lv) = sum(rec)/exp(lv)+n*lv
    nll_sum = rec_sum / jnp.exp(logvar) + n_elem * logvar
    nll_loss = nll_sum / B
    weighted_nll_loss = nll_loss                    # weights is None
    rec_loss_mean = rec_sum / n_elem

    kl_loss = pallas_kl_sum(post_mean, post_logvar) / B
    disc_factor_eff = adopt_weight(disc_factor, global_step, threshold=disc_start)

    if optimizer_idx == 0:
        logits_fake = discriminator_forward(reconstructions, params)
        g_loss = -jnp.mean(logits_fake)
        # TODO(synk): calculate_adaptive_weight needs autograd of nll/g_loss
        # w.r.t. the external decoder's last layer; using the eval fallback 0.
        d_weight = jnp.asarray(0.0, jnp.float32) * disc_weight
        loss = (weighted_nll_loss + kl_weight * kl_loss
                + d_weight * disc_factor_eff * g_loss)
        log = {"total_loss": loss, "logvar": logvar,
               "kl_loss": kl_loss, "nll_loss": nll_loss,
               "rec_loss": rec_loss_mean, "d_weight": d_weight,
               "disc_factor": disc_factor_eff, "g_loss": g_loss}
        return loss, log

    # optimizer_idx == 1: run real + fake through the discriminator as one
    # batched pass (doubles M, halves launch count, feeds both TCs on v7x).
    both = jnp.concatenate([inputs, reconstructions], axis=0)
    logits = discriminator_forward(both, params)
    logits_real, logits_fake = logits[:B], logits[B:]
    d_loss = disc_factor_eff * hinge_d_loss(logits_real, logits_fake)
    log = {"disc_loss": d_loss,
           "logits_real": jnp.mean(logits_real),
           "logits_fake": jnp.mean(logits_fake)}
    return d_loss, log


# ---------------------------------------------------------------------------
if __name__ == "__main__":
    key = jax.random.PRNGKey(0)
    k_in, k_rec, k_mu, k_lv, k_disc = jax.random.split(key, 5)

    # inputs / reconstructions: (B=2, C=3, H=32, W=32) NCHW
    inputs = jax.random.normal(k_in, (2, 3, 32, 32), jnp.float32)
    reconstructions = jax.random.normal(k_rec, (2, 3, 32, 32), jnp.float32)
    # DiagonalGaussian posterior moments: (B=2, z=4, 8, 8)
    post_mean = 0.5 * jax.random.normal(k_mu, (2, 4, 8, 8), jnp.float32)
    post_logvar = 0.1 * jax.random.normal(k_lv, (2, 4, 8, 8), jnp.float32)

    params = init_discriminator_params(k_disc)

    fwd = jax.jit(lpips_with_discriminator_forward,
                  static_argnames=("optimizer_idx",))

    g_loss_total, g_log = fwd(params, inputs, reconstructions,
                              post_mean, post_logvar, 10, optimizer_idx=0)
    d_loss_total, d_log = fwd(params, inputs, reconstructions,
                              post_mean, post_logvar, 10, optimizer_idx=1)

    jax.block_until_ready((g_loss_total, g_log, d_loss_total, d_log))
    assert bool(jnp.isfinite(g_loss_total)) and bool(jnp.isfinite(d_loss_total))
    print("KERNEL_OK")
</pallas_src>

<mosaic_0001>
module attributes {stable_mosaic.version = 11 : i64} {
  func.func @_mm_bias_act_kernel(%arg0: i32, %arg1: i32, %arg2: i32, %arg3: memref<256x48xbf16, #tpu.memory_space<vmem>>, %arg4: memref<48x64xbf16, #tpu.memory_space<vmem>>, %arg5: memref<1x64xf32, #tpu.memory_space<vmem>>, %arg6: memref<256x64xf32, #tpu.memory_space<vmem>>, %arg7: memref<256x64xf32, #tpu.memory_space<vmem>>) attributes {dimension_semantics = [#tpu.dimension_semantics<parallel>, #tpu.dimension_semantics<parallel>, #tpu.dimension_semantics<arbitrary>], iteration_bounds = array<i64: 2, 1, 1>, scalar_prefetch = 0 : i64, scratch_operands = 1 : i64, tpu.core_type = #tpu.core_type<tc>, window_params = [{transform_indices = @transform_0, window_bounds = array<i64: 256, 48>}, {transform_indices = @transform_1, window_bounds = array<i64: 48, 64>}, {transform_indices = @transform_2, window_bounds = array<i64: 1, 64>}, {transform_indices = @transform_3, window_bounds = array<i64: 256, 64>}]} {
    %c0_i32 = arith.constant 0 : i32
    %0 = arith.cmpi eq, %arg2, %c0_i32 : i32
    %1 = arith.extui %0 : i1 to i32
    %c0_i32_0 = arith.constant 0 : i32
    %2 = arith.cmpi ne, %1, %c0_i32_0 : i32
    scf.if %2 {
      %cst_10 = arith.constant 0.000000e+00 : f32
      %12 = vector.broadcast %cst_10 : f32 to vector<256x64xf32>
      %c0_11 = arith.constant 0 : index
      %c0_12 = arith.constant 0 : index
      %13 = vector.load %arg7[%c0_11, %c0_12] : memref<256x64xf32, #tpu.memory_space<vmem>>, vector<256x64xf32>
      tpu.vector_store %arg7[%c0_11, %c0_12], %12 {strides = array<i32>} : memref<256x64xf32, #tpu.memory_space<vmem>>, vector<256x64xf32>,
    } else {
    }
    %c0 = arith.constant 0 : index
    %c0_1 = arith.constant 0 : index
    %3 = vector.load %arg7[%c0, %c0_1] : memref<256x64xf32, #tpu.memory_space<vmem>>, vector<256x64xf32>
    %c0_2 = arith.constant 0 : index
    %c0_3 = arith.constant 0 : index
    %4 = vector.load %arg3[%c0_2, %c0_3] : memref<256x48xbf16, #tpu.memory_space<vmem>>, vector<256x48xbf16>
    %c0_4 = arith.constant 0 : index
    %c0_5 = arith.constant 0 : index
    %5 = vector.load %arg4[%c0_4, %c0_5] : memref<48x64xbf16, #tpu.memory_space<vmem>>, vector<48x64xbf16>
    %cst = arith.constant dense<0.000000e+00> : vector<256x64xf32>
    %6 = tpu.matmul %4, %5, %cst {dimension_numbers = #tpu.dot_dimension_numbers<[1], [0], [0], [1], [0, 0, 1, 1], [], []>} : vector<256x48xbf16>, vector<48x64xbf16>, vector<256x64xf32> -> vector<256x64xf32>
    %7 = arith.addf %3, %6 : vector<256x64xf32>
    %c0_6 = arith.constant 0 : index
    %c0_7 = arith.constant 0 : index
    %8 = vector.load %arg7[%c0_6, %c0_7] : memref<256x64xf32, #tpu.memory_space<vmem>>, vector<256x64xf32>
    tpu.vector_store %arg7[%c0_6, %c0_7], %7 {strides = array<i32>} : memref<256x64xf32, #tpu.memory_space<vmem>>, vector<256x64xf32>,
    %c0_i32_8 = arith.constant 0 : i32
    %9 = arith.cmpi eq, %arg2, %c0_i32_8 : i32
    %10 = arith.extui %9 : i1 to i32
    %c0_i32_9 = arith.constant 0 : i32
    %11 = arith.cmpi ne, %10, %c0_i32_9 : i32
    scf.if %11 {
      %c0_10 = arith.constant 0 : index
      %c0_11 = arith.constant 0 : index
      %12 = vector.load %arg7[%c0_10, %c0_11] : memref<256x64xf32, #tpu.memory_space<vmem>>, vector<256x64xf32>
      %c0_12 = arith.constant 0 : index
      %c0_13 = arith.constant 0 : index
      %13 = vector.load %arg5[%c0_12, %c0_13] : memref<1x64xf32, #tpu.memory_space<vmem>>, vector<1x64xf32>
      %14 = vector.broadcast %13 : vector<1x64xf32> to vector<256x64xf32>
      %15 = arith.addf %12, %14 : vector<256x64xf32>
      %cst_14 = arith.constant 0.000000e+00 : f32
      %16 = vector.broadcast %cst_14 : f32 to vector<256x64xf32>
      %17 = arith.cmpf oge, %15, %16 : vector<256x64xf32>
      %cst_15 = arith.constant 2.000000e-01 : f32
      %18 = vector.broadcast %cst_15 : f32 to vector<256x64xf32>
      %19 = arith.mulf %18, %15 : vector<256x64xf32>
      %20 = arith.select %17, %15, %19 : vector<256x64xi1>, vector<256x64xf32>
      %c0_16 = arith.constant 0 : index
      %c0_17 = arith.constant 0 : index
      %21 = vector.load %arg6[%c0_16, %c0_17] : memref<256x64xf32, #tpu.memory_space<vmem>>, vector<256x64xf32>
      tpu.vector_store %arg6[%c0_16, %c0_17], %20 {strides = array<i32>} : memref<256x64xf32, #tpu.memory_space<vmem>>, vector<256x64xf32>,
    } else {
    }
    return
  }
  func.func @transform_0(%arg0: i32, %arg1: i32, %arg2: i32) -> (i32, i32) {
    %c0_i32 = arith.constant 0 : i32
    return %arg0, %arg2 : i32, i32
  }
  func.func @transform_1(%arg0: i32, %arg1: i32, %arg2: i32) -> (i32, i32) {
    %c0_i32 = arith.constant 0 : i32
    return %arg2, %arg1 : i32, i32
  }
  func.func @transform_2(%arg0: i32, %arg1: i32, %arg2: i32) -> (i32, i32) {
    %c0_i32 = arith.constant 0 : i32
    %c0_i32_0 = arith.constant 0 : i32
    return %c0_i32, %arg1 : i32, i32
  }
  func.func @transform_3(%arg0: i32, %arg1: i32, %arg2: i32) -> (i32, i32) {
    %c0_i32 = arith.constant 0 : i32
    return %arg0, %arg1 : i32, i32
  }
}

module attributes {stable_mosaic.version = 11 : i64} {
  func.func @_mm_bn_stats_kernel(%arg0: i32, %arg1: i32, %arg2: i32, %arg3: memref<128x1024xbf16, #tpu.memory_space<vmem>>, %arg4: memref<1024x128xbf16, #tpu.memory_space<vmem>>, %arg5: memref<128x128xf32, #tpu.memory_space<vmem>>, %arg6: memref<1x128xf32, #tpu.memory_space<vmem>>, %arg7: memref<1x128xf32, #tpu.memory_space<vmem>>, %arg8: memref<128x128xf32, #tpu.memory_space<vmem>>) attributes {dimension_semantics = [#tpu.dimension_semantics<parallel>, #tpu.dimension_semantics<parallel>, #tpu.dimension_semantics<arbitrary>], iteration_bounds = array<i64: 1, 1, 1>, scalar_prefetch = 0 : i64, scratch_operands = 1 : i64, tpu.core_type = #tpu.core_type<tc>, window_params = [{transform_indices = @transform_0, window_bounds = array<i64: 128, 1024>}, {transform_indices = @transform_1, window_bounds = array<i64: 1024, 128>}, {transform_indices = @transform_2, window_bounds = array<i64: 128, 128>}, {transform_indices = @transform_3, window_bounds = array<i64: 1, 128>}, {transform_indices = @transform_4, window_bounds = array<i64: 1, 128>}]} {
    %c0_i32 = arith.constant 0 : i32
    %0 = arith.cmpi eq, %arg2, %c0_i32 : i32
    %1 = arith.extui %0 : i1 to i32
    %c0_i32_0 = arith.constant 0 : i32
    %2 = arith.cmpi ne, %1, %c0_i32_0 : i32
    scf.if %2 {
      %cst_10 = arith.constant 0.000000e+00 : f32
      %12 = vector.broadcast %cst_10 : f32 to vector<128x128xf32>
      %c0_11 = arith.constant 0 : index
      %c0_12 = arith.constant 0 : index
      %13 = vector.load %arg8[%c0_11, %c0_12] : memref<128x128xf32, #tpu.memory_space<vmem>>, vector<128x128xf32>
      tpu.vector_store %arg8[%c0_11, %c0_12], %12 {strides = array<i32>} : memref<128x128xf32, #tpu.memory_space<vmem>>, vector<128x128xf32>,
    } else {
    }
    %c0 = arith.constant 0 : index
    %c0_1 = arith.constant 0 : index
    %3 = vector.load %arg8[%c0, %c0_1] : memref<128x128xf32, #tpu.memory_space<vmem>>, vector<128x128xf32>
    %c0_2 = arith.constant 0 : index
    %c0_3 = arith.constant 0 : index
    %4 = vector.load %arg3[%c0_2, %c0_3] : memref<128x1024xbf16, #tpu.memory_space<vmem>>, vector<128x1024xbf16>
    %c0_4 = arith.constant 0 : index
    %c0_5 = arith.constant 0 : index
    %5 = vector.load %arg4[%c0_4, %c0_5] : memref<1024x128xbf16, #tpu.memory_space<vmem>>, vector<1024x128xbf16>
    %cst = arith.constant dense<0.000000e+00> : vector<128x128xf32>
    %6 = tpu.matmul %4, %5, %cst {dimension_numbers = #tpu.dot_dimension_numbers<[1], [0], [0], [1], [0, 0, 1, 1], [], []>} : vector<128x1024xbf16>, vector<1024x128xbf16>, vector<128x128xf32> -> vector<128x128xf32>
    %7 = arith.addf %3, %6 : vector<128x128xf32>
    %c0_6 = arith.constant 0 : index
    %c0_7 = arith.constant 0 : index
    %8 = vector.load %arg8[%c0_6, %c0_7] : memref<128x128xf32, #tpu.memory_space<vmem>>, vector<128x128xf32>
    tpu.vector_store %arg8[%c0_6, %c0_7], %7 {strides = array<i32>} : memref<128x128xf32, #tpu.memory_space<vmem>>, vector<128x128xf32>,
    %c0_i32_8 = arith.constant 0 : i32
    %9 = arith.cmpi eq, %arg2, %c0_i32_8 : i32
    %10 = arith.extui %9 : i1 to i32
    %c0_i32_9 = arith.constant 0 : i32
    %11 = arith.cmpi ne, %10, %c0_i32_9 : i32
    scf.if %11 {
      %c0_10 = arith.constant 0 : index
      %c0_11 = arith.constant 0 : index
      %12 = vector.load %arg8[%c0_10, %c0_11] : memref<128x128xf32, #tpu.memory_space<vmem>>, vector<128x128xf32>
      %c0_12 = arith.constant 0 : index
      %c0_13 = arith.constant 0 : index
      %13 = vector.load %arg5[%c0_12, %c0_13] : memref<128x128xf32, #tpu.memory_space<vmem>>, vector<128x128xf32>
      tpu.vector_store %arg5[%c0_12, %c0_13], %12 {strides = array<i32>} : memref<128x128xf32, #tpu.memory_space<vmem>>, vector<128x128xf32>,
      %cst_14 = arith.constant dense<0.000000e+00> : vector<128xf32>
      %14 = vector.multi_reduction <add>, %12, %cst_14 [0] : vector<128x128xf32> to vector<128xf32>
      %15 = vector.shape_cast %14 : vector<128xf32> to vector<1x128xf32>
      %c0_15 = arith.constant 0 : index
      %c0_16 = arith.constant 0 : index
      %16 = vector.load %arg6[%c0_15, %c0_16] : memref<1x128xf32, #tpu.memory_space<vmem>>, vector<1x128xf32>
      tpu.vector_store %arg6[%c0_15, %c0_16], %15 {strides = array<i32>} : memref<1x128xf32, #tpu.memory_space<vmem>>, vector<1x128xf32>,
      %17 = arith.mulf %12, %12 : vector<128x128xf32>
      %cst_17 = arith.constant dense<0.000000e+00> : vector<128xf32>
      %18 = vector.multi_reduction <add>, %17, %cst_17 [0] : vector<128x128xf32> to vector<128xf32>
      %19 = vector.shape_cast %18 : vector<128xf32> to vector<1x128xf32>
      %c0_18 = arith.constant 0 : index
      %c0_19 = arith.constant 0 : index
      %20 = vector.load %arg7[%c0_18, %c0_19] : memref<1x128xf32, #tpu.memory_space<vmem>>, vector<1x128xf32>
      tpu.vector_store %arg7[%c0_18, %c0_19], %19 {strides = array<i32>} : memref<1x128xf32, #tpu.memory_space<vmem>>, vector<1x128xf32>,
    } else {
    }
    return
  }
  func.func @transform_0(%arg0: i32, %arg1: i32, %arg2: i32) -> (i32, i32) {
    %c0_i32 = arith.constant 0 : i32
    return %arg0, %arg2 : i32, i32
  }
  func.func @transform_1(%arg0: i32, %arg1: i32, %arg2: i32) -> (i32, i32) {
    %c0_i32 = arith.constant 0 : i32
    return %arg2, %arg1 : i32, i32
  }
  func.func @transform_2(%arg0: i32, %arg1: i32, %arg2: i32) -> (i32, i32) {
    %c0_i32 = arith.constant 0 : i32
    return %arg0, %arg1 : i32, i32
  }
  func.func @transform_3(%arg0: i32, %arg1: i32, %arg2: i32) -> (i32, i32) {
    %c0_i32 = arith.constant 0 : i32
    %c0_i32_0 = arith.constant 0 : i32
    return %c0_i32, %arg1 : i32, i32
  }
  func.func @transform_4(%arg0: i32, %arg1: i32, %arg2: i32) -> (i32, i32) {
    %c0_i32 = arith.constant 0 : i32
    %c0_i32_0 = arith.constant 0 : i32
    return %c0_i32, %arg1 : i32, i32
  }
}

module attributes {stable_mosaic.version = 11 : i64} {
  func.func @_affine_leaky_kernel(%arg0: i32, %arg1: memref<128x128xf32, #tpu.memory_space<vmem>>, %arg2: memref<1x128xf32, #tpu.memory_space<vmem>>, %arg3: memref<1x128xf32, #tpu.memory_space<vmem>>, %arg4: memref<128x128xf32, #tpu.memory_space<vmem>>) attributes {dimension_semantics = [#tpu.dimension_semantics<parallel>], iteration_bounds = array<i64: 1>, scalar_prefetch = 0 : i64, scratch_operands = 0 : i64, tpu.core_type = #tpu.core_type<tc>, window_params = [{transform_indices = @transform_0, window_bounds = array<i64: 128, 128>}, {pipeline_mode = #tpu.pipeline_mode<synchronous>, transform_indices = @transform_1, window_bounds = array<i64: 1, 128>}, {pipeline_mode = #tpu.pipeline_mode<synchronous>, transform_indices = @transform_2, window_bounds = array<i64: 1, 128>}, {transform_indices = @transform_3, window_bounds = array<i64: 128, 128>}]} {
    %c0 = arith.constant 0 : index
    %c0_0 = arith.constant 0 : index
    %0 = vector.load %arg1[%c0, %c0_0] : memref<128x128xf32, #tpu.memory_space<vmem>>, vector<128x128xf32>
    %c0_1 = arith.constant 0 : index
    %c0_2 = arith.constant 0 : index
    %1 = vector.load %arg2[%c0_1, %c0_2] : memref<1x128xf32, #tpu.memory_space<vmem>>, vector<1x128xf32>
    %2 = vector.broadcast %1 : vector<1x128xf32> to vector<128x128xf32>
    %3 = arith.mulf %0, %2 : vector<128x128xf32>
    %c0_3 = arith.constant 0 : index
    %c0_4 = arith.constant 0 : index
    %4 = vector.load %arg3[%c0_3, %c0_4] : memref<1x128xf32, #tpu.memory_space<vmem>>, vector<1x128xf32>
    %5 = vector.broadcast %4 : vector<1x128xf32> to vector<128x128xf32>
    %6 = arith.addf %3, %5 : vector<128x128xf32>
    %cst = arith.constant 0.000000e+00 : f32
    %7 = vector.broadcast %cst : f32 to vector<128x128xf32>
    %8 = arith.cmpf oge, %6, %7 : vector<128x128xf32>
    %cst_5 = arith.constant 2.000000e-01 : f32
    %9 = vector.broadcast %cst_5 : f32 to vector<128x128xf32>
    %10 = arith.mulf %9, %6 : vector<128x128xf32>
    %11 = arith.select %8, %6, %10 : vector<128x128xi1>, vector<128x128xf32>
    %c0_6 = arith.constant 0 : index
    %c0_7 = arith.constant 0 : index
    %12 = vector.load %arg4[%c0_6, %c0_7] : memref<128x128xf32, #tpu.memory_space<vmem>>, vector<128x128xf32>
    tpu.vector_store %arg4[%c0_6, %c0_7], %11 {strides = array<i32>} : memref<128x128xf32, #tpu.memory_space<vmem>>, vector<128x128xf32>,
    return
  }
  func.func @transform_0(%arg0: i32) -> (i32, i32) {
    %c0_i32 = arith.constant 0 : i32
    %c0_i32_0 = arith.constant 0 : i32
    return %arg0, %c0_i32 : i32, i32
  }
  func.func @transform_1(%arg0: i32) -> (i32, i32) {
    %c0_i32 = arith.constant 0 : i32
    %c0_i32_0 = arith.constant 0 : i32
    %c0_i32_1 = arith.constant 0 : i32
    return %c0_i32, %c0_i32_0 : i32, i32
  }
  func.func @transform_2(%arg0: i32) -> (i32, i32) {
    %c0_i32 = arith.constant 0 : i32
    %c0_i32_0 = arith.constant 0 : i32
    %c0_i32_1 = arith.constant 0 : i32
    return %c0_i32, %c0_i32_0 : i32, i32
  }
  func.func @transform_3(%arg0: i32) -> (i32, i32) {
    %c0_i32 = arith.constant 0 : i32
    %c0_i32_0 = arith.constant 0 : i32
    return %arg0, %c0_i32 : i32, i32
  }
}

module attributes {stable_mosaic.version = 11 : i64} {
  func.func @_mm_bn_stats_kernel(%arg0: i32, %arg1: i32, %arg2: i32, %arg3: memref<32x2048xbf16, #tpu.memory_space<vmem>>, %arg4: memref<2048x256xbf16, #tpu.memory_space<vmem>>, %arg5: memref<32x256xf32, #tpu.memory_space<vmem>>, %arg6: memref<1x256xf32, #tpu.memory_space<vmem>>, %arg7: memref<1x256xf32, #tpu.memory_space<vmem>>, %arg8: memref<32x256xf32, #tpu.memory_space<vmem>>) attributes {dimension_semantics = [#tpu.dimension_semantics<parallel>, #tpu.dimension_semantics<parallel>, #tpu.dimension_semantics<arbitrary>], iteration_bounds = array<i64: 1, 1, 1>, scalar_prefetch = 0 : i64, scratch_operands = 1 : i64, tpu.core_type = #tpu.core_type<tc>, window_params = [{transform_indices = @transform_0, window_bounds = array<i64: 32, 2048>}, {transform_indices = @transform_1, window_bounds = array<i64: 2048, 256>}, {transform_indices = @transform_2, window_bounds = array<i64: 32, 256>}, {transform_indices = @transform_3, window_bounds = array<i64: 1, 256>}, {transform_indices = @transform_4, window_bounds = array<i64: 1, 256>}]} {
    %c0_i32 = arith.constant 0 : i32
    %0 = arith.cmpi eq, %arg2, %c0_i32 : i32
    %1 = arith.extui %0 : i1 to i32
    %c0_i32_0 = arith.constant 0 : i32
    %2 = arith.cmpi ne, %1, %c0_i32_0 : i32
    scf.if %2 {
      %cst_10 = arith.constant 0.000000e+00 : f32
      %12 = vector.broadcast %cst_10 : f32 to vector<32x256xf32>
      %c0_11 = arith.constant 0 : index
      %c0_12 = arith.constant 0 : index
      %13 = vector.load %arg8[%c0_11, %c0_12] : memref<32x256xf32, #tpu.memory_space<vmem>>, vector<32x256xf32>
      tpu.vector_store %arg8[%c0_11, %c0_12], %12 {strides = array<i32>} : memref<32x256xf32, #tpu.memory_space<vmem>>, vector<32x256xf32>,
    } else {
    }
    %c0 = arith.constant 0 : index
    %c0_1 = arith.constant 0 : index
    %3 = vector.load %arg8[%c0, %c0_1] : memref<32x256xf32, #tpu.memory_space<vmem>>, vector<32x256xf32>
    %c0_2 = arith.constant 0 : index
    %c0_3 = arith.constant 0 : index
    %4 = vector.load %arg3[%c0_2, %c0_3] : memref<32x2048xbf16, #tpu.memory_space<vmem>>, vector<32x2048xbf16>
    %c0_4 = arith.constant 0 : index
    %c0_5 = arith.constant 0 : index
    %5 = vector.load %arg4[%c0_4, %c0_5] : memref<2048x256xbf16, #tpu.memory_space<vmem>>, vector<2048x256xbf16>
    %cst = arith.constant dense<0.000000e+00> : vector<32x256xf32>
    %6 = tpu.matmul %4, %5, %cst {dimension_numbers = #tpu.dot_dimension_numbers<[1], [0], [0], [1], [0, 0, 1, 1], [], []>} : vector<32x2048xbf16>, vector<2048x256xbf16>, vector<32x256xf32> -> vector<32x256xf32>
    %7 = arith.addf %3, %6 : vector<32x256xf32>
    %c0_6 = arith.constant 0 : index
    %c0_7 = arith.constant 0 : index
    %8 = vector.load %arg8[%c0_6, %c0_7] : memref<32x256xf32, #tpu.memory_space<vmem>>, vector<32x256xf32>
    tpu.vector_store %arg8[%c0_6, %c0_7], %7 {strides = array<i32>} : memref<32x256xf32, #tpu.memory_space<vmem>>, vector<32x256xf32>,
    %c0_i32_8 = arith.constant 0 : i32
    %9 = arith.cmpi eq, %arg2, %c0_i32_8 : i32
    %10 = arith.extui %9 : i1 to i32
    %c0_i32_9 = arith.constant 0 : i32
    %11 = arith.cmpi ne, %10, %c0_i32_9 : i32
    scf.if %11 {
      %c0_10 = arith.constant 0 : index
      %c0_11 = arith.constant 0 : index
      %12 = vector.load %arg8[%c0_10, %c0_11] : memref<32x256xf32, #tpu.memory_space<vmem>>, vector<32x256xf32>
      %c0_12 = arith.constant 0 : index
      %c0_13 = arith.constant 0 : index
      %13 = vector.load %arg5[%c0_12, %c0_13] : memref<32x256xf32, #tpu.memory_space<vmem>>, vector<32x256xf32>
      tpu.vector_store %arg5[%c0_12, %c0_13], %12 {strides = array<i32>} : memref<32x256xf32, #tpu.memory_space<vmem>>, vector<32x256xf32>,
      %cst_14 = arith.constant dense<0.000000e+00> : vector<256xf32>
      %14 = vector.multi_reduction <add>, %12, %cst_14 [0] : vector<32x256xf32> to vector<256xf32>
      %15 = vector.shape_cast %14 : vector<256xf32> to vector<1x256xf32>
      %c0_15 = arith.constant 0 : index
      %c0_16 = arith.constant 0 : index
      %16 = vector.load %arg6[%c0_15, %c0_16] : memref<1x256xf32, #tpu.memory_space<vmem>>, vector<1x256xf32>
      tpu.vector_store %arg6[%c0_15, %c0_16], %15 {strides = array<i32>} : memref<1x256xf32, #tpu.memory_space<vmem>>, vector<1x256xf32>,
      %17 = arith.mulf %12, %12 : vector<32x256xf32>
      %cst_17 = arith.constant dense<0.000000e+00> : vector<256xf32>
      %18 = vector.multi_reduction <add>, %17, %cst_17 [0] : vector<32x256xf32> to vector<256xf32>
      %19 = vector.shape_cast %18 : vector<256xf32> to vector<1x256xf32>
      %c0_18 = arith.constant 0 : index
      %c0_19 = arith.constant 0 : index
      %20 = vector.load %arg7[%c0_18, %c0_19] : memref<1x256xf32, #tpu.memory_space<vmem>>, vector<1x256xf32>
      tpu.vector_store %arg7[%c0_18, %c0_19], %19 {strides = array<i32>} : memref<1x256xf32, #tpu.memory_space<vmem>>, vector<1x256xf32>,
    } else {
    }
    return
  }
  func.func @transform_0(%arg0: i32, %arg1: i32, %arg2: i32) -> (i32, i32) {
    %c0_i32 = arith.constant 0 : i32
    return %arg0, %arg2 : i32, i32
  }
  func.func @transform_1(%arg0: i32, %arg1: i32, %arg2: i32) -> (i32, i32) {
    %c0_i32 = arith.constant 0 : i32
    return %arg2, %arg1 : i32, i32
  }
  func.func @transform_2(%arg0: i32, %arg1: i32, %arg2: i32) -> (i32, i32) {
    %c0_i32 = arith.constant 0 : i32
    return %arg0, %arg1 : i32, i32
  }
  func.func @transform_3(%arg0: i32, %arg1: i32, %arg2: i32) -> (i32, i32) {
    %c0_i32 = arith.constant 0 : i32
    %c0_i32_0 = arith.constant 0 : i32
    return %c0_i32, %arg1 : i32, i32
  }
  func.func @transform_4(%arg0: i32, %arg1: i32, %arg2: i32) -> (i32, i32) {
    %c0_i32 = arith.constant 0 : i32
    %c0_i32_0 = arith.constant 0 : i32
    return %c0_i32, %arg1 : i32, i32
  }
}

module attributes {stable_mosaic.version = 11 : i64} {
  func.func @_affine_leaky_kernel(%arg0: i32, %arg1: memref<32x256xf32, #tpu.memory_space<vmem>>, %arg2: memref<1x256xf32, #tpu.memory_space<vmem>>, %arg3: memref<1x256xf32, #tpu.memory_space<vmem>>, %arg4: memref<32x256xf32, #tpu.memory_space<vmem>>) attributes {dimension_semantics = [#tpu.dimension_semantics<parallel>], iteration_bounds = array<i64: 1>, scalar_prefetch = 0 : i64, scratch_operands = 0 : i64, tpu.core_type = #tpu.core_type<tc>, window_params = [{transform_indices = @transform_0, window_bounds = array<i64: 32, 256>}, {pipeline_mode = #tpu.pipeline_mode<synchronous>, transform_indices = @transform_1, window_bounds = array<i64: 1, 256>}, {pipeline_mode = #tpu.pipeline_mode<synchronous>, transform_indices = @transform_2, window_bounds = array<i64: 1, 256>}, {transform_indices = @transform_3, window_bounds = array<i64: 32, 256>}]} {
    %c0 = arith.constant 0 : index
    %c0_0 = arith.constant 0 : index
    %0 = vector.load %arg1[%c0, %c0_0] : memref<32x256xf32, #tpu.memory_space<vmem>>, vector<32x256xf32>
    %c0_1 = arith.constant 0 : index
    %c0_2 = arith.constant 0 : index
    %1 = vector.load %arg2[%c0_1, %c0_2] : memref<1x256xf32, #tpu.memory_space<vmem>>, vector<1x256xf32>
    %2 = vector.broadcast %1 : vector<1x256xf32> to vector<32x256xf32>
    %3 = arith.mulf %0, %2 : vector<32x256xf32>
    %c0_3 = arith.constant 0 : index
    %c0_4 = arith.constant 0 : index
    %4 = vector.load %arg3[%c0_3, %c0_4] : memref<1x256xf32, #tpu.memory_space<vmem>>, vector<1x256xf32>
    %5 = vector.broadcast %4 : vector<1x256xf32> to vector<32x256xf32>
    %6 = arith.addf %3, %5 : vector<32x256xf32>
    %cst = arith.constant 0.000000e+00 : f32
    %7 = vector.broadcast %cst : f32 to vector<32x256xf32>
    %8 = arith.cmpf oge, %6, %7 : vector<32x256xf32>
    %cst_5 = arith.constant 2.000000e-01 : f32
    %9 = vector.broadcast %cst_5 : f32 to vector<32x256xf32>
    %10 = arith.mulf %9, %6 : vector<32x256xf32>
    %11 = arith.select %8, %6, %10 : vector<32x256xi1>, vector<32x256xf32>
    %c0_6 = arith.constant 0 : index
    %c0_7 = arith.constant 0 : index
    %12 = vector.load %arg4[%c0_6, %c0_7] : memref<32x256xf32, #tpu.memory_space<vmem>>, vector<32x256xf32>
    tpu.vector_store %arg4[%c0_6, %c0_7], %11 {strides = array<i32>} : memref<32x256xf32, #tpu.memory_space<vmem>>, vector<32x256xf32>,
    return
  }
  func.func @transform_0(%arg0: i32) -> (i32, i32) {
    %c0_i32 = arith.constant 0 : i32
    %c0_i32_0 = arith.constant 0 : i32
    return %arg0, %c0_i32 : i32, i32
  }
  func.func @transform_1(%arg0: i32) -> (i32, i32) {
    %c0_i32 = arith.constant 0 : i32
    %c0_i32_0 = arith.constant 0 : i32
    %c0_i32_1 = arith.constant 0 : i32
    return %c0_i32, %c0_i32_0 : i32, i32
  }
  func.func @transform_2(%arg0: i32) -> (i32, i32) {
    %c0_i32 = arith.constant 0 : i32
    %c0_i32_0 = arith.constant 0 : i32
    %c0_i32_1 = arith.constant 0 : i32
    return %c0_i32, %c0_i32_0 : i32, i32
  }
  func.func @transform_3(%arg0: i32) -> (i32, i32) {
    %c0_i32 = arith.constant 0 : i32
    %c0_i32_0 = arith.constant 0 : i32
    return %arg0, %c0_i32 : i32, i32
  }
}

module attributes {stable_mosaic.version = 11 : i64} {
  func.func @_mm_bn_stats_kernel(%arg0: i32, %arg1: i32, %arg2: i32, %arg3: memref<32x2048xbf16, #tpu.memory_space<vmem>>, %arg4: memref<2048x256xbf16, #tpu.memory_space<vmem>>, %arg5: memref<32x256xf32, #tpu.memory_space<vmem>>, %arg6: memref<1x256xf32, #tpu.memory_space<vmem>>, %arg7: memref<1x256xf32, #tpu.memory_space<vmem>>, %arg8: memref<32x256xf32, #tpu.memory_space<vmem>>) attributes {dimension_semantics = [#tpu.dimension_semantics<parallel>, #tpu.dimension_semantics<parallel>, #tpu.dimension_semantics<arbitrary>], iteration_bounds = array<i64: 1, 2, 2>, scalar_prefetch = 0 : i64, scratch_operands = 1 : i64, tpu.core_type = #tpu.core_type<tc>, window_params = [{transform_indices = @transform_0, window_bounds = array<i64: 32, 2048>}, {transform_indices = @transform_1, window_bounds = array<i64: 2048, 256>}, {transform_indices = @transform_2, window_bounds = array<i64: 32, 256>}, {transform_indices = @transform_3, window_bounds = array<i64: 1, 256>}, {transform_indices = @transform_4, window_bounds = array<i64: 1, 256>}]} {
    %c0_i32 = arith.constant 0 : i32
    %0 = arith.cmpi eq, %arg2, %c0_i32 : i32
    %1 = arith.extui %0 : i1 to i32
    %c0_i32_0 = arith.constant 0 : i32
    %2 = arith.cmpi ne, %1, %c0_i32_0 : i32
    scf.if %2 {
      %cst_9 = arith.constant 0.000000e+00 : f32
      %12 = vector.broadcast %cst_9 : f32 to vector<32x256xf32>
      %c0_10 = arith.constant 0 : index
      %c0_11 = arith.constant 0 : index
      %13 = vector.load %arg8[%c0_10, %c0_11] : memref<32x256xf32, #tpu.memory_space<vmem>>, vector<32x256xf32>
      tpu.vector_store %arg8[%c0_10, %c0_11], %12 {strides = array<i32>} : memref<32x256xf32, #tpu.memory_space<vmem>>, vector<32x256xf32>,
    } else {
    }
    %c0 = arith.constant 0 : index
    %c0_1 = arith.constant 0 : index
    %3 = vector.load %arg8[%c0, %c0_1] : memref<32x256xf32, #tpu.memory_space<vmem>>, vector<32x256xf32>
    %c0_2 = arith.constant 0 : index
    %c0_3 = arith.constant 0 : index
    %4 = vector.load %arg3[%c0_2, %c0_3] : memref<32x2048xbf16, #tpu.memory_space<vmem>>, vector<32x2048xbf16>
    %c0_4 = arith.constant 0 : index
    %c0_5 = arith.constant 0 : index
    %5 = vector.load %arg4[%c0_4, %c0_5] : memref<2048x256xbf16, #tpu.memory_space<vmem>>, vector<2048x256xbf16>
    %cst = arith.constant dense<0.000000e+00> : vector<32x256xf32>
    %6 = tpu.matmul %4, %5, %cst {dimension_numbers = #tpu.dot_dimension_numbers<[1], [0], [0], [1], [0, 0, 1, 1], [], []>} : vector<32x2048xbf16>, vector<2048x256xbf16>, vector<32x256xf32> -> vector<32x256xf32>
    %7 = arith.addf %3, %6 : vector<32x256xf32>
    %c0_6 = arith.constant 0 : index
    %c0_7 = arith.constant 0 : index
    %8 = vector.load %arg8[%c0_6, %c0_7] : memref<32x256xf32, #tpu.memory_space<vmem>>, vector<32x256xf32>
    tpu.vector_store %arg8[%c0_6, %c0_7], %7 {strides = array<i32>} : memref<32x256xf32, #tpu.memory_space<vmem>>, vector<32x256xf32>,
    %c1_i32 = arith.constant 1 : i32
    %9 = arith.cmpi eq, %arg2, %c1_i32 : i32
    %10 = arith.extui %9 : i1 to i32
    %c0_i32_8 = arith.constant 0 : i32
    %11 = arith.cmpi ne, %10, %c0_i32_8 : i32
    scf.if %11 {
      %c0_9 = arith.constant 0 : index
      %c0_10 = arith.constant 0 : index
      %12 = vector.load %arg8[%c0_9, %c0_10] : memref<32x256xf32, #tpu.memory_space<vmem>>, vector<32x256xf32>
      %c0_11 = arith.constant 0 : index
      %c0_12 = arith.constant 0 : index
      %13 = vector.load %arg5[%c0_11, %c0_12] : memref<32x256xf32, #tpu.memory_space<vmem>>, vector<32x256xf32>
      tpu.vector_store %arg5[%c0_11, %c0_12], %12 {strides = array<i32>} : memref<32x256xf32, #tpu.memory_space<vmem>>, vector<32x256xf32>,
      %cst_13 = arith.constant dense<0.000000e+00> : vector<256xf32>
      %14 = vector.multi_reduction <add>, %12, %cst_13 [0] : vector<32x256xf32> to vector<256xf32>
      %15 = vector.shape_cast %14 : vector<256xf32> to vector<1x256xf32>
      %c0_14 = arith.constant 0 : index
      %c0_15 = arith.constant 0 : index
      %16 = vector.load %arg6[%c0_14, %c0_15] : memref<1x256xf32, #tpu.memory_space<vmem>>, vector<1x256xf32>
      tpu.vector_store %arg6[%c0_14, %c0_15], %15 {strides = array<i32>} : memref<1x256xf32, #tpu.memory_space<vmem>>, vector<1x256xf32>,
      %17 = arith.mulf %12, %12 : vector<32x256xf32>
      %cst_16 = arith.constant dense<0.000000e+00> : vector<256xf32>
      %18 = vector.multi_reduction <add>, %17, %cst_16 [0] : vector<32x256xf32> to vector<256xf32>
      %19 = vector.shape_cast %18 : vector<256xf32> to vector<1x256xf32>
      %c0_17 = arith.constant 0 : index
      %c0_18 = arith.constant 0 : index
      %20 = vector.load %arg7[%c0_17, %c0_18] : memref<1x256xf32, #tpu.memory_space<vmem>>, vector<1x256xf32>
      tpu.vector_store %arg7[%c0_17, %c0_18], %19 {strides = array<i32>} : memref<1x256xf32, #tpu.memory_space<vmem>>, vector<1x256xf32>,
    } else {
    }
    return
  }
  func.func @transform_0(%arg0: i32, %arg1: i32, %arg2: i32) -> (i32, i32) {
    %c0_i32 = arith.constant 0 : i32
    return %arg0, %arg2 : i32, i32
  }
  func.func @transform_1(%arg0: i32, %arg1: i32, %arg2: i32) -> (i32, i32) {
    %c0_i32 = arith.constant 0 : i32
    return %arg2, %arg1 : i32, i32
  }
  func.func @transform_2(%arg0: i32, %arg1: i32, %arg2: i32) -> (i32, i32) {
    %c0_i32 = arith.constant 0 : i32
    return %arg0, %arg1 : i32, i32
  }
  func.func @transform_3(%arg0: i32, %arg1: i32, %arg2: i32) -> (i32, i32) {
    %c0_i32 = arith.constant 0 : i32
    %c0_i32_0 = arith.constant 0 : i32
    return %c0_i32, %arg1 : i32, i32
  }
  func.func @transform_4(%arg0: i32, %arg1: i32, %arg2: i32) -> (i32, i32) {
    %c0_i32 = arith.constant 0 : i32
    %c0_i32_0 = arith.constant 0 : i32
    return %c0_i32, %arg1 : i32, i32
  }
}

module attributes {stable_mosaic.version = 11 : i64} {
  func.func @_affine_leaky_kernel(%arg0: i32, %arg1: memref<32x512xf32, #tpu.memory_space<vmem>>, %arg2: memref<1x512xf32, #tpu.memory_space<vmem>>, %arg3: memref<1x512xf32, #tpu.memory_space<vmem>>, %arg4: memref<32x512xf32, #tpu.memory_space<vmem>>) attributes {dimension_semantics = [#tpu.dimension_semantics<parallel>], iteration_bounds = array<i64: 1>, scalar_prefetch = 0 : i64, scratch_operands = 0 : i64, tpu.core_type = #tpu.core_type<tc>, window_params = [{transform_indices = @transform_0, window_bounds = array<i64: 32, 512>}, {pipeline_mode = #tpu.pipeline_mode<synchronous>, transform_indices = @transform_1, window_bounds = array<i64: 1, 512>}, {pipeline_mode = #tpu.pipeline_mode<synchronous>, transform_indices = @transform_2, window_bounds = array<i64: 1, 512>}, {transform_indices = @transform_3, window_bounds = array<i64: 32, 512>}]} {
    %c0 = arith.constant 0 : index
    %c0_0 = arith.constant 0 : index
    %0 = vector.load %arg1[%c0, %c0_0] : memref<32x512xf32, #tpu.memory_space<vmem>>, vector<32x512xf32>
    %c0_1 = arith.constant 0 : index
    %c0_2 = arith.constant 0 : index
    %1 = vector.load %arg2[%c0_1, %c0_2] : memref<1x512xf32, #tpu.memory_space<vmem>>, vector<1x512xf32>
    %2 = vector.broadcast %1 : vector<1x512xf32> to vector<32x512xf32>
    %3 = arith.mulf %0, %2 : vector<32x512xf32>
    %c0_3 = arith.constant 0 : index
    %c0_4 = arith.constant 0 : index
    %4 = vector.load %arg3[%c0_3, %c0_4] : memref<1x512xf32, #tpu.memory_space<vmem>>, vector<1x512xf32>
    %5 = vector.broadcast %4 : vector<1x512xf32> to vector<32x512xf32>
    %6 = arith.addf %3, %5 : vector<32x512xf32>
    %cst = arith.constant 0.000000e+00 : f32
    %7 = vector.broadcast %cst : f32 to vector<32x512xf32>
    %8 = arith.cmpf oge, %6, %7 : vector<32x512xf32>
    %cst_5 = arith.constant 2.000000e-01 : f32
    %9 = vector.broadcast %cst_5 : f32 to vector<32x512xf32>
    %10 = arith.mulf %9, %6 : vector<32x512xf32>
    %11 = arith.select %8, %6, %10 : vector<32x512xi1>, vector<32x512xf32>
    %c0_6 = arith.constant 0 : index
    %c0_7 = arith.constant 0 : index
    %12 = vector.load %arg4[%c0_6, %c0_7] : memref<32x512xf32, #tpu.memory_space<vmem>>, vector<32x512xf32>
    tpu.vector_store %arg4[%c0_6, %c0_7], %11 {strides = array<i32>} : memref<32x512xf32, #tpu.memory_space<vmem>>, vector<32x512xf32>,
    return
  }
  func.func @transform_0(%arg0: i32) -> (i32, i32) {
    %c0_i32 = arith.constant 0 : i32
    %c0_i32_0 = arith.constant 0 : i32
    return %arg0, %c0_i32 : i32, i32
  }
  func.func @transform_1(%arg0: i32) -> (i32, i32) {
    %c0_i32 = arith.constant 0 : i32
    %c0_i32_0 = arith.constant 0 : i32
    %c0_i32_1 = arith.constant 0 : i32
    return %c0_i32, %c0_i32_0 : i32, i32
  }
  func.func @transform_2(%arg0: i32) -> (i32, i32) {
    %c0_i32 = arith.constant 0 : i32
    %c0_i32_0 = arith.constant 0 : i32
    %c0_i32_1 = arith.constant 0 : i32
    return %c0_i32, %c0_i32_0 : i32, i32
  }
  func.func @transform_3(%arg0: i32) -> (i32, i32) {
    %c0_i32 = arith.constant 0 : i32
    %c0_i32_0 = arith.constant 0 : i32
    return %arg0, %c0_i32 : i32, i32
  }
}

module attributes {stable_mosaic.version = 11 : i64} {
  func.func @_head_conv_kernel(%arg0: i32, %arg1: memref<8x8192xf32, #tpu.memory_space<vmem>>, %arg2: memref<1x8192xf32, #tpu.memory_space<vmem>>, %arg3: memref<1xf32, #tpu.memory_space<smem>>, %arg4: memref<8x1xf32, #tpu.memory_space<vmem>>) attributes {dimension_semantics = [#tpu.dimension_semantics<parallel>], iteration_bounds = array<i64: 1>, scalar_prefetch = 0 : i64, scratch_operands = 0 : i64, tpu.core_type = #tpu.core_type<tc>, window_params = [{transform_indices = @transform_0, window_bounds = array<i64: 8, 8192>}, {pipeline_mode = #tpu.pipeline_mode<synchronous>, transform_indices = @transform_1, window_bounds = array<i64: 1, 8192>}, {transform_indices = @transform_2, window_bounds = array<i64: 1>}, {transform_indices = @transform_3, window_bounds = array<i64: 8, 1>}]} {
    %c0 = arith.constant 0 : index
    %c0_0 = arith.constant 0 : index
    %0 = vector.load %arg1[%c0, %c0_0] : memref<8x8192xf32, #tpu.memory_space<vmem>>, vector<8x8192xf32>
    %c0_1 = arith.constant 0 : index
    %c0_2 = arith.constant 0 : index
    %1 = vector.load %arg2[%c0_1, %c0_2] : memref<1x8192xf32, #tpu.memory_space<vmem>>, vector<1x8192xf32>
    %2 = vector.broadcast %1 : vector<1x8192xf32> to vector<8x8192xf32>
    %3 = arith.mulf %0, %2 : vector<8x8192xf32>
    %cst = arith.constant dense<0.000000e+00> : vector<8xf32>
    %4 = vector.multi_reduction <add>, %3, %cst [1] : vector<8x8192xf32> to vector<8xf32>
    %5 = vector.shape_cast %4 : vector<8xf32> to vector<8x1xf32>
    %c0_3 = arith.constant 0 : index
    %6 = memref.load %arg3[%c0_3] : memref<1xf32, #tpu.memory_space<smem>>
    %7 = vector.broadcast %6 : f32 to vector<8x1xf32>
    %8 = arith.addf %5, %7 : vector<8x1xf32>
    %c0_4 = arith.constant 0 : index
    %c0_5 = arith.constant 0 : index
    %9 = vector.load %arg4[%c0_4, %c0_5] : memref<8x1xf32, #tpu.memory_space<vmem>>, vector<8x1xf32>
    tpu.vector_store %arg4[%c0_4, %c0_5], %8 {strides = array<i32>} : memref<8x1xf32, #tpu.memory_space<vmem>>, vector<8x1xf32>,
    return
  }
  func.func @transform_0(%arg0: i32) -> (i32, i32) {
    %c0_i32 = arith.constant 0 : i32
    %c0_i32_0 = arith.constant 0 : i32
    return %arg0, %c0_i32 : i32, i32
  }
  func.func @transform_1(%arg0: i32) -> (i32, i32) {
    %c0_i32 = arith.constant 0 : i32
    %c0_i32_0 = arith.constant 0 : i32
    %c0_i32_1 = arith.constant 0 : i32
    return %c0_i32, %c0_i32_0 : i32, i32
  }
  func.func @transform_2(%arg0: i32) -> i32 {
    %c0_i32 = arith.constant 0 : i32
    %c0_i32_0 = arith.constant 0 : i32
    return %c0_i32 : i32
  }
  func.func @transform_3(%arg0: i32) -> (i32, i32) {
    %c0_i32 = arith.constant 0 : i32
    %c0_i32_0 = arith.constant 0 : i32
    return %arg0, %c0_i32 : i32, i32
  }
}

module attributes {stable_mosaic.version = 11 : i64} {
  func.func @_absdiff_sum_kernel(%arg0: i32, %arg1: memref<48x128xf32, #tpu.memory_space<vmem>>, %arg2: memref<48x128xf32, #tpu.memory_space<vmem>>, %arg3: memref<1x1xf32, #tpu.memory_space<smem>>) attributes {dimension_semantics = [#tpu.dimension_semantics<arbitrary>], iteration_bounds = array<i64: 1>, scalar_prefetch = 0 : i64, scratch_operands = 0 : i64, tpu.core_type = #tpu.core_type<tc>, window_params = [{transform_indices = @transform_0, window_bounds = array<i64: 48, 128>}, {transform_indices = @transform_1, window_bounds = array<i64: 48, 128>}, {transform_indices = @transform_2, window_bounds = array<i64: 1, 1>}]} {
    %c0 = arith.constant 0 : index
    %c0_0 = arith.constant 0 : index
    %0 = vector.load %arg1[%c0, %c0_0] : memref<48x128xf32, #tpu.memory_space<vmem>>, vector<48x128xf32>
    %c0_1 = arith.constant 0 : index
    %c0_2 = arith.constant 0 : index
    %1 = vector.load %arg2[%c0_1, %c0_2] : memref<48x128xf32, #tpu.memory_space<vmem>>, vector<48x128xf32>
    %2 = arith.subf %0, %1 : vector<48x128xf32>
    %3 = math.absf %2 : vector<48x128xf32>
    %4 = vector.shape_cast %3 : vector<48x128xf32> to vector<1x48x128xf32>
    %cst = arith.constant dense<0.000000e+00> : vector<1xf32>
    %5 = vector.multi_reduction <add>, %4, %cst [1, 2] : vector<1x48x128xf32> to vector<1xf32>
    %6 = vector.shape_cast %5 : vector<1xf32> to vector<1x1x1xf32>
    %7 = vector.extract %6[0, 0, 0] : f32 from vector<1x1x1xf32>
    %c0_i32 = arith.constant 0 : i32
    %8 = arith.cmpi eq, %arg0, %c0_i32 : i32
    %9 = arith.extui %8 : i1 to i32
    %c0_i32_3 = arith.constant 0 : i32
    %10 = arith.cmpi ne, %9, %c0_i32_3 : i32
    scf.if %10 {
      %c0_6 = arith.constant 0 : index
      %c0_7 = arith.constant 0 : index
      %14 = memref.load %arg3[%c0_6, %c0_7] : memref<1x1xf32, #tpu.memory_space<smem>>
      memref.store %7, %arg3[%c0_6, %c0_7] : memref<1x1xf32, #tpu.memory_space<smem>>
    } else {
    }
    %c0_i32_4 = arith.constant 0 : i32
    %11 = arith.cmpi sgt, %arg0, %c0_i32_4 : i32
    %12 = arith.extui %11 : i1 to i32
    %c0_i32_5 = arith.constant 0 : i32
    %13 = arith.cmpi ne, %12, %c0_i32_5 : i32
    scf.if %13 {
      %c0_6 = arith.constant 0 : index
      %c0_7 = arith.constant 0 : index
      %14 = memref.load %arg3[%c0_6, %c0_7] : memref<1x1xf32, #tpu.memory_space<smem>>
      %15 = arith.addf %14, %7 : f32
      %c0_8 = arith.constant 0 : index
      %c0_9 = arith.constant 0 : index
      %16 = memref.load %arg3[%c0_8, %c0_9] : memref<1x1xf32, #tpu.memory_space<smem>>
      memref.store %15, %arg3[%c0_8, %c0_9] : memref<1x1xf32, #tpu.memory_space<smem>>
    } else {
    }
    return
  }
  func.func @transform_0(%arg0: i32) -> (i32, i32) {
    %c0_i32 = arith.constant 0 : i32
    %c0_i32_0 = arith.constant 0 : i32
    return %arg0, %c0_i32 : i32, i32
  }
  func.func @transform_1(%arg0: i32) -> (i32, i32) {
    %c0_i32 = arith.constant 0 : i32
    %c0_i32_0 = arith.constant 0 : i32
    return %arg0, %c0_i32 : i32, i32
  }
  func.func @transform_2(%arg0: i32) -> (i32, i32) {
    %c0_i32 = arith.constant 0 : i32
    %c0_i32_0 = arith.constant 0 : i32
    %c0_i32_1 = arith.constant 0 : i32
    return %c0_i32, %c0_i32_0 : i32, i32
  }
}

module attributes {stable_mosaic.version = 11 : i64} {
  func.func @_kl_sum_kernel(%arg0: i32, %arg1: memref<8x128xf32, #tpu.memory_space<vmem>>, %arg2: memref<8x128xf32, #tpu.memory_space<vmem>>, %arg3: memref<1x1xf32, #tpu.memory_space<smem>>) attributes {dimension_semantics = [#tpu.dimension_semantics<arbitrary>], iteration_bounds = array<i64: 1>, scalar_prefetch = 0 : i64, scratch_operands = 0 : i64, tpu.core_type = #tpu.core_type<tc>, window_params = [{transform_indices = @transform_0, window_bounds = array<i64: 8, 128>}, {transform_indices = @transform_1, window_bounds = array<i64: 8, 128>}, {transform_indices = @transform_2, window_bounds = array<i64: 1, 1>}]} {
    %c0 = arith.constant 0 : index
    %c0_0 = arith.constant 0 : index
    %0 = vector.load %arg1[%c0, %c0_0] : memref<8x128xf32, #tpu.memory_space<vmem>>, vector<8x128xf32>
    %c0_1 = arith.constant 0 : index
    %c0_2 = arith.constant 0 : index
    %1 = vector.load %arg2[%c0_1, %c0_2] : memref<8x128xf32, #tpu.memory_space<vmem>>, vector<8x128xf32>
    %2 = arith.mulf %0, %0 : vector<8x128xf32>
    %3 = math.exp %1 : vector<8x128xf32>
    %4 = arith.addf %2, %3 : vector<8x128xf32>
    %cst = arith.constant 1.000000e+00 : f32
    %5 = vector.broadcast %cst : f32 to vector<8x128xf32>
    %6 = arith.subf %4, %5 : vector<8x128xf32>
    %7 = arith.subf %6, %1 : vector<8x128xf32>
    %8 = vector.shape_cast %7 : vector<8x128xf32> to vector<1x8x128xf32>
    %cst_3 = arith.constant dense<0.000000e+00> : vector<1xf32>
    %9 = vector.multi_reduction <add>, %8, %cst_3 [1, 2] : vector<1x8x128xf32> to vector<1xf32>
    %10 = vector.shape_cast %9 : vector<1xf32> to vector<1x1x1xf32>
    %11 = vector.extract %10[0, 0, 0] : f32 from vector<1x1x1xf32>
    %cst_4 = arith.constant 5.000000e-01 : f32
    %12 = arith.mulf %cst_4, %11 : f32
    %c0_i32 = arith.constant 0 : i32
    %13 = arith.cmpi eq, %arg0, %c0_i32 : i32
    %14 = arith.extui %13 : i1 to i32
    %c0_i32_5 = arith.constant 0 : i32
    %15 = arith.cmpi ne, %14, %c0_i32_5 : i32
    scf.if %15 {
      %c0_8 = arith.constant 0 : index
      %c0_9 = arith.constant 0 : index
      %19 = memref.load %arg3[%c0_8, %c0_9] : memref<1x1xf32, #tpu.memory_space<smem>>
      memref.store %12, %arg3[%c0_8, %c0_9] : memref<1x1xf32, #tpu.memory_space<smem>>
    } else {
    }
    %c0_i32_6 = arith.constant 0 : i32
    %16 = arith.cmpi sgt, %arg0, %c0_i32_6 : i32
    %17 = arith.extui %16 : i1 to i32
    %c0_i32_7 = arith.constant 0 : i32
    %18 = arith.cmpi ne, %17, %c0_i32_7 : i32
    scf.if %18 {
      %c0_8 = arith.constant 0 : index
      %c0_9 = arith.constant 0 : index
      %19 = memref.load %arg3[%c0_8, %c0_9] : memref<1x1xf32, #tpu.memory_space<smem>>
      %20 = arith.addf %19, %12 : f32
      %c0_10 = arith.constant 0 : index
      %c0_11 = arith.constant 0 : index
      %21 = memref.load %arg3[%c0_10, %c0_11] : memref<1x1xf32, #tpu.memory_space<smem>>
      memref.store %20, %arg3[%c0_10, %c0_11] : memref<1x1xf32, #tpu.memory_space<smem>>
    } else {
    }
    return
  }
  func.func @transform_0(%arg0: i32) -> (i32, i32) {
    %c0_i32 = arith.constant 0 : i32
    %c0_i32_0 = arith.constant 0 : i32
    return %arg0, %c0_i32 : i32, i32
  }
  func.func @transform_1(%arg0: i32) -> (i32, i32) {
    %c0_i32 = arith.constant 0 : i32
    %c0_i32_0 = arith.constant 0 : i32
    return %arg0, %c0_i32 : i32, i32
  }
  func.func @transform_2(%arg0: i32) -> (i32, i32) {
    %c0_i32 = arith.constant 0 : i32
    %c0_i32_0 = arith.constant 0 : i32
    %c0_i32_1 = arith.constant 0 : i32
    return %c0_i32, %c0_i32_0 : i32, i32
  }
}

</mosaic_0001>

<bundles_post_ra>
// kernel: lpips_with_discriminator_forward.12
= control target key start
LH: loop header
LB: loop body
LE: loop exit
PB: predicated region body
PF: predicated region fallthrough
CT: control target
= control target key end

     0   :  { %s1254_s12 = smov 0   ;;  %s1256_s13 = smov 0   ;;  %s1506_s0 = inlined_call_operand.vmem [shape: bf16[512,48], index: 0, kind: input, shape index: {}]   ;;  %s1507_s1 = inlined_call_operand.vmem [shape: bf16[48,64], index: 1, kind: input, shape index: {}]   ;;  %s1508_s2 = inlined_call_operand.vmem [shape: f32[1,64], index: 2, kind: input, shape index: {}]   ;;  %s1509_s3 = inlined_call_operand.vmem [shape: f32[512,64], index: 3, kind: output, shape index: {}]  }
   0x1   :  { %s1258_s14 = smov 0  }
   0x2 LB: > { %s32_s15 = sadd.s32 1, %s1227_s13  ;;  %p1059_p0 = scmp.ge.s32.totalorder %s1231_s14, 1  ;;  %s1231_s14 = sphi %s1258_s14, %s13_s14   ;;  %s1227_s13 = sphi %s1256_s13, %s1511_s13   ;;  %s1223_s12 = sphi %s1254_s12, %s1510_s12  }
   0x3   : > { %p34_p1 = scmp.ge.s32.totalorder %s32_s15, 2  ;;  %p188_p2 = scmp.lt.s32.totalorder %s1231_s14, 3 }
   0x5   : > { %s1513_s15 = smov (%p34_p1, %s32_s15), 0  ;;  %p189_p3 = pnand %p1059_p0, %p188_p2 }
   0x6   : > { %v1190_v0 = vld [vmem:[%s1507_s1] sm:$0xff] (!%p189_p3)   ;;  %s1060_s18 = sshll.u32 (!%p189_p3), %s1223_s12, 5  ;;  %v1191_v1 = vld [vmem:[%s1507_s1 + $0x8] sm:$0xff] (!%p189_p3)   ;;  %vm264_vm0 = vcmask (!%p189_p3), 523264   ;;  %v1192_v2 = vld [vmem:[%s1507_s1 + $0x10] sm:$0xff] (!%p189_p3)   ;;  %v1233_v3 = vmov (!%p189_p3), 0.0  }
   0x7   : > { %192 = sbr.rel (%p189_p3) target bundleno = 286 (0x11e), region = 32  ;;  %p230_p4 = scmp.lt.s32.totalorder (!%p189_p3), %s1060_s18, 63  ;;  %1121 = vmatprep.subr.bf16.mxu0 (!%p189_p3), %v1190_v0  ;;  %1159 = vmatprep.subr.bf16.mxu1 (!%p189_p3), %v1190_v0  ;;  %267 = vst.msk [vmem:[#allocation2 + $0x10] sm:$0xff] (!%p189_p3), %vm264_vm0, %v1233_v3  ;;  %265 = vst.msk [vmem:[#allocation2] sm:$0xff] (!%p189_p3), %vm264_vm0, %v1233_v3  ;;  %vm465_vm1 = vcmask (!%p189_p3), 392192  }
   0x8   : > { %1122 = vmatpush3.bf16.msra.mxu0 (!%p189_p3), %v1190_v0  ;;  %1162 = vmatpush3.bf16.msra.mxu1 (!%p189_p3), %v1190_v0  ;;  %266 = vst.msk [vmem:[#allocation2 + $0x8] sm:$0xff] (!%p189_p3), %vm264_vm0, %v1233_v3  ;;  %268 = vst.msk [vmem:[#allocation2 + $0x18] sm:$0xff] (!%p189_p3), %vm264_vm0, %v1233_v3  ;;  %v1364_v48 = vld [vmem:[%s1508_s2] ss:$0 sm:$0xff] (!%p189_p3) }
   0x9   : > { %1123 = vmatprep.subr.bf16.mxu0 (!%p189_p3), %v1191_v1  ;;  %1160 = vmatprep.subr.bf16.mxu1 (!%p189_p3), %v1191_v1  ;;  %269 = vst.msk [vmem:[#allocation2 + $0x20] sm:$0xff] (!%p189_p3), %vm264_vm0, %v1233_v3  ;;  %270 = vst.msk [vmem:[#allocation2 + $0x28] sm:$0xff] (!%p189_p3), %vm264_vm0, %v1233_v3 }
   0xa   : > { %271 = vst.msk [vmem:[#allocation2 + $0x30] sm:$0xff] (!%p189_p3), %vm264_vm0, %v1233_v3  ;;  %272 = vst.msk [vmem:[#allocation2 + $0x38] sm:$0xff] (!%p189_p3), %vm264_vm0, %v1233_v3 }
   0xb   : > { %273 = vst.msk [vmem:[#allocation2 + $0x40] sm:$0xff] (!%p189_p3), %vm264_vm0, %v1233_v3  ;;  %274 = vst.msk [vmem:[#allocation2 + $0x48] sm:$0xff] (!%p189_p3), %vm264_vm0, %v1233_v3 }
   0xc   : > { %275 = vst.msk [vmem:[#allocation2 + $0x50] sm:$0xff] (!%p189_p3), %vm264_vm0, %v1233_v3  ;;  %276 = vst.msk [vmem:[#allocation2 + $0x58] sm:$0xff] (!%p189_p3), %vm264_vm0, %v1233_v3  ;;  %1124 = vmatpush3.bf16.msra.mxu0 (!%p189_p3), %v1191_v1  ;;  %1163 = vmatpush3.bf16.msra.mxu1 (!%p189_p3), %v1191_v1 }
   0xd   : > { %277 = vst.msk [vmem:[#allocation2 + $0x60] sm:$0xff] (!%p189_p3), %vm264_vm0, %v1233_v3  ;;  %278 = vst.msk [vmem:[#allocation2 + $0x68] sm:$0xff] (!%p189_p3), %vm264_vm0, %v1233_v3  ;;  %1125 = vmatprep.subr.bf16.mxu0 (!%p189_p3), %v1192_v2  ;;  %1161 = vmatprep.subr.bf16.mxu1 (!%p189_p3), %v1192_v2 }
   0xe   : > { %s1515_s18 = smov (!%p230_p4, %s1060_s18), 63  ;;  %279 = vst.msk [vmem:[#allocation2 + $0x70] sm:$0xff] %vm264_vm0, %v1233_v3  ;;  %280 = vst.msk [vmem:[#allocation2 + $0x78] sm:$0xff] %vm264_vm0, %v1233_v3  ;;  %v299_v20 = vld [vmem:[#allocation2 + $0x10] sm:$0xff]  ;;  %v297_v22 = vld [vmem:[#allocation2] sm:$0xff] }
   0xf   : > { %281 = vst.msk [vmem:[#allocation2 + $0x80] sm:$0xff] %vm264_vm0, %v1233_v3  ;;  %282 = vst.msk [vmem:[#allocation2 + $0x88] sm:$0xff] %vm264_vm0, %v1233_v3  ;;  %s1061_s23 = sshll.u32 %s1515_s18, 2  ;;  %v300_v26 = vld [vmem:[#allocation2 + $0x18] sm:$0xff]  ;;  %v298_v32 = vld [vmem:[#allocation2 + $0x8] sm:$0xff]  ;;  %s1063_s29 = sshll.u32 %s1515_s18, 3 }
  0x10   : > { %283 = vst.msk [vmem:[#allocation2 + $0x90] sm:$0xff] %vm264_vm0, %v1233_v3  ;;  %284 = vst.msk [vmem:[#allocation2 + $0x98] sm:$0xff] %vm264_vm0, %v1233_v3  ;;  %s1319_s26 = scalar_lea.vmem %s1506_s0, %s1061_s23  ;;  %1126 = vmatpush3.bf16.msra.mxu0 %v1192_v2  ;;  %1164 = vmatpush3.bf16.msra.mxu1 %v1192_v2  ;;  %v301_v46 = vld [vmem:[#allocation2 + $0x20] sm:$0xff]  ;;  %v302_v57 = vld [vmem:[#allocation2 + $0x28] sm:$0xff]  ;;  %s1378_s5 = scalar_lea.vmem %s1509_s3, %s1063_s29 }
  0x11   : > { %285 = vst.msk [vmem:[#allocation2 + $0xa0] sm:$0xff] %vm264_vm0, %v1233_v3  ;;  %286 = vst.msk [vmem:[#allocation2 + $0xa8] sm:$0xff] %vm264_vm0, %v1233_v3  ;;  %v1193_v4 = vld [vmem:[%s1319_s26] sm:$0xff]   ;;  %v1195_v6 = vld [vmem:[%s1319_s26 + $0x8] sm:$0xff]  }
  0x12   : > { %287 = vst.msk [vmem:[#allocation2 + $0xb0] sm:$0xff] %vm264_vm0, %v1233_v3  ;;  %288 = vst.msk [vmem:[#allocation2 + $0xb8] sm:$0xff] %vm264_vm0, %v1233_v3  ;;  %v1194_v5 = vld [vmem:[%s1319_s26 + $0x40] sm:$0xff]   ;;  %1127 = vmatprep.mubr.msk.bf16.mxu0 %vm465_vm1, %v1193_v4  ;;  %v1196_v7 = vld [vmem:[%s1319_s26 + $0x48] sm:$0xff]  }
  0x13   : > { %289 = vst.msk [vmem:[#allocation2 + $0xc0] sm:$0xff] %vm264_vm0, %v1233_v3  ;;  %290 = vst.msk [vmem:[#allocation2 + $0xc8] sm:$0xff] %vm264_vm0, %v1233_v3  ;;  %1143 = vmatprep.mubr.msk.bf16.mxu1 %vm465_vm1, %v1194_v5  ;;  %v1197_v8 = vld [vmem:[%s1319_s26 + $0x10] sm:$0xff]   ;;  %1128 = vmatmul.mubr.msk.bf16.vlgmr.msra.gmra.mrb[0].mxu0 %vm465_vm1, %v1195_v6  ;;  %v1199_v10 = vld [vmem:[%s1319_s26 + $0x18] sm:$0xff]  }
  0x14   : > { %291 = vst.msk [vmem:[#allocation2 + $0xd0] sm:$0xff] %vm264_vm0, %v1233_v3  ;;  %292 = vst.msk [vmem:[#allocation2 + $0xd8] sm:$0xff] %vm264_vm0, %v1233_v3  ;;  %v1198_v9 = vld [vmem:[%s1319_s26 + $0x50] sm:$0xff]   ;;  %1144 = vmatmul.mubr.msk.bf16.vlgmr.msra.gmra.mrb[0].mxu1 %vm465_vm1, %v1196_v7  ;;  %1131 = vmatprep.mubr.msk.bf16.mxu0 %vm465_vm1, %v1197_v8  ;;  %v1200_v11 = vld [vmem:[%s1319_s26 + $0x58] sm:$0xff]  }
  0x15   : > { %293 = vst.msk [vmem:[#allocation2 + $0xe0] sm:$0xff] %vm264_vm0, %v1233_v3  ;;  %294 = vst.msk [vmem:[#allocation2 + $0xe8] sm:$0xff] %vm264_vm0, %v1233_v3  ;;  %1147 = vmatprep.mubr.msk.bf16.mxu1 %vm465_vm1, %v1198_v9  ;;  %v1201_v12 = vld [vmem:[%s1319_s26 + $0x20] sm:$0xff]   ;;  %v1203_v14 = vld [vmem:[%s1319_s26 + $0x28] sm:$0xff]  }
  0x16   : > { %295 = vst.msk [vmem:[#allocation2 + $0xf0] sm:$0xff] %vm264_vm0, %v1233_v3  ;;  %296 = vst.msk [vmem:[#allocation2 + $0xf8] sm:$0xff] %vm264_vm0, %v1233_v3  ;;  %v1202_v13 = vld [vmem:[%s1319_s26 + $0x60] sm:$0xff]   ;;  %v1204_v15 = vld [vmem:[%s1319_s26 + $0x68] sm:$0xff]  }
  0x17   : > { %v1205_v16 = vld [vmem:[%s1319_s26 + $0x30] sm:$0xff]   ;;  %v1207_v18 = vld [vmem:[%s1319_s26 + $0x38] sm:$0xff]   ;;  %v313_v23 = vld [vmem:[#allocation2 + $0x80] sm:$0xff] }
  0x18   : > { %v1206_v17 = vld [vmem:[%s1319_s26 + $0x70] sm:$0xff]   ;;  %v1208_v19 = vld [vmem:[%s1319_s26 + $0x78] sm:$0xff]   ;;  %v314_v33 = vld [vmem:[#allocation2 + $0x88] sm:$0xff] }
  0x19   : > { %v315_v21 = vld [vmem:[#allocation2 + $0x90] sm:$0xff]  ;;  %v316_v27 = vld [vmem:[#allocation2 + $0x98] sm:$0xff]  ;;  %v317_v47 = vld [vmem:[#allocation2 + $0xa0] sm:$0xff] }
  0x1a   : > { %v303_v44 = vld [vmem:[#allocation2 + $0x30] sm:$0xff]  ;;  %v304_v51 = vld [vmem:[#allocation2 + $0x38] sm:$0xff]  ;;  %v318_v58 = vld [vmem:[#allocation2 + $0xa8] sm:$0xff] }
  0x1b   : > { %1132 = vmatmul.mubr.msk.bf16.gmra.mrb[4].mxu0 %vm465_vm1, %v1199_v10  ;;  %v319_v45 = vld [vmem:[#allocation2 + $0xb0] sm:$0xff]  ;;  %v320_v52 = vld [vmem:[#allocation2 + $0xb8] sm:$0xff] }
  0x1c   : > { %1148 = vmatmul.mubr.msk.bf16.gmra.mrb[4].mxu1 %vm465_vm1, %v1200_v11  ;;  %1135 = vmatprep.mubr.msk.bf16.mxu0 %vm465_vm1, %v1201_v12 }
  0x1d   : > { %1151 = vmatprep.mubr.msk.bf16.mxu1 %vm465_vm1, %v1202_v13 }
  0x23   : > { %1136 = vmatmul.mubr.msk.bf16.gmra.mrb[8].mxu0 %vm465_vm1, %v1203_v14 }
  0x24   : > { %1152 = vmatmul.mubr.msk.bf16.gmra.mrb[8].mxu1 %vm465_vm1, %v1204_v15  ;;  %1139 = vmatprep.mubr.msk.bf16.mxu0 %vm465_vm1, %v1205_v16 }
  0x25   : > { %1155 = vmatprep.mubr.msk.bf16.mxu1 %vm465_vm1, %v1206_v17 }
  0x2b   : > { %1140 = vmatmul.mubr.msk.bf16.gmra.mrb[12].mxu0 %vm465_vm1, %v1207_v18 }
  0x2c   : > { %1156 = vmatmul.mubr.msk.bf16.gmra.mrb[12].mxu1 %vm465_vm1, %v1208_v19 }
  0xe6   : > { %v1129_v24 = vpop.f32.mrb[0].mxu0 }
  0xe7   : > { %v1145_v25 = vpop.f32.mrb[0].mxu1  ;;  %v677_v28 = vadd.f32 %v1129_v24, %v299_v20  ;;  %v548_v30 = vpop.f32.mrb[1].mxu0 }
  0xe8   : > { %v693_v29 = vadd.f32 %v1145_v25, %v315_v21  ;;  %v612_v31 = vpop.f32.mrb[1].mxu1  ;;  %v675_v34 = vadd.f32 %v548_v30, %v297_v22  ;;  %v1130_v36 = vpop.f32.mrb[2].mxu0 }
  0xe9   : > { %v691_v35 = vadd.f32 %v612_v31, %v313_v23  ;;  %v1146_v37 = vpop.f32.mrb[2].mxu1  ;;  %710 = vst.msk [vmem:[#allocation2 + $0x10] sm:$0xff] %vm264_vm0, %v677_v28  ;;  %v678_v38 = vadd.f32 %v1130_v36, %v300_v26  ;;  %v551_v40 = vpop.f32.mrb[3].mxu0  ;;  %v323_v31 = vld [vmem:[#allocation2 + $0xd0] sm:$0xff] }
  0xea   : > { %726 = vst.msk [vmem:[#allocation2 + $0x90] sm:$0xff] %vm264_vm0, %v693_v29  ;;  %v694_v39 = vadd.f32 %v1146_v37, %v316_v27  ;;  %v615_v41 = vpop.f32.mrb[3].mxu1  ;;  %708 = vst.msk [vmem:[#allocation2] sm:$0xff] %vm264_vm0, %v675_v34  ;;  %v676_v42 = vadd.f32 %v551_v40, %v298_v32  ;;  %v307_v29 = vld [vmem:[#allocation2 + $0x50] sm:$0xff] }
  0xeb   : > { %724 = vst.msk [vmem:[#allocation2 + $0x80] sm:$0xff] %vm264_vm0, %v691_v35  ;;  %v692_v43 = vadd.f32 %v615_v41, %v314_v33  ;;  %711 = vst.msk [vmem:[#allocation2 + $0x18] sm:$0xff] %vm264_vm0, %v678_v38 }
  0xec   : > { %727 = vst.msk [vmem:[#allocation2 + $0x98] sm:$0xff] %vm264_vm0, %v694_v39  ;;  %709 = vst.msk [vmem:[#allocation2 + $0x8] sm:$0xff] %vm264_vm0, %v676_v42 }
  0xed   : > { %725 = vst.msk [vmem:[#allocation2 + $0x88] sm:$0xff] %vm264_vm0, %v692_v43 }
  0xee   : > { %v1133_v49 = vpop.f32.mrb[4].mxu0 }
  0xef   : > { %v1149_v50 = vpop.f32.mrb[4].mxu1  ;;  %v681_v53 = vadd.f32 %v1133_v49, %v303_v44  ;;  %v564_v55 = vpop.f32.mrb[5].mxu0 }
  0xf0   : > { %v697_v54 = vadd.f32 %v1149_v50, %v319_v45  ;;  %v628_v56 = vpop.f32.mrb[5].mxu1  ;;  %v745_v59 = vld [vmem:[#allocation2 + $0x10] sm:$0xff]  ;;  %v679_v61 = vadd.f32 %v564_v55, %v301_v46  ;;  %v1134_v63 = vpop.f32.mrb[6].mxu0 }
  0xf1   : > { %v761_v60 = vld [vmem:[#allocation2 + $0x90] sm:$0xff]  ;;  %v695_v62 = vadd.f32 %v628_v56, %v317_v47  ;;  %v1150_v0 = vpop.f32.mrb[6].mxu1  ;;  %v784_v1 = vadd.f32 %v1364_v48, %v745_v59  ;;  %v743_v3 = vld [vmem:[#allocation2] sm:$0xff]  ;;  %714 = vst.msk [vmem:[#allocation2 + $0x30] sm:$0xff] %vm264_vm0, %v681_v53  ;;  %v682_v5 = vadd.f32 %v1134_v63, %v304_v51  ;;  %v567_v7 = vpop.f32.mrb[7].mxu0 }
  0xf2   : > { %v800_v2 = vadd.f32 %v1364_v48, %v761_v60  ;;  %v759_v4 = vld [vmem:[#allocation2 + $0x80] sm:$0xff]  ;;  %730 = vst.msk [vmem:[#allocation2 + $0xb0] sm:$0xff] %vm264_vm0, %v697_v54  ;;  %v698_v6 = vadd.f32 %v1150_v0, %v320_v52  ;;  %v631_v8 = vpop.f32.mrb[7].mxu1  ;;  %v782_v9 = vadd.f32 %v1364_v48, %v743_v3  ;;  %v746_v11 = vld [vmem:[#allocation2 + $0x18] sm:$0xff]  ;;  %712 = vst.msk [vmem:[#allocation2 + $0x20] sm:$0xff] %vm264_vm0, %v679_v61 }
  0xf3   : > { %v798_v10 = vadd.f32 %v1364_v48, %v759_v4  ;;  %v762_v12 = vld [vmem:[#allocation2 + $0x98] sm:$0xff]  ;;  %728 = vst.msk [vmem:[#allocation2 + $0xa0] sm:$0xff] %vm264_vm0, %v695_v62  ;;  %v680_v13 = vadd.f32 %v567_v7, %v302_v57  ;;  %v696_v14 = vadd.f32 %v631_v8, %v318_v58  ;;  %vm816_vm2 = vcmp.ge.f32.partialorder %v784_v1, 0.0  ;;  %715 = vst.msk [vmem:[#allocation2 + $0x38] sm:$0xff] %vm264_vm0, %v682_v5  ;;  %v744_v23 = vld [vmem:[#allocation2 + $0x8] sm:$0xff] }
  0xf4   : > { %v848_v15 = vmul.f32 0.2, %v784_v1  ;;  %vm832_vm3 = vcmp.ge.f32.partialorder %v800_v2, 0.0  ;;  %v864_v16 = vmul.f32 0.2, %v800_v2  ;;  %731 = vst.msk [vmem:[#allocation2 + $0xb8] sm:$0xff] %vm264_vm0, %v698_v6  ;;  %v785_v21 = vadd.f32 %v1364_v48, %v746_v11 }
  0xf5   : > { %vm814_vm4 = vcmp.ge.f32.partialorder %v782_v9, 0.0  ;;  %v846_v17 = vmul.f32 0.2, %v782_v9  ;;  %vm830_vm5 = vcmp.ge.f32.partialorder %v798_v10, 0.0  ;;  %v862_v18 = vmul.f32 0.2, %v798_v10 }
  0xf6   : > { %713 = vst.msk [vmem:[#allocation2 + $0x28] sm:$0xff] %vm264_vm0, %v680_v13  ;;  %729 = vst.msk [vmem:[#allocation2 + $0xa8] sm:$0xff] %vm264_vm0, %v696_v14  ;;  %v880_v19 = vsel %vm816_vm2, %v784_v1, %v848_v15  ;;  %v896_v20 = vsel %vm832_vm3, %v800_v2, %v864_v16  ;;  %v801_v22 = vadd.f32 %v1364_v48, %v762_v12  ;;  %v760_v24 = vld [vmem:[#allocation2 + $0x88] sm:$0xff]  ;;  %v1137_v30 = vpop.f32.mrb[8].mxu0  ;;  %vm817_vm6 = vcmp.ge.f32.partialorder %v785_v21, 0.0  ;;  %v305_v62 = vld [vmem:[#allocation2 + $0x40] sm:$0xff] }
  0xf7   : > { %912 = vst.msk [vmem:[%s1378_s5 + $0x10] sm:$0xff] %vm264_vm0, %v880_v19  ;;  %928 = vst.msk [vmem:[%s1378_s5 + $0x90] sm:$0xff] %vm264_vm0, %v896_v20  ;;  %v878_v25 = vsel %vm814_vm4, %v782_v9, %v846_v17  ;;  %v894_v26 = vsel %vm830_vm5, %v798_v10, %v862_v18  ;;  %v783_v27 = vadd.f32 %v1364_v48, %v744_v23  ;;  %v1153_v32 = vpop.f32.mrb[8].mxu1  ;;  %v849_v33 = vmul.f32 0.2, %v785_v21  ;;  %v580_v44 = vpop.f32.mrb[9].mxu0 }
  0xf8   : > { %v799_v28 = vadd.f32 %v1364_v48, %v760_v24  ;;  %910 = vst.msk [vmem:[%s1378_s5] sm:$0xff] %vm264_vm0, %v878_v25  ;;  %926 = vst.msk [vmem:[%s1378_s5 + $0x80] sm:$0xff] %vm264_vm0, %v894_v26  ;;  %vm833_vm7 = vcmp.ge.f32.partialorder %v801_v22, 0.0  ;;  %v865_v34 = vmul.f32 0.2, %v801_v22  ;;  %v749_v39 = vld [vmem:[#allocation2 + $0x30] sm:$0xff]  ;;  %v685_v42 = vadd.f32 %v1137_v30, %v307_v29 }
  0xf9   : > { %vm815_vm8 = vcmp.ge.f32.partialorder %v783_v27, 0.0  ;;  %v847_v35 = vmul.f32 0.2, %v783_v27  ;;  %v881_v37 = vsel %vm817_vm6, %v785_v21, %v849_v33  ;;  %v765_v40 = vld [vmem:[#allocation2 + $0xb0] sm:$0xff]  ;;  %v747_v41 = vld [vmem:[#allocation2 + $0x20] sm:$0xff]  ;;  %v701_v43 = vadd.f32 %v1153_v32, %v323_v31  ;;  %v1396_v45 = vpop.f32.mrb[9].mxu1 }
  0xfa   : > { %vm831_vm9 = vcmp.ge.f32.partialorder %v799_v28, 0.0  ;;  %v863_v36 = vmul.f32 0.2, %v799_v28  ;;  %v897_v38 = vsel %vm833_vm7, %v801_v22, %v865_v34  ;;  %913 = vst.msk [vmem:[%s1378_s5 + $0x18] sm:$0xff] %vm264_vm0, %v881_v37  ;;  %v788_v49 = vadd.f32 %v1364_v48, %v749_v39  ;;  %v763_v51 = vld [vmem:[#allocation2 + $0xa0] sm:$0xff]  ;;  %v750_v52 = vld [vmem:[#allocation2 + $0x38] sm:$0xff] }
  0xfb   : > { %929 = vst.msk [vmem:[%s1378_s5 + $0x98] sm:$0xff] %vm264_vm0, %v897_v38  ;;  %v879_v46 = vsel %vm815_vm8, %v783_v27, %v847_v35  ;;  %v804_v50 = vadd.f32 %v1364_v48, %v765_v40  ;;  %v766_v53 = vld [vmem:[#allocation2 + $0xb8] sm:$0xff]  ;;  %v1138_v54 = vpop.f32.mrb[10].mxu0  ;;  %v1154_v55 = vpop.f32.mrb[10].mxu1  ;;  %v786_v56 = vadd.f32 %v1364_v48, %v747_v41  ;;  %v802_v57 = vadd.f32 %v1364_v48, %v763_v51  ;;  %v321_v3 = vld [vmem:[#allocation2 + $0xc0] sm:$0xff]  ;;  %v306_v11 = vld [vmem:[#allocation2 + $0x48] sm:$0xff] }
  0xfc   : > { %v895_v47 = vsel %vm831_vm9, %v799_v28, %v863_v36  ;;  %911 = vst.msk [vmem:[%s1378_s5 + $0x8] sm:$0xff] %vm264_vm0, %v879_v46  ;;  %v789_v58 = vadd.f32 %v1364_v48, %v750_v52  ;;  %v805_v59 = vadd.f32 %v1364_v48, %v766_v53  ;;  %718 = vst.msk [vmem:[#allocation2 + $0x50] sm:$0xff] %vm264_vm0, %v685_v42  ;;  %v583_v63 = vpop.f32.mrb[11].mxu0  ;;  %v647_v0 = vpop.f32.mrb[11].mxu1  ;;  %vm820_vm10 = vcmp.ge.f32.partialorder %v788_v49, 0.0  ;;  %v308_v4 = vld [vmem:[#allocation2 + $0x58] sm:$0xff] }
  0xfd   : > { %927 = vst.msk [vmem:[%s1378_s5 + $0x88] sm:$0xff] %vm264_vm0, %v895_v47  ;;  %v748_v60 = vld [vmem:[#allocation2 + $0x28] sm:$0xff]  ;;  %734 = vst.msk [vmem:[#allocation2 + $0xd0] sm:$0xff] %vm264_vm0, %v701_v43  ;;  %v852_v1 = vmul.f32 0.2, %v788_v49  ;;  %vm836_vm11 = vcmp.ge.f32.partialorder %v804_v50, 0.0  ;;  %v683_v23 = vadd.f32 %v580_v44, %v305_v62  ;;  %v699_v30 = vadd.f32 %v1396_v45, %v321_v3 }
  0xfe   : > { %v764_v61 = vld [vmem:[#allocation2 + $0xa8] sm:$0xff]  ;;  %v868_v2 = vmul.f32 0.2, %v804_v50  ;;  %v324_v5 = vld [vmem:[#allocation2 + $0xd8] sm:$0xff]  ;;  %vm818_vm12 = vcmp.ge.f32.partialorder %v786_v56, 0.0  ;;  %vm834_vm13 = vcmp.ge.f32.partialorder %v802_v57, 0.0  ;;  %v787_v21 = vadd.f32 %v1364_v48, %v748_v60 }
  0xff   : > { %v850_v6 = vmul.f32 0.2, %v786_v56  ;;  %v866_v7 = vmul.f32 0.2, %v802_v57  ;;  %v884_v8 = vsel %vm820_vm10, %v788_v49, %v852_v1  ;;  %vm821_vm14 = vcmp.ge.f32.partialorder %v789_v58, 0.0  ;;  %v1141_v12 = vpop.f32.mrb[12].mxu0 }
 0x100   : > { %v900_v9 = vsel %vm836_vm11, %v804_v50, %v868_v2  ;;  %v853_v10 = vmul.f32 0.2, %v789_v58  ;;  %v1157_v13 = vpop.f32.mrb[12].mxu1  ;;  %916 = vst.msk [vmem:[%s1378_s5 + $0x30] sm:$0xff] %vm264_vm0, %v884_v8  ;;  %vm837_vm15 = vcmp.ge.f32.partialorder %v805_v59, 0.0  ;;  %v322_v17 = vld [vmem:[#allocation2 + $0xc8] sm:$0xff]  ;;  %v803_v22 = vadd.f32 %v1364_v48, %v764_v61 }
 0x101   : > { %932 = vst.msk [vmem:[%s1378_s5 + $0xb0] sm:$0xff] %vm264_vm0, %v900_v9  ;;  %v882_v14 = vsel %vm818_vm12, %v786_v56, %v850_v6  ;;  %v898_v15 = vsel %vm834_vm13, %v802_v57, %v866_v7  ;;  %v869_v16 = vmul.f32 0.2, %v805_v59  ;;  %v596_v18 = vpop.f32.mrb[13].mxu0  ;;  %v660_v19 = vpop.f32.mrb[13].mxu1  ;;  %v311_v24 = vld [vmem:[#allocation2 + $0x70] sm:$0xff]  ;;  %v686_v31 = vadd.f32 %v1138_v54, %v308_v4 }
 0x102   : > { %914 = vst.msk [vmem:[%s1378_s5 + $0x20] sm:$0xff] %vm264_vm0, %v882_v14  ;;  %930 = vst.msk [vmem:[%s1378_s5 + $0xa0] sm:$0xff] %vm264_vm0, %v898_v15  ;;  %v885_v20 = vsel %vm821_vm14, %v789_v58, %v853_v10  ;;  %v327_v25 = vld [vmem:[#allocation2 + $0xf0] sm:$0xff]  ;;  %v309_v26 = vld [vmem:[#allocation2 + $0x60] sm:$0xff]  ;;  %v1142_v27 = vpop.f32.mrb[14].mxu0  ;;  %v1158_v28 = vpop.f32.mrb[14].mxu1  ;;  %v702_v32 = vadd.f32 %v1154_v55, %v324_v5  ;;  %v684_v42 = vadd.f32 %v583_v63, %v306_v11 }
 0x103   : > { %917 = vst.msk [vmem:[%s1378_s5 + $0x38] sm:$0xff] %vm264_vm0, %v885_v20  ;;  %v901_v29 = vsel %vm837_vm15, %v805_v59, %v869_v16  ;;  %v325_v33 = vld [vmem:[#allocation2 + $0xe0] sm:$0xff]  ;;  %v312_v34 = vld [vmem:[#allocation2 + $0x78] sm:$0xff]  ;;  %v599_v36 = vpop.f32.mrb[15].mxu0  ;;  %v663_v37 = vpop.f32.mrb[15].mxu1  ;;  %vm819_vm1 = vcmp.ge.f32.partialorder %v787_v21, 0.0  ;;  %v700_v43 = vadd.f32 %v647_v0, %v322_v17  ;;  %v689_v44 = vadd.f32 %v1141_v12, %v311_v24 }
 0x104   : > { %v328_v35 = vld [vmem:[#allocation2 + $0xf8] sm:$0xff]  ;;  %933 = vst.msk [vmem:[%s1378_s5 + $0xb8] sm:$0xff] %vm264_vm0, %v901_v29  ;;  %v851_v38 = vmul.f32 0.2, %v787_v21  ;;  %vm835_vm2 = vcmp.ge.f32.partialorder %v803_v22, 0.0  ;;  %716 = vst.msk [vmem:[#allocation2 + $0x40] sm:$0xff] %vm264_vm0, %v683_v23  ;;  %v705_v45 = vadd.f32 %v1157_v13, %v327_v25  ;;  %v687_v53 = vadd.f32 %v596_v18, %v309_v26 }
 0x105   : > { %v867_v39 = vmul.f32 0.2, %v803_v22  ;;  %v753_v40 = vld [vmem:[#allocation2 + $0x50] sm:$0xff]  ;;  %732 = vst.msk [vmem:[#allocation2 + $0xc0] sm:$0xff] %vm264_vm0, %v699_v30  ;;  %719 = vst.msk [vmem:[#allocation2 + $0x58] sm:$0xff] %vm264_vm0, %v686_v31  ;;  %v310_v51 = vld [vmem:[#allocation2 + $0x68] sm:$0xff]  ;;  %v703_v54 = vadd.f32 %v660_v19, %v325_v33  ;;  %v690_v55 = vadd.f32 %v1142_v27, %v312_v34  ;;  %v706_v56 = vadd.f32 %v1158_v28, %v328_v35 }
 0x106   : > { %v769_v41 = vld [vmem:[#allocation2 + $0xd0] sm:$0xff]  ;;  %735 = vst.msk [vmem:[#allocation2 + $0xd8] sm:$0xff] %vm264_vm0, %v702_v32  ;;  %v883_v46 = vsel %vm819_vm1, %v787_v21, %v851_v38  ;;  %v792_v49 = vadd.f32 %v1364_v48, %v753_v40  ;;  %v326_v52 = vld [vmem:[#allocation2 + $0xe8] sm:$0xff]  ;;  %717 = vst.msk [vmem:[#allocation2 + $0x48] sm:$0xff] %vm264_vm0, %v684_v42  ;;  %v688_v59 = vadd.f32 %v599_v36, %v310_v51 }
 0x107   : > { %v899_v47 = vsel %vm835_vm2, %v803_v22, %v867_v39  ;;  %v808_v50 = vadd.f32 %v1364_v48, %v769_v41  ;;  %915 = vst.msk [vmem:[%s1378_s5 + $0x28] sm:$0xff] %vm264_vm0, %v883_v46  ;;  %733 = vst.msk [vmem:[#allocation2 + $0xc8] sm:$0xff] %vm264_vm0, %v700_v43  ;;  %v704_v60 = vadd.f32 %v663_v37, %v326_v52 }
 0x108   : > { %931 = vst.msk [vmem:[%s1378_s5 + $0xa8] sm:$0xff] %vm264_vm0, %v899_v47  ;;  %722 = vst.msk [vmem:[#allocation2 + $0x70] sm:$0xff] %vm264_vm0, %v689_v44  ;;  %vm824_vm3 = vcmp.ge.f32.partialorder %v792_v49, 0.0  ;;  %v856_v57 = vmul.f32 0.2, %v792_v49 }
 0x109   : > { %738 = vst.msk [vmem:[#allocation2 + $0xf0] sm:$0xff] %vm264_vm0, %v705_v45  ;;  %vm840_vm4 = vcmp.ge.f32.partialorder %v808_v50, 0.0  ;;  %v872_v58 = vmul.f32 0.2, %v808_v50  ;;  %720 = vst.msk [vmem:[#allocation2 + $0x60] sm:$0xff] %vm264_vm0, %v687_v53 }
 0x10a   : > { %736 = vst.msk [vmem:[#allocation2 + $0xe0] sm:$0xff] %vm264_vm0, %v703_v54  ;;  %723 = vst.msk [vmem:[#allocation2 + $0x78] sm:$0xff] %vm264_vm0, %v690_v55  ;;  %v888_v61 = vsel %vm824_vm3, %v792_v49, %v856_v57 }
 0x10b   : > { %739 = vst.msk [vmem:[#allocation2 + $0xf8] sm:$0xff] %vm264_vm0, %v706_v56  ;;  %v904_v62 = vsel %vm840_vm4, %v808_v50, %v872_v58  ;;  %920 = vst.msk [vmem:[%s1378_s5 + $0x50] sm:$0xff] %vm264_vm0, %v888_v61  ;;  %v751_v63 = vld [vmem:[#allocation2 + $0x40] sm:$0xff] }
 0x10c   : > { %936 = vst.msk [vmem:[%s1378_s5 + $0xd0] sm:$0xff] %vm264_vm0, %v904_v62  ;;  %721 = vst.msk [vmem:[#allocation2 + $0x68] sm:$0xff] %vm264_vm0, %v688_v59  ;;  %v790_v0 = vadd.f32 %v1364_v48, %v751_v63  ;;  %v767_v1 = vld [vmem:[#allocation2 + $0xc0] sm:$0xff]  ;;  %v754_v2 = vld [vmem:[#allocation2 + $0x58] sm:$0xff] }
 0x10d   : > { %737 = vst.msk [vmem:[#allocation2 + $0xe8] sm:$0xff] %vm264_vm0, %v704_v60  ;;  %v770_v3 = vld [vmem:[#allocation2 + $0xd8] sm:$0xff]  ;;  %v806_v4 = vadd.f32 %v1364_v48, %v767_v1  ;;  %v793_v5 = vadd.f32 %v1364_v48, %v754_v2  ;;  %v752_v8 = vld [vmem:[#allocation2 + $0x48] sm:$0xff] }
 0x10e   : > { %v809_v6 = vadd.f32 %v1364_v48, %v770_v3  ;;  %vm822_vm5 = vcmp.ge.f32.partialorder %v790_v0, 0.0  ;;  %v854_v7 = vmul.f32 0.2, %v790_v0  ;;  %v768_v9 = vld [vmem:[#allocation2 + $0xc8] sm:$0xff]  ;;  %v791_v15 = vadd.f32 %v1364_v48, %v752_v8 }
 0x10f   : > { %v757_v10 = vld [vmem:[#allocation2 + $0x70] sm:$0xff]  ;;  %vm838_vm6 = vcmp.ge.f32.partialorder %v806_v4, 0.0  ;;  %v870_v11 = vmul.f32 0.2, %v806_v4  ;;  %vm825_vm7 = vcmp.ge.f32.partialorder %v793_v5, 0.0  ;;  %v807_v19 = vadd.f32 %v1364_v48, %v768_v9 }
 0x110   : > { %v857_v12 = vmul.f32 0.2, %v793_v5  ;;  %v886_v13 = vsel %vm822_vm5, %v790_v0, %v854_v7  ;;  %vm841_vm8 = vcmp.ge.f32.partialorder %v809_v6, 0.0  ;;  %v873_v14 = vmul.f32 0.2, %v809_v6  ;;  %v773_v16 = vld [vmem:[#allocation2 + $0xf0] sm:$0xff] }
 0x111   : > { %918 = vst.msk [vmem:[%s1378_s5 + $0x40] sm:$0xff] %vm264_vm0, %v886_v13  ;;  %v902_v17 = vsel %vm838_vm6, %v806_v4, %v870_v11  ;;  %v796_v20 = vadd.f32 %v1364_v48, %v757_v10  ;;  %v755_v21 = vld [vmem:[#allocation2 + $0x60] sm:$0xff]  ;;  %vm823_vm9 = vcmp.ge.f32.partialorder %v791_v15, 0.0  ;;  %v855_v23 = vmul.f32 0.2, %v791_v15  ;;  %v758_v26 = vld [vmem:[#allocation2 + $0x78] sm:$0xff] }
 0x112   : > { %v889_v18 = vsel %vm825_vm7, %v793_v5, %v857_v12  ;;  %934 = vst.msk [vmem:[%s1378_s5 + $0xc0] sm:$0xff] %vm264_vm0, %v902_v17  ;;  %v905_v22 = vsel %vm841_vm8, %v809_v6, %v873_v14  ;;  %v812_v24 = vadd.f32 %v1364_v48, %v773_v16  ;;  %v771_v25 = vld [vmem:[#allocation2 + $0xe0] sm:$0xff]  ;;  %v774_v27 = vld [vmem:[#allocation2 + $0xf8] sm:$0xff]  ;;  %vm839_vm10 = vcmp.ge.f32.partialorder %v807_v19, 0.0 }
 0x113   : > { %921 = vst.msk [vmem:[%s1378_s5 + $0x58] sm:$0xff] %vm264_vm0, %v889_v18  ;;  %937 = vst.msk [vmem:[%s1378_s5 + $0xd8] sm:$0xff] %vm264_vm0, %v905_v22  ;;  %v871_v28 = vmul.f32 0.2, %v807_v19  ;;  %vm828_vm11 = vcmp.ge.f32.partialorder %v796_v20, 0.0  ;;  %v887_v30 = vsel %vm823_vm9, %v791_v15, %v855_v23  ;;  %v794_v32 = vadd.f32 %v1364_v48, %v755_v21  ;;  %v756_v37 = vld [vmem:[#allocation2 + $0x68] sm:$0xff] }
 0x114   : > { %v860_v29 = vmul.f32 0.2, %v796_v20  ;;  %vm844_vm12 = vcmp.ge.f32.partialorder %v812_v24, 0.0  ;;  %v876_v31 = vmul.f32 0.2, %v812_v24  ;;  %919 = vst.msk [vmem:[%s1378_s5 + $0x48] sm:$0xff] %vm264_vm0, %v887_v30  ;;  %v810_v35 = vadd.f32 %v1364_v48, %v771_v25 }
 0x115   : > { %v903_v33 = vsel %vm839_vm10, %v807_v19, %v871_v28  ;;  %v797_v36 = vadd.f32 %v1364_v48, %v758_v26  ;;  %vm826_vm13 = vcmp.ge.f32.partialorder %v794_v32, 0.0  ;;  %v858_v39 = vmul.f32 0.2, %v794_v32  ;;  %v772_v41 = vld [vmem:[#allocation2 + $0xe8] sm:$0xff] }
 0x116   : > { %v892_v34 = vsel %vm828_vm11, %v796_v20, %v860_v29  ;;  %935 = vst.msk [vmem:[%s1378_s5 + $0xc8] sm:$0xff] %vm264_vm0, %v903_v33  ;;  %v908_v38 = vsel %vm844_vm12, %v812_v24, %v876_v31  ;;  %v813_v40 = vadd.f32 %v1364_v48, %v774_v27  ;;  %vm842_vm14 = vcmp.ge.f32.partialorder %v810_v35, 0.0 }
 0x117   : > { %924 = vst.msk [vmem:[%s1378_s5 + $0x70] sm:$0xff] %vm264_vm0, %v892_v34  ;;  %940 = vst.msk [vmem:[%s1378_s5 + $0xf0] sm:$0xff] %vm264_vm0, %v908_v38  ;;  %v874_v42 = vmul.f32 0.2, %v810_v35  ;;  %vm829_vm15 = vcmp.ge.f32.partialorder %v797_v36, 0.0  ;;  %v890_v44 = vsel %vm826_vm13, %v794_v32, %v858_v39  ;;  %v795_v46 = vadd.f32 %v1364_v48, %v756_v37 }
 0x118   : > { %v861_v43 = vmul.f32 0.2, %v797_v36  ;;  %vm845_vm1 = vcmp.ge.f32.partialorder %v813_v40, 0.0  ;;  %v877_v45 = vmul.f32 0.2, %v813_v40  ;;  %922 = vst.msk [vmem:[%s1378_s5 + $0x60] sm:$0xff] %vm264_vm0, %v890_v44  ;;  %v811_v50 = vadd.f32 %v1364_v48, %v772_v41 }
 0x119   : > { %v906_v47 = vsel %vm842_vm14, %v810_v35, %v874_v42  ;;  %vm827_vm2 = vcmp.ge.f32.partialorder %v795_v46, 0.0  ;;  %v859_v52 = vmul.f32 0.2, %v795_v46 }
 0x11a   : > { %v893_v49 = vsel %vm829_vm15, %v797_v36, %v861_v43  ;;  %938 = vst.msk [vmem:[%s1378_s5 + $0xe0] sm:$0xff] %vm264_vm0, %v906_v47  ;;  %v909_v51 = vsel %vm845_vm1, %v813_v40, %v877_v45  ;;  %vm843_vm3 = vcmp.ge.f32.partialorder %v811_v50, 0.0  ;;  %v875_v53 = vmul.f32 0.2, %v811_v50 }
 0x11b   : > { %925 = vst.msk [vmem:[%s1378_s5 + $0x78] sm:$0xff] %vm264_vm0, %v893_v49  ;;  %941 = vst.msk [vmem:[%s1378_s5 + $0xf8] sm:$0xff] %vm264_vm0, %v909_v51  ;;  %v891_v54 = vsel %vm827_vm2, %v795_v46, %v859_v52 }
 0x11c   : > { %923 = vst.msk [vmem:[%s1378_s5 + $0x68] sm:$0xff] %vm264_vm0, %v891_v54  ;;  %v907_v55 = vsel %vm843_vm3, %v811_v50, %v875_v53 }
 0x11d   : > { %939 = vst.msk [vmem:[%s1378_s5 + $0xe8] sm:$0xff] %vm264_vm0, %v907_v55 }
 0x11e PF: > { %s13_s14 = sadd.s32 1, %s1231_s14   ;;  %s1510_s12 = smov %s1227_s13 }
 0x11f   : > { %p10_p5 = scmp.ge.s32.totalorder %s13_s14, 4   ;;  %s1511_s13 = smov %s1513_s15 }
 0x121   :  { %12 = sbr.rel (!%p10_p5) target bundleno = 2 (0x2), region = 76 }

// kernel: lpips_with_discriminator_forward.13
= control target key start
LH: loop header
LB: loop body
LE: loop exit
PB: predicated region body
PF: predicated region fallthrough
CT: control target
= control target key end

     0   :  { %s2433_s1 = inlined_call_operand.vmem [shape: bf16[1024,128], index: 1, kind: input, shape index: {}]   ;;  %s2434_s0 = inlined_call_operand.vmem [shape: bf16[128,1024], index: 0, kind: input, shape index: {}]   ;;  %s2435_s2 = inlined_call_operand.vmem [shape: f32[128,128], index: 2, kind: output, shape index: {0}]   ;;  %s2436_s3 = inlined_call_operand.vmem [shape: f32[1,128], index: 3, kind: output, shape index: {1}]   ;;  %s2437_s4 = inlined_call_operand.vmem [shape: f32[1,128], index: 4, kind: output, shape index: {2}]  }
   0x1   :  { %v1858_v0 = vld [vmem:[%s2433_s1 + $0x40] sm:$0xff]   ;;  %v1862_v4 = vld [vmem:[%s2433_s1 + $0x48] sm:$0xff]   ;;  %v1866_v8 = vld [vmem:[%s2433_s1 + $0x50] sm:$0xff]  }
   0x2   :  { %v1859_v1 = vld [vmem:[%s2433_s1 + $0xc0] sm:$0xff]   ;;  %1602 = vmatprep.subr.bf16.mxu0 %v1858_v0  ;;  %v1863_v5 = vld [vmem:[%s2433_s1 + $0xc8] sm:$0xff]   ;;  %v1867_v9 = vld [vmem:[%s2433_s1 + $0xd0] sm:$0xff]  }
   0x3   :  { %v1860_v2 = vld [vmem:[%s2433_s1] sm:$0xff]   ;;  %1666 = vmatprep.subr.bf16.mxu1 %v1859_v1  ;;  %v1864_v6 = vld [vmem:[%s2433_s1 + $0x8] sm:$0xff]   ;;  %v1868_v10 = vld [vmem:[%s2433_s1 + $0x10] sm:$0xff]  }
   0x4   :  { %v1861_v3 = vld [vmem:[%s2433_s1 + $0x80] sm:$0xff]   ;;  %1603 = vmatpush3.bf16.msra.mxu0 %v1860_v2  ;;  %v1865_v7 = vld [vmem:[%s2433_s1 + $0x88] sm:$0xff]   ;;  %v1869_v11 = vld [vmem:[%s2433_s1 + $0x90] sm:$0xff]  }
   0x5   :  { %1667 = vmatpush3.bf16.msra.mxu1 %v1861_v3  ;;  %1604 = vmatprep.subr.bf16.mxu0 %v1862_v4  ;;  %v1870_v12 = vld [vmem:[%s2433_s1 + $0x58] sm:$0xff]   ;;  %v1874_v16 = vld [vmem:[%s2433_s1 + $0x60] sm:$0xff]   ;;  %v1878_v20 = vld [vmem:[%s2433_s1 + $0x68] sm:$0xff]  }
   0x6   :  { %1668 = vmatprep.subr.bf16.mxu1 %v1863_v5  ;;  %v1871_v13 = vld [vmem:[%s2433_s1 + $0xd8] sm:$0xff]   ;;  %v1875_v17 = vld [vmem:[%s2433_s1 + $0xe0] sm:$0xff]   ;;  %v1879_v21 = vld [vmem:[%s2433_s1 + $0xe8] sm:$0xff]  }
   0x7   :  { %v1872_v14 = vld [vmem:[%s2433_s1 + $0x18] sm:$0xff]   ;;  %v1876_v18 = vld [vmem:[%s2433_s1 + $0x20] sm:$0xff]   ;;  %v1880_v22 = vld [vmem:[%s2433_s1 + $0x28] sm:$0xff]  }
   0x8   :  { %1605 = vmatpush3.bf16.msra.mxu0 %v1864_v6  ;;  %v1873_v15 = vld [vmem:[%s2433_s1 + $0x98] sm:$0xff]   ;;  %v1877_v19 = vld [vmem:[%s2433_s1 + $0xa0] sm:$0xff]   ;;  %v1881_v23 = vld [vmem:[%s2433_s1 + $0xa8] sm:$0xff]  }
   0x9   :  { %1669 = vmatpush3.bf16.msra.mxu1 %v1865_v7  ;;  %1606 = vmatprep.subr.bf16.mxu0 %v1866_v8  ;;  %v1882_v24 = vld [vmem:[%s2433_s1 + $0x70] sm:$0xff]   ;;  %v1886_v28 = vld [vmem:[%s2433_s1 + $0x78] sm:$0xff]   ;;  %v51_v32 = vld [vmem:[%s2434_s0] sm:$0xff] }
   0xa   :  { %1670 = vmatprep.subr.bf16.mxu1 %v1867_v9  ;;  %v1883_v25 = vld [vmem:[%s2433_s1 + $0xf0] sm:$0xff]   ;;  %v1887_v29 = vld [vmem:[%s2433_s1 + $0xf8] sm:$0xff]   ;;  %v55_v33 = vld [vmem:[%s2434_s0 + $0x20] sm:$0xff] }
   0xb   :  { %v1884_v26 = vld [vmem:[%s2433_s1 + $0x30] sm:$0xff]   ;;  %v1888_v30 = vld [vmem:[%s2433_s1 + $0x38] sm:$0xff]   ;;  %v52_v34 = vld [vmem:[%s2434_s0 + $0x8] sm:$0xff]  ;;  %v1474_v35 = vcombine.low %v51_v32, %v55_v33  ;;  %v1475_v36 = vcombine.high %v51_v32, %v55_v33 }
   0xc   :  { %1607 = vmatpush3.bf16.msra.mxu0 %v1868_v10  ;;  %v1885_v27 = vld [vmem:[%s2433_s1 + $0xb0] sm:$0xff]   ;;  %v1889_v31 = vld [vmem:[%s2433_s1 + $0xb8] sm:$0xff]   ;;  %v56_v37 = vld [vmem:[%s2434_s0 + $0x28] sm:$0xff] }
   0xd   :  { %1671 = vmatpush3.bf16.msra.mxu1 %v1869_v11  ;;  %1608 = vmatprep.subr.bf16.mxu0 %v1870_v12  ;;  %v1476_v38 = vcombine.low %v52_v34, %v56_v37  ;;  %v1477_v39 = vcombine.high %v52_v34, %v56_v37  ;;  %v1890_v40 = vld [vmem:[%s2433_s1 + $0x140] sm:$0xff]   ;;  %v60_v47 = vld [vmem:[%s2434_s0 + $0x48] sm:$0xff]  ;;  %v1898_v62 = vld [vmem:[%s2433_s1 + $0x150] sm:$0xff]  }
   0xe   :  { %1672 = vmatprep.subr.bf16.mxu1 %v1871_v13  ;;  %979 = vmatprep.mubr.bf16.mxu0 %v1475_v36  ;;  %v1891_v41 = vld [vmem:[%s2433_s1 + $0x100] sm:$0xff]   ;;  %v64_v48 = vld [vmem:[%s2434_s0 + $0x68] sm:$0xff]  ;;  %v1899_v63 = vld [vmem:[%s2433_s1 + $0x110] sm:$0xff]  }
   0xf   :  { %1076 = vmatprep.mubr.bf16.mxu1 %v1477_v39  ;;  %v1892_v42 = vld [vmem:[%s2433_s1 + $0x1c0] sm:$0xff]   ;;  %v1485_v49 = vcombine.high %v60_v47, %v64_v48  ;;  %v1894_v50 = vld [vmem:[%s2433_s1 + $0x148] sm:$0xff]   ;;  %v1484_v53 = vcombine.low %v60_v47, %v64_v48  ;;  %v1900_v0 = vld [vmem:[%s2433_s1 + $0x1d0] sm:$0xff]  }
  0x10   :  { %1609 = vmatpush3.bf16.msra.mxu0 %v1872_v14  ;;  %v1893_v43 = vld [vmem:[%s2433_s1 + $0x180] sm:$0xff]   ;;  %v1895_v52 = vld [vmem:[%s2433_s1 + $0x108] sm:$0xff]   ;;  %v1901_v1 = vld [vmem:[%s2433_s1 + $0x190] sm:$0xff]  }
  0x11   :  { %1673 = vmatpush3.bf16.msra.mxu1 %v1873_v15  ;;  %1610 = vmatprep.subr.bf16.mxu0 %v1874_v16  ;;  %v59_v44 = vld [vmem:[%s2434_s0 + $0x40] sm:$0xff]  ;;  %v1896_v54 = vld [vmem:[%s2433_s1 + $0x1c8] sm:$0xff]   ;;  %v1902_v10 = vld [vmem:[%s2433_s1 + $0x158] sm:$0xff]  }
  0x12   :  { %1674 = vmatprep.subr.bf16.mxu1 %v1875_v17  ;;  %v63_v45 = vld [vmem:[%s2434_s0 + $0x60] sm:$0xff]  ;;  %v1897_v55 = vld [vmem:[%s2433_s1 + $0x188] sm:$0xff]   ;;  %v1903_v11 = vld [vmem:[%s2433_s1 + $0x118] sm:$0xff]  }
  0x13   :  { %v1483_v46 = vcombine.high %v59_v44, %v63_v45  ;;  %v1482_v51 = vcombine.low %v59_v44, %v63_v45  ;;  %v67_v56 = vld [vmem:[%s2434_s0 + $0x80] sm:$0xff]  ;;  %v68_v58 = vld [vmem:[%s2434_s0 + $0x88] sm:$0xff]  ;;  %v1904_v12 = vld [vmem:[%s2433_s1 + $0x1d8] sm:$0xff]  }
  0x14   :  { %1611 = vmatpush3.bf16.msra.mxu0 %v1876_v18  ;;  %v71_v57 = vld [vmem:[%s2434_s0 + $0xa0] sm:$0xff]  ;;  %v72_v59 = vld [vmem:[%s2434_s0 + $0xa8] sm:$0xff]  ;;  %v1905_v13 = vld [vmem:[%s2433_s1 + $0x198] sm:$0xff]  }
  0x15   :  { %1675 = vmatpush3.bf16.msra.mxu1 %v1877_v19  ;;  %1612 = vmatprep.subr.bf16.mxu0 %v1878_v20  ;;  %v1491_v60 = vcombine.high %v67_v56, %v71_v57  ;;  %v1493_v61 = vcombine.high %v68_v58, %v72_v59  ;;  %v1490_v2 = vcombine.low %v67_v56, %v71_v57  ;;  %v75_v3 = vld [vmem:[%s2434_s0 + $0xc0] sm:$0xff]  ;;  %v76_v5 = vld [vmem:[%s2434_s0 + $0xc8] sm:$0xff]  ;;  %v1915_v39 = vld [vmem:[%s2433_s1 + $0x130] sm:$0xff]  }
  0x16   :  { %1676 = vmatprep.subr.bf16.mxu1 %v1879_v21  ;;  %v79_v4 = vld [vmem:[%s2434_s0 + $0xe0] sm:$0xff]  ;;  %v1492_v6 = vcombine.low %v68_v58, %v72_v59  ;;  %v80_v8 = vld [vmem:[%s2434_s0 + $0xe8] sm:$0xff]  ;;  %v1919_v48 = vld [vmem:[%s2433_s1 + $0x138] sm:$0xff]  }
  0x17   :  { %v1499_v7 = vcombine.high %v75_v3, %v79_v4  ;;  %v1501_v9 = vcombine.high %v76_v5, %v80_v8  ;;  %v83_v14 = vld [vmem:[%s2434_s0 + $0x100] sm:$0xff]  ;;  %v84_v16 = vld [vmem:[%s2434_s0 + $0x108] sm:$0xff]  ;;  %v1498_v19 = vcombine.low %v75_v3, %v79_v4  ;;  %v1500_v21 = vcombine.low %v76_v5, %v80_v8  ;;  %v62_v8 = vld [vmem:[%s2434_s0 + $0x58] sm:$0xff] }
  0x18   :  { %1613 = vmatpush3.bf16.msra.mxu0 %v1880_v22  ;;  %v87_v15 = vld [vmem:[%s2434_s0 + $0x120] sm:$0xff]  ;;  %v88_v17 = vld [vmem:[%s2434_s0 + $0x128] sm:$0xff] }
  0x19   :  { %1677 = vmatpush3.bf16.msra.mxu1 %v1881_v23  ;;  %1614 = vmatprep.subr.bf16.mxu0 %v1882_v24  ;;  %v1906_v18 = vld [vmem:[%s2433_s1 + $0x160] sm:$0xff]   ;;  %v1507_v22 = vcombine.high %v83_v14, %v87_v15  ;;  %v1509_v24 = vcombine.high %v84_v16, %v88_v17  ;;  %v1912_v32 = vld [vmem:[%s2433_s1 + $0x1e8] sm:$0xff]   ;;  %v1506_v34 = vcombine.low %v83_v14, %v87_v15  ;;  %v69_v14 = vld [vmem:[%s2434_s0 + $0x90] sm:$0xff] }
  0x1a   :  { %1678 = vmatprep.subr.bf16.mxu1 %v1883_v25  ;;  %v1907_v20 = vld [vmem:[%s2433_s1 + $0x120] sm:$0xff]   ;;  %v1913_v33 = vld [vmem:[%s2433_s1 + $0x1a8] sm:$0xff]   ;;  %v73_v15 = vld [vmem:[%s2434_s0 + $0xb0] sm:$0xff] }
  0x1b   :  { %v1908_v23 = vld [vmem:[%s2433_s1 + $0x1e0] sm:$0xff]   ;;  %v100_v44 = vld [vmem:[%s2434_s0 + $0x188] sm:$0xff] }
  0x1c   :  { %1615 = vmatpush3.bf16.msra.mxu0 %v1884_v26  ;;  %v1909_v25 = vld [vmem:[%s2433_s1 + $0x1a0] sm:$0xff]   ;;  %v104_v45 = vld [vmem:[%s2434_s0 + $0x1a8] sm:$0xff] }
  0x1d   :  { %1679 = vmatpush3.bf16.msra.mxu1 %v1885_v27  ;;  %1616 = vmatprep.subr.bf16.mxu0 %v1886_v28  ;;  %v91_v26 = vld [vmem:[%s2434_s0 + $0x140] sm:$0xff]  ;;  %v1910_v28 = vld [vmem:[%s2433_s1 + $0x168] sm:$0xff]   ;;  %v1524_v59 = vcombine.low %v100_v44, %v104_v45 }
  0x1e   :  { %1680 = vmatprep.subr.bf16.mxu1 %v1887_v29  ;;  %v95_v27 = vld [vmem:[%s2434_s0 + $0x160] sm:$0xff]  ;;  %v92_v29 = vld [vmem:[%s2434_s0 + $0x148] sm:$0xff] }
  0x1f   :  { %v1515_v36 = vcombine.high %v91_v26, %v95_v27  ;;  %v1514_v47 = vcombine.low %v91_v26, %v95_v27  ;;  %v108_v56 = vld [vmem:[%s2434_s0 + $0x1c8] sm:$0xff]  ;;  %v1494_v26 = vcombine.low %v69_v14, %v73_v15 }
  0x20   :  { %1617 = vmatpush3.bf16.msra.mxu0 %v1888_v30  ;;  %v96_v30 = vld [vmem:[%s2434_s0 + $0x168] sm:$0xff] }
  0x21   :  { %1681 = vmatpush3.bf16.msra.mxu1 %v1889_v31  ;;  %1730 = vmatprep.subr.bf16.mxu0 %v1890_v40  ;;  %v1911_v31 = vld [vmem:[%s2433_s1 + $0x128] sm:$0xff]   ;;  %v1517_v37 = vcombine.high %v92_v29, %v96_v30  ;;  %v1916_v40 = vld [vmem:[%s2433_s1 + $0x1f0] sm:$0xff]  }
  0x22   :  { %1794 = vmatprep.subr.bf16.mxu1 %v1892_v42  ;;  %v103_v42 = vld [vmem:[%s2434_s0 + $0x1a0] sm:$0xff]  ;;  %v112_v57 = vld [vmem:[%s2434_s0 + $0x1e8] sm:$0xff] }
  0x23   :  { %980 = vmatmul.mubr.bf16.vlgmr.msra.gmra.mrb[0].mxu0 %v1474_v35  ;;  %v1508_v35 = vcombine.low %v84_v16, %v88_v17  ;;  %v1532_v3 = vcombine.low %v108_v56, %v112_v57  ;;  %v70_v16 = vld [vmem:[%s2434_s0 + $0x98] sm:$0xff] }
  0x24   :  { %1077 = vmatmul.mubr.bf16.vlgmr.msra.gmra.mrb[0].mxu1 %v1476_v38  ;;  %1731 = vmatpush3.bf16.msra.mxu0 %v1891_v41  ;;  %v1914_v38 = vld [vmem:[%s2433_s1 + $0x170] sm:$0xff]   ;;  %v99_v41 = vld [vmem:[%s2434_s0 + $0x180] sm:$0xff]  ;;  %v74_v17 = vld [vmem:[%s2434_s0 + $0xb8] sm:$0xff] }
  0x25   :  { %1795 = vmatpush3.bf16.msra.mxu1 %v1893_v43  ;;  %987 = vmatprep.mubr.bf16.mxu0 %v1483_v46  ;;  %v1917_v43 = vld [vmem:[%s2433_s1 + $0x1b0] sm:$0xff]   ;;  %v1918_v46 = vld [vmem:[%s2433_s1 + $0x178] sm:$0xff]   ;;  %v1522_v58 = vcombine.low %v99_v41, %v103_v42  ;;  %v1496_v27 = vcombine.low %v70_v16, %v74_v17 }
  0x26   :  { %1084 = vmatprep.mubr.bf16.mxu1 %v1485_v49  ;;  %1732 = vmatprep.subr.bf16.mxu0 %v1894_v50  ;;  %v1516_v49 = vcombine.low %v92_v29, %v96_v30  ;;  %v1523_v50 = vcombine.high %v99_v41, %v103_v42  ;;  %v85_v30 = vld [vmem:[%s2434_s0 + $0x110] sm:$0xff]  ;;  %v98_v41 = vld [vmem:[%s2434_s0 + $0x178] sm:$0xff] }
  0x27   :  { %1796 = vmatprep.subr.bf16.mxu1 %v1896_v54  ;;  %v107_v54 = vld [vmem:[%s2434_s0 + $0x1c0] sm:$0xff] }
  0x28   :  { %1733 = vmatpush3.bf16.msra.mxu0 %v1895_v52  ;;  %v1525_v52 = vcombine.high %v100_v44, %v104_v45 }
  0x29   :  { %1797 = vmatpush3.bf16.msra.mxu1 %v1897_v55  ;;  %1734 = vmatprep.subr.bf16.mxu0 %v1898_v62  ;;  %v111_v55 = vld [vmem:[%s2434_s0 + $0x1e0] sm:$0xff]  ;;  %v53_v62 = vld [vmem:[%s2434_s0 + $0x10] sm:$0xff] }
  0x2a   :  { %1798 = vmatprep.subr.bf16.mxu1 %v1900_v0  ;;  %v54_v0 = vld [vmem:[%s2434_s0 + $0x18] sm:$0xff] }
  0x2b   :  { %988 = vmatmul.mubr.bf16.gmra.mrb[4].mxu0 %v1482_v51  ;;  %v1920_v51 = vld [vmem:[%s2433_s1 + $0x1f8] sm:$0xff]  }
  0x2c   :  { %1085 = vmatmul.mubr.bf16.gmra.mrb[4].mxu1 %v1484_v53  ;;  %995 = vmatprep.mubr.bf16.mxu0 %v1491_v60  ;;  %v1921_v53 = vld [vmem:[%s2433_s1 + $0x1b8] sm:$0xff]   ;;  %v1531_v60 = vcombine.high %v107_v54, %v111_v55 }
  0x2d   :  { %1092 = vmatprep.mubr.bf16.mxu1 %v1493_v61  ;;  %1735 = vmatpush3.bf16.msra.mxu0 %v1899_v63  ;;  %v1533_v61 = vcombine.high %v108_v56, %v112_v57  ;;  %v57_v63 = vld [vmem:[%s2434_s0 + $0x30] sm:$0xff]  ;;  %v110_v56 = vld [vmem:[%s2434_s0 + $0x1d8] sm:$0xff] }
  0x2e   :  { %1799 = vmatpush3.bf16.msra.mxu1 %v1901_v1  ;;  %1736 = vmatprep.subr.bf16.mxu0 %v1902_v10  ;;  %v58_v1 = vld [vmem:[%s2434_s0 + $0x38] sm:$0xff]  ;;  %v1479_v4 = vcombine.high %v53_v62, %v57_v63  ;;  %v1478_v10 = vcombine.low %v53_v62, %v57_v63 }
  0x2f   :  { %1800 = vmatprep.subr.bf16.mxu1 %v1904_v12  ;;  %v1481_v5 = vcombine.high %v54_v0, %v58_v1  ;;  %v114_v57 = vld [vmem:[%s2434_s0 + $0x1f8] sm:$0xff] }
  0x30   :  { %v1536_v63 = vcombine.low %v110_v56, %v114_v57 }
  0x31   :  { %1737 = vmatpush3.bf16.msra.mxu0 %v1903_v11  ;;  %v1480_v11 = vcombine.low %v54_v0, %v58_v1 }
  0x32   :  { %1801 = vmatpush3.bf16.msra.mxu1 %v1905_v13  ;;  %1738 = vmatprep.subr.bf16.mxu0 %v1906_v18 }
  0x33   :  { %996 = vmatmul.mubr.bf16.gmra.mrb[8].mxu0 %v1490_v2  ;;  %1802 = vmatprep.subr.bf16.mxu1 %v1908_v23  ;;  %v1530_v2 = vcombine.low %v107_v54, %v111_v55  ;;  %v81_v23 = vld [vmem:[%s2434_s0 + $0xf0] sm:$0xff] }
  0x34   :  { %1093 = vmatmul.mubr.bf16.gmra.mrb[8].mxu1 %v1492_v6  ;;  %1003 = vmatprep.mubr.bf16.mxu0 %v1499_v7  ;;  %v61_v6 = vld [vmem:[%s2434_s0 + $0x50] sm:$0xff] }
  0x35   :  { %1100 = vmatprep.mubr.bf16.mxu1 %v1501_v9  ;;  %1739 = vmatpush3.bf16.msra.mxu0 %v1907_v20  ;;  %v65_v7 = vld [vmem:[%s2434_s0 + $0x70] sm:$0xff]  ;;  %v66_v9 = vld [vmem:[%s2434_s0 + $0x78] sm:$0xff]  ;;  %v1495_v20 = vcombine.high %v69_v14, %v73_v15 }
  0x36   :  { %1803 = vmatpush3.bf16.msra.mxu1 %v1909_v25  ;;  %1740 = vmatprep.subr.bf16.mxu0 %v1910_v28  ;;  %v1487_v12 = vcombine.high %v61_v6, %v65_v7  ;;  %v1489_v13 = vcombine.high %v62_v8, %v66_v9  ;;  %v1486_v18 = vcombine.low %v61_v6, %v65_v7  ;;  %v82_v25 = vld [vmem:[%s2434_s0 + $0xf8] sm:$0xff]  ;;  %v109_v54 = vld [vmem:[%s2434_s0 + $0x1d0] sm:$0xff] }
  0x37   :  { %1804 = vmatprep.subr.bf16.mxu1 %v1912_v32  ;;  %v86_v32 = vld [vmem:[%s2434_s0 + $0x118] sm:$0xff]  ;;  %v113_v55 = vld [vmem:[%s2434_s0 + $0x1f0] sm:$0xff] }
  0x38   :  { %v1534_v62 = vcombine.low %v109_v54, %v113_v55 }
  0x39   :  { %1741 = vmatpush3.bf16.msra.mxu0 %v1911_v31  ;;  %v89_v31 = vld [vmem:[%s2434_s0 + $0x130] sm:$0xff] }
  0x3a   :  { %1805 = vmatpush3.bf16.msra.mxu1 %v1913_v33  ;;  %1742 = vmatprep.subr.bf16.mxu0 %v1914_v38  ;;  %v90_v33 = vld [vmem:[%s2434_s0 + $0x138] sm:$0xff]  ;;  %v93_v38 = vld [vmem:[%s2434_s0 + $0x150] sm:$0xff]  ;;  %v1510_v42 = vcombine.low %v85_v30, %v89_v31 }
  0x3b   :  { %1004 = vmatmul.mubr.bf16.gmra.mrb[12].mxu0 %v1498_v19  ;;  %1806 = vmatprep.subr.bf16.mxu1 %v1916_v40  ;;  %v1488_v19 = vcombine.low %v62_v8, %v66_v9  ;;  %v94_v40 = vld [vmem:[%s2434_s0 + $0x158] sm:$0xff] }
  0x3c   :  { %1101 = vmatmul.mubr.bf16.gmra.mrb[12].mxu1 %v1500_v21  ;;  %1011 = vmatprep.mubr.bf16.mxu0 %v1507_v22  ;;  %v1497_v21 = vcombine.high %v70_v16, %v74_v17  ;;  %v77_v22 = vld [vmem:[%s2434_s0 + $0xd0] sm:$0xff]  ;;  %v1521_v45 = vcombine.high %v94_v40, %v98_v41 }
  0x3d   :  { %1108 = vmatprep.mubr.bf16.mxu1 %v1509_v24  ;;  %1743 = vmatpush3.bf16.msra.mxu0 %v1915_v39  ;;  %v78_v24 = vld [vmem:[%s2434_s0 + $0xd8] sm:$0xff]  ;;  %v1503_v28 = vcombine.high %v77_v22, %v81_v23  ;;  %v97_v39 = vld [vmem:[%s2434_s0 + $0x170] sm:$0xff] }
  0x3e   :  { %1807 = vmatpush3.bf16.msra.mxu1 %v1917_v43  ;;  %1744 = vmatprep.subr.bf16.mxu0 %v1918_v46  ;;  %v1505_v29 = vcombine.high %v78_v24, %v82_v25  ;;  %v1512_v43 = vcombine.low %v86_v32, %v90_v33  ;;  %v1519_v44 = vcombine.high %v93_v38, %v97_v39  ;;  %v101_v46 = vld [vmem:[%s2434_s0 + $0x190] sm:$0xff] }
  0x3f   :  { %1808 = vmatprep.subr.bf16.mxu1 %v1920_v51  ;;  %v1520_v51 = vcombine.low %v94_v40, %v98_v41 }
  0x41   :  { %1745 = vmatpush3.bf16.msra.mxu0 %v1919_v48  ;;  %v102_v48 = vld [vmem:[%s2434_s0 + $0x198] sm:$0xff] }
  0x42   :  { %1809 = vmatpush3.bf16.msra.mxu1 %v1921_v53 }
  0x43   :  { %1012 = vmatmul.mubr.bf16.gmra.mrb[16].mxu0 %v1506_v34  ;;  %v1502_v34 = vcombine.low %v77_v22, %v81_v23 }
  0x44   :  { %1109 = vmatmul.mubr.bf16.gmra.mrb[16].mxu1 %v1508_v35  ;;  %1019 = vmatprep.mubr.bf16.mxu0 %v1515_v36  ;;  %v1504_v35 = vcombine.low %v78_v24, %v82_v25  ;;  %v1511_v36 = vcombine.high %v85_v30, %v89_v31 }
  0x45   :  { %1116 = vmatprep.mubr.bf16.mxu1 %v1517_v37  ;;  %v1513_v37 = vcombine.high %v86_v32, %v90_v33 }
  0x4b   :  { %1020 = vmatmul.mubr.bf16.gmra.mrb[20].mxu0 %v1514_v47  ;;  %v105_v47 = vld [vmem:[%s2434_s0 + $0x1b0] sm:$0xff] }
  0x4c   :  { %1117 = vmatmul.mubr.bf16.gmra.mrb[20].mxu1 %v1516_v49  ;;  %1027 = vmatprep.mubr.bf16.mxu0 %v1523_v50  ;;  %v106_v49 = vld [vmem:[%s2434_s0 + $0x1b8] sm:$0xff]  ;;  %v1518_v50 = vcombine.low %v93_v38, %v97_v39 }
  0x4d   :  { %1124 = vmatprep.mubr.bf16.mxu1 %v1525_v52  ;;  %v1527_v52 = vcombine.high %v101_v46, %v105_v47  ;;  %v1529_v53 = vcombine.high %v102_v48, %v106_v49 }
  0x53   :  { %1028 = vmatmul.mubr.bf16.gmra.mrb[24].mxu0 %v1522_v58  ;;  %v1526_v58 = vcombine.low %v101_v46, %v105_v47 }
  0x54   :  { %1125 = vmatmul.mubr.bf16.gmra.mrb[24].mxu1 %v1524_v59  ;;  %1035 = vmatprep.mubr.bf16.mxu0 %v1531_v60  ;;  %v1528_v59 = vcombine.low %v102_v48, %v106_v49  ;;  %v1535_v60 = vcombine.high %v109_v54, %v113_v55 }
  0x55   :  { %1132 = vmatprep.mubr.bf16.mxu1 %v1533_v61  ;;  %v1537_v61 = vcombine.high %v110_v56, %v114_v57 }
  0x5b   :  { %1036 = vmatmul.mubr.bf16.gmra.mrb[28].mxu0 %v1530_v2 }
  0x5c   :  { %1133 = vmatmul.mubr.bf16.gmra.mrb[28].mxu1 %v1532_v3  ;;  %1173 = vmatprep.mubr.bf16.mxu0 %v1479_v4 }
  0x5d   :  { %1270 = vmatprep.mubr.bf16.mxu1 %v1481_v5 }
  0x63   :  { %1174 = vmatmul.mubr.bf16.vlgmr.msra.gmra.mrb[32].mxu0 %v1478_v10 }
  0x64   :  { %1271 = vmatmul.mubr.bf16.vlgmr.msra.gmra.mrb[32].mxu1 %v1480_v11  ;;  %1181 = vmatprep.mubr.bf16.mxu0 %v1487_v12 }
  0x65   :  { %1278 = vmatprep.mubr.bf16.mxu1 %v1489_v13 }
  0x6b   :  { %1182 = vmatmul.mubr.bf16.gmra.mrb[36].mxu0 %v1486_v18 }
  0x6c   :  { %1279 = vmatmul.mubr.bf16.gmra.mrb[36].mxu1 %v1488_v19  ;;  %1189 = vmatprep.mubr.bf16.mxu0 %v1495_v20 }
  0x6d   :  { %1286 = vmatprep.mubr.bf16.mxu1 %v1497_v21 }
  0x73   :  { %1190 = vmatmul.mubr.bf16.gmra.mrb[40].mxu0 %v1494_v26 }
  0x74   :  { %1287 = vmatmul.mubr.bf16.gmra.mrb[40].mxu1 %v1496_v27  ;;  %1197 = vmatprep.mubr.bf16.mxu0 %v1503_v28 }
  0x75   :  { %1294 = vmatprep.mubr.bf16.mxu1 %v1505_v29 }
  0x7b   :  { %1198 = vmatmul.mubr.bf16.gmra.mrb[44].mxu0 %v1502_v34 }
  0x7c   :  { %1295 = vmatmul.mubr.bf16.gmra.mrb[44].mxu1 %v1504_v35  ;;  %1205 = vmatprep.mubr.bf16.mxu0 %v1511_v36 }
  0x7d   :  { %1302 = vmatprep.mubr.bf16.mxu1 %v1513_v37 }
  0x83   :  { %1206 = vmatmul.mubr.bf16.gmra.mrb[48].mxu0 %v1510_v42 }
  0x84   :  { %1303 = vmatmul.mubr.bf16.gmra.mrb[48].mxu1 %v1512_v43  ;;  %1213 = vmatprep.mubr.bf16.mxu0 %v1519_v44 }
  0x85   :  { %1310 = vmatprep.mubr.bf16.mxu1 %v1521_v45 }
  0x8b   :  { %1214 = vmatmul.mubr.bf16.gmra.mrb[52].mxu0 %v1518_v50 }
  0x8c   :  { %1311 = vmatmul.mubr.bf16.gmra.mrb[52].mxu1 %v1520_v51  ;;  %1221 = vmatprep.mubr.bf16.mxu0 %v1527_v52 }
  0x8d   :  { %1318 = vmatprep.mubr.bf16.mxu1 %v1529_v53 }
  0x93   :  { %1222 = vmatmul.mubr.bf16.gmra.mrb[56].mxu0 %v1526_v58 }
  0x94   :  { %1319 = vmatmul.mubr.bf16.gmra.mrb[56].mxu1 %v1528_v59  ;;  %1229 = vmatprep.mubr.bf16.mxu0 %v1535_v60 }
  0x95   :  { %1326 = vmatprep.mubr.bf16.mxu1 %v1537_v61 }
  0x9b   :  { %1230 = vmatmul.mubr.bf16.gmra.mrb[60].mxu0 %v1534_v62 }
  0x9c   :  { %1327 = vmatmul.mubr.bf16.gmra.mrb[60].mxu1 %v1536_v63 }
  0xf6   :  { %v1618_v0 = vpop.f32.mrb[0].mxu0 }
  0xf7   :  { %v1682_v1 = vpop.f32.mrb[0].mxu1  ;;  %v1619_v2 = vpop.f32.mrb[1].mxu0 }
  0xf8   :  { %v1620_v3 = vadd.f32 %v1619_v2, %v1618_v0  ;;  %v1683_v4 = vpop.f32.mrb[1].mxu1  ;;  %v1621_v5 = vpop.f32.mrb[2].mxu0 }
  0xf9   :  { %v1684_v6 = vadd.f32 %v1683_v4, %v1682_v1  ;;  %v1685_v7 = vpop.f32.mrb[2].mxu1  ;;  %v1622_v8 = vpop.f32.mrb[3].mxu0 }
  0xfa   :  { %v1623_v9 = vadd.f32 %v1622_v8, %v1621_v5  ;;  %v1686_v10 = vpop.f32.mrb[3].mxu1 }
  0xfb   :  { %v2331_v11 = vadd.f32 %v1684_v6, %v1620_v3  ;;  %v1687_v12 = vadd.f32 %v1686_v10, %v1685_v7 }
  0xfd   :  { %v2333_v13 = vadd.f32 %v1687_v12, %v1623_v9 }
  0xfe   :  { %v1624_v14 = vpop.f32.mrb[4].mxu0 }
  0xff   :  { %v1688_v15 = vpop.f32.mrb[4].mxu1  ;;  %v1625_v16 = vpop.f32.mrb[5].mxu0 }
 0x100   :  { %v1626_v17 = vadd.f32 %v1625_v16, %v1624_v14  ;;  %v1689_v18 = vpop.f32.mrb[5].mxu1  ;;  %v1627_v19 = vpop.f32.mrb[6].mxu0 }
 0x101   :  { %v1690_v20 = vadd.f32 %v1689_v18, %v1688_v15  ;;  %v1691_v21 = vpop.f32.mrb[6].mxu1  ;;  %v1628_v22 = vpop.f32.mrb[7].mxu0 }
 0x102   :  { %v1629_v23 = vadd.f32 %v1628_v22, %v1627_v19  ;;  %v1692_v24 = vpop.f32.mrb[7].mxu1 }
 0x103   :  { %v2335_v25 = vadd.f32 %v1690_v20, %v1626_v17  ;;  %v1693_v26 = vadd.f32 %v1692_v24, %v1691_v21 }
 0x105   :  { %v2337_v27 = vadd.f32 %v1693_v26, %v1629_v23 }
 0x106   :  { %v1630_v28 = vpop.f32.mrb[8].mxu0 }
 0x107   :  { %v1694_v29 = vpop.f32.mrb[8].mxu1  ;;  %v1631_v30 = vpop.f32.mrb[9].mxu0 }
 0x108   :  { %v1632_v31 = vadd.f32 %v1631_v30, %v1630_v28  ;;  %v1695_v32 = vpop.f32.mrb[9].mxu1  ;;  %v1633_v33 = vpop.f32.mrb[10].mxu0 }
 0x109   :  { %v1696_v34 = vadd.f32 %v1695_v32, %v1694_v29  ;;  %v1697_v35 = vpop.f32.mrb[10].mxu1  ;;  %v1634_v36 = vpop.f32.mrb[11].mxu0 }
 0x10a   :  { %v1635_v37 = vadd.f32 %v1634_v36, %v1633_v33  ;;  %v1698_v38 = vpop.f32.mrb[11].mxu1 }
 0x10b   :  { %v2339_v39 = vadd.f32 %v1696_v34, %v1632_v31  ;;  %v1699_v40 = vadd.f32 %v1698_v38, %v1697_v35 }
 0x10d   :  { %v2341_v41 = vadd.f32 %v1699_v40, %v1635_v37 }
 0x10e   :  { %v1636_v42 = vpop.f32.mrb[12].mxu0 }
 0x10f   :  { %v1700_v43 = vpop.f32.mrb[12].mxu1  ;;  %v1637_v44 = vpop.f32.mrb[13].mxu0 }
 0x110   :  { %v1638_v45 = vadd.f32 %v1637_v44, %v1636_v42  ;;  %v1701_v46 = vpop.f32.mrb[13].mxu1  ;;  %v1639_v47 = vpop.f32.mrb[14].mxu0 }
 0x111   :  { %v1702_v48 = vadd.f32 %v1701_v46, %v1700_v43  ;;  %v1703_v49 = vpop.f32.mrb[14].mxu1  ;;  %v1640_v50 = vpop.f32.mrb[15].mxu0 }
 0x112   :  { %v1641_v51 = vadd.f32 %v1640_v50, %v1639_v47  ;;  %v1704_v52 = vpop.f32.mrb[15].mxu1 }
 0x113   :  { %v2343_v53 = vadd.f32 %v1702_v48, %v1638_v45  ;;  %v1705_v54 = vadd.f32 %v1704_v52, %v1703_v49 }
 0x115   :  { %v2345_v55 = vadd.f32 %v1705_v54, %v1641_v51 }
 0x116   :  { %v1642_v56 = vpop.f32.mrb[16].mxu0 }
 0x117   :  { %v1706_v57 = vpop.f32.mrb[16].mxu1  ;;  %v1643_v58 = vpop.f32.mrb[17].mxu0 }
 0x118   :  { %v1644_v59 = vadd.f32 %v1643_v58, %v1642_v56  ;;  %v1707_v60 = vpop.f32.mrb[17].mxu1  ;;  %v1645_v61 = vpop.f32.mrb[18].mxu0 }
 0x119   :  { %v1708_v62 = vadd.f32 %v1707_v60, %v1706_v57  ;;  %v1709_v63 = vpop.f32.mrb[18].mxu1  ;;  %v1646_v0 = vpop.f32.mrb[19].mxu0 }
 0x11a   :  { %v1647_v1 = vadd.f32 %v1646_v0, %v1645_v61  ;;  %v1710_v2 = vpop.f32.mrb[19].mxu1 }
 0x11b   :  { %v2347_v3 = vadd.f32 %v1708_v62, %v1644_v59  ;;  %v1711_v4 = vadd.f32 %v1710_v2, %v1709_v63 }
 0x11d   :  { %v2349_v5 = vadd.f32 %v1711_v4, %v1647_v1 }
 0x11e   :  { %v1648_v6 = vpop.f32.mrb[20].mxu0 }
 0x11f   :  { %v1712_v7 = vpop.f32.mrb[20].mxu1  ;;  %v1649_v8 = vpop.f32.mrb[21].mxu0 }
 0x120   :  { %v1650_v9 = vadd.f32 %v1649_v8, %v1648_v6  ;;  %v1713_v10 = vpop.f32.mrb[21].mxu1  ;;  %v1651_v12 = vpop.f32.mrb[22].mxu0 }
 0x121   :  { %v1714_v14 = vadd.f32 %v1713_v10, %v1712_v7  ;;  %v1715_v15 = vpop.f32.mrb[22].mxu1  ;;  %v1652_v16 = vpop.f32.mrb[23].mxu0 }
 0x122   :  { %v1653_v17 = vadd.f32 %v1652_v16, %v1651_v12  ;;  %v1716_v18 = vpop.f32.mrb[23].mxu1 }
 0x123   :  { %v2351_v19 = vadd.f32 %v1714_v14, %v1650_v9  ;;  %v1717_v20 = vadd.f32 %v1716_v18, %v1715_v15 }
 0x125   :  { %v2353_v21 = vadd.f32 %v1717_v20, %v1653_v17 }
 0x126   :  { %v1654_v22 = vpop.f32.mrb[24].mxu0 }
 0x127   :  { %v1718_v23 = vpop.f32.mrb[24].mxu1  ;;  %v1655_v24 = vpop.f32.mrb[25].mxu0 }
 0x128   :  { %v1656_v26 = vadd.f32 %v1655_v24, %v1654_v22  ;;  %v1719_v28 = vpop.f32.mrb[25].mxu1  ;;  %v1657_v29 = vpop.f32.mrb[26].mxu0 }
 0x129   :  { %v1720_v30 = vadd.f32 %v1719_v28, %v1718_v23  ;;  %v1721_v31 = vpop.f32.mrb[26].mxu1  ;;  %v1658_v32 = vpop.f32.mrb[27].mxu0 }
 0x12a   :  { %v1659_v33 = vadd.f32 %v1658_v32, %v1657_v29  ;;  %v1722_v34 = vpop.f32.mrb[27].mxu1 }
 0x12b   :  { %v2355_v35 = vadd.f32 %v1720_v30, %v1656_v26  ;;  %v1723_v36 = vadd.f32 %v1722_v34, %v1721_v31 }
 0x12d   :  { %v2357_v37 = vadd.f32 %v1723_v36, %v1659_v33 }
 0x12e   :  { %v1660_v38 = vpop.f32.mrb[28].mxu0 }
 0x12f   :  { %v1724_v40 = vpop.f32.mrb[28].mxu1  ;;  %v1661_v42 = vpop.f32.mrb[29].mxu0 }
 0x130   :  { %v1662_v43 = vadd.f32 %v1661_v42, %v1660_v38  ;;  %v1725_v44 = vpop.f32.mrb[29].mxu1  ;;  %v1663_v45 = vpop.f32.mrb[30].mxu0 }
 0x131   :  { %v1726_v46 = vadd.f32 %v1725_v44, %v1724_v40  ;;  %v1727_v47 = vpop.f32.mrb[30].mxu1  ;;  %v1664_v48 = vpop.f32.mrb[31].mxu0 }
 0x132   :  { %v1665_v49 = vadd.f32 %v1664_v48, %v1663_v45  ;;  %v1728_v50 = vpop.f32.mrb[31].mxu1 }
 0x133   :  { %v2359_v51 = vadd.f32 %v1726_v46, %v1662_v43  ;;  %v1729_v52 = vadd.f32 %v1728_v50, %v1727_v47 }
 0x135   :  { %v2361_v54 = vadd.f32 %v1729_v52, %v1665_v49 }
 0x136   :  { %v1746_v56 = vpop.f32.mrb[32].mxu0 }
 0x137   :  { %v1810_v57 = vpop.f32.mrb[32].mxu1  ;;  %v1747_v58 = vpop.f32.mrb[33].mxu0 }
 0x138   :  { %v1748_v59 = vadd.f32 %v1747_v58, %v1746_v56  ;;  %v1811_v60 = vpop.f32.mrb[33].mxu1  ;;  %v1749_v61 = vpop.f32.mrb[34].mxu0 }
 0x139   :  { %v1812_v62 = vadd.f32 %v1811_v60, %v1810_v57  ;;  %v1813_v63 = vpop.f32.mrb[34].mxu1  ;;  %v1750_v0 = vpop.f32.mrb[35].mxu0 }
 0x13a   :  { %v1176_v1 = vadd.f32 %v1748_v59, %v2331_v11  ;;  %v1751_v2 = vadd.f32 %v1750_v0, %v1749_v61  ;;  %v1814_v4 = vpop.f32.mrb[35].mxu1 }
 0x13b   :  { %v1815_v6 = vadd.f32 %v1814_v4, %v1813_v63 }
 0x13c   :  { %v1273_v7 = vadd.f32 %v1812_v62, %v1176_v1  ;;  %v1179_v8 = vadd.f32 %v1751_v2, %v2333_v13 }
 0x13e   :  { %1386 = vst [vmem:[%s2435_s2] sm:$0xff] %v1273_v7  ;;  %v1276_v9 = vadd.f32 %v1815_v6, %v1179_v8  ;;  %v1752_v10 = vpop.f32.mrb[36].mxu0  ;;  %v1424_v15 = vmul.f32 %v1273_v7, %v1273_v7 }
 0x13f   :  { %v1816_v12 = vpop.f32.mrb[36].mxu1  ;;  %v1753_v14 = vpop.f32.mrb[37].mxu0 }
 0x140   :  { %1387 = vst [vmem:[%s2435_s2 + $0x8] sm:$0xff] %v1276_v9  ;;  %v1402_v11 = vadd.f32 %v1276_v9, %v1273_v7  ;;  %v1425_v16 = vmul.f32 %v1276_v9, %v1276_v9  ;;  %v1754_v17 = vadd.f32 %v1753_v14, %v1752_v10  ;;  %v1817_v18 = vpop.f32.mrb[37].mxu1  ;;  %v1755_v20 = vpop.f32.mrb[38].mxu0 }
 0x141   :  { %v1818_v22 = vadd.f32 %v1817_v18, %v1816_v12  ;;  %v1819_v13 = vpop.f32.mrb[38].mxu1  ;;  %v1756_v23 = vpop.f32.mrb[39].mxu0 }
 0x142   :  { %v1440_v24 = vadd.f32 %v1425_v16, %v1424_v15  ;;  %v1184_v26 = vadd.f32 %v1754_v17, %v2335_v25  ;;  %v1757_v28 = vadd.f32 %v1756_v23, %v1755_v20  ;;  %v1820_v29 = vpop.f32.mrb[39].mxu1 }
 0x143   :  { %v1821_v30 = vadd.f32 %v1820_v29, %v1819_v13 }
 0x144   :  { %v1281_v31 = vadd.f32 %v1818_v22, %v1184_v26  ;;  %v1187_v32 = vadd.f32 %v1757_v28, %v2337_v27 }
 0x146   :  { %1388 = vst [vmem:[%s2435_s2 + $0x10] sm:$0xff] %v1281_v31  ;;  %v1403_v33 = vadd.f32 %v1402_v11, %v1281_v31  ;;  %v1426_v34 = vmul.f32 %v1281_v31, %v1281_v31  ;;  %v1284_v36 = vadd.f32 %v1821_v30, %v1187_v32  ;;  %v1758_v38 = vpop.f32.mrb[40].mxu0 }
 0x147   :  { %v1822_v40 = vpop.f32.mrb[40].mxu1  ;;  %v1759_v42 = vpop.f32.mrb[41].mxu0 }
 0x148   :  { %v1441_v43 = vadd.f32 %v1440_v24, %v1426_v34  ;;  %1389 = vst [vmem:[%s2435_s2 + $0x18] sm:$0xff] %v1284_v36  ;;  %v1404_v25 = vadd.f32 %v1403_v33, %v1284_v36  ;;  %v1427_v44 = vmul.f32 %v1284_v36, %v1284_v36  ;;  %v1760_v45 = vadd.f32 %v1759_v42, %v1758_v38  ;;  %v1823_v46 = vpop.f32.mrb[41].mxu1  ;;  %v1761_v27 = vpop.f32.mrb[42].mxu0 }
 0x149   :  { %v1824_v47 = vadd.f32 %v1823_v46, %v1822_v40  ;;  %v1825_v48 = vpop.f32.mrb[42].mxu1  ;;  %v1762_v49 = vpop.f32.mrb[43].mxu0 }
 0x14a   :  { %v1442_v50 = vadd.f32 %v1441_v43, %v1427_v44  ;;  %v1192_v52 = vadd.f32 %v1760_v45, %v2339_v39  ;;  %v1763_v56 = vadd.f32 %v1762_v49, %v1761_v27  ;;  %v1826_v57 = vpop.f32.mrb[43].mxu1 }
 0x14b   :  { %v1827_v58 = vadd.f32 %v1826_v57, %v1825_v48 }
 0x14c   :  { %v1289_v59 = vadd.f32 %v1824_v47, %v1192_v52  ;;  %v1195_v60 = vadd.f32 %v1763_v56, %v2341_v41 }
 0x14e   :  { %1390 = vst [vmem:[%s2435_s2 + $0x20] sm:$0xff] %v1289_v59  ;;  %v1405_v61 = vadd.f32 %v1404_v25, %v1289_v59  ;;  %v1428_v62 = vmul.f32 %v1289_v59, %v1289_v59  ;;  %v1292_v63 = vadd.f32 %v1827_v58, %v1195_v60  ;;  %v1764_v0 = vpop.f32.mrb[44].mxu0 }
 0x14f   :  { %v1828_v1 = vpop.f32.mrb[44].mxu1  ;;  %v1765_v2 = vpop.f32.mrb[45].mxu0 }
 0x150   :  { %v1443_v4 = vadd.f32 %v1442_v50, %v1428_v62  ;;  %1391 = vst [vmem:[%s2435_s2 + $0x28] sm:$0xff] %v1292_v63  ;;  %v1406_v39 = vadd.f32 %v1405_v61, %v1292_v63  ;;  %v1429_v6 = vmul.f32 %v1292_v63, %v1292_v63  ;;  %v1766_v7 = vadd.f32 %v1765_v2, %v1764_v0  ;;  %v1829_v8 = vpop.f32.mrb[45].mxu1  ;;  %v1767_v41 = vpop.f32.mrb[46].mxu0 }
 0x151   :  { %v1830_v9 = vadd.f32 %v1829_v8, %v1828_v1  ;;  %v1831_v10 = vpop.f32.mrb[46].mxu1  ;;  %v1768_v12 = vpop.f32.mrb[47].mxu0 }
 0x152   :  { %v1444_v14 = vadd.f32 %v1443_v4, %v1429_v6  ;;  %v1200_v15 = vadd.f32 %v1766_v7, %v2343_v53  ;;  %v1769_v11 = vadd.f32 %v1768_v12, %v1767_v41  ;;  %v1832_v16 = vpop.f32.mrb[47].mxu1 }
 0x153   :  { %v1833_v17 = vadd.f32 %v1832_v16, %v1831_v10 }
 0x154   :  { %v1297_v18 = vadd.f32 %v1830_v9, %v1200_v15  ;;  %v1203_v20 = vadd.f32 %v1769_v11, %v2345_v55 }
 0x156   :  { %1392 = vst [vmem:[%s2435_s2 + $0x30] sm:$0xff] %v1297_v18  ;;  %v1407_v22 = vadd.f32 %v1406_v39, %v1297_v18  ;;  %v1430_v13 = vmul.f32 %v1297_v18, %v1297_v18  ;;  %v1300_v23 = vadd.f32 %v1833_v17, %v1203_v20  ;;  %v1770_v24 = vpop.f32.mrb[48].mxu0 }
 0x157   :  { %v1834_v26 = vpop.f32.mrb[48].mxu1  ;;  %v1771_v28 = vpop.f32.mrb[49].mxu0 }
 0x158   :  { %v1445_v29 = vadd.f32 %v1444_v14, %v1430_v13  ;;  %1393 = vst [vmem:[%s2435_s2 + $0x38] sm:$0xff] %v1300_v23  ;;  %v1408_v53 = vadd.f32 %v1407_v22, %v1300_v23  ;;  %v1431_v30 = vmul.f32 %v1300_v23, %v1300_v23  ;;  %v1772_v31 = vadd.f32 %v1771_v28, %v1770_v24  ;;  %v1835_v32 = vpop.f32.mrb[49].mxu1  ;;  %v1773_v55 = vpop.f32.mrb[50].mxu0 }
 0x159   :  { %v1836_v33 = vadd.f32 %v1835_v32, %v1834_v26  ;;  %v1837_v34 = vpop.f32.mrb[50].mxu1  ;;  %v1774_v36 = vpop.f32.mrb[51].mxu0 }
 0x15a   :  { %v1446_v38 = vadd.f32 %v1445_v29, %v1431_v30  ;;  %v1208_v40 = vadd.f32 %v1772_v31, %v2347_v3  ;;  %v1775_v42 = vadd.f32 %v1774_v36, %v1773_v55  ;;  %v1838_v43 = vpop.f32.mrb[51].mxu1 }
 0x15b   :  { %v1839_v25 = vadd.f32 %v1838_v43, %v1837_v34 }
 0x15c   :  { %v1305_v44 = vadd.f32 %v1836_v33, %v1208_v40  ;;  %v1211_v45 = vadd.f32 %v1775_v42, %v2349_v5 }
 0x15e   :  { %1394 = vst [vmem:[%s2435_s2 + $0x40] sm:$0xff] %v1305_v44  ;;  %v1409_v46 = vadd.f32 %v1408_v53, %v1305_v44  ;;  %v1432_v27 = vmul.f32 %v1305_v44, %v1305_v44  ;;  %v1308_v47 = vadd.f32 %v1839_v25, %v1211_v45  ;;  %v1776_v48 = vpop.f32.mrb[52].mxu0 }
 0x15f   :  { %v1840_v49 = vpop.f32.mrb[52].mxu1  ;;  %v1777_v50 = vpop.f32.mrb[53].mxu0 }
 0x160   :  { %v1447_v52 = vadd.f32 %v1446_v38, %v1432_v27  ;;  %1395 = vst [vmem:[%s2435_s2 + $0x48] sm:$0xff] %v1308_v47  ;;  %v1410_v3 = vadd.f32 %v1409_v46, %v1308_v47  ;;  %v1433_v56 = vmul.f32 %v1308_v47, %v1308_v47  ;;  %v1778_v57 = vadd.f32 %v1777_v50, %v1776_v48  ;;  %v1841_v58 = vpop.f32.mrb[53].mxu1  ;;  %v1779_v5 = vpop.f32.mrb[54].mxu0 }
 0x161   :  { %v1842_v59 = vadd.f32 %v1841_v58, %v1840_v49  ;;  %v1843_v60 = vpop.f32.mrb[54].mxu1  ;;  %v1780_v61 = vpop.f32.mrb[55].mxu0 }
 0x162   :  { %v1448_v62 = vadd.f32 %v1447_v52, %v1433_v56  ;;  %v1216_v63 = vadd.f32 %v1778_v57, %v2351_v19  ;;  %v1781_v0 = vadd.f32 %v1780_v61, %v1779_v5  ;;  %v1844_v1 = vpop.f32.mrb[55].mxu1 }
 0x163   :  { %v1845_v2 = vadd.f32 %v1844_v1, %v1843_v60 }
 0x164   :  { %v1313_v4 = vadd.f32 %v1842_v59, %v1216_v63  ;;  %v1219_v39 = vadd.f32 %v1781_v0, %v2353_v21 }
 0x166   :  { %1396 = vst [vmem:[%s2435_s2 + $0x50] sm:$0xff] %v1313_v4  ;;  %v1411_v6 = vadd.f32 %v1410_v3, %v1313_v4  ;;  %v1434_v7 = vmul.f32 %v1313_v4, %v1313_v4  ;;  %v1316_v8 = vadd.f32 %v1845_v2, %v1219_v39  ;;  %v1782_v41 = vpop.f32.mrb[56].mxu0 }
 0x167   :  { %v1846_v9 = vpop.f32.mrb[56].mxu1  ;;  %v1783_v10 = vpop.f32.mrb[57].mxu0 }
 0x168   :  { %v1449_v12 = vadd.f32 %v1448_v62, %v1434_v7  ;;  %1397 = vst [vmem:[%s2435_s2 + $0x58] sm:$0xff] %v1316_v8  ;;  %v1412_v19 = vadd.f32 %v1411_v6, %v1316_v8  ;;  %v1435_v14 = vmul.f32 %v1316_v8, %v1316_v8  ;;  %v1784_v15 = vadd.f32 %v1783_v10, %v1782_v41  ;;  %v1847_v11 = vpop.f32.mrb[57].mxu1  ;;  %v1785_v21 = vpop.f32.mrb[58].mxu0 }
 0x169   :  { %v1848_v16 = vadd.f32 %v1847_v11, %v1846_v9  ;;  %v1849_v17 = vpop.f32.mrb[58].mxu1  ;;  %v1786_v18 = vpop.f32.mrb[59].mxu0 }
 0x16a   :  { %v1450_v20 = vadd.f32 %v1449_v12, %v1435_v14  ;;  %v1224_v22 = vadd.f32 %v1784_v15, %v2355_v35  ;;  %v1787_v13 = vadd.f32 %v1786_v18, %v1785_v21  ;;  %v1850_v23 = vpop.f32.mrb[59].mxu1 }
 0x16b   :  { %v1851_v24 = vadd.f32 %v1850_v23, %v1849_v17 }
 0x16c   :  { %v1321_v26 = vadd.f32 %v1848_v16, %v1224_v22  ;;  %v1227_v28 = vadd.f32 %v1787_v13, %v2357_v37 }
 0x16e   :  { %1398 = vst [vmem:[%s2435_s2 + $0x60] sm:$0xff] %v1321_v26  ;;  %v1413_v29 = vadd.f32 %v1412_v19, %v1321_v26  ;;  %v1436_v53 = vmul.f32 %v1321_v26, %v1321_v26  ;;  %v1324_v30 = vadd.f32 %v1851_v24, %v1227_v28  ;;  %v1788_v31 = vpop.f32.mrb[60].mxu0 }
 0x16f   :  { %v1852_v32 = vpop.f32.mrb[60].mxu1  ;;  %v1789_v55 = vpop.f32.mrb[61].mxu0 }
 0x170   :  { %v1451_v33 = vadd.f32 %v1450_v20, %v1436_v53  ;;  %1399 = vst [vmem:[%s2435_s2 + $0x68] sm:$0xff] %v1324_v30  ;;  %v1414_v35 = vadd.f32 %v1413_v29, %v1324_v30  ;;  %v1437_v34 = vmul.f32 %v1324_v30, %v1324_v30  ;;  %v1790_v36 = vadd.f32 %v1789_v55, %v1788_v31  ;;  %v1853_v38 = vpop.f32.mrb[61].mxu1  ;;  %v1791_v37 = vpop.f32.mrb[62].mxu0 }
 0x171   :  { %v1854_v40 = vadd.f32 %v1853_v38, %v1852_v32  ;;  %v1855_v42 = vpop.f32.mrb[62].mxu1  ;;  %v1792_v43 = vpop.f32.mrb[63].mxu0 }
 0x172   :  { %v1452_v25 = vadd.f32 %v1451_v33, %v1437_v34  ;;  %v1232_v44 = vadd.f32 %v1790_v36, %v2359_v51  ;;  %v1793_v45 = vadd.f32 %v1792_v43, %v1791_v37  ;;  %v1856_v46 = vpop.f32.mrb[63].mxu1 }
 0x173   :  { %v1857_v27 = vadd.f32 %v1856_v46, %v1855_v42 }
 0x174   :  { %v1329_v47 = vadd.f32 %v1854_v40, %v1232_v44  ;;  %v1235_v48 = vadd.f32 %v1793_v45, %v2361_v54 }
 0x176   :  { %1400 = vst [vmem:[%s2435_s2 + $0x70] sm:$0xff] %v1329_v47  ;;  %v1415_v49 = vadd.f32 %v1414_v35, %v1329_v47  ;;  %v1438_v50 = vmul.f32 %v1329_v47, %v1329_v47  ;;  %v1332_v52 = vadd.f32 %v1857_v27, %v1235_v48 }
 0x178   :  { %v1453_v3 = vadd.f32 %v1452_v25, %v1438_v50  ;;  %1401 = vst [vmem:[%s2435_s2 + $0x78] sm:$0xff] %v1332_v52  ;;  %v1416_v56 = vadd.f32 %v1415_v49, %v1332_v52  ;;  %v1439_v51 = vmul.f32 %v1332_v52, %v1332_v52 }
 0x17a   :  { %v1417_v57 = vrot.slane %v1416_v56, 4  ;;  %v1454_v58 = vadd.f32 %v1453_v3, %v1439_v51 }
 0x17c   :  { %v1418_v5 = vadd.f32 %v1417_v57, %v1416_v56  ;;  %v1455_v59 = vrot.slane %v1454_v58, 4 }
 0x17e   :  { %v1419_v60 = vrot.slane %v1418_v5, 2  ;;  %v1456_v54 = vadd.f32 %v1455_v59, %v1454_v58 }
 0x180   :  { %v1420_v61 = vadd.f32 %v1419_v60, %v1418_v5  ;;  %v1457_v62 = vrot.slane %v1456_v54, 2 }
 0x182   :  { %v1421_v63 = vrot.slane %v1420_v61, 1  ;;  %v1458_v0 = vadd.f32 %v1457_v62, %v1456_v54 }
 0x184   :  { %v1422_v1 = vadd.f32 %v1421_v63, %v1420_v61  ;;  %v1459_v2 = vrot.slane %v1458_v0, 1 }
 0x186   :  { %1423 = vst [vmem:[%s2436_s3] sm:$0x1] %v1422_v1  ;;  %v1460_v4 = vadd.f32 %v1459_v2, %v1458_v0 }
 0x188   :  { %1461 = vst [vmem:[%s2437_s4] sm:$0x1] %v1460_v4 }

// kernel: lpips_with_discriminator_forward.14
= control target key start
LH: loop header
LB: loop body
LE: loop exit
PB: predicated region body
PF: predicated region fallthrough
CT: control target
= control target key end

     0   :  { %s305_s0 = inlined_call_operand.vmem [shape: f32[128,128], index: 0, kind: input, shape index: {}]   ;;  %s306_s1 = inlined_call_operand.vmem [shape: f32[1,128], index: 1, kind: input, shape index: {}]   ;;  %s307_s2 = inlined_call_operand.vmem [shape: f32[1,128], index: 2, kind: input, shape index: {}]   ;;  %s308_s3 = inlined_call_operand.vmem [shape: f32[128,128], index: 3, kind: output, shape index: {}]  }
   0x1   :  { %v14_v0 = vld [vmem:[%s305_s0] sm:$0xff]  ;;  %v15_v4 = vld [vmem:[%s305_s0 + $0x8] sm:$0xff]  ;;  %v16_v5 = vld [vmem:[%s305_s0 + $0x10] sm:$0xff] }
   0x2   :  { %v172_v1 = vld [vmem:[%s306_s1] ss:$0 sm:$0xff]  ;;  %v17_v6 = vld [vmem:[%s305_s0 + $0x18] sm:$0xff]  ;;  %v19_v11 = vld [vmem:[%s305_s0 + $0x28] sm:$0xff] }
   0x3   :  { %v177_v2 = vld [vmem:[%s307_s2] ss:$0 sm:$0xff]  ;;  %v37_v3 = vmul.f32 %v172_v1, %v14_v0  ;;  %v38_v7 = vmul.f32 %v172_v1, %v15_v4  ;;  %v39_v8 = vmul.f32 %v172_v1, %v16_v5  ;;  %v40_v9 = vmul.f32 %v172_v1, %v17_v6  ;;  %v20_v12 = vld [vmem:[%s305_s0 + $0x30] sm:$0xff]  ;;  %v21_v17 = vld [vmem:[%s305_s0 + $0x38] sm:$0xff] }
   0x4   :  { %v18_v10 = vld [vmem:[%s305_s0 + $0x20] sm:$0xff]  ;;  %v42_v15 = vmul.f32 %v172_v1, %v19_v11  ;;  %v43_v16 = vmul.f32 %v172_v1, %v20_v12  ;;  %v44_v21 = vmul.f32 %v172_v1, %v21_v17  ;;  %v23_v30 = vld [vmem:[%s305_s0 + $0x48] sm:$0xff]  ;;  %v24_v31 = vld [vmem:[%s305_s0 + $0x50] sm:$0xff] }
   0x5   :  { %v60_v13 = vadd.f32 %v177_v2, %v37_v3  ;;  %v41_v14 = vmul.f32 %v172_v1, %v18_v10  ;;  %v61_v18 = vadd.f32 %v177_v2, %v38_v7  ;;  %v62_v19 = vadd.f32 %v177_v2, %v39_v8  ;;  %v22_v25 = vld [vmem:[%s305_s0 + $0x40] sm:$0xff]  ;;  %v25_v43 = vld [vmem:[%s305_s0 + $0x58] sm:$0xff]  ;;  %v27_v45 = vld [vmem:[%s305_s0 + $0x68] sm:$0xff] }
   0x6   :  { %v63_v20 = vadd.f32 %v177_v2, %v40_v9  ;;  %v65_v24 = vadd.f32 %v177_v2, %v42_v15  ;;  %v66_v37 = vadd.f32 %v177_v2, %v43_v16  ;;  %v67_v38 = vadd.f32 %v177_v2, %v44_v21  ;;  %v26_v44 = vld [vmem:[%s305_s0 + $0x60] sm:$0xff]  ;;  %v28_v56 = vld [vmem:[%s305_s0 + $0x70] sm:$0xff]  ;;  %v29_v4 = vld [vmem:[%s305_s0 + $0x78] sm:$0xff] }
   0x7   :  { %vm76_vm0 = vcmp.ge.f32.partialorder %v60_v13, 0.0  ;;  %v92_v22 = vmul.f32 0.2, %v60_v13  ;;  %v64_v23 = vadd.f32 %v177_v2, %v41_v14  ;;  %vm77_vm1 = vcmp.ge.f32.partialorder %v61_v18, 0.0 }
   0x8   :  { %v93_v26 = vmul.f32 0.2, %v61_v18  ;;  %vm78_vm2 = vcmp.ge.f32.partialorder %v62_v19, 0.0  ;;  %v94_v27 = vmul.f32 0.2, %v62_v19  ;;  %vm79_vm3 = vcmp.ge.f32.partialorder %v63_v20, 0.0 }
   0x9   :  { %v108_v28 = vsel %vm76_vm0, %v60_v13, %v92_v22  ;;  %v95_v29 = vmul.f32 0.2, %v63_v20  ;;  %vm80_vm4 = vcmp.ge.f32.partialorder %v64_v23, 0.0  ;;  %v96_v34 = vmul.f32 0.2, %v64_v23 }
   0xa   :  { %124 = vst [vmem:[%s308_s3] sm:$0xff] %v108_v28  ;;  %v109_v32 = vsel %vm77_vm1, %v61_v18, %v93_v26  ;;  %v110_v33 = vsel %vm78_vm2, %v62_v19, %v94_v27  ;;  %vm81_vm5 = vcmp.ge.f32.partialorder %v65_v24, 0.0  ;;  %v97_v36 = vmul.f32 0.2, %v65_v24 }
   0xb   :  { %125 = vst [vmem:[%s308_s3 + $0x8] sm:$0xff] %v109_v32  ;;  %126 = vst [vmem:[%s308_s3 + $0x10] sm:$0xff] %v110_v33  ;;  %v111_v35 = vsel %vm79_vm3, %v63_v20, %v95_v29  ;;  %v112_v39 = vsel %vm80_vm4, %v64_v23, %v96_v34  ;;  %v45_v40 = vmul.f32 %v172_v1, %v22_v25  ;;  %vm82_vm6 = vcmp.ge.f32.partialorder %v66_v37, 0.0 }
   0xc   :  { %127 = vst [vmem:[%s308_s3 + $0x18] sm:$0xff] %v111_v35  ;;  %v46_v41 = vmul.f32 %v172_v1, %v23_v30  ;;  %v47_v42 = vmul.f32 %v172_v1, %v24_v31  ;;  %128 = vst [vmem:[%s308_s3 + $0x20] sm:$0xff] %v112_v39  ;;  %v113_v46 = vsel %vm81_vm5, %v65_v24, %v97_v36  ;;  %v98_v47 = vmul.f32 0.2, %v66_v37 }
   0xd   :  { %vm83_vm7 = vcmp.ge.f32.partialorder %v67_v38, 0.0  ;;  %129 = vst [vmem:[%s308_s3 + $0x28] sm:$0xff] %v113_v46  ;;  %v99_v48 = vmul.f32 0.2, %v67_v38  ;;  %v68_v49 = vadd.f32 %v177_v2, %v45_v40  ;;  %v48_v53 = vmul.f32 %v172_v1, %v25_v43 }
   0xe   :  { %v69_v50 = vadd.f32 %v177_v2, %v46_v41  ;;  %v70_v51 = vadd.f32 %v177_v2, %v47_v42  ;;  %v114_v52 = vsel %vm82_vm6, %v66_v37, %v98_v47  ;;  %v49_v54 = vmul.f32 %v172_v1, %v26_v44 }
   0xf   :  { %v50_v55 = vmul.f32 %v172_v1, %v27_v45  ;;  %130 = vst [vmem:[%s308_s3 + $0x30] sm:$0xff] %v114_v52  ;;  %v115_v57 = vsel %vm83_vm7, %v67_v38, %v99_v48  ;;  %vm84_vm8 = vcmp.ge.f32.partialorder %v68_v49, 0.0  ;;  %v100_v58 = vmul.f32 0.2, %v68_v49 }
  0x10   :  { %vm85_vm9 = vcmp.ge.f32.partialorder %v69_v50, 0.0  ;;  %131 = vst [vmem:[%s308_s3 + $0x38] sm:$0xff] %v115_v57  ;;  %v101_v59 = vmul.f32 0.2, %v69_v50  ;;  %vm86_vm10 = vcmp.ge.f32.partialorder %v70_v51, 0.0  ;;  %v71_v61 = vadd.f32 %v177_v2, %v48_v53 }
  0x11   :  { %v102_v60 = vmul.f32 0.2, %v70_v51  ;;  %v116_v62 = vsel %vm84_vm8, %v68_v49, %v100_v58  ;;  %v72_v63 = vadd.f32 %v177_v2, %v49_v54  ;;  %v73_v0 = vadd.f32 %v177_v2, %v50_v55 }
  0x12   :  { %v51_v3 = vmul.f32 %v172_v1, %v28_v56  ;;  %132 = vst [vmem:[%s308_s3 + $0x40] sm:$0xff] %v116_v62  ;;  %v117_v5 = vsel %vm85_vm9, %v69_v50, %v101_v59  ;;  %vm87_vm11 = vcmp.ge.f32.partialorder %v71_v61, 0.0  ;;  %v103_v7 = vmul.f32 0.2, %v71_v61 }
  0x13   :  { %v118_v6 = vsel %vm86_vm10, %v70_v51, %v102_v60  ;;  %133 = vst [vmem:[%s308_s3 + $0x48] sm:$0xff] %v117_v5  ;;  %vm88_vm12 = vcmp.ge.f32.partialorder %v72_v63, 0.0  ;;  %v104_v8 = vmul.f32 0.2, %v72_v63  ;;  %vm89_vm13 = vcmp.ge.f32.partialorder %v73_v0, 0.0 }
  0x14   :  { %134 = vst [vmem:[%s308_s3 + $0x50] sm:$0xff] %v118_v6  ;;  %v105_v9 = vmul.f32 0.2, %v73_v0  ;;  %v119_v10 = vsel %vm87_vm11, %v71_v61, %v103_v7  ;;  %v74_v11 = vadd.f32 %v177_v2, %v51_v3  ;;  %v52_v12 = vmul.f32 %v172_v1, %v29_v4 }
  0x15   :  { %135 = vst [vmem:[%s308_s3 + $0x58] sm:$0xff] %v119_v10  ;;  %v120_v13 = vsel %vm88_vm12, %v72_v63, %v104_v8 }
  0x16   :  { %v121_v14 = vsel %vm89_vm13, %v73_v0, %v105_v9  ;;  %136 = vst [vmem:[%s308_s3 + $0x60] sm:$0xff] %v120_v13  ;;  %vm90_vm14 = vcmp.ge.f32.partialorder %v74_v11, 0.0  ;;  %v106_v15 = vmul.f32 0.2, %v74_v11  ;;  %v75_v16 = vadd.f32 %v177_v2, %v52_v12 }
  0x17   :  { %137 = vst [vmem:[%s308_s3 + $0x68] sm:$0xff] %v121_v14 }
  0x18   :  { %v122_v17 = vsel %vm90_vm14, %v74_v11, %v106_v15  ;;  %vm91_vm15 = vcmp.ge.f32.partialorder %v75_v16, 0.0  ;;  %v107_v1 = vmul.f32 0.2, %v75_v16 }
  0x19   :  { %138 = vst [vmem:[%s308_s3 + $0x70] sm:$0xff] %v122_v17 }
  0x1a   :  { %v123_v18 = vsel %vm91_vm15, %v75_v16, %v107_v1 }
  0x1b   :  { %139 = vst [vmem:[%s308_s3 + $0x78] sm:$0xff] %v123_v18 }

// kernel: lpips_with_discriminator_forward.16
= control target key start
LH: loop header
LB: loop body
LE: loop exit
PB: predicated region body
PF: predicated region fallthrough
CT: control target
= control target key end

     0   :  { %v24_v0 = vlaneseq  ;;  %s172_s1 = inlined_call_operand.vmem [shape: f32[1,256], index: 1, kind: input, shape index: {}]   ;;  %s173_s2 = inlined_call_operand.vmem [shape: f32[1,256], index: 2, kind: input, shape index: {}]   ;;  %s174_s0 = inlined_call_operand.vmem [shape: f32[32,256], index: 0, kind: input, shape index: {}]   ;;  %s175_s3 = inlined_call_operand.vmem [shape: f32[32,256], index: 3, kind: output, shape index: {}]  }
   0x1   :  { %v22_v2 = vld [vmem:[%s172_s1] sm:$0x3]  ;;  %v15_v6 = vld [vmem:[%s174_s0 + $0x8] sm:$0xff]  ;;  %v16_v8 = vld [vmem:[%s174_s0 + $0x10] sm:$0xff] }
   0x2   :  { %v25_v1 = vshrl.u32 %v24_v0, 7  ;;  %v42_v3 = vld [vmem:[%s173_s2] sm:$0x3]  ;;  %v17_v9 = vld [vmem:[%s174_s0 + $0x18] sm:$0xff]  ;;  %v19_v15 = vld [vmem:[%s174_s0 + $0x28] sm:$0xff] }
   0x3   :  { %v14_v4 = vld [vmem:[%s174_s0] sm:$0xff]  ;;  %v20_v16 = vld [vmem:[%s174_s0 + $0x30] sm:$0xff]  ;;  %v21_v17 = vld [vmem:[%s174_s0 + $0x38] sm:$0xff] }
   0x4   :  { %v26_v5 = vsub.s32 0, %v25_v1  ;;  %v30_v7 = vsub.s32 1, %v25_v1  ;;  %v18_v10 = vld [vmem:[%s174_s0 + $0x20] sm:$0xff] }
   0x6   :  { %v27_v11 = vrot.slane %v22_v2, %v26_v5  ;;  %v47_v12 = vrot.slane %v42_v3, %v26_v5  ;;  %v31_v13 = vrot.slane %v22_v2, %v30_v7  ;;  %v51_v14 = vrot.slane %v42_v3, %v30_v7 }
   0x8   :  { %v34_v18 = vmul.f32 %v27_v11, %v14_v4  ;;  %v35_v19 = vmul.f32 %v31_v13, %v15_v6  ;;  %v36_v20 = vmul.f32 %v27_v11, %v16_v8  ;;  %v37_v21 = vmul.f32 %v31_v13, %v17_v9 }
   0x9   :  { %v38_v22 = vmul.f32 %v27_v11, %v18_v10  ;;  %v39_v23 = vmul.f32 %v31_v13, %v19_v15  ;;  %v40_v24 = vmul.f32 %v27_v11, %v20_v16  ;;  %v41_v25 = vmul.f32 %v31_v13, %v21_v17 }
   0xa   :  { %v54_v26 = vadd.f32 %v47_v12, %v34_v18  ;;  %v55_v27 = vadd.f32 %v51_v14, %v35_v19  ;;  %v56_v28 = vadd.f32 %v47_v12, %v36_v20  ;;  %v57_v29 = vadd.f32 %v51_v14, %v37_v21 }
   0xb   :  { %v58_v30 = vadd.f32 %v47_v12, %v38_v22  ;;  %v59_v31 = vadd.f32 %v51_v14, %v39_v23  ;;  %v60_v32 = vadd.f32 %v47_v12, %v40_v24  ;;  %v61_v33 = vadd.f32 %v51_v14, %v41_v25 }
   0xc   :  { %vm62_vm0 = vcmp.ge.f32.partialorder %v54_v26, 0.0  ;;  %v70_v34 = vmul.f32 0.2, %v54_v26  ;;  %vm63_vm1 = vcmp.ge.f32.partialorder %v55_v27, 0.0  ;;  %v71_v35 = vmul.f32 0.2, %v55_v27 }
   0xd   :  { %vm64_vm2 = vcmp.ge.f32.partialorder %v56_v28, 0.0  ;;  %v72_v36 = vmul.f32 0.2, %v56_v28  ;;  %vm65_vm3 = vcmp.ge.f32.partialorder %v57_v29, 0.0  ;;  %v73_v37 = vmul.f32 0.2, %v57_v29 }
   0xe   :  { %v78_v38 = vsel %vm62_vm0, %v54_v26, %v70_v34  ;;  %v79_v39 = vsel %vm63_vm1, %v55_v27, %v71_v35  ;;  %vm66_vm4 = vcmp.ge.f32.partialorder %v58_v30, 0.0  ;;  %v74_v40 = vmul.f32 0.2, %v58_v30 }
   0xf   :  { %86 = vst [vmem:[%s175_s3] sm:$0xff] %v78_v38  ;;  %87 = vst [vmem:[%s175_s3 + $0x8] sm:$0xff] %v79_v39  ;;  %v80_v41 = vsel %vm64_vm2, %v56_v28, %v72_v36  ;;  %v81_v42 = vsel %vm65_vm3, %v57_v29, %v73_v37  ;;  %vm67_vm5 = vcmp.ge.f32.partialorder %v59_v31, 0.0  ;;  %v75_v43 = vmul.f32 0.2, %v59_v31 }
  0x10   :  { %88 = vst [vmem:[%s175_s3 + $0x10] sm:$0xff] %v80_v41  ;;  %89 = vst [vmem:[%s175_s3 + $0x18] sm:$0xff] %v81_v42  ;;  %v82_v44 = vsel %vm66_vm4, %v58_v30, %v74_v40  ;;  %vm68_vm6 = vcmp.ge.f32.partialorder %v60_v32, 0.0  ;;  %v76_v45 = vmul.f32 0.2, %v60_v32  ;;  %vm69_vm7 = vcmp.ge.f32.partialorder %v61_v33, 0.0 }
  0x11   :  { %90 = vst [vmem:[%s175_s3 + $0x20] sm:$0xff] %v82_v44  ;;  %v83_v46 = vsel %vm67_vm5, %v59_v31, %v75_v43  ;;  %v77_v47 = vmul.f32 0.2, %v61_v33 }
  0x12   :  { %91 = vst [vmem:[%s175_s3 + $0x28] sm:$0xff] %v83_v46  ;;  %v84_v48 = vsel %vm68_vm6, %v60_v32, %v76_v45 }
  0x13   :  { %92 = vst [vmem:[%s175_s3 + $0x30] sm:$0xff] %v84_v48  ;;  %v85_v49 = vsel %vm69_vm7, %v61_v33, %v77_v47 }
  0x14   :  { %93 = vst [vmem:[%s175_s3 + $0x38] sm:$0xff] %v85_v49 }

// kernel: lpips_with_discriminator_forward.18
= control target key start
LH: loop header
LB: loop body
LE: loop exit
PB: predicated region body
PF: predicated region fallthrough
CT: control target
= control target key end

     0   :  { %v32_v0 = vlaneseq  ;;  %s344_s1 = inlined_call_operand.vmem [shape: f32[1,512], index: 1, kind: input, shape index: {}]   ;;  %s345_s2 = inlined_call_operand.vmem [shape: f32[1,512], index: 2, kind: input, shape index: {}]   ;;  %s346_s0 = inlined_call_operand.vmem [shape: f32[32,512], index: 0, kind: input, shape index: {}]   ;;  %s347_s3 = inlined_call_operand.vmem [shape: f32[32,512], index: 3, kind: output, shape index: {}]  }
   0x1   :  { %v30_v2 = vld [vmem:[%s344_s1] sm:$0xf]  ;;  %v15_v6 = vld [vmem:[%s346_s0 + $0x8] sm:$0xff]  ;;  %v16_v10 = vld [vmem:[%s346_s0 + $0x10] sm:$0xff] }
   0x2   :  { %v33_v1 = vshrl.u32 %v32_v0, 7  ;;  %v68_v3 = vld [vmem:[%s345_s2] sm:$0xf]  ;;  %v19_v12 = vld [vmem:[%s346_s0 + $0x28] sm:$0xff]  ;;  %v17_v17 = vld [vmem:[%s346_s0 + $0x18] sm:$0xff] }
   0x3   :  { %v14_v4 = vld [vmem:[%s346_s0] sm:$0xff]  ;;  %v20_v18 = vld [vmem:[%s346_s0 + $0x30] sm:$0xff]  ;;  %v21_v19 = vld [vmem:[%s346_s0 + $0x38] sm:$0xff] }
   0x4   :  { %v34_v5 = vsub.s32 0, %v33_v1  ;;  %v38_v7 = vsub.s32 1, %v33_v1  ;;  %v42_v8 = vsub.s32 2, %v33_v1  ;;  %v46_v9 = vsub.s32 3, %v33_v1  ;;  %v18_v11 = vld [vmem:[%s346_s0 + $0x20] sm:$0xff]  ;;  %v23_v48 = vld [vmem:[%s346_s0 + $0x48] sm:$0xff] }
   0x5   :  { %v22_v47 = vld [vmem:[%s346_s0 + $0x40] sm:$0xff]  ;;  %v24_v52 = vld [vmem:[%s346_s0 + $0x50] sm:$0xff]  ;;  %v25_v53 = vld [vmem:[%s346_s0 + $0x58] sm:$0xff] }
   0x6   :  { %v215_v13 = vrot.slane %v30_v2, %v34_v5  ;;  %v217_v14 = vrot.slane %v68_v3, %v34_v5  ;;  %v219_v15 = vrot.slane %v30_v2, %v38_v7  ;;  %v221_v16 = vrot.slane %v68_v3, %v38_v7  ;;  %v26_v54 = vld [vmem:[%s346_s0 + $0x60] sm:$0xff]  ;;  %v27_v57 = vld [vmem:[%s346_s0 + $0x68] sm:$0xff]  ;;  %v28_v62 = vld [vmem:[%s346_s0 + $0x70] sm:$0xff] }
   0x7   :  { %v232_v20 = vrot.slane %v30_v2, %v42_v8  ;;  %v234_v21 = vrot.slane %v68_v3, %v42_v8  ;;  %v236_v22 = vrot.slane %v30_v2, %v46_v9  ;;  %v238_v23 = vrot.slane %v68_v3, %v46_v9 }
   0x8   :  { %v52_v24 = vmul.f32 %v215_v13, %v14_v4  ;;  %v53_v25 = vmul.f32 %v219_v15, %v15_v6  ;;  %v56_v26 = vmul.f32 %v215_v13, %v18_v11  ;;  %v57_v27 = vmul.f32 %v219_v15, %v19_v12  ;;  %v29_v11 = vld [vmem:[%s346_s0 + $0x78] sm:$0xff] }
   0x9   :  { %v54_v28 = vmul.f32 %v232_v20, %v16_v10  ;;  %v55_v29 = vmul.f32 %v236_v22, %v17_v17  ;;  %v58_v30 = vmul.f32 %v232_v20, %v20_v18  ;;  %v59_v31 = vmul.f32 %v236_v22, %v21_v19 }
   0xa   :  { %v90_v32 = vadd.f32 %v217_v14, %v52_v24  ;;  %v91_v33 = vadd.f32 %v221_v16, %v53_v25  ;;  %v94_v34 = vadd.f32 %v217_v14, %v56_v26  ;;  %v95_v35 = vadd.f32 %v221_v16, %v57_v27 }
   0xb   :  { %v92_v36 = vadd.f32 %v234_v21, %v54_v28  ;;  %v93_v37 = vadd.f32 %v238_v23, %v55_v29  ;;  %v96_v38 = vadd.f32 %v234_v21, %v58_v30  ;;  %v97_v39 = vadd.f32 %v238_v23, %v59_v31 }
   0xc   :  { %vm106_vm0 = vcmp.ge.f32.partialorder %v90_v32, 0.0  ;;  %v122_v40 = vmul.f32 0.2, %v90_v32  ;;  %vm107_vm1 = vcmp.ge.f32.partialorder %v91_v33, 0.0  ;;  %v123_v41 = vmul.f32 0.2, %v91_v33 }
   0xd   :  { %vm108_vm2 = vcmp.ge.f32.partialorder %v92_v36, 0.0  ;;  %v124_v42 = vmul.f32 0.2, %v92_v36  ;;  %vm109_vm3 = vcmp.ge.f32.partialorder %v93_v37, 0.0  ;;  %v125_v43 = vmul.f32 0.2, %v93_v37 }
   0xe   :  { %v138_v44 = vsel %vm106_vm0, %v90_v32, %v122_v40  ;;  %v139_v45 = vsel %vm107_vm1, %v91_v33, %v123_v41  ;;  %vm110_vm4 = vcmp.ge.f32.partialorder %v94_v34, 0.0  ;;  %v126_v46 = vmul.f32 0.2, %v94_v34 }
   0xf   :  { %154 = vst [vmem:[%s347_s3] sm:$0xff] %v138_v44  ;;  %155 = vst [vmem:[%s347_s3 + $0x8] sm:$0xff] %v139_v45  ;;  %v140_v49 = vsel %vm108_vm2, %v92_v36, %v124_v42  ;;  %v141_v50 = vsel %vm109_vm3, %v93_v37, %v125_v43  ;;  %vm111_vm5 = vcmp.ge.f32.partialorder %v95_v35, 0.0  ;;  %v127_v51 = vmul.f32 0.2, %v95_v35 }
  0x10   :  { %156 = vst [vmem:[%s347_s3 + $0x10] sm:$0xff] %v140_v49  ;;  %157 = vst [vmem:[%s347_s3 + $0x18] sm:$0xff] %v141_v50  ;;  %v142_v55 = vsel %vm110_vm4, %v94_v34, %v126_v46  ;;  %vm112_vm6 = vcmp.ge.f32.partialorder %v96_v38, 0.0  ;;  %v128_v56 = vmul.f32 0.2, %v96_v38  ;;  %vm113_vm7 = vcmp.ge.f32.partialorder %v97_v39, 0.0 }
  0x11   :  { %158 = vst [vmem:[%s347_s3 + $0x20] sm:$0xff] %v142_v55  ;;  %v143_v58 = vsel %vm111_vm5, %v95_v35, %v127_v51  ;;  %v129_v59 = vmul.f32 0.2, %v97_v39  ;;  %v60_v60 = vmul.f32 %v215_v13, %v22_v47  ;;  %v61_v61 = vmul.f32 %v219_v15, %v23_v48 }
  0x12   :  { %159 = vst [vmem:[%s347_s3 + $0x28] sm:$0xff] %v143_v58  ;;  %v144_v63 = vsel %vm112_vm6, %v96_v38, %v128_v56  ;;  %v62_v0 = vmul.f32 %v232_v20, %v24_v52  ;;  %v63_v1 = vmul.f32 %v236_v22, %v25_v53  ;;  %v64_v2 = vmul.f32 %v215_v13, %v26_v54 }
  0x13   :  { %160 = vst [vmem:[%s347_s3 + $0x30] sm:$0xff] %v144_v63  ;;  %v145_v3 = vsel %vm113_vm7, %v97_v39, %v129_v59  ;;  %v98_v4 = vadd.f32 %v217_v14, %v60_v60  ;;  %v99_v5 = vadd.f32 %v221_v16, %v61_v61  ;;  %v65_v6 = vmul.f32 %v219_v15, %v27_v57 }
  0x14   :  { %161 = vst [vmem:[%s347_s3 + $0x38] sm:$0xff] %v145_v3  ;;  %v100_v7 = vadd.f32 %v234_v21, %v62_v0  ;;  %v101_v8 = vadd.f32 %v238_v23, %v63_v1  ;;  %v102_v9 = vadd.f32 %v217_v14, %v64_v2  ;;  %v66_v10 = vmul.f32 %v232_v20, %v28_v62 }
  0x15   :  { %vm114_vm8 = vcmp.ge.f32.partialorder %v98_v4, 0.0  ;;  %v130_v12 = vmul.f32 0.2, %v98_v4  ;;  %vm115_vm9 = vcmp.ge.f32.partialorder %v99_v5, 0.0  ;;  %v131_v13 = vmul.f32 0.2, %v99_v5 }
  0x16   :  { %vm116_vm10 = vcmp.ge.f32.partialorder %v100_v7, 0.0  ;;  %v132_v15 = vmul.f32 0.2, %v100_v7  ;;  %vm117_vm11 = vcmp.ge.f32.partialorder %v101_v8, 0.0  ;;  %v133_v17 = vmul.f32 0.2, %v101_v8 }
  0x17   :  { %v146_v18 = vsel %vm114_vm8, %v98_v4, %v130_v12  ;;  %v147_v19 = vsel %vm115_vm9, %v99_v5, %v131_v13  ;;  %vm118_vm12 = vcmp.ge.f32.partialorder %v102_v9, 0.0  ;;  %v134_v24 = vmul.f32 0.2, %v102_v9 }
  0x18   :  { %162 = vst [vmem:[%s347_s3 + $0x40] sm:$0xff] %v146_v18  ;;  %163 = vst [vmem:[%s347_s3 + $0x48] sm:$0xff] %v147_v19  ;;  %v148_v14 = vsel %vm116_vm10, %v100_v7, %v132_v15  ;;  %v149_v20 = vsel %vm117_vm11, %v101_v8, %v133_v17  ;;  %v103_v25 = vadd.f32 %v221_v16, %v65_v6 }
  0x19   :  { %v104_v26 = vadd.f32 %v234_v21, %v66_v10  ;;  %164 = vst [vmem:[%s347_s3 + $0x50] sm:$0xff] %v148_v14  ;;  %165 = vst [vmem:[%s347_s3 + $0x58] sm:$0xff] %v149_v20  ;;  %v150_v27 = vsel %vm118_vm12, %v102_v9, %v134_v24  ;;  %v67_v28 = vmul.f32 %v236_v22, %v29_v11 }
  0x1a   :  { %166 = vst [vmem:[%s347_s3 + $0x60] sm:$0xff] %v150_v27  ;;  %vm119_vm13 = vcmp.ge.f32.partialorder %v103_v25, 0.0  ;;  %v135_v29 = vmul.f32 0.2, %v103_v25 }
  0x1b   :  { %vm120_vm14 = vcmp.ge.f32.partialorder %v104_v26, 0.0  ;;  %v136_v16 = vmul.f32 0.2, %v104_v26  ;;  %v105_v21 = vadd.f32 %v238_v23, %v67_v28 }
  0x1c   :  { %v151_v30 = vsel %vm119_vm13, %v103_v25, %v135_v29 }
  0x1d   :  { %v152_v31 = vsel %vm120_vm14, %v104_v26, %v136_v16  ;;  %167 = vst [vmem:[%s347_s3 + $0x68] sm:$0xff] %v151_v30  ;;  %vm121_vm15 = vcmp.ge.f32.partialorder %v105_v21, 0.0  ;;  %v137_v22 = vmul.f32 0.2, %v105_v21 }
  0x1e   :  { %168 = vst [vmem:[%s347_s3 + $0x70] sm:$0xff] %v152_v31 }
  0x1f   :  { %v153_v32 = vsel %vm121_vm15, %v105_v21, %v137_v22 }
  0x20   :  { %169 = vst [vmem:[%s347_s3 + $0x78] sm:$0xff] %v153_v32 }

// kernel: lpips_with_discriminator_forward.15
= control target key start
LH: loop header
LB: loop body
LE: loop exit
PB: predicated region body
PF: predicated region fallthrough
CT: control target
= control target key end

     0   :  { %s4016_s1 = inlined_call_operand.vmem [shape: bf16[2048,256], index: 1, kind: input, shape index: {}]   ;;  %s4017_s0 = inlined_call_operand.vmem [shape: bf16[32,2048], index: 0, kind: input, shape index: {}]   ;;  %s4018_s2 = inlined_call_operand.vmem [shape: f32[32,256], index: 2, kind: output, shape index: {0}]   ;;  %s4019_s3 = inlined_call_operand.vmem [shape: f32[1,256], index: 3, kind: output, shape index: {1}]   ;;  %s4020_s4 = inlined_call_operand.vmem [shape: f32[1,256], index: 4, kind: output, shape index: {2}]  }
   0x1   :  { %v2664_v0 = vld [vmem:[%s4016_s1 + $0x4] ss:$8 sps:$4 sm:$0xff]   ;;  %v2668_v2 = vld [vmem:[%s4016_s1] ss:$8 sps:$4 sm:$0xff]   ;;  %v2670_v4 = vld [vmem:[%s4016_s1 + $0x14] ss:$8 sps:$4 sm:$0xff]  }
   0x2   :  { %v2666_v1 = vld [vmem:[%s4016_s1 + $0x404] ss:$8 sps:$4 sm:$0xff]   ;;  %1762 = vmatprep.subr.bf16.mxu1 %v2664_v0  ;;  %v2669_v3 = vld [vmem:[%s4016_s1 + $0x400] ss:$8 sps:$4 sm:$0xff]   ;;  %v2672_v5 = vld [vmem:[%s4016_s1 + $0x414] ss:$8 sps:$4 sm:$0xff]  }
   0x3   :  { %1974 = vmatprep.subr.bf16.mxu0 %v2666_v1  ;;  %1763 = vmatpush1.bf16.msra.mxu1 %v2668_v2  ;;  %v2674_v6 = vld [vmem:[%s4016_s1 + $0x10] ss:$8 sps:$4 sm:$0xff]   ;;  %v2676_v8 = vld [vmem:[%s4016_s1 + $0x24] ss:$8 sps:$4 sm:$0xff]   ;;  %v2680_v10 = vld [vmem:[%s4016_s1 + $0x20] ss:$8 sps:$4 sm:$0xff]  }
   0x4   :  { %1975 = vmatpush1.bf16.msra.mxu0 %v2669_v3  ;;  %1764 = vmatprep.subr.bf16.mxu1 %v2670_v4  ;;  %v2675_v7 = vld [vmem:[%s4016_s1 + $0x410] ss:$8 sps:$4 sm:$0xff]   ;;  %v2678_v9 = vld [vmem:[%s4016_s1 + $0x424] ss:$8 sps:$4 sm:$0xff]   ;;  %v2681_v11 = vld [vmem:[%s4016_s1 + $0x420] ss:$8 sps:$4 sm:$0xff]  }
   0x5   :  { %1976 = vmatprep.subr.bf16.mxu0 %v2672_v5  ;;  %v2682_v12 = vld [vmem:[%s4016_s1 + $0x34] ss:$8 sps:$4 sm:$0xff]   ;;  %v2686_v14 = vld [vmem:[%s4016_s1 + $0x30] ss:$8 sps:$4 sm:$0xff]   ;;  %v2688_v16 = vld [vmem:[%s4016_s1 + $0x44] ss:$8 sps:$4 sm:$0xff]  }
   0x6   :  { %v2684_v13 = vld [vmem:[%s4016_s1 + $0x434] ss:$8 sps:$4 sm:$0xff]   ;;  %v2687_v15 = vld [vmem:[%s4016_s1 + $0x430] ss:$8 sps:$4 sm:$0xff]   ;;  %v2690_v17 = vld [vmem:[%s4016_s1 + $0x444] ss:$8 sps:$4 sm:$0xff]  }
   0x7   :  { %1765 = vmatpush1.bf16.msra.mxu1 %v2674_v6  ;;  %v2692_v18 = vld [vmem:[%s4016_s1 + $0x40] ss:$8 sps:$4 sm:$0xff]   ;;  %v2694_v20 = vld [vmem:[%s4016_s1 + $0x54] ss:$8 sps:$4 sm:$0xff]   ;;  %v2698_v22 = vld [vmem:[%s4016_s1 + $0x50] ss:$8 sps:$4 sm:$0xff]  }
   0x8   :  { %1977 = vmatpush1.bf16.msra.mxu0 %v2675_v7  ;;  %1766 = vmatprep.subr.bf16.mxu1 %v2676_v8  ;;  %v2693_v19 = vld [vmem:[%s4016_s1 + $0x440] ss:$8 sps:$4 sm:$0xff]   ;;  %v2696_v21 = vld [vmem:[%s4016_s1 + $0x454] ss:$8 sps:$4 sm:$0xff]   ;;  %v2699_v23 = vld [vmem:[%s4016_s1 + $0x450] ss:$8 sps:$4 sm:$0xff]  }
   0x9   :  { %1978 = vmatprep.subr.bf16.mxu0 %v2678_v9  ;;  %v2700_v24 = vld [vmem:[%s4016_s1 + $0x64] ss:$8 sps:$4 sm:$0xff]   ;;  %v2704_v26 = vld [vmem:[%s4016_s1 + $0x60] ss:$8 sps:$4 sm:$0xff]   ;;  %v2706_v28 = vld [vmem:[%s4016_s1 + $0x74] ss:$8 sps:$4 sm:$0xff]  }
   0xa   :  { %v2702_v25 = vld [vmem:[%s4016_s1 + $0x464] ss:$8 sps:$4 sm:$0xff]   ;;  %v2705_v27 = vld [vmem:[%s4016_s1 + $0x460] ss:$8 sps:$4 sm:$0xff]   ;;  %v2708_v29 = vld [vmem:[%s4016_s1 + $0x474] ss:$8 sps:$4 sm:$0xff]  }
   0xb   :  { %1767 = vmatpush1.bf16.msra.mxu1 %v2680_v10  ;;  %v2710_v30 = vld [vmem:[%s4016_s1 + $0x70] ss:$8 sps:$4 sm:$0xff]   ;;  %v2712_v32 = vld [vmem:[%s4016_s1 + $0x84] ss:$8 sps:$4 sm:$0xff]   ;;  %v2716_v34 = vld [vmem:[%s4016_s1 + $0x80] ss:$8 sps:$4 sm:$0xff]  }
   0xc   :  { %1979 = vmatpush1.bf16.msra.mxu0 %v2681_v11  ;;  %1768 = vmatprep.subr.bf16.mxu1 %v2682_v12  ;;  %v2711_v31 = vld [vmem:[%s4016_s1 + $0x470] ss:$8 sps:$4 sm:$0xff]   ;;  %v2714_v33 = vld [vmem:[%s4016_s1 + $0x484] ss:$8 sps:$4 sm:$0xff]   ;;  %v2717_v35 = vld [vmem:[%s4016_s1 + $0x480] ss:$8 sps:$4 sm:$0xff]  }
   0xd   :  { %1980 = vmatprep.subr.bf16.mxu0 %v2684_v13  ;;  %v2718_v36 = vld [vmem:[%s4016_s1 + $0x94] ss:$8 sps:$4 sm:$0xff]   ;;  %v2722_v38 = vld [vmem:[%s4016_s1 + $0x90] ss:$8 sps:$4 sm:$0xff]   ;;  %v2724_v40 = vld [vmem:[%s4016_s1 + $0xa4] ss:$8 sps:$4 sm:$0xff]  }
   0xe   :  { %v2720_v37 = vld [vmem:[%s4016_s1 + $0x494] ss:$8 sps:$4 sm:$0xff]   ;;  %v2723_v39 = vld [vmem:[%s4016_s1 + $0x490] ss:$8 sps:$4 sm:$0xff]   ;;  %v2726_v41 = vld [vmem:[%s4016_s1 + $0x4a4] ss:$8 sps:$4 sm:$0xff]  }
   0xf   :  { %1769 = vmatpush1.bf16.msra.mxu1 %v2686_v14  ;;  %v2728_v42 = vld [vmem:[%s4016_s1 + $0xa0] ss:$8 sps:$4 sm:$0xff]   ;;  %v2730_v44 = vld [vmem:[%s4016_s1 + $0xb4] ss:$8 sps:$4 sm:$0xff]   ;;  %v2734_v46 = vld [vmem:[%s4016_s1 + $0xb0] ss:$8 sps:$4 sm:$0xff]  }
  0x10   :  { %1981 = vmatpush1.bf16.msra.mxu0 %v2687_v15  ;;  %1770 = vmatprep.subr.bf16.mxu1 %v2688_v16  ;;  %v2729_v43 = vld [vmem:[%s4016_s1 + $0x4a0] ss:$8 sps:$4 sm:$0xff]   ;;  %v2732_v45 = vld [vmem:[%s4016_s1 + $0x4b4] ss:$8 sps:$4 sm:$0xff]   ;;  %v2735_v47 = vld [vmem:[%s4016_s1 + $0x4b0] ss:$8 sps:$4 sm:$0xff]  }
  0x11   :  { %1982 = vmatprep.subr.bf16.mxu0 %v2690_v17  ;;  %v34_v48 = vld [vmem:[%s4017_s0] sm:$0xff]  ;;  %v2742_v58 = vld [vmem:[%s4016_s1 + $0xd4] ss:$8 sps:$4 sm:$0xff]   ;;  %v2746_v60 = vld [vmem:[%s4016_s1 + $0xd0] ss:$8 sps:$4 sm:$0xff]  }
  0x12   :  { %v42_v49 = vld [vmem:[%s4017_s0 + $0x40] sm:$0xff]  ;;  %v2744_v59 = vld [vmem:[%s4016_s1 + $0x4d4] ss:$8 sps:$4 sm:$0xff]   ;;  %v2747_v61 = vld [vmem:[%s4016_s1 + $0x4d0] ss:$8 sps:$4 sm:$0xff]  }
  0x13   :  { %1771 = vmatpush1.bf16.msra.mxu1 %v2692_v18  ;;  %v2736_v50 = vld [vmem:[%s4016_s1 + $0xc4] ss:$8 sps:$4 sm:$0xff]   ;;  %v2320_v52 = vcombine.high %v34_v48, %v42_v49  ;;  %v2740_v56 = vld [vmem:[%s4016_s1 + $0xc0] ss:$8 sps:$4 sm:$0xff]   ;;  %v2754_v2 = vld [vmem:[%s4016_s1 + $0xf4] ss:$8 sps:$4 sm:$0xff]   ;;  %v2319_v8 = vcombine.low %v34_v48, %v42_v49 }
  0x14   :  { %1983 = vmatpush1.bf16.msra.mxu0 %v2693_v19  ;;  %1772 = vmatprep.subr.bf16.mxu1 %v2694_v20  ;;  %v2738_v51 = vld [vmem:[%s4016_s1 + $0x4c4] ss:$8 sps:$4 sm:$0xff]   ;;  %v2741_v57 = vld [vmem:[%s4016_s1 + $0x4c0] ss:$8 sps:$4 sm:$0xff]   ;;  %v2756_v3 = vld [vmem:[%s4016_s1 + $0x4f4] ss:$8 sps:$4 sm:$0xff]  }
  0x15   :  { %1984 = vmatprep.subr.bf16.mxu0 %v2696_v21  ;;  %v38_v53 = vld [vmem:[%s4017_s0 + $0x20] sm:$0xff]  ;;  %1794 = vmatprep.mubr.bf16.mxu1 %v2320_v52  ;;  %v2758_v4 = vld [vmem:[%s4016_s1 + $0xf0] ss:$8 sps:$4 sm:$0xff]   ;;  %v2768_v12 = vld [vmem:[%s4016_s1 + $0x114] ss:$8 sps:$4 sm:$0xff]  }
  0x16   :  { %v46_v54 = vld [vmem:[%s4017_s0 + $0x60] sm:$0xff]  ;;  %v2759_v5 = vld [vmem:[%s4016_s1 + $0x4f0] ss:$8 sps:$4 sm:$0xff]   ;;  %v2771_v13 = vld [vmem:[%s4016_s1 + $0x514] ss:$8 sps:$4 sm:$0xff]  }
  0x17   :  { %1773 = vmatpush1.bf16.msra.mxu1 %v2698_v22  ;;  %v2328_v55 = vcombine.high %v38_v53, %v46_v54  ;;  %v2748_v62 = vld [vmem:[%s4016_s1 + $0xe4] ss:$8 sps:$4 sm:$0xff]   ;;  %v2752_v0 = vld [vmem:[%s4016_s1 + $0xe0] ss:$8 sps:$4 sm:$0xff]   ;;  %v2327_v10 = vcombine.low %v38_v53, %v46_v54  ;;  %v2766_v14 = vld [vmem:[%s4016_s1 + $0x110] ss:$8 sps:$4 sm:$0xff]  }
  0x18   :  { %1985 = vmatpush1.bf16.msra.mxu0 %v2699_v23  ;;  %1774 = vmatprep.subr.bf16.mxu1 %v2700_v24  ;;  %v2750_v63 = vld [vmem:[%s4016_s1 + $0x4e4] ss:$8 sps:$4 sm:$0xff]   ;;  %v2753_v1 = vld [vmem:[%s4016_s1 + $0x4e0] ss:$8 sps:$4 sm:$0xff]   ;;  %v2769_v15 = vld [vmem:[%s4016_s1 + $0x510] ss:$8 sps:$4 sm:$0xff]  }
  0x19   :  { %1986 = vmatprep.subr.bf16.mxu0 %v2702_v25  ;;  %2006 = vmatprep.mubr.bf16.mxu0 %v2328_v55  ;;  %v2762_v6 = vld [vmem:[%s4016_s1 + $0x104] ss:$8 sps:$4 sm:$0xff]   ;;  %v2760_v9 = vld [vmem:[%s4016_s1 + $0x100] ss:$8 sps:$4 sm:$0xff]   ;;  %v2780_v20 = vld [vmem:[%s4016_s1 + $0x134] ss:$8 sps:$4 sm:$0xff]  }
  0x1a   :  { %v2765_v7 = vld [vmem:[%s4016_s1 + $0x504] ss:$8 sps:$4 sm:$0xff]   ;;  %v2763_v11 = vld [vmem:[%s4016_s1 + $0x500] ss:$8 sps:$4 sm:$0xff]   ;;  %v2783_v21 = vld [vmem:[%s4016_s1 + $0x534] ss:$8 sps:$4 sm:$0xff]  }
  0x1b   :  { %1775 = vmatpush1.bf16.msra.mxu1 %v2704_v26  ;;  %v2774_v16 = vld [vmem:[%s4016_s1 + $0x124] ss:$8 sps:$4 sm:$0xff]   ;;  %v2772_v18 = vld [vmem:[%s4016_s1 + $0x120] ss:$8 sps:$4 sm:$0xff]   ;;  %v2778_v22 = vld [vmem:[%s4016_s1 + $0x130] ss:$8 sps:$4 sm:$0xff]  }
  0x1c   :  { %1987 = vmatpush1.bf16.msra.mxu0 %v2705_v27  ;;  %1776 = vmatprep.subr.bf16.mxu1 %v2706_v28  ;;  %v2777_v17 = vld [vmem:[%s4016_s1 + $0x524] ss:$8 sps:$4 sm:$0xff]   ;;  %v2775_v19 = vld [vmem:[%s4016_s1 + $0x520] ss:$8 sps:$4 sm:$0xff]   ;;  %v2781_v23 = vld [vmem:[%s4016_s1 + $0x530] ss:$8 sps:$4 sm:$0xff]  }
  0x1d   :  { %1988 = vmatprep.subr.bf16.mxu0 %v2708_v29  ;;  %v2786_v24 = vld [vmem:[%s4016_s1 + $0x144] ss:$8 sps:$4 sm:$0xff]   ;;  %v2784_v26 = vld [vmem:[%s4016_s1 + $0x140] ss:$8 sps:$4 sm:$0xff]   ;;  %v2792_v28 = vld [vmem:[%s4016_s1 + $0x154] ss:$8 sps:$4 sm:$0xff]  }
  0x1e   :  { %v2789_v25 = vld [vmem:[%s4016_s1 + $0x544] ss:$8 sps:$4 sm:$0xff]   ;;  %v2787_v27 = vld [vmem:[%s4016_s1 + $0x540] ss:$8 sps:$4 sm:$0xff]   ;;  %v2795_v29 = vld [vmem:[%s4016_s1 + $0x554] ss:$8 sps:$4 sm:$0xff]  }
  0x1f   :  { %1777 = vmatpush1.bf16.msra.mxu1 %v2710_v30  ;;  %v50_v30 = vld [vmem:[%s4017_s0 + $0x80] sm:$0xff]  ;;  %v3395_v49 = vld [vmem:[%s4017_s0 + $0x28] sm:$0xff]  ;;  %v2805_v52 = vld [vmem:[%s4016_s1 + $0x570] ss:$8 sps:$4 sm:$0xff]  }
  0x20   :  { %1989 = vmatpush1.bf16.msra.mxu0 %v2711_v31  ;;  %1778 = vmatprep.subr.bf16.mxu1 %v2712_v32  ;;  %v58_v31 = vld [vmem:[%s4017_s0 + $0xc0] sm:$0xff]  ;;  %v2790_v32 = vld [vmem:[%s4016_s1 + $0x150] ss:$8 sps:$4 sm:$0xff]  }
  0x21   :  { %1990 = vmatprep.subr.bf16.mxu0 %v2714_v33  ;;  %v2336_v33 = vcombine.high %v50_v30, %v58_v31  ;;  %v2810_v54 = vld [vmem:[%s4016_s1 + $0x184] ss:$8 sps:$4 sm:$0xff]  }
  0x22   :  { %v2813_v55 = vld [vmem:[%s4016_s1 + $0x584] ss:$8 sps:$4 sm:$0xff]  }
  0x23   :  { %1779 = vmatpush1.bf16.msra.mxu1 %v2716_v34  ;;  %v2793_v34 = vld [vmem:[%s4016_s1 + $0x550] ss:$8 sps:$4 sm:$0xff]  }
  0x24   :  { %1991 = vmatpush1.bf16.msra.mxu0 %v2717_v35  ;;  %1780 = vmatprep.subr.bf16.mxu1 %v2718_v36  ;;  %v54_v35 = vld [vmem:[%s4017_s0 + $0xa0] sm:$0xff] }
  0x25   :  { %1992 = vmatprep.subr.bf16.mxu0 %v2720_v37  ;;  %v62_v36 = vld [vmem:[%s4017_s0 + $0xe0] sm:$0xff]  ;;  %v2335_v37 = vcombine.low %v50_v30, %v58_v31  ;;  %v2864_v30 = vld [vmem:[%s4016_s1 + $0x214] ss:$8 sps:$4 sm:$0xff]  }
  0x26   :  { %v2867_v31 = vld [vmem:[%s4016_s1 + $0x614] ss:$8 sps:$4 sm:$0xff]  }
  0x27   :  { %1781 = vmatpush1.bf16.msra.mxu1 %v2722_v38  ;;  %v2798_v38 = vld [vmem:[%s4016_s1 + $0x164] ss:$8 sps:$4 sm:$0xff]  }
  0x28   :  { %1993 = vmatpush1.bf16.msra.mxu0 %v2723_v39  ;;  %1782 = vmatprep.subr.bf16.mxu1 %v2724_v40  ;;  %v2344_v39 = vcombine.high %v54_v35, %v62_v36  ;;  %v2343_v40 = vcombine.low %v54_v35, %v62_v36  ;;  %v2862_v36 = vld [vmem:[%s4016_s1 + $0x210] ss:$8 sps:$4 sm:$0xff]  }
  0x29   :  { %1994 = vmatprep.subr.bf16.mxu0 %v2726_v41  ;;  %v2801_v41 = vld [vmem:[%s4016_s1 + $0x564] ss:$8 sps:$4 sm:$0xff]  }
  0x2b   :  { %1783 = vmatpush1.bf16.msra.mxu1 %v2728_v42  ;;  %v2796_v42 = vld [vmem:[%s4016_s1 + $0x160] ss:$8 sps:$4 sm:$0xff]  }
  0x2c   :  { %1995 = vmatpush1.bf16.msra.mxu0 %v2729_v43  ;;  %1784 = vmatprep.subr.bf16.mxu1 %v2730_v44  ;;  %v2799_v43 = vld [vmem:[%s4016_s1 + $0x560] ss:$8 sps:$4 sm:$0xff]  }
  0x2d   :  { %1996 = vmatprep.subr.bf16.mxu0 %v2732_v45  ;;  %v3377_v44 = vld [vmem:[%s4017_s0 + $0x8] sm:$0xff] }
  0x2e   :  { %v3382_v45 = vld [vmem:[%s4017_s0 + $0x48] sm:$0xff] }
  0x2f   :  { %1785 = vmatpush1.bf16.msra.mxu1 %v2734_v46  ;;  %v2804_v46 = vld [vmem:[%s4016_s1 + $0x174] ss:$8 sps:$4 sm:$0xff]   ;;  %v2322_v48 = vcombine.high %v3377_v44, %v3382_v45 }
  0x30   :  { %1997 = vmatpush1.bf16.msra.mxu0 %v2735_v47  ;;  %1786 = vmatprep.subr.bf16.mxu1 %v2736_v50  ;;  %v2807_v47 = vld [vmem:[%s4016_s1 + $0x574] ss:$8 sps:$4 sm:$0xff]   ;;  %v3400_v50 = vld [vmem:[%s4017_s0 + $0x68] sm:$0xff] }
  0x31   :  { %1998 = vmatprep.subr.bf16.mxu0 %v2738_v51  ;;  %v2802_v51 = vld [vmem:[%s4016_s1 + $0x170] ss:$8 sps:$4 sm:$0xff]   ;;  %v2330_v53 = vcombine.high %v3395_v49, %v3400_v50 }
  0x33   :  { %1787 = vmatpush1.bf16.msra.mxu1 %v2740_v56  ;;  %v2808_v56 = vld [vmem:[%s4016_s1 + $0x180] ss:$8 sps:$4 sm:$0xff]  }
  0x34   :  { %1999 = vmatpush1.bf16.msra.mxu0 %v2741_v57  ;;  %1788 = vmatprep.subr.bf16.mxu1 %v2742_v58  ;;  %v2811_v57 = vld [vmem:[%s4016_s1 + $0x580] ss:$8 sps:$4 sm:$0xff]   ;;  %v2816_v58 = vld [vmem:[%s4016_s1 + $0x194] ss:$8 sps:$4 sm:$0xff]  }
  0x35   :  { %2000 = vmatprep.subr.bf16.mxu0 %v2744_v59  ;;  %v2819_v59 = vld [vmem:[%s4016_s1 + $0x594] ss:$8 sps:$4 sm:$0xff]  }
  0x37   :  { %1789 = vmatpush1.bf16.msra.mxu1 %v2746_v60  ;;  %v2814_v60 = vld [vmem:[%s4016_s1 + $0x190] ss:$8 sps:$4 sm:$0xff]  }
  0x38   :  { %2001 = vmatpush1.bf16.msra.mxu0 %v2747_v61  ;;  %1790 = vmatprep.subr.bf16.mxu1 %v2748_v62  ;;  %v2817_v61 = vld [vmem:[%s4016_s1 + $0x590] ss:$8 sps:$4 sm:$0xff]   ;;  %v2822_v62 = vld [vmem:[%s4016_s1 + $0x1a4] ss:$8 sps:$4 sm:$0xff]  }
  0x39   :  { %2002 = vmatprep.subr.bf16.mxu0 %v2750_v63  ;;  %v2825_v63 = vld [vmem:[%s4016_s1 + $0x5a4] ss:$8 sps:$4 sm:$0xff]  }
  0x3b   :  { %1791 = vmatpush1.bf16.msra.mxu1 %v2752_v0  ;;  %v2820_v0 = vld [vmem:[%s4016_s1 + $0x1a0] ss:$8 sps:$4 sm:$0xff]  }
  0x3c   :  { %2003 = vmatpush1.bf16.msra.mxu0 %v2753_v1  ;;  %1792 = vmatprep.subr.bf16.mxu1 %v2754_v2  ;;  %v2823_v1 = vld [vmem:[%s4016_s1 + $0x5a0] ss:$8 sps:$4 sm:$0xff]   ;;  %v2828_v2 = vld [vmem:[%s4016_s1 + $0x1b4] ss:$8 sps:$4 sm:$0xff]  }
  0x3d   :  { %2004 = vmatprep.subr.bf16.mxu0 %v2756_v3  ;;  %v2831_v3 = vld [vmem:[%s4016_s1 + $0x5b4] ss:$8 sps:$4 sm:$0xff]  }
  0x3f   :  { %1793 = vmatpush1.bf16.msra.mxu1 %v2758_v4  ;;  %v2826_v4 = vld [vmem:[%s4016_s1 + $0x1b0] ss:$8 sps:$4 sm:$0xff]  }
  0x40   :  { %2005 = vmatpush1.bf16.msra.mxu0 %v2759_v5  ;;  %1815 = vmatprep.subr.bf16.mxu1 %v2762_v6  ;;  %v2829_v5 = vld [vmem:[%s4016_s1 + $0x5b0] ss:$8 sps:$4 sm:$0xff]   ;;  %v2834_v6 = vld [vmem:[%s4016_s1 + $0x1c4] ss:$8 sps:$4 sm:$0xff]  }
  0x41   :  { %2027 = vmatprep.subr.bf16.mxu0 %v2765_v7  ;;  %v2837_v7 = vld [vmem:[%s4016_s1 + $0x5c4] ss:$8 sps:$4 sm:$0xff]  }
  0x42   :  { %1795 = vmatmul.mubr.bf16.vlgmr.msra.gmra.mrb[0].mxu1 %v2319_v8  ;;  %v2832_v8 = vld [vmem:[%s4016_s1 + $0x1c0] ss:$8 sps:$4 sm:$0xff]  }
  0x43   :  { %2007 = vmatmul.mubr.bf16.vlgmr.msra.gmra.mrb[0].mxu0 %v2327_v10  ;;  %1816 = vmatpush1.bf16.msra.mxu1 %v2760_v9  ;;  %v2835_v9 = vld [vmem:[%s4016_s1 + $0x5c0] ss:$8 sps:$4 sm:$0xff]   ;;  %v2840_v10 = vld [vmem:[%s4016_s1 + $0x1d4] ss:$8 sps:$4 sm:$0xff]  }
  0x44   :  { %2028 = vmatpush1.bf16.msra.mxu0 %v2763_v11  ;;  %1817 = vmatprep.subr.bf16.mxu1 %v2768_v12  ;;  %v2843_v11 = vld [vmem:[%s4016_s1 + $0x5d4] ss:$8 sps:$4 sm:$0xff]   ;;  %v2838_v12 = vld [vmem:[%s4016_s1 + $0x1d0] ss:$8 sps:$4 sm:$0xff]  }
  0x45   :  { %2029 = vmatprep.subr.bf16.mxu0 %v2771_v13  ;;  %1804 = vmatprep.mubr.bf16.mxu1 %v2336_v33  ;;  %v2841_v13 = vld [vmem:[%s4016_s1 + $0x5d0] ss:$8 sps:$4 sm:$0xff]   ;;  %v63_v33 = vld [vmem:[%s4017_s0 + $0xe8] sm:$0xff] }
  0x46   :  { %2016 = vmatprep.mubr.bf16.mxu0 %v2344_v39  ;;  %v2873_v39 = vld [vmem:[%s4016_s1 + $0x624] ss:$8 sps:$4 sm:$0xff]  }
  0x47   :  { %1818 = vmatpush1.bf16.msra.mxu1 %v2766_v14  ;;  %v2846_v14 = vld [vmem:[%s4016_s1 + $0x1e4] ss:$8 sps:$4 sm:$0xff]  }
  0x48   :  { %2030 = vmatpush1.bf16.msra.mxu0 %v2769_v15  ;;  %1819 = vmatprep.subr.bf16.mxu1 %v2774_v16  ;;  %v2849_v15 = vld [vmem:[%s4016_s1 + $0x5e4] ss:$8 sps:$4 sm:$0xff]   ;;  %v2844_v16 = vld [vmem:[%s4016_s1 + $0x1e0] ss:$8 sps:$4 sm:$0xff]  }
  0x49   :  { %2031 = vmatprep.subr.bf16.mxu0 %v2777_v17  ;;  %v2847_v17 = vld [vmem:[%s4016_s1 + $0x5e0] ss:$8 sps:$4 sm:$0xff]  }
  0x4a   :  { %1805 = vmatmul.mubr.bf16.gmra.mrb[4].mxu1 %v2335_v37  ;;  %v2865_v37 = vld [vmem:[%s4016_s1 + $0x610] ss:$8 sps:$4 sm:$0xff]  }
  0x4b   :  { %1820 = vmatpush1.bf16.msra.mxu1 %v2772_v18  ;;  %2017 = vmatmul.mubr.bf16.gmra.mrb[4].mxu0 %v2343_v40  ;;  %v2852_v18 = vld [vmem:[%s4016_s1 + $0x1f4] ss:$8 sps:$4 sm:$0xff]   ;;  %v2868_v40 = vld [vmem:[%s4016_s1 + $0x220] ss:$8 sps:$4 sm:$0xff]  }
  0x4c   :  { %2032 = vmatpush1.bf16.msra.mxu0 %v2775_v19  ;;  %1821 = vmatprep.subr.bf16.mxu1 %v2780_v20  ;;  %v2855_v19 = vld [vmem:[%s4016_s1 + $0x5f4] ss:$8 sps:$4 sm:$0xff]   ;;  %v2850_v20 = vld [vmem:[%s4016_s1 + $0x1f0] ss:$8 sps:$4 sm:$0xff]  }
  0x4d   :  { %2033 = vmatprep.subr.bf16.mxu0 %v2783_v21  ;;  %1847 = vmatprep.mubr.bf16.mxu1 %v2322_v48  ;;  %v2853_v21 = vld [vmem:[%s4016_s1 + $0x5f0] ss:$8 sps:$4 sm:$0xff]   ;;  %v2876_v48 = vld [vmem:[%s4016_s1 + $0x234] ss:$8 sps:$4 sm:$0xff]  }
  0x4e   :  { %2059 = vmatprep.mubr.bf16.mxu0 %v2330_v53  ;;  %v2877_v53 = vld [vmem:[%s4016_s1 + $0x630] ss:$8 sps:$4 sm:$0xff]  }
  0x4f   :  { %1822 = vmatpush1.bf16.msra.mxu1 %v2778_v22  ;;  %v2858_v22 = vld [vmem:[%s4016_s1 + $0x204] ss:$8 sps:$4 sm:$0xff]  }
  0x50   :  { %2034 = vmatpush1.bf16.msra.mxu0 %v2781_v23  ;;  %1823 = vmatprep.subr.bf16.mxu1 %v2786_v24  ;;  %v2861_v23 = vld [vmem:[%s4016_s1 + $0x604] ss:$8 sps:$4 sm:$0xff]   ;;  %v2856_v24 = vld [vmem:[%s4016_s1 + $0x200] ss:$8 sps:$4 sm:$0xff]  }
  0x51   :  { %2035 = vmatprep.subr.bf16.mxu0 %v2789_v25  ;;  %v2859_v25 = vld [vmem:[%s4016_s1 + $0x600] ss:$8 sps:$4 sm:$0xff]  }
  0x53   :  { %1824 = vmatpush1.bf16.msra.mxu1 %v2784_v26  ;;  %v51_v26 = vld [vmem:[%s4017_s0 + $0x88] sm:$0xff] }
  0x54   :  { %2036 = vmatpush1.bf16.msra.mxu0 %v2787_v27  ;;  %1825 = vmatprep.subr.bf16.mxu1 %v2792_v28  ;;  %v2321_v27 = vcombine.low %v3377_v44, %v3382_v45  ;;  %v2329_v28 = vcombine.low %v3395_v49, %v3400_v50  ;;  %v3566_v45 = vld [vmem:[%s4017_s0 + $0x50] sm:$0xff] }
  0x55   :  { %2037 = vmatprep.subr.bf16.mxu0 %v2795_v29  ;;  %v59_v29 = vld [vmem:[%s4017_s0 + $0xc8] sm:$0xff]  ;;  %v2879_v49 = vld [vmem:[%s4016_s1 + $0x634] ss:$8 sps:$4 sm:$0xff]  }
  0x57   :  { %1826 = vmatpush1.bf16.msra.mxu1 %v2790_v32  ;;  %v55_v32 = vld [vmem:[%s4017_s0 + $0xa8] sm:$0xff] }
  0x58   :  { %2038 = vmatpush1.bf16.msra.mxu0 %v2793_v34  ;;  %1827 = vmatprep.subr.bf16.mxu1 %v2798_v38  ;;  %v2338_v34 = vcombine.high %v51_v26, %v59_v29  ;;  %v2346_v35 = vcombine.high %v55_v32, %v63_v33  ;;  %v2870_v38 = vld [vmem:[%s4016_s1 + $0x224] ss:$8 sps:$4 sm:$0xff]   ;;  %v2345_v44 = vcombine.low %v55_v32, %v63_v33  ;;  %v2940_v32 = vld [vmem:[%s4016_s1 + $0x2e0] ss:$8 sps:$4 sm:$0xff]  }
  0x59   :  { %2039 = vmatprep.subr.bf16.mxu0 %v2801_v41  ;;  %v2871_v41 = vld [vmem:[%s4016_s1 + $0x620] ss:$8 sps:$4 sm:$0xff]  }
  0x5a   :  { %v2943_v33 = vld [vmem:[%s4016_s1 + $0x6e0] ss:$8 sps:$4 sm:$0xff]  }
  0x5b   :  { %1828 = vmatpush1.bf16.msra.mxu1 %v2796_v42  ;;  %v3561_v42 = vld [vmem:[%s4017_s0 + $0x10] sm:$0xff] }
  0x5c   :  { %2040 = vmatpush1.bf16.msra.mxu0 %v2799_v43  ;;  %1829 = vmatprep.subr.bf16.mxu1 %v2804_v46  ;;  %v2337_v43 = vcombine.low %v51_v26, %v59_v29  ;;  %v3571_v46 = vld [vmem:[%s4017_s0 + $0x30] sm:$0xff]  ;;  %v2324_v50 = vcombine.high %v3561_v42, %v3566_v45 }
  0x5d   :  { %2041 = vmatprep.subr.bf16.mxu0 %v2807_v47  ;;  %v3576_v47 = vld [vmem:[%s4017_s0 + $0x70] sm:$0xff] }
  0x5e   :  { %v2936_v26 = vld [vmem:[%s4016_s1 + $0x2d4] ss:$8 sps:$4 sm:$0xff]   ;;  %v2937_v29 = vld [vmem:[%s4016_s1 + $0x6d0] ss:$8 sps:$4 sm:$0xff]  }
  0x5f   :  { %1830 = vmatpush1.bf16.msra.mxu1 %v2802_v51  ;;  %v2332_v51 = vcombine.high %v3571_v46, %v3576_v47 }
  0x60   :  { %2042 = vmatpush1.bf16.msra.mxu0 %v2805_v52  ;;  %1831 = vmatprep.subr.bf16.mxu1 %v2810_v54  ;;  %v2874_v52 = vld [vmem:[%s4016_s1 + $0x230] ss:$8 sps:$4 sm:$0xff]   ;;  %v2882_v54 = vld [vmem:[%s4016_s1 + $0x244] ss:$8 sps:$4 sm:$0xff]  }
  0x61   :  { %2043 = vmatprep.subr.bf16.mxu0 %v2813_v55  ;;  %v2885_v55 = vld [vmem:[%s4016_s1 + $0x644] ss:$8 sps:$4 sm:$0xff]  }
  0x63   :  { %1832 = vmatpush1.bf16.msra.mxu1 %v2808_v56  ;;  %v2880_v56 = vld [vmem:[%s4016_s1 + $0x240] ss:$8 sps:$4 sm:$0xff]  }
  0x64   :  { %2044 = vmatpush1.bf16.msra.mxu0 %v2811_v57  ;;  %1833 = vmatprep.subr.bf16.mxu1 %v2816_v58  ;;  %v2883_v57 = vld [vmem:[%s4016_s1 + $0x640] ss:$8 sps:$4 sm:$0xff]   ;;  %v2888_v58 = vld [vmem:[%s4016_s1 + $0x254] ss:$8 sps:$4 sm:$0xff]  }
  0x65   :  { %2045 = vmatprep.subr.bf16.mxu0 %v2819_v59  ;;  %v2891_v59 = vld [vmem:[%s4016_s1 + $0x654] ss:$8 sps:$4 sm:$0xff]  }
  0x67   :  { %1834 = vmatpush1.bf16.msra.mxu1 %v2814_v60  ;;  %v2886_v60 = vld [vmem:[%s4016_s1 + $0x250] ss:$8 sps:$4 sm:$0xff]  }
  0x68   :  { %2046 = vmatpush1.bf16.msra.mxu0 %v2817_v61  ;;  %1835 = vmatprep.subr.bf16.mxu1 %v2822_v62  ;;  %v2889_v61 = vld [vmem:[%s4016_s1 + $0x650] ss:$8 sps:$4 sm:$0xff]   ;;  %v2894_v62 = vld [vmem:[%s4016_s1 + $0x264] ss:$8 sps:$4 sm:$0xff]  }
  0x69   :  { %2047 = vmatprep.subr.bf16.mxu0 %v2825_v63  ;;  %v2897_v63 = vld [vmem:[%s4016_s1 + $0x664] ss:$8 sps:$4 sm:$0xff]  }
  0x6b   :  { %1836 = vmatpush1.bf16.msra.mxu1 %v2820_v0  ;;  %v2892_v0 = vld [vmem:[%s4016_s1 + $0x260] ss:$8 sps:$4 sm:$0xff]  }
  0x6c   :  { %2048 = vmatpush1.bf16.msra.mxu0 %v2823_v1  ;;  %1837 = vmatprep.subr.bf16.mxu1 %v2828_v2  ;;  %v2895_v1 = vld [vmem:[%s4016_s1 + $0x660] ss:$8 sps:$4 sm:$0xff]   ;;  %v2900_v2 = vld [vmem:[%s4016_s1 + $0x274] ss:$8 sps:$4 sm:$0xff]  }
  0x6d   :  { %2049 = vmatprep.subr.bf16.mxu0 %v2831_v3  ;;  %v2903_v3 = vld [vmem:[%s4016_s1 + $0x674] ss:$8 sps:$4 sm:$0xff]  }
  0x6f   :  { %1838 = vmatpush1.bf16.msra.mxu1 %v2826_v4  ;;  %v2898_v4 = vld [vmem:[%s4016_s1 + $0x270] ss:$8 sps:$4 sm:$0xff]  }
  0x70   :  { %2050 = vmatpush1.bf16.msra.mxu0 %v2829_v5  ;;  %1839 = vmatprep.subr.bf16.mxu1 %v2834_v6  ;;  %v2901_v5 = vld [vmem:[%s4016_s1 + $0x670] ss:$8 sps:$4 sm:$0xff]   ;;  %v2906_v6 = vld [vmem:[%s4016_s1 + $0x284] ss:$8 sps:$4 sm:$0xff]  }
  0x71   :  { %2051 = vmatprep.subr.bf16.mxu0 %v2837_v7  ;;  %v2909_v7 = vld [vmem:[%s4016_s1 + $0x684] ss:$8 sps:$4 sm:$0xff]  }
  0x73   :  { %1840 = vmatpush1.bf16.msra.mxu1 %v2832_v8  ;;  %v2904_v8 = vld [vmem:[%s4016_s1 + $0x280] ss:$8 sps:$4 sm:$0xff]  }
  0x74   :  { %2052 = vmatpush1.bf16.msra.mxu0 %v2835_v9  ;;  %1841 = vmatprep.subr.bf16.mxu1 %v2840_v10  ;;  %v2907_v9 = vld [vmem:[%s4016_s1 + $0x680] ss:$8 sps:$4 sm:$0xff]   ;;  %v2912_v10 = vld [vmem:[%s4016_s1 + $0x294] ss:$8 sps:$4 sm:$0xff]  }
  0x75   :  { %2053 = vmatprep.subr.bf16.mxu0 %v2843_v11  ;;  %v2915_v11 = vld [vmem:[%s4016_s1 + $0x694] ss:$8 sps:$4 sm:$0xff]  }
  0x77   :  { %1842 = vmatpush1.bf16.msra.mxu1 %v2838_v12  ;;  %v2910_v12 = vld [vmem:[%s4016_s1 + $0x290] ss:$8 sps:$4 sm:$0xff]  }
  0x78   :  { %2054 = vmatpush1.bf16.msra.mxu0 %v2841_v13  ;;  %1843 = vmatprep.subr.bf16.mxu1 %v2846_v14  ;;  %v2913_v13 = vld [vmem:[%s4016_s1 + $0x690] ss:$8 sps:$4 sm:$0xff]   ;;  %v2918_v14 = vld [vmem:[%s4016_s1 + $0x2a4] ss:$8 sps:$4 sm:$0xff]  }
  0x79   :  { %2055 = vmatprep.subr.bf16.mxu0 %v2849_v15  ;;  %v2921_v15 = vld [vmem:[%s4016_s1 + $0x6a4] ss:$8 sps:$4 sm:$0xff]  }
  0x7b   :  { %1844 = vmatpush1.bf16.msra.mxu1 %v2844_v16  ;;  %v2916_v16 = vld [vmem:[%s4016_s1 + $0x2a0] ss:$8 sps:$4 sm:$0xff]  }
  0x7c   :  { %2056 = vmatpush1.bf16.msra.mxu0 %v2847_v17  ;;  %1845 = vmatprep.subr.bf16.mxu1 %v2852_v18  ;;  %v2919_v17 = vld [vmem:[%s4016_s1 + $0x6a0] ss:$8 sps:$4 sm:$0xff]   ;;  %v2924_v18 = vld [vmem:[%s4016_s1 + $0x2b4] ss:$8 sps:$4 sm:$0xff]  }
  0x7d   :  { %2057 = vmatprep.subr.bf16.mxu0 %v2855_v19  ;;  %v2927_v19 = vld [vmem:[%s4016_s1 + $0x6b4] ss:$8 sps:$4 sm:$0xff]  }
  0x7f   :  { %1846 = vmatpush1.bf16.msra.mxu1 %v2850_v20  ;;  %v2922_v20 = vld [vmem:[%s4016_s1 + $0x2b0] ss:$8 sps:$4 sm:$0xff]  }
  0x80   :  { %2058 = vmatpush1.bf16.msra.mxu0 %v2853_v21  ;;  %1868 = vmatprep.subr.bf16.mxu1 %v2858_v22  ;;  %v2925_v21 = vld [vmem:[%s4016_s1 + $0x6b0] ss:$8 sps:$4 sm:$0xff]   ;;  %v2930_v22 = vld [vmem:[%s4016_s1 + $0x2c4] ss:$8 sps:$4 sm:$0xff]  }
  0x81   :  { %2080 = vmatprep.subr.bf16.mxu0 %v2861_v23  ;;  %v2933_v23 = vld [vmem:[%s4016_s1 + $0x6c4] ss:$8 sps:$4 sm:$0xff]  }
  0x82   :  { %1848 = vmatmul.mubr.bf16.vlgmr.msra.gmra.mrb[0].mxu1 %v2321_v27  ;;  %v2939_v27 = vld [vmem:[%s4016_s1 + $0x6d4] ss:$8 sps:$4 sm:$0xff]  }
  0x83   :  { %2060 = vmatmul.mubr.bf16.vlgmr.msra.gmra.mrb[0].mxu0 %v2329_v28  ;;  %1869 = vmatpush1.bf16.msra.mxu1 %v2856_v24  ;;  %v2928_v24 = vld [vmem:[%s4016_s1 + $0x2c0] ss:$8 sps:$4 sm:$0xff]   ;;  %v2934_v28 = vld [vmem:[%s4016_s1 + $0x2d0] ss:$8 sps:$4 sm:$0xff]  }
  0x84   :  { %2081 = vmatpush1.bf16.msra.mxu0 %v2859_v25  ;;  %1870 = vmatprep.subr.bf16.mxu1 %v2864_v30  ;;  %v2931_v25 = vld [vmem:[%s4016_s1 + $0x6c0] ss:$8 sps:$4 sm:$0xff]   ;;  %v2942_v30 = vld [vmem:[%s4016_s1 + $0x2e4] ss:$8 sps:$4 sm:$0xff]  }
  0x85   :  { %2082 = vmatprep.subr.bf16.mxu0 %v2867_v31  ;;  %1857 = vmatprep.mubr.bf16.mxu1 %v2338_v34  ;;  %v2945_v31 = vld [vmem:[%s4016_s1 + $0x6e4] ss:$8 sps:$4 sm:$0xff]   ;;  %v2948_v34 = vld [vmem:[%s4016_s1 + $0x2f4] ss:$8 sps:$4 sm:$0xff]  }
  0x86   :  { %2069 = vmatprep.mubr.bf16.mxu0 %v2346_v35  ;;  %v2951_v35 = vld [vmem:[%s4016_s1 + $0x6f4] ss:$8 sps:$4 sm:$0xff]  }
  0x87   :  { %1871 = vmatpush1.bf16.msra.mxu1 %v2862_v36  ;;  %v2946_v36 = vld [vmem:[%s4016_s1 + $0x2f0] ss:$8 sps:$4 sm:$0xff]  }
  0x88   :  { %2083 = vmatpush1.bf16.msra.mxu0 %v2865_v37  ;;  %1872 = vmatprep.subr.bf16.mxu1 %v2870_v38  ;;  %v2949_v37 = vld [vmem:[%s4016_s1 + $0x6f0] ss:$8 sps:$4 sm:$0xff]   ;;  %v2954_v38 = vld [vmem:[%s4016_s1 + $0x304] ss:$8 sps:$4 sm:$0xff]  }
  0x89   :  { %2084 = vmatprep.subr.bf16.mxu0 %v2873_v39  ;;  %v2957_v39 = vld [vmem:[%s4016_s1 + $0x704] ss:$8 sps:$4 sm:$0xff]  }
  0x8a   :  { %1858 = vmatmul.mubr.bf16.gmra.mrb[4].mxu1 %v2337_v43  ;;  %v2331_v43 = vcombine.low %v3571_v46, %v3576_v47  ;;  %v2960_v46 = vld [vmem:[%s4016_s1 + $0x314] ss:$8 sps:$4 sm:$0xff]  }
  0x8b   :  { %2070 = vmatmul.mubr.bf16.gmra.mrb[4].mxu0 %v2345_v44  ;;  %1873 = vmatpush1.bf16.msra.mxu1 %v2868_v40  ;;  %v52_v40 = vld [vmem:[%s4017_s0 + $0x90] sm:$0xff] }
  0x8c   :  { %2085 = vmatpush1.bf16.msra.mxu0 %v2871_v41  ;;  %1874 = vmatprep.subr.bf16.mxu1 %v2876_v48  ;;  %v2323_v41 = vcombine.low %v3561_v42, %v3566_v45  ;;  %v60_v44 = vld [vmem:[%s4017_s0 + $0xd0] sm:$0xff]  ;;  %v2952_v42 = vld [vmem:[%s4016_s1 + $0x300] ss:$8 sps:$4 sm:$0xff]  }
  0x8d   :  { %2086 = vmatprep.subr.bf16.mxu0 %v2879_v49  ;;  %1900 = vmatprep.mubr.bf16.mxu1 %v2324_v50  ;;  %v56_v48 = vld [vmem:[%s4017_s0 + $0xb0] sm:$0xff]  ;;  %v2955_v45 = vld [vmem:[%s4016_s1 + $0x700] ss:$8 sps:$4 sm:$0xff]   ;;  %v2340_v50 = vcombine.high %v52_v40, %v60_v44 }
  0x8e   :  { %2112 = vmatprep.mubr.bf16.mxu0 %v2332_v51  ;;  %v64_v49 = vld [vmem:[%s4017_s0 + $0xf0] sm:$0xff] }
  0x8f   :  { %1875 = vmatpush1.bf16.msra.mxu1 %v2874_v52  ;;  %v2963_v47 = vld [vmem:[%s4016_s1 + $0x714] ss:$8 sps:$4 sm:$0xff]   ;;  %v2348_v51 = vcombine.high %v56_v48, %v64_v49  ;;  %v2958_v52 = vld [vmem:[%s4016_s1 + $0x310] ss:$8 sps:$4 sm:$0xff]  }
  0x90   :  { %2087 = vmatpush1.bf16.msra.mxu0 %v2877_v53  ;;  %1876 = vmatprep.subr.bf16.mxu1 %v2882_v54  ;;  %v2961_v53 = vld [vmem:[%s4016_s1 + $0x710] ss:$8 sps:$4 sm:$0xff]   ;;  %v2966_v54 = vld [vmem:[%s4016_s1 + $0x324] ss:$8 sps:$4 sm:$0xff]  }
  0x91   :  { %2088 = vmatprep.subr.bf16.mxu0 %v2885_v55  ;;  %v2969_v55 = vld [vmem:[%s4016_s1 + $0x724] ss:$8 sps:$4 sm:$0xff]  }
  0x93   :  { %1877 = vmatpush1.bf16.msra.mxu1 %v2880_v56  ;;  %v3787_v56 = vld [vmem:[%s4017_s0 + $0x18] sm:$0xff] }
  0x94   :  { %2089 = vmatpush1.bf16.msra.mxu0 %v2883_v57  ;;  %1878 = vmatprep.subr.bf16.mxu1 %v2888_v58  ;;  %v2339_v57 = vcombine.low %v52_v40, %v60_v44  ;;  %v2347_v58 = vcombine.low %v56_v48, %v64_v49  ;;  %v3024_v40 = vld [vmem:[%s4016_s1 + $0x3c0] ss:$8 sps:$4 sm:$0xff]   ;;  %v3035_v44 = vld [vmem:[%s4016_s1 + $0x7d4] ss:$8 sps:$4 sm:$0xff]   ;;  %v3030_v48 = vld [vmem:[%s4016_s1 + $0x3d0] ss:$8 sps:$4 sm:$0xff]  }
  0x95   :  { %2090 = vmatprep.subr.bf16.mxu0 %v2891_v59  ;;  %v3792_v59 = vld [vmem:[%s4017_s0 + $0x58] sm:$0xff] }
  0x96   :  { %v3033_v49 = vld [vmem:[%s4016_s1 + $0x7d0] ss:$8 sps:$4 sm:$0xff]  }
  0x97   :  { %1879 = vmatpush1.bf16.msra.mxu1 %v2886_v60  ;;  %v3797_v60 = vld [vmem:[%s4017_s0 + $0x38] sm:$0xff] }
  0x98   :  { %2091 = vmatpush1.bf16.msra.mxu0 %v2889_v61  ;;  %1880 = vmatprep.subr.bf16.mxu1 %v2894_v62  ;;  %v3802_v61 = vld [vmem:[%s4017_s0 + $0x78] sm:$0xff]  ;;  %v2964_v62 = vld [vmem:[%s4016_s1 + $0x320] ss:$8 sps:$4 sm:$0xff]  }
  0x99   :  { %2092 = vmatprep.subr.bf16.mxu0 %v2897_v63  ;;  %v2967_v63 = vld [vmem:[%s4016_s1 + $0x720] ss:$8 sps:$4 sm:$0xff]  }
  0x9b   :  { %1881 = vmatpush1.bf16.msra.mxu1 %v2892_v0  ;;  %v2972_v0 = vld [vmem:[%s4016_s1 + $0x334] ss:$8 sps:$4 sm:$0xff]  }
  0x9c   :  { %2093 = vmatpush1.bf16.msra.mxu0 %v2895_v1  ;;  %1882 = vmatprep.subr.bf16.mxu1 %v2900_v2  ;;  %v2975_v1 = vld [vmem:[%s4016_s1 + $0x734] ss:$8 sps:$4 sm:$0xff]   ;;  %v2326_v2 = vcombine.high %v3787_v56, %v3792_v59 }
  0x9d   :  { %2094 = vmatprep.subr.bf16.mxu0 %v2903_v3  ;;  %v2334_v3 = vcombine.high %v3797_v60, %v3802_v61 }
  0x9f   :  { %1883 = vmatpush1.bf16.msra.mxu1 %v2898_v4  ;;  %v2970_v4 = vld [vmem:[%s4016_s1 + $0x330] ss:$8 sps:$4 sm:$0xff]  }
  0xa0   :  { %2095 = vmatpush1.bf16.msra.mxu0 %v2901_v5  ;;  %1884 = vmatprep.subr.bf16.mxu1 %v2906_v6  ;;  %v2973_v5 = vld [vmem:[%s4016_s1 + $0x730] ss:$8 sps:$4 sm:$0xff]   ;;  %v2978_v6 = vld [vmem:[%s4016_s1 + $0x344] ss:$8 sps:$4 sm:$0xff]  }
  0xa1   :  { %2096 = vmatprep.subr.bf16.mxu0 %v2909_v7  ;;  %v2981_v7 = vld [vmem:[%s4016_s1 + $0x744] ss:$8 sps:$4 sm:$0xff]  }
  0xa3   :  { %1885 = vmatpush1.bf16.msra.mxu1 %v2904_v8  ;;  %v2976_v8 = vld [vmem:[%s4016_s1 + $0x340] ss:$8 sps:$4 sm:$0xff]  }
  0xa4   :  { %2097 = vmatpush1.bf16.msra.mxu0 %v2907_v9  ;;  %1886 = vmatprep.subr.bf16.mxu1 %v2912_v10  ;;  %v2979_v9 = vld [vmem:[%s4016_s1 + $0x740] ss:$8 sps:$4 sm:$0xff]   ;;  %v2984_v10 = vld [vmem:[%s4016_s1 + $0x354] ss:$8 sps:$4 sm:$0xff]  }
  0xa5   :  { %2098 = vmatprep.subr.bf16.mxu0 %v2915_v11  ;;  %v2987_v11 = vld [vmem:[%s4016_s1 + $0x754] ss:$8 sps:$4 sm:$0xff]  }
  0xa7   :  { %1887 = vmatpush1.bf16.msra.mxu1 %v2910_v12  ;;  %v2982_v12 = vld [vmem:[%s4016_s1 + $0x350] ss:$8 sps:$4 sm:$0xff]  }
  0xa8   :  { %2099 = vmatpush1.bf16.msra.mxu0 %v2913_v13  ;;  %1888 = vmatprep.subr.bf16.mxu1 %v2918_v14  ;;  %v2985_v13 = vld [vmem:[%s4016_s1 + $0x750] ss:$8 sps:$4 sm:$0xff]   ;;  %v2990_v14 = vld [vmem:[%s4016_s1 + $0x364] ss:$8 sps:$4 sm:$0xff]  }
  0xa9   :  { %2100 = vmatprep.subr.bf16.mxu0 %v2921_v15  ;;  %v2993_v15 = vld [vmem:[%s4016_s1 + $0x764] ss:$8 sps:$4 sm:$0xff]  }
  0xab   :  { %1889 = vmatpush1.bf16.msra.mxu1 %v2916_v16  ;;  %v2988_v16 = vld [vmem:[%s4016_s1 + $0x360] ss:$8 sps:$4 sm:$0xff]  }
  0xac   :  { %2101 = vmatpush1.bf16.msra.mxu0 %v2919_v17  ;;  %1890 = vmatprep.subr.bf16.mxu1 %v2924_v18  ;;  %v2991_v17 = vld [vmem:[%s4016_s1 + $0x760] ss:$8 sps:$4 sm:$0xff]   ;;  %v2996_v18 = vld [vmem:[%s4016_s1 + $0x374] ss:$8 sps:$4 sm:$0xff]  }
  0xad   :  { %2102 = vmatprep.subr.bf16.mxu0 %v2927_v19  ;;  %v2999_v19 = vld [vmem:[%s4016_s1 + $0x774] ss:$8 sps:$4 sm:$0xff]  }
  0xaf   :  { %1891 = vmatpush1.bf16.msra.mxu1 %v2922_v20  ;;  %v2994_v20 = vld [vmem:[%s4016_s1 + $0x370] ss:$8 sps:$4 sm:$0xff]  }
  0xb0   :  { %2103 = vmatpush1.bf16.msra.mxu0 %v2925_v21  ;;  %1892 = vmatprep.subr.bf16.mxu1 %v2930_v22  ;;  %v2997_v21 = vld [vmem:[%s4016_s1 + $0x770] ss:$8 sps:$4 sm:$0xff]   ;;  %v3002_v22 = vld [vmem:[%s4016_s1 + $0x384] ss:$8 sps:$4 sm:$0xff]  }
  0xb1   :  { %2104 = vmatprep.subr.bf16.mxu0 %v2933_v23  ;;  %v3005_v23 = vld [vmem:[%s4016_s1 + $0x784] ss:$8 sps:$4 sm:$0xff]  }
  0xb3   :  { %1893 = vmatpush1.bf16.msra.mxu1 %v2928_v24  ;;  %v3000_v24 = vld [vmem:[%s4016_s1 + $0x380] ss:$8 sps:$4 sm:$0xff]  }
  0xb4   :  { %2105 = vmatpush1.bf16.msra.mxu0 %v2931_v25  ;;  %1894 = vmatprep.subr.bf16.mxu1 %v2936_v26  ;;  %v3003_v25 = vld [vmem:[%s4016_s1 + $0x780] ss:$8 sps:$4 sm:$0xff]   ;;  %v3008_v26 = vld [vmem:[%s4016_s1 + $0x394] ss:$8 sps:$4 sm:$0xff]  }
  0xb5   :  { %2106 = vmatprep.subr.bf16.mxu0 %v2939_v27  ;;  %v3011_v27 = vld [vmem:[%s4016_s1 + $0x794] ss:$8 sps:$4 sm:$0xff]  }
  0xb7   :  { %1895 = vmatpush1.bf16.msra.mxu1 %v2934_v28  ;;  %v3006_v28 = vld [vmem:[%s4016_s1 + $0x390] ss:$8 sps:$4 sm:$0xff]  }
  0xb8   :  { %2107 = vmatpush1.bf16.msra.mxu0 %v2937_v29  ;;  %1896 = vmatprep.subr.bf16.mxu1 %v2942_v30  ;;  %v3009_v29 = vld [vmem:[%s4016_s1 + $0x790] ss:$8 sps:$4 sm:$0xff]   ;;  %v3014_v30 = vld [vmem:[%s4016_s1 + $0x3a4] ss:$8 sps:$4 sm:$0xff]  }
  0xb9   :  { %2108 = vmatprep.subr.bf16.mxu0 %v2945_v31  ;;  %v3017_v31 = vld [vmem:[%s4016_s1 + $0x7a4] ss:$8 sps:$4 sm:$0xff]  }
  0xbb   :  { %1897 = vmatpush1.bf16.msra.mxu1 %v2940_v32  ;;  %v3012_v32 = vld [vmem:[%s4016_s1 + $0x3a0] ss:$8 sps:$4 sm:$0xff]  }
  0xbc   :  { %2109 = vmatpush1.bf16.msra.mxu0 %v2943_v33  ;;  %1898 = vmatprep.subr.bf16.mxu1 %v2948_v34  ;;  %v3015_v33 = vld [vmem:[%s4016_s1 + $0x7a0] ss:$8 sps:$4 sm:$0xff]   ;;  %v3020_v34 = vld [vmem:[%s4016_s1 + $0x3b4] ss:$8 sps:$4 sm:$0xff]  }
  0xbd   :  { %2110 = vmatprep.subr.bf16.mxu0 %v2951_v35  ;;  %v3023_v35 = vld [vmem:[%s4016_s1 + $0x7b4] ss:$8 sps:$4 sm:$0xff]  }
  0xbf   :  { %1899 = vmatpush1.bf16.msra.mxu1 %v2946_v36  ;;  %v3018_v36 = vld [vmem:[%s4016_s1 + $0x3b0] ss:$8 sps:$4 sm:$0xff]  }
  0xc0   :  { %2111 = vmatpush1.bf16.msra.mxu0 %v2949_v37  ;;  %1921 = vmatprep.subr.bf16.mxu1 %v2954_v38  ;;  %v3021_v37 = vld [vmem:[%s4016_s1 + $0x7b0] ss:$8 sps:$4 sm:$0xff]   ;;  %v3026_v38 = vld [vmem:[%s4016_s1 + $0x3c4] ss:$8 sps:$4 sm:$0xff]  }
  0xc1   :  { %2133 = vmatprep.subr.bf16.mxu0 %v2957_v39  ;;  %v3029_v39 = vld [vmem:[%s4016_s1 + $0x7c4] ss:$8 sps:$4 sm:$0xff]  }
  0xc2   :  { %1901 = vmatmul.mubr.bf16.vlgmr.msra.gmra.mrb[0].mxu1 %v2323_v41  ;;  %v3027_v41 = vld [vmem:[%s4016_s1 + $0x7c0] ss:$8 sps:$4 sm:$0xff]  }
  0xc3   :  { %2113 = vmatmul.mubr.bf16.vlgmr.msra.gmra.mrb[0].mxu0 %v2331_v43  ;;  %1922 = vmatpush1.bf16.msra.mxu1 %v2952_v42  ;;  %v3032_v43 = vld [vmem:[%s4016_s1 + $0x3d4] ss:$8 sps:$4 sm:$0xff]   ;;  %v3038_v42 = vld [vmem:[%s4016_s1 + $0x3e4] ss:$8 sps:$4 sm:$0xff]  }
  0xc4   :  { %2134 = vmatpush1.bf16.msra.mxu0 %v2955_v45  ;;  %1923 = vmatprep.subr.bf16.mxu1 %v2960_v46  ;;  %v3041_v45 = vld [vmem:[%s4016_s1 + $0x7e4] ss:$8 sps:$4 sm:$0xff]   ;;  %v3036_v46 = vld [vmem:[%s4016_s1 + $0x3e0] ss:$8 sps:$4 sm:$0xff]  }
  0xc5   :  { %2135 = vmatprep.subr.bf16.mxu0 %v2963_v47  ;;  %1910 = vmatprep.mubr.bf16.mxu1 %v2340_v50  ;;  %v3039_v47 = vld [vmem:[%s4016_s1 + $0x7e0] ss:$8 sps:$4 sm:$0xff]   ;;  %v3044_v50 = vld [vmem:[%s4016_s1 + $0x3f4] ss:$8 sps:$4 sm:$0xff]  }
  0xc6   :  { %2122 = vmatprep.mubr.bf16.mxu0 %v2348_v51  ;;  %v3047_v51 = vld [vmem:[%s4016_s1 + $0x7f4] ss:$8 sps:$4 sm:$0xff]  }
  0xc7   :  { %1924 = vmatpush1.bf16.msra.mxu1 %v2958_v52  ;;  %v3042_v52 = vld [vmem:[%s4016_s1 + $0x3f0] ss:$8 sps:$4 sm:$0xff]  }
  0xc8   :  { %2136 = vmatpush1.bf16.msra.mxu0 %v2961_v53  ;;  %1925 = vmatprep.subr.bf16.mxu1 %v2966_v54  ;;  %v3045_v53 = vld [vmem:[%s4016_s1 + $0x7f0] ss:$8 sps:$4 sm:$0xff]  }
  0xc9   :  { %2137 = vmatprep.subr.bf16.mxu0 %v2969_v55  ;;  %v53_v54 = vld [vmem:[%s4017_s0 + $0x98] sm:$0xff] }
  0xca   :  { %1911 = vmatmul.mubr.bf16.gmra.mrb[4].mxu1 %v2339_v57  ;;  %v61_v55 = vld [vmem:[%s4017_s0 + $0xd8] sm:$0xff] }
  0xcb   :  { %2123 = vmatmul.mubr.bf16.gmra.mrb[4].mxu0 %v2347_v58  ;;  %1926 = vmatpush1.bf16.msra.mxu1 %v2964_v62  ;;  %v57_v57 = vld [vmem:[%s4017_s0 + $0xb8] sm:$0xff]  ;;  %v2325_v62 = vcombine.low %v3787_v56, %v3792_v59 }
  0xcc   :  { %2138 = vmatpush1.bf16.msra.mxu0 %v2967_v63  ;;  %1927 = vmatprep.subr.bf16.mxu1 %v2972_v0  ;;  %v65_v58 = vld [vmem:[%s4017_s0 + $0xf8] sm:$0xff]  ;;  %v2333_v63 = vcombine.low %v3797_v60, %v3802_v61  ;;  %v2342_v0 = vcombine.high %v53_v54, %v61_v55 }
  0xcd   :  { %2139 = vmatprep.subr.bf16.mxu0 %v2975_v1  ;;  %1953 = vmatprep.mubr.bf16.mxu1 %v2326_v2  ;;  %v2350_v1 = vcombine.high %v57_v57, %v65_v58  ;;  %v2341_v2 = vcombine.low %v53_v54, %v61_v55 }
  0xce   :  { %2165 = vmatprep.mubr.bf16.mxu0 %v2334_v3  ;;  %v2349_v3 = vcombine.low %v57_v57, %v65_v58 }
  0xcf   :  { %1928 = vmatpush1.bf16.msra.mxu1 %v2970_v4 }
  0xd0   :  { %2140 = vmatpush1.bf16.msra.mxu0 %v2973_v5  ;;  %1929 = vmatprep.subr.bf16.mxu1 %v2978_v6 }
  0xd1   :  { %2141 = vmatprep.subr.bf16.mxu0 %v2981_v7 }
  0xd3   :  { %1930 = vmatpush1.bf16.msra.mxu1 %v2976_v8 }
  0xd4   :  { %2142 = vmatpush1.bf16.msra.mxu0 %v2979_v9  ;;  %1931 = vmatprep.subr.bf16.mxu1 %v2984_v10 }
  0xd5   :  { %2143 = vmatprep.subr.bf16.mxu0 %v2987_v11 }
  0xd7   :  { %1932 = vmatpush1.bf16.msra.mxu1 %v2982_v12 }
  0xd8   :  { %2144 = vmatpush1.bf16.msra.mxu0 %v2985_v13  ;;  %1933 = vmatprep.subr.bf16.mxu1 %v2990_v14 }
  0xd9   :  { %2145 = vmatprep.subr.bf16.mxu0 %v2993_v15 }
  0xdb   :  { %1934 = vmatpush1.bf16.msra.mxu1 %v2988_v16 }
  0xdc   :  { %2146 = vmatpush1.bf16.msra.mxu0 %v2991_v17  ;;  %1935 = vmatprep.subr.bf16.mxu1 %v2996_v18 }
  0xdd   :  { %2147 = vmatprep.subr.bf16.mxu0 %v2999_v19 }
  0xdf   :  { %1936 = vmatpush1.bf16.msra.mxu1 %v2994_v20 }
  0xe0   :  { %2148 = vmatpush1.bf16.msra.mxu0 %v2997_v21  ;;  %1937 = vmatprep.subr.bf16.mxu1 %v3002_v22 }
  0xe1   :  { %2149 = vmatprep.subr.bf16.mxu0 %v3005_v23 }
  0xe3   :  { %1938 = vmatpush1.bf16.msra.mxu1 %v3000_v24 }
  0xe4   :  { %2150 = vmatpush1.bf16.msra.mxu0 %v3003_v25  ;;  %1939 = vmatprep.subr.bf16.mxu1 %v3008_v26 }
  0xe5   :  { %2151 = vmatprep.subr.bf16.mxu0 %v3011_v27 }
  0xe7   :  { %1940 = vmatpush1.bf16.msra.mxu1 %v3006_v28 }
  0xe8   :  { %2152 = vmatpush1.bf16.msra.mxu0 %v3009_v29  ;;  %1941 = vmatprep.subr.bf16.mxu1 %v3014_v30 }
  0xe9   :  { %2153 = vmatprep.subr.bf16.mxu0 %v3017_v31 }
  0xeb   :  { %1942 = vmatpush1.bf16.msra.mxu1 %v3012_v32 }
  0xec   :  { %2154 = vmatpush1.bf16.msra.mxu0 %v3015_v33  ;;  %1943 = vmatprep.subr.bf16.mxu1 %v3020_v34 }
  0xed   :  { %2155 = vmatprep.subr.bf16.mxu0 %v3023_v35 }
  0xef   :  { %1944 = vmatpush1.bf16.msra.mxu1 %v3018_v36 }
  0xf0   :  { %2156 = vmatpush1.bf16.msra.mxu0 %v3021_v37  ;;  %1945 = vmatprep.subr.bf16.mxu1 %v3026_v38 }
  0xf1   :  { %2157 = vmatprep.subr.bf16.mxu0 %v3029_v39 }
  0xf3   :  { %1946 = vmatpush1.bf16.msra.mxu1 %v3024_v40 }
  0xf4   :  { %2158 = vmatpush1.bf16.msra.mxu0 %v3027_v41  ;;  %1947 = vmatprep.subr.bf16.mxu1 %v3032_v43 }
  0xf5   :  { %2159 = vmatprep.subr.bf16.mxu0 %v3035_v44 }
  0xf7   :  { %1948 = vmatpush1.bf16.msra.mxu1 %v3030_v48 }
  0xf8   :  { %2160 = vmatpush1.bf16.msra.mxu0 %v3033_v49  ;;  %1949 = vmatprep.subr.bf16.mxu1 %v3038_v42 }
  0xf9   :  { %2161 = vmatprep.subr.bf16.mxu0 %v3041_v45 }
  0xfb   :  { %1950 = vmatpush1.bf16.msra.mxu1 %v3036_v46 }
  0xfc   :  { %2162 = vmatpush1.bf16.msra.mxu0 %v3039_v47  ;;  %1951 = vmatprep.subr.bf16.mxu1 %v3044_v50  ;;  %v3048_v47 = vmov 1966171168  }
  0xfd   :  { %2163 = vmatprep.subr.bf16.mxu0 %v3047_v51  ;;  %v2243_v50 = vunpack.c.l.s4 %v3048_v47  ;;  %v2245_v51 = vlaneseq }
  0xff   :  { %1952 = vmatpush1.bf16.msra.mxu1 %v3042_v52  ;;  %vm2259_vm0 = vcmp.lt.s32.totalorder %v2245_v51, 256 }
 0x100   :  { %2164 = vmatpush1.bf16.msra.mxu0 %v3045_v53 }
 0x102   :  { %1954 = vmatmul.mubr.bf16.vlgmr.msra.gmra.mrb[0].mxu1 %v2325_v62 }
 0x103   :  { %2166 = vmatmul.mubr.bf16.vlgmr.msra.gmra.mrb[0].mxu0 %v2333_v63  ;;  %1963 = vmatprep.mubr.bf16.mxu1 %v2342_v0  ;;  %v2244_v0 = vunpack.c.0.s8 %v2243_v50 }
 0x104   :  { %2175 = vmatprep.mubr.bf16.mxu0 %v2350_v1  ;;  %v2246_v1 = vshrl.u32 %v2245_v51, 7 }
 0x10a   :  { %1964 = vmatmul.mubr.bf16.gmra.mrb[4].mxu1 %v2341_v2 }
 0x10b   :  { %2176 = vmatmul.mubr.bf16.gmra.mrb[4].mxu0 %v2349_v3 }
 0x1d5   :  { %v1955_v4 = vpop.f32.mrb[0].mxu1 }
 0x1d6   :  { %v2167_v5 = vpop.f32.mrb[0].mxu0  ;;  %v1957_v7 = vpop.f32.mrb[1].mxu1 }
 0x1d7   :  { %v2607_v6 = vadd.f32 %v2167_v5, %v1955_v4  ;;  %v2169_v56 = vpop.f32.mrb[1].mxu0  ;;  %v1959_v8 = vpop.f32.mrb[2].mxu1 }
 0x1d8   :  { %v2608_v59 = vadd.f32 %v2169_v56, %v1957_v7  ;;  %v2171_v60 = vpop.f32.mrb[2].mxu0  ;;  %v1961_v9 = vpop.f32.mrb[3].mxu1 }
 0x1d9   :  { %2213 = vst [vmem:[%s4018_s2] sm:$0xff] %v2607_v6  ;;  %v2609_v61 = vadd.f32 %v2171_v60, %v1959_v8  ;;  %v2173_v10 = vpop.f32.mrb[3].mxu0  ;;  %v2262_v12 = vmul.f32 %v2607_v6, %v2607_v6  ;;  %v2247_v8 = vsub.s32 %v2244_v0, %v2246_v1 }
 0x1da   :  { %2214 = vst [vmem:[%s4018_s2 + $0x8] sm:$0xff] %v2608_v59  ;;  %v2610_v11 = vadd.f32 %v2173_v10, %v1961_v9  ;;  %v2263_v15 = vmul.f32 %v2608_v59, %v2608_v59 }
 0x1db   :  { %2215 = vst [vmem:[%s4018_s2 + $0x10] sm:$0xff] %v2609_v61  ;;  %v2221_v13 = vadd.f32 %v2609_v61, %v2607_v6  ;;  %v2264_v14 = vmul.f32 %v2609_v61, %v2609_v61 }
 0x1dc   :  { %2216 = vst [vmem:[%s4018_s2 + $0x18] sm:$0xff] %v2610_v11  ;;  %v2230_v16 = vadd.f32 %v2610_v11, %v2608_v59  ;;  %v2265_v17 = vmul.f32 %v2610_v11, %v2610_v11 }
 0x1dd   :  { %v2270_v18 = vadd.f32 %v2264_v14, %v2262_v12  ;;  %v1965_v20 = vpop.f32.mrb[4].mxu1 }
 0x1de   :  { %v2279_v19 = vadd.f32 %v2265_v17, %v2263_v15  ;;  %v2177_v21 = vpop.f32.mrb[4].mxu0  ;;  %v1967_v23 = vpop.f32.mrb[5].mxu1 }
 0x1df   :  { %v2611_v22 = vadd.f32 %v2177_v21, %v1965_v20  ;;  %v2179_v24 = vpop.f32.mrb[5].mxu0  ;;  %v1969_v26 = vpop.f32.mrb[6].mxu1 }
 0x1e0   :  { %v2612_v25 = vadd.f32 %v2179_v24, %v1967_v23  ;;  %v2181_v27 = vpop.f32.mrb[6].mxu0  ;;  %v1971_v31 = vpop.f32.mrb[7].mxu1 }
 0x1e1   :  { %2217 = vst [vmem:[%s4018_s2 + $0x20] sm:$0xff] %v2611_v22  ;;  %v2222_v28 = vadd.f32 %v2611_v22, %v2221_v13  ;;  %v2266_v29 = vmul.f32 %v2611_v22, %v2611_v22  ;;  %v2613_v30 = vadd.f32 %v2181_v27, %v1969_v26  ;;  %v2183_v32 = vpop.f32.mrb[7].mxu0 }
 0x1e2   :  { %2218 = vst [vmem:[%s4018_s2 + $0x28] sm:$0xff] %v2612_v25  ;;  %v2231_v33 = vadd.f32 %v2612_v25, %v2230_v16  ;;  %v2267_v34 = vmul.f32 %v2612_v25, %v2612_v25  ;;  %v2614_v35 = vadd.f32 %v2183_v32, %v1971_v31 }
 0x1e3   :  { %v2271_v36 = vadd.f32 %v2270_v18, %v2266_v29  ;;  %2219 = vst [vmem:[%s4018_s2 + $0x30] sm:$0xff] %v2613_v30  ;;  %v2223_v37 = vadd.f32 %v2613_v30, %v2222_v28  ;;  %v2268_v38 = vmul.f32 %v2613_v30, %v2613_v30 }
 0x1e4   :  { %v2280_v39 = vadd.f32 %v2279_v19, %v2267_v34  ;;  %2220 = vst [vmem:[%s4018_s2 + $0x38] sm:$0xff] %v2614_v35  ;;  %v2232_v40 = vadd.f32 %v2614_v35, %v2231_v33  ;;  %v2269_v41 = vmul.f32 %v2614_v35, %v2614_v35 }
 0x1e5   :  { %v2224_v43 = vrot.slane %v2223_v37, 4  ;;  %v2272_v44 = vadd.f32 %v2271_v36, %v2268_v38 }
 0x1e6   :  { %v2233_v48 = vrot.slane %v2232_v40, 4  ;;  %v2281_v49 = vadd.f32 %v2280_v39, %v2269_v41 }
 0x1e7   :  { %v2225_v42 = vadd.f32 %v2224_v43, %v2223_v37  ;;  %v2273_v45 = vrot.slane %v2272_v44, 4 }
 0x1e8   :  { %v2234_v46 = vadd.f32 %v2233_v48, %v2232_v40  ;;  %v2282_v52 = vrot.slane %v2281_v49, 4 }
 0x1e9   :  { %v2226_v53 = vrot.slane %v2225_v42, 2  ;;  %v2274_v54 = vadd.f32 %v2273_v45, %v2272_v44 }
 0x1ea   :  { %v2235_v55 = vrot.slane %v2234_v46, 2  ;;  %v2283_v57 = vadd.f32 %v2282_v52, %v2281_v49 }
 0x1eb   :  { %v2227_v58 = vadd.f32 %v2226_v53, %v2225_v42  ;;  %v2275_v62 = vrot.slane %v2274_v54, 2 }
 0x1ec   :  { %v2236_v63 = vadd.f32 %v2235_v55, %v2234_v46  ;;  %v2284_v2 = vrot.slane %v2283_v57, 2 }
 0x1ed   :  { %v2228_v3 = vrot.slane %v2227_v58, 1  ;;  %v2276_v4 = vadd.f32 %v2275_v62, %v2274_v54 }
 0x1ee   :  { %v2237_v5 = vrot.slane %v2236_v63, 1  ;;  %v2285_v6 = vadd.f32 %v2284_v2, %v2283_v57 }
 0x1ef   :  { %v2229_v7 = vadd.f32 %v2228_v3, %v2227_v58  ;;  %v2277_v56 = vrot.slane %v2276_v4, 1 }
 0x1f0   :  { %v2238_v59 = vadd.f32 %v2237_v5, %v2236_v63  ;;  %v2286_v60 = vrot.slane %v2285_v6, 1 }
 0x1f1   :  { %v2278_v61 = vadd.f32 %v2277_v56, %v2276_v4 }
 0x1f2   :  { %v2241_v9 = vcombine.low %v2229_v7, %v2238_v59  ;;  %v2287_v10 = vadd.f32 %v2286_v60, %v2285_v6 }
 0x1f4   :  { %v2248_v11 = vrot.slane %v2241_v9, %v2247_v8  ;;  %v2290_v12 = vcombine.low %v2278_v61, %v2287_v10 }
 0x1f6   :  { %v2255_v13 = vrot.slane %v2248_v11, %v2247_v8  ;;  %v2297_v14 = vrot.slane %v2290_v12, %v2247_v8 }
 0x1f8   :  { %2261 = vst.msk [vmem:[%s4019_s3] sm:$0x3] %vm2259_vm0, %v2255_v13  ;;  %v2304_v15 = vrot.slane %v2297_v14, %v2247_v8 }
 0x1fa   :  { %2306 = vst.msk [vmem:[%s4020_s4] sm:$0x3] %vm2259_vm0, %v2304_v15 }

// kernel: lpips_with_discriminator_forward.19
= control target key start
LH: loop header
LB: loop body
LE: loop exit
PB: predicated region body
PF: predicated region fallthrough
CT: control target
= control target key end

     0   :  { %v95_v0 = vlaneseq  ;;  %vm547_vm0 = vcmask 7168   ;;  %s1090_s1 = inlined_call_operand.vmem [shape: f32[1,8192], index: 1, kind: input, shape index: {}]   ;;  %s1091_s0 = inlined_call_operand.vmem [shape: f32[8,8192], index: 0, kind: input, shape index: {}]   ;;  %s1092_s2 = inlined_call_operand.<no memory space> [shape: f32[1], index: 2, kind: input, shape index: {}]   ;;  %s1093_s3 = inlined_call_operand.vmem [shape: f32[8,1], index: 3, kind: output, shape index: {}]  }
   0x1   :  { %v576_v2 = vld [vmem:[%s1090_s1 + $0x28] sm:$0xff]  ;;  %v589_v7 = vld [vmem:[%s1090_s1 + $0x30] sm:$0xff]  ;;  %v610_v16 = vld [vmem:[%s1090_s1 + $0x38] sm:$0xff] }
   0x2   :  { %v96_v1 = vshrl.u32 %v95_v0, 7  ;;  %v655_v37 = vld [vmem:[%s1090_s1] sm:$0xff]  ;;  %v16_v39 = vld [vmem:[%s1091_s0 + $0x8] sm:$0xff]  ;;  %v17_v40 = vld [vmem:[%s1091_s0 + $0x10] sm:$0xff] }
   0x3   :  { %v15_v38 = vld [vmem:[%s1091_s0] sm:$0xff]  ;;  %v48_v41 = vld [vmem:[%s1091_s0 + $0x108] sm:$0xff]  ;;  %v49_v42 = vld [vmem:[%s1091_s0 + $0x110] sm:$0xff] }
   0x4   :  { %v578_v3 = vsub.s32 0, %v96_v1  ;;  %v580_v4 = vsub.s32 1, %v96_v1  ;;  %v582_v5 = vsub.s32 2, %v96_v1  ;;  %v584_v6 = vsub.s32 3, %v96_v1  ;;  %v50_v43 = vld [vmem:[%s1091_s0 + $0x118] sm:$0xff]  ;;  %v678_v44 = vld [vmem:[%s1090_s1 + $0x20] sm:$0xff] }
   0x5   :  { %v591_v8 = vsub.s32 4, %v96_v1  ;;  %v593_v9 = vsub.s32 5, %v96_v1  ;;  %v595_v10 = vsub.s32 6, %v96_v1  ;;  %v597_v11 = vsub.s32 7, %v96_v1  ;;  %v51_v47 = vld [vmem:[%s1091_s0 + $0x120] sm:$0xff]  ;;  %v52_v48 = vld [vmem:[%s1091_s0 + $0x128] sm:$0xff] }
   0x6   :  { %v258_v12 = vrot.slane %v576_v2, %v578_v3  ;;  %v262_v13 = vrot.slane %v576_v2, %v580_v4  ;;  %v266_v14 = vrot.slane %v576_v2, %v582_v5  ;;  %v270_v15 = vrot.slane %v576_v2, %v584_v6  ;;  %v53_v49 = vld [vmem:[%s1091_s0 + $0x130] sm:$0xff]  ;;  %v54_v50 = vld [vmem:[%s1091_s0 + $0x138] sm:$0xff]  ;;  %v55_v55 = vld [vmem:[%s1091_s0 + $0x140] sm:$0xff] }
   0x7   :  { %v274_v17 = vrot.slane %v576_v2, %v591_v8  ;;  %v278_v18 = vrot.slane %v576_v2, %v593_v9  ;;  %v282_v19 = vrot.slane %v576_v2, %v595_v10  ;;  %v286_v20 = vrot.slane %v576_v2, %v597_v11  ;;  %v56_v56 = vld [vmem:[%s1091_s0 + $0x148] sm:$0xff]  ;;  %v57_v57 = vld [vmem:[%s1091_s0 + $0x150] sm:$0xff]  ;;  %v58_v62 = vld [vmem:[%s1091_s0 + $0x158] sm:$0xff] }
   0x8   :  { %v290_v21 = vrot.slane %v589_v7, %v578_v3  ;;  %v294_v22 = vrot.slane %v589_v7, %v580_v4  ;;  %v298_v23 = vrot.slane %v589_v7, %v582_v5  ;;  %v98_v45 = vrot.slane %v655_v37, %v578_v3  ;;  %v59_v63 = vld [vmem:[%s1091_s0 + $0x160] sm:$0xff]  ;;  %v60_v0 = vld [vmem:[%s1091_s0 + $0x168] sm:$0xff]  ;;  %v61_v1 = vld [vmem:[%s1091_s0 + $0x170] sm:$0xff] }
   0x9   :  { %v102_v46 = vrot.slane %v655_v37, %v580_v4  ;;  %v106_v51 = vrot.slane %v655_v37, %v582_v5  ;;  %v230_v52 = vrot.slane %v678_v44, %v580_v4  ;;  %v234_v53 = vrot.slane %v678_v44, %v582_v5  ;;  %v62_v36 = vld [vmem:[%s1091_s0 + $0x178] sm:$0xff]  ;;  %v63_v35 = vld [vmem:[%s1091_s0 + $0x180] sm:$0xff]  ;;  %v64_v30 = vld [vmem:[%s1091_s0 + $0x188] sm:$0xff] }
   0xa   :  { %v238_v54 = vrot.slane %v678_v44, %v584_v6  ;;  %v242_v58 = vrot.slane %v678_v44, %v591_v8  ;;  %v246_v59 = vrot.slane %v678_v44, %v593_v9  ;;  %v250_v60 = vrot.slane %v678_v44, %v595_v10  ;;  %v65_v29 = vld [vmem:[%s1091_s0 + $0x190] sm:$0xff]  ;;  %v66_v28 = vld [vmem:[%s1091_s0 + $0x198] sm:$0xff] }
   0xb   :  { %v254_v61 = vrot.slane %v678_v44, %v597_v11  ;;  %v110_v34 = vrot.slane %v655_v37, %v584_v6  ;;  %v114_v33 = vrot.slane %v655_v37, %v591_v8  ;;  %v415_v32 = vmul.f32 %v98_v45, %v15_v38  ;;  %v67_v38 = vld [vmem:[%s1091_s0 + $0x1a0] sm:$0xff]  ;;  %v69_v45 = vld [vmem:[%s1091_s0 + $0x1b0] sm:$0xff] }
   0xc   :  { %v416_v31 = vmul.f32 %v102_v46, %v16_v39  ;;  %v417_v27 = vmul.f32 %v106_v51, %v17_v40  ;;  %v752_v26 = vmul.f32 %v230_v52, %v48_v41  ;;  %v754_v25 = vmul.f32 %v234_v53, %v49_v42  ;;  %v68_v39 = vld [vmem:[%s1091_s0 + $0x1a8] sm:$0xff]  ;;  %v71_v51 = vld [vmem:[%s1091_s0 + $0x1c0] sm:$0xff]  ;;  %v74_v53 = vld [vmem:[%s1091_s0 + $0x1d8] sm:$0xff] }
   0xd   :  { %v756_v24 = vmul.f32 %v238_v54, %v50_v43  ;;  %v767_v46 = vmul.f32 %v242_v58, %v51_v47  ;;  %v769_v40 = vmul.f32 %v246_v59, %v52_v48  ;;  %v771_v41 = vmul.f32 %v250_v60, %v53_v49  ;;  %v70_v43 = vld [vmem:[%s1091_s0 + $0x1b8] sm:$0xff]  ;;  %v72_v52 = vld [vmem:[%s1091_s0 + $0x1c8] sm:$0xff] }
   0xe   :  { %v773_v42 = vmul.f32 %v254_v61, %v54_v50  ;;  %v787_v47 = vmul.f32 %v258_v12, %v55_v55  ;;  %v792_v48 = vmul.f32 %v262_v13, %v56_v56  ;;  %v797_v49 = vmul.f32 %v266_v14, %v57_v57  ;;  %v73_v12 = vld [vmem:[%s1091_s0 + $0x1d0] sm:$0xff]  ;;  %v75_v13 = vld [vmem:[%s1091_s0 + $0x1e0] sm:$0xff] }
   0xf   :  { %v802_v50 = vmul.f32 %v270_v15, %v58_v62  ;;  %v816_v14 = vmul.f32 %v274_v17, %v59_v63  ;;  %v821_v15 = vmul.f32 %v278_v18, %v60_v0  ;;  %v826_v54 = vmul.f32 %v282_v19, %v61_v1  ;;  %v76_v17 = vld [vmem:[%s1091_s0 + $0x1e8] sm:$0xff]  ;;  %v77_v56 = vld [vmem:[%s1091_s0 + $0x1f0] sm:$0xff]  ;;  %v78_v18 = vld [vmem:[%s1091_s0 + $0x1f8] sm:$0xff] }
  0x10   :  { %v831_v55 = vmul.f32 %v286_v20, %v62_v36  ;;  %v845_v19 = vmul.f32 %v290_v21, %v63_v35  ;;  %v850_v2 = vmul.f32 %v294_v22, %v64_v30  ;;  %v855_v20 = vmul.f32 %v298_v23, %v65_v29  ;;  %v18_v21 = vld [vmem:[%s1091_s0 + $0x18] sm:$0xff] }
  0x11   :  { %v1094_v36 = vrot.slane %v589_v7, %v584_v6  ;;  %v1095_v35 = vrot.slane %v589_v7, %v591_v8  ;;  %v1096_v22 = vrot.slane %v589_v7, %v593_v9  ;;  %v1097_v23 = vrot.slane %v589_v7, %v595_v10 }
  0x12   :  { %v1099_v60 = vrot.slane %v610_v16, %v578_v3  ;;  %v1100_v62 = vrot.slane %v610_v16, %v580_v4  ;;  %v1101_v0 = vrot.slane %v610_v16, %v582_v5 }
  0x13   :  { %v860_v57 = vmul.f32 %v1094_v36, %v66_v28  ;;  %v868_v58 = vmul.f32 %v1095_v35, %v67_v38  ;;  %v873_v30 = vmul.f32 %v1096_v22, %v68_v39  ;;  %v878_v29 = vmul.f32 %v1097_v23, %v69_v45  ;;  %v19_v39 = vld [vmem:[%s1091_s0 + $0x20] sm:$0xff] }
  0x14   :  { %v1098_v28 = vrot.slane %v589_v7, %v597_v11  ;;  %v888_v61 = vmul.f32 %v1099_v60, %v71_v51  ;;  %v893_v63 = vmul.f32 %v1100_v62, %v72_v52  ;;  %v898_v1 = vmul.f32 %v1101_v0, %v73_v12  ;;  %v23_v0 = vld [vmem:[%s1091_s0 + $0x40] sm:$0xff] }
  0x15   :  { %v1102_v7 = vrot.slane %v610_v16, %v584_v6  ;;  %v1103_v45 = vrot.slane %v610_v16, %v591_v8  ;;  %v1104_v51 = vrot.slane %v610_v16, %v593_v9  ;;  %v1105_v12 = vrot.slane %v610_v16, %v595_v10 }
  0x16   :  { %v883_v59 = vmul.f32 %v1098_v28, %v70_v43  ;;  %v118_v22 = vrot.slane %v655_v37, %v593_v9  ;;  %v479_v23 = vadd.f32 %v416_v31, %v415_v32  ;;  %v122_v28 = vrot.slane %v655_v37, %v595_v10 }
  0x17   :  { %v903_v38 = vmul.f32 %v1102_v7, %v74_v53  ;;  %v911_v43 = vmul.f32 %v1103_v45, %v75_v13  ;;  %v916_v52 = vmul.f32 %v1104_v51, %v76_v17  ;;  %v921_v36 = vmul.f32 %v1105_v12, %v77_v56  ;;  %v20_v17 = vld [vmem:[%s1091_s0 + $0x28] sm:$0xff] }
  0x18   :  { %v1106_v53 = vrot.slane %v610_v16, %v597_v11  ;;  %v418_v13 = vmul.f32 %v110_v34, %v18_v21  ;;  %v419_v60 = vmul.f32 %v114_v33, %v19_v39  ;;  %v480_v56 = vadd.f32 %v479_v23, %v417_v27  ;;  %v21_v16 = vld [vmem:[%s1091_s0 + $0x30] sm:$0xff]  ;;  %v22_v21 = vld [vmem:[%s1091_s0 + $0x38] sm:$0xff] }
  0x19   :  { %v126_v31 = vrot.slane %v655_v37, %v597_v11  ;;  %v420_v32 = vmul.f32 %v118_v22, %v20_v17  ;;  %v421_v27 = vmul.f32 %v122_v28, %v21_v16  ;;  %v24_v37 = vld [vmem:[%s1091_s0 + $0x48] sm:$0xff]  ;;  %v25_v22 = vld [vmem:[%s1091_s0 + $0x50] sm:$0xff]  ;;  %v26_v28 = vld [vmem:[%s1091_s0 + $0x58] sm:$0xff] }
  0x1a   :  { %v926_v35 = vmul.f32 %v1106_v53, %v78_v18  ;;  %v80_v18 = vld [vmem:[%s1090_s1 + $0x8] sm:$0xff]  ;;  %v481_v34 = vadd.f32 %v480_v56, %v418_v13 }
  0x1b   :  { %v130_v33 = vrot.slane %v80_v18, %v578_v3  ;;  %v134_v7 = vrot.slane %v80_v18, %v580_v4  ;;  %v422_v39 = vmul.f32 %v126_v31, %v22_v21  ;;  %v138_v51 = vrot.slane %v80_v18, %v582_v5  ;;  %v27_v31 = vld [vmem:[%s1091_s0 + $0x60] sm:$0xff] }
  0x1c   :  { %v482_v62 = vadd.f32 %v481_v34, %v419_v60  ;;  %v142_v13 = vrot.slane %v80_v18, %v584_v6  ;;  %v146_v60 = vrot.slane %v80_v18, %v591_v8 }
  0x1d   :  { %v423_v12 = vmul.f32 %v130_v33, %v23_v0  ;;  %v424_v23 = vmul.f32 %v134_v7, %v24_v37  ;;  %v425_v56 = vmul.f32 %v138_v51, %v25_v22  ;;  %v28_v33 = vld [vmem:[%s1091_s0 + $0x68] sm:$0xff]  ;;  %v29_v7 = vld [vmem:[%s1091_s0 + $0x70] sm:$0xff] }
  0x1e   :  { %v483_v45 = vadd.f32 %v482_v62, %v420_v32  ;;  %v150_v32 = vrot.slane %v80_v18, %v593_v9  ;;  %v426_v34 = vmul.f32 %v142_v13, %v26_v28  ;;  %v427_v62 = vmul.f32 %v146_v60, %v27_v31 }
  0x20   :  { %v484_v53 = vadd.f32 %v483_v45, %v421_v27  ;;  %v154_v27 = vrot.slane %v80_v18, %v595_v10  ;;  %v158_v45 = vrot.slane %v80_v18, %v597_v11  ;;  %v428_v37 = vmul.f32 %v150_v32, %v28_v33  ;;  %v32_v18 = vld [vmem:[%s1091_s0 + $0x88] sm:$0xff]  ;;  %v33_v32 = vld [vmem:[%s1091_s0 + $0x90] sm:$0xff] }
  0x22   :  { %v485_v17 = vadd.f32 %v484_v53, %v422_v39  ;;  %v81_v39 = vld [vmem:[%s1090_s1 + $0x10] sm:$0xff]  ;;  %v429_v22 = vmul.f32 %v154_v27, %v29_v7  ;;  %v34_v27 = vld [vmem:[%s1091_s0 + $0x98] sm:$0xff] }
  0x23   :  { %v162_v53 = vrot.slane %v81_v39, %v578_v3 }
  0x24   :  { %v486_v16 = vadd.f32 %v485_v17, %v423_v12  ;;  %v30_v12 = vld [vmem:[%s1091_s0 + $0x78] sm:$0xff]  ;;  %v166_v17 = vrot.slane %v81_v39, %v580_v4 }
  0x25   :  { %v430_v28 = vmul.f32 %v158_v45, %v30_v12  ;;  %v35_v45 = vld [vmem:[%s1091_s0 + $0xa0] sm:$0xff] }
  0x26   :  { %v487_v21 = vadd.f32 %v486_v16, %v424_v23  ;;  %v31_v23 = vld [vmem:[%s1091_s0 + $0x80] sm:$0xff] }
  0x27   :  { %v431_v16 = vmul.f32 %v162_v53, %v31_v23  ;;  %v36_v53 = vld [vmem:[%s1091_s0 + $0xa8] sm:$0xff] }
  0x28   :  { %v488_v0 = vadd.f32 %v487_v21, %v425_v56  ;;  %v170_v56 = vrot.slane %v81_v39, %v582_v5  ;;  %v432_v21 = vmul.f32 %v166_v17, %v32_v18  ;;  %v37_v17 = vld [vmem:[%s1091_s0 + $0xb0] sm:$0xff] }
  0x2a   :  { %v489_v51 = vadd.f32 %v488_v0, %v426_v34  ;;  %v174_v34 = vrot.slane %v81_v39, %v584_v6  ;;  %v433_v0 = vmul.f32 %v170_v56, %v33_v32 }
  0x2c   :  { %v490_v13 = vadd.f32 %v489_v51, %v427_v62  ;;  %v178_v62 = vrot.slane %v81_v39, %v591_v8  ;;  %v434_v51 = vmul.f32 %v174_v34, %v34_v27 }
  0x2e   :  { %v491_v60 = vadd.f32 %v490_v13, %v428_v37  ;;  %v182_v37 = vrot.slane %v81_v39, %v593_v9  ;;  %v435_v13 = vmul.f32 %v178_v62, %v35_v45 }
  0x30   :  { %v492_v31 = vadd.f32 %v491_v60, %v429_v22  ;;  %v186_v22 = vrot.slane %v81_v39, %v595_v10  ;;  %v190_v60 = vrot.slane %v81_v39, %v597_v11  ;;  %v436_v18 = vmul.f32 %v182_v37, %v36_v53  ;;  %v40_v39 = vld [vmem:[%s1091_s0 + $0xc8] sm:$0xff]  ;;  %v41_v37 = vld [vmem:[%s1091_s0 + $0xd0] sm:$0xff] }
  0x32   :  { %v493_v33 = vadd.f32 %v492_v31, %v430_v28  ;;  %v82_v28 = vld [vmem:[%s1090_s1 + $0x18] sm:$0xff]  ;;  %v437_v32 = vmul.f32 %v186_v22, %v37_v17 }
  0x33   :  { %v194_v31 = vrot.slane %v82_v28, %v578_v3  ;;  %v210_v22 = vrot.slane %v82_v28, %v591_v8  ;;  %v214_v17 = vrot.slane %v82_v28, %v593_v9  ;;  %v45_v8 = vld [vmem:[%s1091_s0 + $0xf0] sm:$0xff]  ;;  %v46_v9 = vld [vmem:[%s1091_s0 + $0xf8] sm:$0xff] }
  0x34   :  { %v494_v7 = vadd.f32 %v493_v33, %v431_v16  ;;  %v38_v16 = vld [vmem:[%s1091_s0 + $0xb8] sm:$0xff]  ;;  %v198_v33 = vrot.slane %v82_v28, %v580_v4 }
  0x35   :  { %v438_v27 = vmul.f32 %v190_v60, %v38_v16  ;;  %v42_v4 = vld [vmem:[%s1091_s0 + $0xd8] sm:$0xff] }
  0x36   :  { %v495_v12 = vadd.f32 %v494_v7, %v432_v21  ;;  %v39_v21 = vld [vmem:[%s1091_s0 + $0xc0] sm:$0xff] }
  0x37   :  { %v439_v7 = vmul.f32 %v194_v31, %v39_v21 }
  0x38   :  { %v496_v23 = vadd.f32 %v495_v12, %v433_v0  ;;  %v202_v0 = vrot.slane %v82_v28, %v582_v5  ;;  %v440_v12 = vmul.f32 %v198_v33, %v40_v39  ;;  %v43_v5 = vld [vmem:[%s1091_s0 + $0xe0] sm:$0xff]  ;;  %v226_v33 = vrot.slane %v678_v44, %v578_v3 }
  0x39   :  { %v443_v16 = vmul.f32 %v210_v22, %v43_v5 }
  0x3a   :  { %v497_v56 = vadd.f32 %v496_v23, %v434_v51  ;;  %v206_v51 = vrot.slane %v82_v28, %v584_v6  ;;  %v44_v6 = vld [vmem:[%s1091_s0 + $0xe8] sm:$0xff] }
  0x3c   :  { %v498_v34 = vadd.f32 %v497_v56, %v435_v13  ;;  %v441_v13 = vmul.f32 %v202_v0, %v41_v37  ;;  %v442_v60 = vmul.f32 %v206_v51, %v42_v4  ;;  %v218_v56 = vrot.slane %v82_v28, %v595_v10  ;;  %v47_v10 = vld [vmem:[%s1091_s0 + $0x100] sm:$0xff] }
  0x3e   :  { %v499_v62 = vadd.f32 %v498_v34, %v436_v18  ;;  %v444_v34 = vmul.f32 %v214_v17, %v44_v6 }
  0x40   :  { %v500_v45 = vadd.f32 %v499_v62, %v437_v32  ;;  %v222_v32 = vrot.slane %v82_v28, %v597_v11 }
  0x42   :  { %v501_v53 = vadd.f32 %v500_v45, %v438_v27  ;;  %v445_v27 = vmul.f32 %v218_v56, %v45_v8  ;;  %v446_v39 = vmul.f32 %v222_v32, %v46_v9 }
  0x44   :  { %v502_v23 = vadd.f32 %v501_v53, %v439_v7  ;;  %v447_v7 = vmul.f32 %v226_v33, %v47_v10 }
  0x46   :  { %v503_v18 = vadd.f32 %v502_v23, %v440_v12 }
  0x48   :  { %v504_v31 = vadd.f32 %v503_v18, %v441_v13 }
  0x4a   :  { %v505_v21 = vadd.f32 %v504_v31, %v442_v60 }
  0x4c   :  { %v506_v62 = vadd.f32 %v505_v21, %v443_v16 }
  0x4e   :  { %v507_v0 = vadd.f32 %v506_v62, %v444_v34 }
  0x50   :  { %v508_v45 = vadd.f32 %v507_v0, %v445_v27 }
  0x52   :  { %v509_v11 = vadd.f32 %v508_v45, %v446_v39 }
  0x54   :  { %v510_v28 = vadd.f32 %v509_v11, %v447_v7 }
  0x56   :  { %v511_v37 = vadd.f32 %v510_v28, %v752_v26 }
  0x58   :  { %v512_v51 = vadd.f32 %v511_v37, %v754_v25 }
  0x5a   :  { %v513_v12 = vadd.f32 %v512_v51, %v756_v24 }
  0x5c   :  { %v514_v3 = vadd.f32 %v513_v12, %v767_v46 }
  0x5e   :  { %v515_v44 = vadd.f32 %v514_v3, %v769_v40 }
  0x60   :  { %v516_v53 = vadd.f32 %v515_v44, %v771_v41 }
  0x62   :  { %v517_v4 = vadd.f32 %v516_v53, %v773_v42 }
  0x64   :  { %v518_v22 = vadd.f32 %v517_v4, %v787_v47 }
  0x66   :  { %v519_v13 = vadd.f32 %v518_v22, %v792_v48 }
  0x68   :  { %v520_v23 = vadd.f32 %v519_v13, %v797_v49 }
  0x6a   :  { %v521_v26 = vadd.f32 %v520_v23, %v802_v50 }
  0x6c   :  { %v522_v25 = vadd.f32 %v521_v26, %v816_v14 }
  0x6e   :  { %v523_v24 = vadd.f32 %v522_v25, %v821_v15 }
  0x70   :  { %v524_v46 = vadd.f32 %v523_v24, %v826_v54 }
  0x72   :  { %v525_v40 = vadd.f32 %v524_v46, %v831_v55 }
  0x74   :  { %v526_v41 = vadd.f32 %v525_v40, %v845_v19 }
  0x76   :  { %v527_v42 = vadd.f32 %v526_v41, %v850_v2 }
  0x78   :  { %v528_v47 = vadd.f32 %v527_v42, %v855_v20 }
  0x7a   :  { %v529_v48 = vadd.f32 %v528_v47, %v860_v57 }
  0x7c   :  { %v530_v49 = vadd.f32 %v529_v48, %v868_v58 }
  0x7e   :  { %v531_v50 = vadd.f32 %v530_v49, %v873_v30 }
  0x80   :  { %v532_v14 = vadd.f32 %v531_v50, %v878_v29  ;;  %v545_v29 = vstv %s1092_s2 }
  0x82   :  { %v533_v15 = vadd.f32 %v532_v14, %v883_v59 }
  0x84   :  { %v534_v54 = vadd.f32 %v533_v15, %v888_v61 }
  0x86   :  { %v535_v55 = vadd.f32 %v534_v54, %v893_v63 }
  0x88   :  { %v536_v19 = vadd.f32 %v535_v55, %v898_v1 }
  0x8a   :  { %v537_v2 = vadd.f32 %v536_v19, %v903_v38 }
  0x8c   :  { %v538_v20 = vadd.f32 %v537_v2, %v911_v43 }
  0x8e   :  { %v539_v57 = vadd.f32 %v538_v20, %v916_v52 }
  0x90   :  { %v540_v58 = vadd.f32 %v539_v57, %v921_v36 }
  0x92   :  { %v541_v30 = vadd.f32 %v540_v58, %v926_v35 }
  0x94   :  { %542 = vadd.xlane.f32.xlu0 %v541_v30 }
 0x121   :  { %v543_v59 = vpop.xlane.xlu0 %542 }
 0x122   :  { %v546_v61 = vadd.f32 %v545_v29, %v543_v59 }
 0x124   :  { %548 = vst.msk [vmem:[%s1093_s3] sm:$0xff] %vm547_vm0, %v546_v61 }

// kernel: lpips_with_discriminator_forward.10
= control target key start
LH: loop header
LB: loop body
LE: loop exit
PB: predicated region body
PF: predicated region fallthrough
CT: control target
= control target key end

     0   :  { %s156_s0 = inlined_call_operand.vmem [shape: f32[48,128], index: 0, kind: input, shape index: {}]   ;;  %s157_s1 = inlined_call_operand.vmem [shape: f32[48,128], index: 1, kind: input, shape index: {}]   ;;  %s158_s2 = inlined_call_operand.hbm [shape: f32[1,1], index: 2, kind: output, shape index: {}]  }
   0x1   :  { %v12_v0 = vld [vmem:[%s156_s0] sm:$0xff]  ;;  %v13_v1 = vld [vmem:[%s156_s0 + $0x8] sm:$0xff]  ;;  %v14_v2 = vld [vmem:[%s156_s0 + $0x10] sm:$0xff] }
   0x2   :  { %v15_v3 = vld [vmem:[%s156_s0 + $0x18] sm:$0xff]  ;;  %v16_v4 = vld [vmem:[%s156_s0 + $0x20] sm:$0xff]  ;;  %v19_v6 = vld [vmem:[%s157_s1 + $0x8] sm:$0xff] }
   0x3   :  { %v18_v5 = vld [vmem:[%s157_s1] sm:$0xff]  ;;  %v20_v7 = vld [vmem:[%s157_s1 + $0x10] sm:$0xff]  ;;  %v21_v8 = vld [vmem:[%s157_s1 + $0x18] sm:$0xff]  ;;  %v25_v11 = vsub.f32 %v13_v1, %v19_v6 }
   0x4   :  { %v22_v9 = vld [vmem:[%s157_s1 + $0x20] sm:$0xff]  ;;  %v24_v10 = vsub.f32 %v12_v0, %v18_v5  ;;  %v26_v12 = vsub.f32 %v14_v2, %v20_v7  ;;  %v17_v13 = vld [vmem:[%s156_s0 + $0x28] sm:$0xff]  ;;  %v27_v15 = vsub.f32 %v15_v3, %v21_v8 }
   0x5   :  { %v23_v14 = vld [vmem:[%s157_s1 + $0x28] sm:$0xff] }
   0x6   :  { %7 = vsyncpa [#allocation3], 0  ;;  %v28_v16 = vsub.f32 %v16_v4, %v22_v9  ;;  %v30_v17 = vand.u32 2147483647, %v24_v10  ;;  %v31_v18 = vand.u32 2147483647, %v25_v11  ;;  %v29_v20 = vsub.f32 %v17_v13, %v23_v14 }
   0x7   :  { %v32_v19 = vand.u32 2147483647, %v26_v12  ;;  %v33_v21 = vand.u32 2147483647, %v27_v15  ;;  %s80_s6 = scalar_lea.hbm %s158_s2, 16 }
   0x8   :  { %v36_v22 = vadd.f32 %v31_v18, %v30_v17  ;;  %v34_v23 = vand.u32 2147483647, %v28_v16  ;;  %v35_v25 = vand.u32 2147483647, %v29_v20  ;;  %p81_p0 = scmp.ne.s32.totalorder %s158_s2, %s80_s6  ;;  %p84_p1 = scmp.lt.u32.totalorder %s80_s6, %s158_s2 }
   0xa   :  { %v37_v24 = vadd.f32 %v36_v22, %v32_v19  ;;  %p86_p2 = pnand %p84_p1, %p81_p0 }
   0xc   :  { %v38_v26 = vadd.f32 %v37_v24, %v33_v21 }
   0xe   :  { %v39_v27 = vadd.f32 %v38_v26, %v34_v23 }
  0x10   :  { %v40_v28 = vadd.f32 %v39_v27, %v35_v25 }
  0x12   :  { %41 = vadd.xlane.f32.xlu0 %v40_v28 }
  0x9f   :  { %v42_v29 = vpop.xlane.xlu0 %41 }
  0xa0   :  { %v43_v30 = vrot.slane %v42_v29, 4 }
  0xa2   :  { %v44_v31 = vadd.f32 %v43_v30, %v42_v29 }
  0xa4   :  { %v45_v32 = vrot.slane %v44_v31, 2 }
  0xa6   :  { %v46_v33 = vadd.f32 %v45_v32, %v44_v31 }
  0xa8   :  { %v47_v34 = vrot.slane %v46_v33, 1 }
  0xaa   :  { %v48_v35 = vadd.f32 %v47_v34, %v46_v33 }
  0xac   :  { %77 = vpush %v48_v35 }
  0xdd   :  { %s78_s0 = spop %77 }
  0xde   :  { %55 = sst [smem:[#allocation2]] %s78_s0 }
  0xdf   :  { %89 = shalt.err (!%p86_p2)
}
  0xe0   :  { %s92_s11 = smov [#allocation2]  }
  0xe1   :  { %71 = dma.smem_to_hbm %s92_s11, 16, %s158_s2, [#allocation3]  }
  0xe2   :  { %90 = dma.done.wait [#allocation3], 16  }
  0xe3   :  { %91 = vsyncadd [#allocation3], 4294967280 }
  0xe4   :  { %75 = sfence }
  0xe5   :  { %76 = vsyncpa [#allocation3], 1 }

// kernel: lpips_with_discriminator_forward.17
= control target key start
LH: loop header
LB: loop body
LE: loop exit
PB: predicated region body
PF: predicated region fallthrough
CT: control target
= control target key end

     0   :  { %s5985_s0 = inlined_call_operand.vmem [shape: bf16[32,4096], index: 0, kind: input, shape index: {}]   ;;  %s5986_s1 = inlined_call_operand.vmem [shape: bf16[4096,512], index: 1, kind: input, shape index: {}]   ;;  %s5987_s2 = inlined_call_operand.vmem [shape: f32[32,512], index: 2, kind: output, shape index: {0}]   ;;  %s5988_s3 = inlined_call_operand.vmem [shape: f32[1,512], index: 3, kind: output, shape index: {1}]   ;;  %s5989_s4 = inlined_call_operand.vmem [shape: f32[1,512], index: 4, kind: output, shape index: {2}]  }
   0x1   :  { %5992 = sst [smem:[#allocation8_spill]] %s5985_s0 }
   0x2   :  { %5993 = sst [smem:[#allocation9_spill]] %s5986_s1 }
   0x3   :  { %s4862_s15 = smov 0   ;;  %s4864_s16 = smov 0  }
   0x4   :  { %s4866_s17 = smov 0   ;;  %s4868_s18 = smov 0  }
   0x5   :  { %s4870_s19 = smov 0   ;;  %s4872_s20 = smov 0  }
   0x6   :  { %s4874_s21 = smov 0   ;;  %s4876_s22 = smov 0  }
   0x7   :  { %s4878_s23 = smov 0   ;;  %s4880_s24 = smov 0  }
   0x8   :  { %s4882_s25 = smov 0  }
   0x9 LB: > { %s3901_s26 = sadd.s32 4294967295, %s4833_s25   ;;  %s27_s27 = sadd.s32 1, %s4825_s23  ;;  %s4833_s25 = sphi %s4882_s25, %s15_s25   ;;  %s4829_s24 = sphi %s4880_s24, %s6012_s24   ;;  %s4825_s23 = sphi %s4878_s23, %s6011_s23   ;;  %s4821_s22 = sphi %s4876_s22, %s6010_s22   ;;  %s4817_s21 = sphi %s4874_s21, %s6009_s21   ;;  %s4813_s20 = sphi %s4872_s20, %s6008_s20   ;;  %s4809_s19 = sphi %s4870_s19, %s6007_s19   ;;  %s4805_s18 = sphi %s4868_s18, %s6006_s18   ;;  %s4801_s17 = sphi %s4866_s17, %s6005_s17   ;;  %s4797_s16 = sphi %s4864_s16, %s6004_s16   ;;  %s4793_s15 = sphi %s4862_s15, %s6003_s15  }
   0xa   : > { %p28_p0 = scmp.ge.s32.totalorder %s27_s27, 2  ;;  %s30_s28 = sadd.s32 1, %s4829_s24 }
   0xb   : > { %s43_s29 = sadd.s32 1, %s4813_s20  ;;  %p50_p1 = scmp.ne.s32.totalorder %s4813_s20, %s4809_s19 }
   0xc   : > { %s6014_s27 = smov (%p28_p0, %s27_s27), 0  ;;  %s6016_s28 = smov (!%p28_p0, %s30_s28), %s4829_s24 }
   0xd   : > { %5994 = sst [smem:[#allocation6_spill]] %s6014_s27  ;;  %s39_s30 = ssub.s32 %s4825_s23, %s6014_s27 }
   0xe   : > { %p51_p2 = scmp.eq.s32.totalorder %s4833_s25, 0  ;;  %p32_p3 = scmp.ge.s32.totalorder %s6016_s28, 2 }
   0xf   : > { %p41_p4 = scmp.eq.s32.totalorder %s39_s30, 0  ;;  %s71_s6 = sadd.s32 1, %s4805_s18 }
  0x10   : > { %p4929_p5 = por %p51_p2, %p50_p1  ;;  %s6018_s28 = smov (%p32_p3, %s6016_s28), 0 }
  0x11   : > { %5996 = sst [smem:[#allocation7_spill]] %s6018_s28  ;;  %s67_s8 = ssub.s32 %s4829_s24, %s6018_s28 }
  0x12   : > { %s4937_s7 = scalar_select %p41_p4, %s4813_s20, %s43_s29  }
  0x13   : > { %p78_p6 = scmp.ne.s32.totalorder %s4805_s18, %s4801_s17  ;;  %s68_s9 = sor.u32 %s67_s8, %s39_s30 }
  0x14   : > { %p97_p7 = scmp.eq.s32.totalorder %s67_s8, 0  ;;  %p69_p8 = scmp.eq.s32.totalorder %s68_s9, 0 }
  0x15   : > { %p4943_p9 = por %p78_p6, %p51_p2  ;;  %s99_s11 = sadd.s32 1, %s4797_s16 }
  0x16   : > { %p109_p10 = scmp.ne.s32.totalorder %s4797_s16, %s4793_s15  ;;  %p110_p11 = scmp.eq.s32.totalorder %s3901_s26, 3 }
  0x17   : > { %s4951_s12 = scalar_select %p69_p8, %s4805_s18, %s71_s6  }
  0x18   : > { %s4954_s13 = scalar_select %p97_p7, %s4797_s16, %s99_s11  }
  0x19   : > { %p4956_p12 = por %p110_p11, %p109_p10  ;;  %p3904_p13 = scmp.ge.s32.totalorder %s4833_s25, 4 }
  0x1b   : > { %184 = sbr.rel (%p3904_p13) target bundleno = 198 (0xc6), region = 16 }
  0x22   : > { %187 = sbr.rel (!%p4929_p5) target bundleno = 60 (0x3c), region = 20  ;;  %s189_s29 = sand.u32 (%p4929_p5), 1, %s4813_s20  }
  0x23   : > { %s4214_s30 = sshll.u32 (%p4929_p5), %s4825_s23, 6  ;;  %s3905_s8 = sshll.u32 (%p4929_p5), %s189_s29, 8 }
  0x24   : > { %s5999_s0 = sld [smem:[#allocation8_spill]] (%p4929_p5)  ;;  %s4973_s26 = scalar_lea.vmem (%p4929_p5), [#allocation3], %s3905_s8 }
  0x2a   : > { %s4968_s11 = scalar_lea.vmem %s5999_s0, %s4214_s30 }
  0x2b   : > { %v210_v0 = vld [vmem:[%s4968_s11] sm:$0xff]  ;;  %v212_v1 = vld [vmem:[%s4968_s11 + $0x8] sm:$0xff]  ;;  %v214_v2 = vld [vmem:[%s4968_s11 + $0x10] sm:$0xff] }
  0x2c   : > { %211 = vst [vmem:[%s4973_s26] sm:$0xff] %v210_v0  ;;  %213 = vst [vmem:[%s4973_s26 + $0x8] sm:$0xff] %v212_v1  ;;  %v216_v3 = vld [vmem:[%s4968_s11 + $0x18] sm:$0xff]  ;;  %v218_v4 = vld [vmem:[%s4968_s11 + $0x20] sm:$0xff] }
  0x2d   : > { %215 = vst [vmem:[%s4973_s26 + $0x10] sm:$0xff] %v214_v2  ;;  %v220_v5 = vld [vmem:[%s4968_s11 + $0x28] sm:$0xff]  ;;  %217 = vst [vmem:[%s4973_s26 + $0x18] sm:$0xff] %v216_v3  ;;  %v222_v6 = vld [vmem:[%s4968_s11 + $0x30] sm:$0xff] }
  0x2e   : > { %219 = vst [vmem:[%s4973_s26 + $0x20] sm:$0xff] %v218_v4  ;;  %221 = vst [vmem:[%s4973_s26 + $0x28] sm:$0xff] %v220_v5  ;;  %v224_v7 = vld [vmem:[%s4968_s11 + $0x38] sm:$0xff]  ;;  %v226_v8 = vld [vmem:[%s4968_s11 + $0x80] sm:$0xff] }
  0x2f   : > { %223 = vst [vmem:[%s4973_s26 + $0x30] sm:$0xff] %v222_v6  ;;  %225 = vst [vmem:[%s4973_s26 + $0x38] sm:$0xff] %v224_v7  ;;  %v228_v9 = vld [vmem:[%s4968_s11 + $0x88] sm:$0xff]  ;;  %v230_v10 = vld [vmem:[%s4968_s11 + $0x90] sm:$0xff] }
  0x30   : > { %227 = vst [vmem:[%s4973_s26 + $0x40] sm:$0xff] %v226_v8  ;;  %v232_v11 = vld [vmem:[%s4968_s11 + $0x98] sm:$0xff]  ;;  %229 = vst [vmem:[%s4973_s26 + $0x48] sm:$0xff] %v228_v9  ;;  %v234_v12 = vld [vmem:[%s4968_s11 + $0xa0] sm:$0xff] }
  0x31   : > { %231 = vst [vmem:[%s4973_s26 + $0x50] sm:$0xff] %v230_v10  ;;  %233 = vst [vmem:[%s4973_s26 + $0x58] sm:$0xff] %v232_v11  ;;  %v236_v13 = vld [vmem:[%s4968_s11 + $0xa8] sm:$0xff]  ;;  %v238_v14 = vld [vmem:[%s4968_s11 + $0xb0] sm:$0xff] }
  0x32   : > { %235 = vst [vmem:[%s4973_s26 + $0x60] sm:$0xff] %v234_v12  ;;  %237 = vst [vmem:[%s4973_s26 + $0x68] sm:$0xff] %v236_v13  ;;  %v240_v15 = vld [vmem:[%s4968_s11 + $0xb8] sm:$0xff]  ;;  %v242_v16 = vld [vmem:[%s4968_s11 + $0x100] sm:$0xff] }
  0x33   : > { %239 = vst [vmem:[%s4973_s26 + $0x70] sm:$0xff] %v238_v14  ;;  %v244_v17 = vld [vmem:[%s4968_s11 + $0x108] sm:$0xff]  ;;  %241 = vst [vmem:[%s4973_s26 + $0x78] sm:$0xff] %v240_v15  ;;  %v246_v18 = vld [vmem:[%s4968_s11 + $0x110] sm:$0xff] }
  0x34   : > { %243 = vst [vmem:[%s4973_s26 + $0x80] sm:$0xff] %v242_v16  ;;  %245 = vst [vmem:[%s4973_s26 + $0x88] sm:$0xff] %v244_v17  ;;  %v248_v19 = vld [vmem:[%s4968_s11 + $0x118] sm:$0xff]  ;;  %v250_v20 = vld [vmem:[%s4968_s11 + $0x120] sm:$0xff] }
  0x35   : > { %247 = vst [vmem:[%s4973_s26 + $0x90] sm:$0xff] %v246_v18  ;;  %249 = vst [vmem:[%s4973_s26 + $0x98] sm:$0xff] %v248_v19  ;;  %v252_v21 = vld [vmem:[%s4968_s11 + $0x128] sm:$0xff]  ;;  %v254_v22 = vld [vmem:[%s4968_s11 + $0x130] sm:$0xff] }
  0x36   : > { %251 = vst [vmem:[%s4973_s26 + $0xa0] sm:$0xff] %v250_v20  ;;  %v256_v23 = vld [vmem:[%s4968_s11 + $0x138] sm:$0xff]  ;;  %253 = vst [vmem:[%s4973_s26 + $0xa8] sm:$0xff] %v252_v21  ;;  %v258_v24 = vld [vmem:[%s4968_s11 + $0x180] sm:$0xff] }
  0x37   : > { %255 = vst [vmem:[%s4973_s26 + $0xb0] sm:$0xff] %v254_v22  ;;  %257 = vst [vmem:[%s4973_s26 + $0xb8] sm:$0xff] %v256_v23  ;;  %v260_v25 = vld [vmem:[%s4968_s11 + $0x188] sm:$0xff]  ;;  %v262_v26 = vld [vmem:[%s4968_s11 + $0x190] sm:$0xff] }
  0x38   : > { %259 = vst [vmem:[%s4973_s26 + $0xc0] sm:$0xff] %v258_v24  ;;  %261 = vst [vmem:[%s4973_s26 + $0xc8] sm:$0xff] %v260_v25  ;;  %v264_v27 = vld [vmem:[%s4968_s11 + $0x198] sm:$0xff]  ;;  %v266_v28 = vld [vmem:[%s4968_s11 + $0x1a0] sm:$0xff] }
  0x39   : > { %263 = vst [vmem:[%s4973_s26 + $0xd0] sm:$0xff] %v262_v26  ;;  %v268_v29 = vld [vmem:[%s4968_s11 + $0x1a8] sm:$0xff]  ;;  %265 = vst [vmem:[%s4973_s26 + $0xd8] sm:$0xff] %v264_v27  ;;  %v270_v30 = vld [vmem:[%s4968_s11 + $0x1b0] sm:$0xff] }
  0x3a   : > { %267 = vst [vmem:[%s4973_s26 + $0xe0] sm:$0xff] %v266_v28  ;;  %269 = vst [vmem:[%s4973_s26 + $0xe8] sm:$0xff] %v268_v29  ;;  %v272_v31 = vld [vmem:[%s4968_s11 + $0x1b8] sm:$0xff] }
  0x3b   : > { %271 = vst [vmem:[%s4973_s26 + $0xf0] sm:$0xff] %v270_v30  ;;  %273 = vst [vmem:[%s4973_s26 + $0xf8] sm:$0xff] %v272_v31 }
  0x3c PF: > { %279 = sbr.rel (!%p4943_p9) target bundleno = 198 (0xc6), region = 43  ;;  %s281_s5 = sand.u32 (%p4943_p9), 1, %s4805_s18  }
  0x3d   : > { %s3910_s29 = sshll.u32 (%p4943_p9), %s4829_s24, 1  ;;  %s3908_s30 = sshll.u32 (%p4943_p9), %s281_s5, 11 }
  0x3e   : > { %s4215_s8 = sshll.u32 (%p4943_p9), %s4825_s23, 10  ;;  %s6000_s1 = sld [smem:[#allocation9_spill]] (%p4943_p9) }
  0x3f   : > { %s287_s6 = sadd.s32 (%p4943_p9), %s4215_s8, %s3910_s29  ;;  %s5049_s10 = scalar_lea.vmem (%p4943_p9), [#allocation4], %s3908_s30 }
  0x40   : > { %s3912_s9 = sshll.u32 (%p4943_p9), %s287_s6, 2 }
  0x44   : > { %s5044_s27 = scalar_lea.vmem %s6000_s1, %s3912_s9 }
  0x45   : > { %v827_v32 = vld [vmem:[%s5044_s27] sm:$0xff]  ;;  %v829_v33 = vld [vmem:[%s5044_s27 + $0x10] sm:$0xff] }
  0x46   : > { %v831_v34 = vld [vmem:[%s5044_s27 + $0x20] sm:$0xff]  ;;  %828 = vst [vmem:[%s5049_s10] sm:$0xff] %v827_v32  ;;  %830 = vst [vmem:[%s5049_s10 + $0x8] sm:$0xff] %v829_v33  ;;  %v833_v35 = vld [vmem:[%s5044_s27 + $0x30] sm:$0xff] }
  0x47   : > { %832 = vst [vmem:[%s5049_s10 + $0x10] sm:$0xff] %v831_v34  ;;  %v835_v36 = vld [vmem:[%s5044_s27 + $0x40] sm:$0xff]  ;;  %v837_v37 = vld [vmem:[%s5044_s27 + $0x50] sm:$0xff]  ;;  %834 = vst [vmem:[%s5049_s10 + $0x18] sm:$0xff] %v833_v35 }
  0x48   : > { %836 = vst [vmem:[%s5049_s10 + $0x20] sm:$0xff] %v835_v36  ;;  %838 = vst [vmem:[%s5049_s10 + $0x28] sm:$0xff] %v837_v37  ;;  %v839_v38 = vld [vmem:[%s5044_s27 + $0x60] sm:$0xff]  ;;  %v841_v39 = vld [vmem:[%s5044_s27 + $0x70] sm:$0xff] }
  0x49   : > { %v843_v40 = vld [vmem:[%s5044_s27 + $0x80] sm:$0xff]  ;;  %840 = vst [vmem:[%s5049_s10 + $0x30] sm:$0xff] %v839_v38  ;;  %842 = vst [vmem:[%s5049_s10 + $0x38] sm:$0xff] %v841_v39  ;;  %v845_v41 = vld [vmem:[%s5044_s27 + $0x90] sm:$0xff] }
  0x4a   : > { %844 = vst [vmem:[%s5049_s10 + $0x40] sm:$0xff] %v843_v40  ;;  %v847_v42 = vld [vmem:[%s5044_s27 + $0xa0] sm:$0xff]  ;;  %v849_v43 = vld [vmem:[%s5044_s27 + $0xb0] sm:$0xff]  ;;  %846 = vst [vmem:[%s5049_s10 + $0x48] sm:$0xff] %v845_v41 }
  0x4b   : > { %848 = vst [vmem:[%s5049_s10 + $0x50] sm:$0xff] %v847_v42  ;;  %850 = vst [vmem:[%s5049_s10 + $0x58] sm:$0xff] %v849_v43  ;;  %v851_v44 = vld [vmem:[%s5044_s27 + $0xc0] sm:$0xff]  ;;  %v853_v45 = vld [vmem:[%s5044_s27 + $0xd0] sm:$0xff] }
  0x4c   : > { %v855_v46 = vld [vmem:[%s5044_s27 + $0xe0] sm:$0xff]  ;;  %852 = vst [vmem:[%s5049_s10 + $0x60] sm:$0xff] %v851_v44  ;;  %854 = vst [vmem:[%s5049_s10 + $0x68] sm:$0xff] %v853_v45  ;;  %v857_v47 = vld [vmem:[%s5044_s27 + $0xf0] sm:$0xff] }
  0x4d   : > { %856 = vst [vmem:[%s5049_s10 + $0x70] sm:$0xff] %v855_v46  ;;  %v859_v48 = vld [vmem:[%s5044_s27 + $0x100] sm:$0xff]  ;;  %v861_v49 = vld [vmem:[%s5044_s27 + $0x110] sm:$0xff]  ;;  %858 = vst [vmem:[%s5049_s10 + $0x78] sm:$0xff] %v857_v47 }
  0x4e   : > { %860 = vst [vmem:[%s5049_s10 + $0x80] sm:$0xff] %v859_v48  ;;  %862 = vst [vmem:[%s5049_s10 + $0x88] sm:$0xff] %v861_v49  ;;  %v863_v50 = vld [vmem:[%s5044_s27 + $0x120] sm:$0xff]  ;;  %v865_v51 = vld [vmem:[%s5044_s27 + $0x130] sm:$0xff] }
  0x4f   : > { %v867_v52 = vld [vmem:[%s5044_s27 + $0x140] sm:$0xff]  ;;  %864 = vst [vmem:[%s5049_s10 + $0x90] sm:$0xff] %v863_v50  ;;  %866 = vst [vmem:[%s5049_s10 + $0x98] sm:$0xff] %v865_v51  ;;  %v869_v53 = vld [vmem:[%s5044_s27 + $0x150] sm:$0xff] }
  0x50   : > { %868 = vst [vmem:[%s5049_s10 + $0xa0] sm:$0xff] %v867_v52  ;;  %v871_v54 = vld [vmem:[%s5044_s27 + $0x160] sm:$0xff]  ;;  %v873_v55 = vld [vmem:[%s5044_s27 + $0x170] sm:$0xff]  ;;  %870 = vst [vmem:[%s5049_s10 + $0xa8] sm:$0xff] %v869_v53 }
  0x51   : > { %872 = vst [vmem:[%s5049_s10 + $0xb0] sm:$0xff] %v871_v54  ;;  %874 = vst [vmem:[%s5049_s10 + $0xb8] sm:$0xff] %v873_v55  ;;  %v875_v56 = vld [vmem:[%s5044_s27 + $0x180] sm:$0xff]  ;;  %v877_v57 = vld [vmem:[%s5044_s27 + $0x190] sm:$0xff] }
  0x52   : > { %v879_v58 = vld [vmem:[%s5044_s27 + $0x1a0] sm:$0xff]  ;;  %876 = vst [vmem:[%s5049_s10 + $0xc0] sm:$0xff] %v875_v56  ;;  %878 = vst [vmem:[%s5049_s10 + $0xc8] sm:$0xff] %v877_v57  ;;  %v881_v59 = vld [vmem:[%s5044_s27 + $0x1b0] sm:$0xff] }
  0x53   : > { %880 = vst [vmem:[%s5049_s10 + $0xd0] sm:$0xff] %v879_v58  ;;  %v883_v60 = vld [vmem:[%s5044_s27 + $0x1c0] sm:$0xff]  ;;  %v885_v61 = vld [vmem:[%s5044_s27 + $0x1d0] sm:$0xff]  ;;  %882 = vst [vmem:[%s5049_s10 + $0xd8] sm:$0xff] %v881_v59 }
  0x54   : > { %884 = vst [vmem:[%s5049_s10 + $0xe0] sm:$0xff] %v883_v60  ;;  %886 = vst [vmem:[%s5049_s10 + $0xe8] sm:$0xff] %v885_v61  ;;  %v887_v62 = vld [vmem:[%s5044_s27 + $0x1e0] sm:$0xff]  ;;  %v889_v63 = vld [vmem:[%s5044_s27 + $0x1f0] sm:$0xff] }
  0x55   : > { %v891_v0 = vld [vmem:[%s5044_s27 + $0x200] sm:$0xff]  ;;  %888 = vst [vmem:[%s5049_s10 + $0xf0] sm:$0xff] %v887_v62  ;;  %890 = vst [vmem:[%s5049_s10 + $0xf8] sm:$0xff] %v889_v63  ;;  %v893_v1 = vld [vmem:[%s5044_s27 + $0x210] sm:$0xff] }
  0x56   : > { %892 = vst [vmem:[%s5049_s10 + $0x100] sm:$0xff] %v891_v0  ;;  %v895_v2 = vld [vmem:[%s5044_s27 + $0x220] sm:$0xff]  ;;  %v897_v3 = vld [vmem:[%s5044_s27 + $0x230] sm:$0xff]  ;;  %894 = vst [vmem:[%s5049_s10 + $0x108] sm:$0xff] %v893_v1 }
  0x57   : > { %896 = vst [vmem:[%s5049_s10 + $0x110] sm:$0xff] %v895_v2  ;;  %898 = vst [vmem:[%s5049_s10 + $0x118] sm:$0xff] %v897_v3  ;;  %v899_v4 = vld [vmem:[%s5044_s27 + $0x240] sm:$0xff]  ;;  %v901_v5 = vld [vmem:[%s5044_s27 + $0x250] sm:$0xff] }
  0x58   : > { %v903_v6 = vld [vmem:[%s5044_s27 + $0x260] sm:$0xff]  ;;  %900 = vst [vmem:[%s5049_s10 + $0x120] sm:$0xff] %v899_v4  ;;  %902 = vst [vmem:[%s5049_s10 + $0x128] sm:$0xff] %v901_v5  ;;  %v905_v7 = vld [vmem:[%s5044_s27 + $0x270] sm:$0xff] }
  0x59   : > { %904 = vst [vmem:[%s5049_s10 + $0x130] sm:$0xff] %v903_v6  ;;  %v907_v8 = vld [vmem:[%s5044_s27 + $0x280] sm:$0xff]  ;;  %v909_v9 = vld [vmem:[%s5044_s27 + $0x290] sm:$0xff]  ;;  %906 = vst [vmem:[%s5049_s10 + $0x138] sm:$0xff] %v905_v7 }
  0x5a   : > { %908 = vst [vmem:[%s5049_s10 + $0x140] sm:$0xff] %v907_v8  ;;  %910 = vst [vmem:[%s5049_s10 + $0x148] sm:$0xff] %v909_v9  ;;  %v911_v10 = vld [vmem:[%s5044_s27 + $0x2a0] sm:$0xff]  ;;  %v913_v11 = vld [vmem:[%s5044_s27 + $0x2b0] sm:$0xff] }
  0x5b   : > { %v915_v12 = vld [vmem:[%s5044_s27 + $0x2c0] sm:$0xff]  ;;  %912 = vst [vmem:[%s5049_s10 + $0x150] sm:$0xff] %v911_v10  ;;  %914 = vst [vmem:[%s5049_s10 + $0x158] sm:$0xff] %v913_v11  ;;  %v917_v13 = vld [vmem:[%s5044_s27 + $0x2d0] sm:$0xff] }
  0x5c   : > { %916 = vst [vmem:[%s5049_s10 + $0x160] sm:$0xff] %v915_v12  ;;  %v919_v14 = vld [vmem:[%s5044_s27 + $0x2e0] sm:$0xff]  ;;  %v921_v15 = vld [vmem:[%s5044_s27 + $0x2f0] sm:$0xff]  ;;  %918 = vst [vmem:[%s5049_s10 + $0x168] sm:$0xff] %v917_v13 }
  0x5d   : > { %920 = vst [vmem:[%s5049_s10 + $0x170] sm:$0xff] %v919_v14  ;;  %922 = vst [vmem:[%s5049_s10 + $0x178] sm:$0xff] %v921_v15  ;;  %v923_v16 = vld [vmem:[%s5044_s27 + $0x300] sm:$0xff]  ;;  %v925_v17 = vld [vmem:[%s5044_s27 + $0x310] sm:$0xff] }
  0x5e   : > { %v927_v18 = vld [vmem:[%s5044_s27 + $0x320] sm:$0xff]  ;;  %924 = vst [vmem:[%s5049_s10 + $0x180] sm:$0xff] %v923_v16  ;;  %926 = vst [vmem:[%s5049_s10 + $0x188] sm:$0xff] %v925_v17  ;;  %v929_v19 = vld [vmem:[%s5044_s27 + $0x330] sm:$0xff] }
  0x5f   : > { %928 = vst [vmem:[%s5049_s10 + $0x190] sm:$0xff] %v927_v18  ;;  %v931_v20 = vld [vmem:[%s5044_s27 + $0x340] sm:$0xff]  ;;  %v933_v21 = vld [vmem:[%s5044_s27 + $0x350] sm:$0xff]  ;;  %930 = vst [vmem:[%s5049_s10 + $0x198] sm:$0xff] %v929_v19 }
  0x60   : > { %932 = vst [vmem:[%s5049_s10 + $0x1a0] sm:$0xff] %v931_v20  ;;  %934 = vst [vmem:[%s5049_s10 + $0x1a8] sm:$0xff] %v933_v21  ;;  %v935_v22 = vld [vmem:[%s5044_s27 + $0x360] sm:$0xff]  ;;  %v937_v23 = vld [vmem:[%s5044_s27 + $0x370] sm:$0xff] }
  0x61   : > { %v939_v24 = vld [vmem:[%s5044_s27 + $0x380] sm:$0xff]  ;;  %936 = vst [vmem:[%s5049_s10 + $0x1b0] sm:$0xff] %v935_v22  ;;  %938 = vst [vmem:[%s5049_s10 + $0x1b8] sm:$0xff] %v937_v23  ;;  %v941_v25 = vld [vmem:[%s5044_s27 + $0x390] sm:$0xff] }
  0x62   : > { %940 = vst [vmem:[%s5049_s10 + $0x1c0] sm:$0xff] %v939_v24  ;;  %v943_v26 = vld [vmem:[%s5044_s27 + $0x3a0] sm:$0xff]  ;;  %v945_v27 = vld [vmem:[%s5044_s27 + $0x3b0] sm:$0xff]  ;;  %942 = vst [vmem:[%s5049_s10 + $0x1c8] sm:$0xff] %v941_v25 }
  0x63   : > { %944 = vst [vmem:[%s5049_s10 + $0x1d0] sm:$0xff] %v943_v26  ;;  %946 = vst [vmem:[%s5049_s10 + $0x1d8] sm:$0xff] %v945_v27  ;;  %v947_v28 = vld [vmem:[%s5044_s27 + $0x3c0] sm:$0xff]  ;;  %v949_v29 = vld [vmem:[%s5044_s27 + $0x3d0] sm:$0xff] }
  0x64   : > { %v951_v30 = vld [vmem:[%s5044_s27 + $0x3e0] sm:$0xff]  ;;  %948 = vst [vmem:[%s5049_s10 + $0x1e0] sm:$0xff] %v947_v28  ;;  %950 = vst [vmem:[%s5049_s10 + $0x1e8] sm:$0xff] %v949_v29  ;;  %v953_v31 = vld [vmem:[%s5044_s27 + $0x3f0] sm:$0xff] }
  0x65   : > { %952 = vst [vmem:[%s5049_s10 + $0x1f0] sm:$0xff] %v951_v30  ;;  %v955_v32 = vld [vmem:[%s5044_s27 + $0x400] sm:$0xff]  ;;  %v957_v33 = vld [vmem:[%s5044_s27 + $0x410] sm:$0xff]  ;;  %954 = vst [vmem:[%s5049_s10 + $0x1f8] sm:$0xff] %v953_v31 }
  0x66   : > { %956 = vst [vmem:[%s5049_s10 + $0x200] sm:$0xff] %v955_v32  ;;  %958 = vst [vmem:[%s5049_s10 + $0x208] sm:$0xff] %v957_v33  ;;  %v959_v34 = vld [vmem:[%s5044_s27 + $0x420] sm:$0xff]  ;;  %v961_v35 = vld [vmem:[%s5044_s27 + $0x430] sm:$0xff] }
  0x67   : > { %v963_v36 = vld [vmem:[%s5044_s27 + $0x440] sm:$0xff]  ;;  %960 = vst [vmem:[%s5049_s10 + $0x210] sm:$0xff] %v959_v34  ;;  %962 = vst [vmem:[%s5049_s10 + $0x218] sm:$0xff] %v961_v35  ;;  %v965_v37 = vld [vmem:[%s5044_s27 + $0x450] sm:$0xff] }
  0x68   : > { %964 = vst [vmem:[%s5049_s10 + $0x220] sm:$0xff] %v963_v36  ;;  %v967_v38 = vld [vmem:[%s5044_s27 + $0x460] sm:$0xff]  ;;  %v969_v39 = vld [vmem:[%s5044_s27 + $0x470] sm:$0xff]  ;;  %966 = vst [vmem:[%s5049_s10 + $0x228] sm:$0xff] %v965_v37 }
  0x69   : > { %968 = vst [vmem:[%s5049_s10 + $0x230] sm:$0xff] %v967_v38  ;;  %970 = vst [vmem:[%s5049_s10 + $0x238] sm:$0xff] %v969_v39  ;;  %v971_v40 = vld [vmem:[%s5044_s27 + $0x480] sm:$0xff]  ;;  %v973_v41 = vld [vmem:[%s5044_s27 + $0x490] sm:$0xff] }
  0x6a   : > { %v975_v42 = vld [vmem:[%s5044_s27 + $0x4a0] sm:$0xff]  ;;  %972 = vst [vmem:[%s5049_s10 + $0x240] sm:$0xff] %v971_v40  ;;  %974 = vst [vmem:[%s5049_s10 + $0x248] sm:$0xff] %v973_v41  ;;  %v977_v43 = vld [vmem:[%s5044_s27 + $0x4b0] sm:$0xff] }
  0x6b   : > { %976 = vst [vmem:[%s5049_s10 + $0x250] sm:$0xff] %v975_v42  ;;  %v979_v44 = vld [vmem:[%s5044_s27 + $0x4c0] sm:$0xff]  ;;  %v981_v45 = vld [vmem:[%s5044_s27 + $0x4d0] sm:$0xff]  ;;  %978 = vst [vmem:[%s5049_s10 + $0x258] sm:$0xff] %v977_v43 }
  0x6c   : > { %980 = vst [vmem:[%s5049_s10 + $0x260] sm:$0xff] %v979_v44  ;;  %982 = vst [vmem:[%s5049_s10 + $0x268] sm:$0xff] %v981_v45  ;;  %v983_v46 = vld [vmem:[%s5044_s27 + $0x4e0] sm:$0xff]  ;;  %v985_v47 = vld [vmem:[%s5044_s27 + $0x4f0] sm:$0xff] }
  0x6d   : > { %v987_v48 = vld [vmem:[%s5044_s27 + $0x500] sm:$0xff]  ;;  %984 = vst [vmem:[%s5049_s10 + $0x270] sm:$0xff] %v983_v46  ;;  %986 = vst [vmem:[%s5049_s10 + $0x278] sm:$0xff] %v985_v47  ;;  %v989_v49 = vld [vmem:[%s5044_s27 + $0x510] sm:$0xff] }
  0x6e   : > { %988 = vst [vmem:[%s5049_s10 + $0x280] sm:$0xff] %v987_v48  ;;  %v991_v50 = vld [vmem:[%s5044_s27 + $0x520] sm:$0xff]  ;;  %v993_v51 = vld [vmem:[%s5044_s27 + $0x530] sm:$0xff]  ;;  %990 = vst [vmem:[%s5049_s10 + $0x288] sm:$0xff] %v989_v49 }
  0x6f   : > { %992 = vst [vmem:[%s5049_s10 + $0x290] sm:$0xff] %v991_v50  ;;  %994 = vst [vmem:[%s5049_s10 + $0x298] sm:$0xff] %v993_v51  ;;  %v995_v52 = vld [vmem:[%s5044_s27 + $0x540] sm:$0xff]  ;;  %v997_v53 = vld [vmem:[%s5044_s27 + $0x550] sm:$0xff] }
  0x70   : > { %v999_v54 = vld [vmem:[%s5044_s27 + $0x560] sm:$0xff]  ;;  %996 = vst [vmem:[%s5049_s10 + $0x2a0] sm:$0xff] %v995_v52  ;;  %998 = vst [vmem:[%s5049_s10 + $0x2a8] sm:$0xff] %v997_v53  ;;  %v1001_v55 = vld [vmem:[%s5044_s27 + $0x570] sm:$0xff] }
  0x71   : > { %1000 = vst [vmem:[%s5049_s10 + $0x2b0] sm:$0xff] %v999_v54  ;;  %v1003_v56 = vld [vmem:[%s5044_s27 + $0x580] sm:$0xff]  ;;  %v1005_v57 = vld [vmem:[%s5044_s27 + $0x590] sm:$0xff]  ;;  %1002 = vst [vmem:[%s5049_s10 + $0x2b8] sm:$0xff] %v1001_v55 }
  0x72   : > { %1004 = vst [vmem:[%s5049_s10 + $0x2c0] sm:$0xff] %v1003_v56  ;;  %1006 = vst [vmem:[%s5049_s10 + $0x2c8] sm:$0xff] %v1005_v57  ;;  %v1007_v58 = vld [vmem:[%s5044_s27 + $0x5a0] sm:$0xff]  ;;  %v1009_v59 = vld [vmem:[%s5044_s27 + $0x5b0] sm:$0xff] }
  0x73   : > { %v1011_v60 = vld [vmem:[%s5044_s27 + $0x5c0] sm:$0xff]  ;;  %1008 = vst [vmem:[%s5049_s10 + $0x2d0] sm:$0xff] %v1007_v58  ;;  %1010 = vst [vmem:[%s5049_s10 + $0x2d8] sm:$0xff] %v1009_v59  ;;  %v1013_v61 = vld [vmem:[%s5044_s27 + $0x5d0] sm:$0xff] }
  0x74   : > { %1012 = vst [vmem:[%s5049_s10 + $0x2e0] sm:$0xff] %v1011_v60  ;;  %v1015_v62 = vld [vmem:[%s5044_s27 + $0x5e0] sm:$0xff]  ;;  %v1017_v63 = vld [vmem:[%s5044_s27 + $0x5f0] sm:$0xff]  ;;  %1014 = vst [vmem:[%s5049_s10 + $0x2e8] sm:$0xff] %v1013_v61 }
  0x75   : > { %1016 = vst [vmem:[%s5049_s10 + $0x2f0] sm:$0xff] %v1015_v62  ;;  %1018 = vst [vmem:[%s5049_s10 + $0x2f8] sm:$0xff] %v1017_v63  ;;  %v1019_v0 = vld [vmem:[%s5044_s27 + $0x600] sm:$0xff]  ;;  %v1021_v1 = vld [vmem:[%s5044_s27 + $0x610] sm:$0xff] }
  0x76   : > { %v1023_v2 = vld [vmem:[%s5044_s27 + $0x620] sm:$0xff]  ;;  %1020 = vst [vmem:[%s5049_s10 + $0x300] sm:$0xff] %v1019_v0  ;;  %1022 = vst [vmem:[%s5049_s10 + $0x308] sm:$0xff] %v1021_v1  ;;  %v1025_v3 = vld [vmem:[%s5044_s27 + $0x630] sm:$0xff] }
  0x77   : > { %1024 = vst [vmem:[%s5049_s10 + $0x310] sm:$0xff] %v1023_v2  ;;  %v1027_v4 = vld [vmem:[%s5044_s27 + $0x640] sm:$0xff]  ;;  %v1029_v5 = vld [vmem:[%s5044_s27 + $0x650] sm:$0xff]  ;;  %1026 = vst [vmem:[%s5049_s10 + $0x318] sm:$0xff] %v1025_v3 }
  0x78   : > { %1028 = vst [vmem:[%s5049_s10 + $0x320] sm:$0xff] %v1027_v4  ;;  %1030 = vst [vmem:[%s5049_s10 + $0x328] sm:$0xff] %v1029_v5  ;;  %v1031_v6 = vld [vmem:[%s5044_s27 + $0x660] sm:$0xff]  ;;  %v1033_v7 = vld [vmem:[%s5044_s27 + $0x670] sm:$0xff] }
  0x79   : > { %v1035_v8 = vld [vmem:[%s5044_s27 + $0x680] sm:$0xff]  ;;  %1032 = vst [vmem:[%s5049_s10 + $0x330] sm:$0xff] %v1031_v6  ;;  %1034 = vst [vmem:[%s5049_s10 + $0x338] sm:$0xff] %v1033_v7  ;;  %v1037_v9 = vld [vmem:[%s5044_s27 + $0x690] sm:$0xff] }
  0x7a   : > { %1036 = vst [vmem:[%s5049_s10 + $0x340] sm:$0xff] %v1035_v8  ;;  %v1039_v10 = vld [vmem:[%s5044_s27 + $0x6a0] sm:$0xff]  ;;  %v1041_v11 = vld [vmem:[%s5044_s27 + $0x6b0] sm:$0xff]  ;;  %1038 = vst [vmem:[%s5049_s10 + $0x348] sm:$0xff] %v1037_v9 }
  0x7b   : > { %1040 = vst [vmem:[%s5049_s10 + $0x350] sm:$0xff] %v1039_v10  ;;  %1042 = vst [vmem:[%s5049_s10 + $0x358] sm:$0xff] %v1041_v11  ;;  %v1043_v12 = vld [vmem:[%s5044_s27 + $0x6c0] sm:$0xff]  ;;  %v1045_v13 = vld [vmem:[%s5044_s27 + $0x6d0] sm:$0xff] }
  0x7c   : > { %v1047_v14 = vld [vmem:[%s5044_s27 + $0x6e0] sm:$0xff]  ;;  %1044 = vst [vmem:[%s5049_s10 + $0x360] sm:$0xff] %v1043_v12  ;;  %1046 = vst [vmem:[%s5049_s10 + $0x368] sm:$0xff] %v1045_v13  ;;  %v1049_v15 = vld [vmem:[%s5044_s27 + $0x6f0] sm:$0xff] }
  0x7d   : > { %1048 = vst [vmem:[%s5049_s10 + $0x370] sm:$0xff] %v1047_v14  ;;  %v1051_v16 = vld [vmem:[%s5044_s27 + $0x700] sm:$0xff]  ;;  %v1053_v17 = vld [vmem:[%s5044_s27 + $0x710] sm:$0xff]  ;;  %1050 = vst [vmem:[%s5049_s10 + $0x378] sm:$0xff] %v1049_v15 }
  0x7e   : > { %1052 = vst [vmem:[%s5049_s10 + $0x380] sm:$0xff] %v1051_v16  ;;  %1054 = vst [vmem:[%s5049_s10 + $0x388] sm:$0xff] %v1053_v17  ;;  %v1055_v18 = vld [vmem:[%s5044_s27 + $0x720] sm:$0xff]  ;;  %v1057_v19 = vld [vmem:[%s5044_s27 + $0x730] sm:$0xff] }
  0x7f   : > { %v1059_v20 = vld [vmem:[%s5044_s27 + $0x740] sm:$0xff]  ;;  %1056 = vst [vmem:[%s5049_s10 + $0x390] sm:$0xff] %v1055_v18  ;;  %1058 = vst [vmem:[%s5049_s10 + $0x398] sm:$0xff] %v1057_v19  ;;  %v1061_v21 = vld [vmem:[%s5044_s27 + $0x750] sm:$0xff] }
  0x80   : > { %1060 = vst [vmem:[%s5049_s10 + $0x3a0] sm:$0xff] %v1059_v20  ;;  %v1063_v22 = vld [vmem:[%s5044_s27 + $0x760] sm:$0xff]  ;;  %v1065_v23 = vld [vmem:[%s5044_s27 + $0x770] sm:$0xff]  ;;  %1062 = vst [vmem:[%s5049_s10 + $0x3a8] sm:$0xff] %v1061_v21 }
  0x81   : > { %1064 = vst [vmem:[%s5049_s10 + $0x3b0] sm:$0xff] %v1063_v22  ;;  %1066 = vst [vmem:[%s5049_s10 + $0x3b8] sm:$0xff] %v1065_v23  ;;  %v1067_v24 = vld [vmem:[%s5044_s27 + $0x780] sm:$0xff]  ;;  %v1069_v25 = vld [vmem:[%s5044_s27 + $0x790] sm:$0xff] }
  0x82   : > { %v1071_v26 = vld [vmem:[%s5044_s27 + $0x7a0] sm:$0xff]  ;;  %1068 = vst [vmem:[%s5049_s10 + $0x3c0] sm:$0xff] %v1067_v24  ;;  %1070 = vst [vmem:[%s5049_s10 + $0x3c8] sm:$0xff] %v1069_v25  ;;  %v1073_v27 = vld [vmem:[%s5044_s27 + $0x7b0] sm:$0xff] }
  0x83   : > { %1072 = vst [vmem:[%s5049_s10 + $0x3d0] sm:$0xff] %v1071_v26  ;;  %v1075_v28 = vld [vmem:[%s5044_s27 + $0x7c0] sm:$0xff]  ;;  %v1077_v29 = vld [vmem:[%s5044_s27 + $0x7d0] sm:$0xff]  ;;  %1074 = vst [vmem:[%s5049_s10 + $0x3d8] sm:$0xff] %v1073_v27 }
  0x84   : > { %1076 = vst [vmem:[%s5049_s10 + $0x3e0] sm:$0xff] %v1075_v28  ;;  %1078 = vst [vmem:[%s5049_s10 + $0x3e8] sm:$0xff] %v1077_v29  ;;  %v1079_v30 = vld [vmem:[%s5044_s27 + $0x7e0] sm:$0xff]  ;;  %v1081_v31 = vld [vmem:[%s5044_s27 + $0x7f0] sm:$0xff] }
  0x85   : > { %v1083_v32 = vld [vmem:[%s5044_s27 + $0x800] sm:$0xff]  ;;  %1080 = vst [vmem:[%s5049_s10 + $0x3f0] sm:$0xff] %v1079_v30  ;;  %1082 = vst [vmem:[%s5049_s10 + $0x3f8] sm:$0xff] %v1081_v31  ;;  %v1085_v33 = vld [vmem:[%s5044_s27 + $0x810] sm:$0xff] }
  0x86   : > { %1084 = vst [vmem:[%s5049_s10 + $0x400] sm:$0xff] %v1083_v32  ;;  %v1087_v34 = vld [vmem:[%s5044_s27 + $0x820] sm:$0xff]  ;;  %v1089_v35 = vld [vmem:[%s5044_s27 + $0x830] sm:$0xff]  ;;  %1086 = vst [vmem:[%s5049_s10 + $0x408] sm:$0xff] %v1085_v33 }
  0x87   : > { %1088 = vst [vmem:[%s5049_s10 + $0x410] sm:$0xff] %v1087_v34  ;;  %1090 = vst [vmem:[%s5049_s10 + $0x418] sm:$0xff] %v1089_v35  ;;  %v1091_v36 = vld [vmem:[%s5044_s27 + $0x840] sm:$0xff]  ;;  %v1093_v37 = vld [vmem:[%s5044_s27 + $0x850] sm:$0xff] }
  0x88   : > { %v1095_v38 = vld [vmem:[%s5044_s27 + $0x860] sm:$0xff]  ;;  %1092 = vst [vmem:[%s5049_s10 + $0x420] sm:$0xff] %v1091_v36  ;;  %1094 = vst [vmem:[%s5049_s10 + $0x428] sm:$0xff] %v1093_v37  ;;  %v1097_v39 = vld [vmem:[%s5044_s27 + $0x870] sm:$0xff] }
  0x89   : > { %1096 = vst [vmem:[%s5049_s10 + $0x430] sm:$0xff] %v1095_v38  ;;  %v1099_v40 = vld [vmem:[%s5044_s27 + $0x880] sm:$0xff]  ;;  %v1101_v41 = vld [vmem:[%s5044_s27 + $0x890] sm:$0xff]  ;;  %1098 = vst [vmem:[%s5049_s10 + $0x438] sm:$0xff] %v1097_v39 }
  0x8a   : > { %1100 = vst [vmem:[%s5049_s10 + $0x440] sm:$0xff] %v1099_v40  ;;  %1102 = vst [vmem:[%s5049_s10 + $0x448] sm:$0xff] %v1101_v41  ;;  %v1103_v42 = vld [vmem:[%s5044_s27 + $0x8a0] sm:$0xff]  ;;  %v1105_v43 = vld [vmem:[%s5044_s27 + $0x8b0] sm:$0xff] }
  0x8b   : > { %v1107_v44 = vld [vmem:[%s5044_s27 + $0x8c0] sm:$0xff]  ;;  %1104 = vst [vmem:[%s5049_s10 + $0x450] sm:$0xff] %v1103_v42  ;;  %1106 = vst [vmem:[%s5049_s10 + $0x458] sm:$0xff] %v1105_v43  ;;  %v1109_v45 = vld [vmem:[%s5044_s27 + $0x8d0] sm:$0xff] }
  0x8c   : > { %1108 = vst [vmem:[%s5049_s10 + $0x460] sm:$0xff] %v1107_v44  ;;  %v1111_v46 = vld [vmem:[%s5044_s27 + $0x8e0] sm:$0xff]  ;;  %v1113_v47 = vld [vmem:[%s5044_s27 + $0x8f0] sm:$0xff]  ;;  %1110 = vst [vmem:[%s5049_s10 + $0x468] sm:$0xff] %v1109_v45 }
  0x8d   : > { %1112 = vst [vmem:[%s5049_s10 + $0x470] sm:$0xff] %v1111_v46  ;;  %1114 = vst [vmem:[%s5049_s10 + $0x478] sm:$0xff] %v1113_v47  ;;  %v1115_v48 = vld [vmem:[%s5044_s27 + $0x900] sm:$0xff]  ;;  %v1117_v49 = vld [vmem:[%s5044_s27 + $0x910] sm:$0xff] }
  0x8e   : > { %v1119_v50 = vld [vmem:[%s5044_s27 + $0x920] sm:$0xff]  ;;  %1116 = vst [vmem:[%s5049_s10 + $0x480] sm:$0xff] %v1115_v48  ;;  %1118 = vst [vmem:[%s5049_s10 + $0x488] sm:$0xff] %v1117_v49  ;;  %v1121_v51 = vld [vmem:[%s5044_s27 + $0x930] sm:$0xff] }
  0x8f   : > { %1120 = vst [vmem:[%s5049_s10 + $0x490] sm:$0xff] %v1119_v50  ;;  %v1123_v52 = vld [vmem:[%s5044_s27 + $0x940] sm:$0xff]  ;;  %v1125_v53 = vld [vmem:[%s5044_s27 + $0x950] sm:$0xff]  ;;  %1122 = vst [vmem:[%s5049_s10 + $0x498] sm:$0xff] %v1121_v51 }
  0x90   : > { %1124 = vst [vmem:[%s5049_s10 + $0x4a0] sm:$0xff] %v1123_v52  ;;  %1126 = vst [vmem:[%s5049_s10 + $0x4a8] sm:$0xff] %v1125_v53  ;;  %v1127_v54 = vld [vmem:[%s5044_s27 + $0x960] sm:$0xff]  ;;  %v1129_v55 = vld [vmem:[%s5044_s27 + $0x970] sm:$0xff] }
  0x91   : > { %v1131_v56 = vld [vmem:[%s5044_s27 + $0x980] sm:$0xff]  ;;  %1128 = vst [vmem:[%s5049_s10 + $0x4b0] sm:$0xff] %v1127_v54  ;;  %1130 = vst [vmem:[%s5049_s10 + $0x4b8] sm:$0xff] %v1129_v55  ;;  %v1133_v57 = vld [vmem:[%s5044_s27 + $0x990] sm:$0xff] }
  0x92   : > { %1132 = vst [vmem:[%s5049_s10 + $0x4c0] sm:$0xff] %v1131_v56  ;;  %v1135_v58 = vld [vmem:[%s5044_s27 + $0x9a0] sm:$0xff]  ;;  %v1137_v59 = vld [vmem:[%s5044_s27 + $0x9b0] sm:$0xff]  ;;  %1134 = vst [vmem:[%s5049_s10 + $0x4c8] sm:$0xff] %v1133_v57 }
  0x93   : > { %1136 = vst [vmem:[%s5049_s10 + $0x4d0] sm:$0xff] %v1135_v58  ;;  %1138 = vst [vmem:[%s5049_s10 + $0x4d8] sm:$0xff] %v1137_v59  ;;  %v1139_v60 = vld [vmem:[%s5044_s27 + $0x9c0] sm:$0xff]  ;;  %v1141_v61 = vld [vmem:[%s5044_s27 + $0x9d0] sm:$0xff] }
  0x94   : > { %v1143_v62 = vld [vmem:[%s5044_s27 + $0x9e0] sm:$0xff]  ;;  %1140 = vst [vmem:[%s5049_s10 + $0x4e0] sm:$0xff] %v1139_v60  ;;  %1142 = vst [vmem:[%s5049_s10 + $0x4e8] sm:$0xff] %v1141_v61  ;;  %v1145_v63 = vld [vmem:[%s5044_s27 + $0x9f0] sm:$0xff] }
  0x95   : > { %1144 = vst [vmem:[%s5049_s10 + $0x4f0] sm:$0xff] %v1143_v62  ;;  %v1147_v0 = vld [vmem:[%s5044_s27 + $0xa00] sm:$0xff]  ;;  %v1149_v1 = vld [vmem:[%s5044_s27 + $0xa10] sm:$0xff]  ;;  %1146 = vst [vmem:[%s5049_s10 + $0x4f8] sm:$0xff] %v1145_v63 }
  0x96   : > { %1148 = vst [vmem:[%s5049_s10 + $0x500] sm:$0xff] %v1147_v0  ;;  %1150 = vst [vmem:[%s5049_s10 + $0x508] sm:$0xff] %v1149_v1  ;;  %v1151_v2 = vld [vmem:[%s5044_s27 + $0xa20] sm:$0xff]  ;;  %v1153_v3 = vld [vmem:[%s5044_s27 + $0xa30] sm:$0xff] }
  0x97   : > { %v1155_v4 = vld [vmem:[%s5044_s27 + $0xa40] sm:$0xff]  ;;  %1152 = vst [vmem:[%s5049_s10 + $0x510] sm:$0xff] %v1151_v2  ;;  %1154 = vst [vmem:[%s5049_s10 + $0x518] sm:$0xff] %v1153_v3  ;;  %v1157_v5 = vld [vmem:[%s5044_s27 + $0xa50] sm:$0xff] }
  0x98   : > { %1156 = vst [vmem:[%s5049_s10 + $0x520] sm:$0xff] %v1155_v4  ;;  %v1159_v6 = vld [vmem:[%s5044_s27 + $0xa60] sm:$0xff]  ;;  %v1161_v7 = vld [vmem:[%s5044_s27 + $0xa70] sm:$0xff]  ;;  %1158 = vst [vmem:[%s5049_s10 + $0x528] sm:$0xff] %v1157_v5 }
  0x99   : > { %1160 = vst [vmem:[%s5049_s10 + $0x530] sm:$0xff] %v1159_v6  ;;  %1162 = vst [vmem:[%s5049_s10 + $0x538] sm:$0xff] %v1161_v7  ;;  %v1163_v8 = vld [vmem:[%s5044_s27 + $0xa80] sm:$0xff]  ;;  %v1165_v9 = vld [vmem:[%s5044_s27 + $0xa90] sm:$0xff] }
  0x9a   : > { %v1167_v10 = vld [vmem:[%s5044_s27 + $0xaa0] sm:$0xff]  ;;  %1164 = vst [vmem:[%s5049_s10 + $0x540] sm:$0xff] %v1163_v8  ;;  %1166 = vst [vmem:[%s5049_s10 + $0x548] sm:$0xff] %v1165_v9  ;;  %v1169_v11 = vld [vmem:[%s5044_s27 + $0xab0] sm:$0xff] }
  0x9b   : > { %1168 = vst [vmem:[%s5049_s10 + $0x550] sm:$0xff] %v1167_v10  ;;  %v1171_v12 = vld [vmem:[%s5044_s27 + $0xac0] sm:$0xff]  ;;  %v1173_v13 = vld [vmem:[%s5044_s27 + $0xad0] sm:$0xff]  ;;  %1170 = vst [vmem:[%s5049_s10 + $0x558] sm:$0xff] %v1169_v11 }
  0x9c   : > { %1172 = vst [vmem:[%s5049_s10 + $0x560] sm:$0xff] %v1171_v12  ;;  %1174 = vst [vmem:[%s5049_s10 + $0x568] sm:$0xff] %v1173_v13  ;;  %v1175_v14 = vld [vmem:[%s5044_s27 + $0xae0] sm:$0xff]  ;;  %v1177_v15 = vld [vmem:[%s5044_s27 + $0xaf0] sm:$0xff] }
  0x9d   : > { %v1179_v16 = vld [vmem:[%s5044_s27 + $0xb00] sm:$0xff]  ;;  %1176 = vst [vmem:[%s5049_s10 + $0x570] sm:$0xff] %v1175_v14  ;;  %1178 = vst [vmem:[%s5049_s10 + $0x578] sm:$0xff] %v1177_v15  ;;  %v1181_v17 = vld [vmem:[%s5044_s27 + $0xb10] sm:$0xff] }
  0x9e   : > { %1180 = vst [vmem:[%s5049_s10 + $0x580] sm:$0xff] %v1179_v16  ;;  %v1183_v18 = vld [vmem:[%s5044_s27 + $0xb20] sm:$0xff]  ;;  %v1185_v19 = vld [vmem:[%s5044_s27 + $0xb30] sm:$0xff]  ;;  %1182 = vst [vmem:[%s5049_s10 + $0x588] sm:$0xff] %v1181_v17 }
  0x9f   : > { %1184 = vst [vmem:[%s5049_s10 + $0x590] sm:$0xff] %v1183_v18  ;;  %1186 = vst [vmem:[%s5049_s10 + $0x598] sm:$0xff] %v1185_v19  ;;  %v1187_v20 = vld [vmem:[%s5044_s27 + $0xb40] sm:$0xff]  ;;  %v1189_v21 = vld [vmem:[%s5044_s27 + $0xb50] sm:$0xff] }
  0xa0   : > { %v1191_v22 = vld [vmem:[%s5044_s27 + $0xb60] sm:$0xff]  ;;  %1188 = vst [vmem:[%s5049_s10 + $0x5a0] sm:$0xff] %v1187_v20  ;;  %1190 = vst [vmem:[%s5049_s10 + $0x5a8] sm:$0xff] %v1189_v21  ;;  %v1193_v23 = vld [vmem:[%s5044_s27 + $0xb70] sm:$0xff] }
  0xa1   : > { %1192 = vst [vmem:[%s5049_s10 + $0x5b0] sm:$0xff] %v1191_v22  ;;  %v1195_v24 = vld [vmem:[%s5044_s27 + $0xb80] sm:$0xff]  ;;  %v1197_v25 = vld [vmem:[%s5044_s27 + $0xb90] sm:$0xff]  ;;  %1194 = vst [vmem:[%s5049_s10 + $0x5b8] sm:$0xff] %v1193_v23 }
  0xa2   : > { %1196 = vst [vmem:[%s5049_s10 + $0x5c0] sm:$0xff] %v1195_v24  ;;  %1198 = vst [vmem:[%s5049_s10 + $0x5c8] sm:$0xff] %v1197_v25  ;;  %v1199_v26 = vld [vmem:[%s5044_s27 + $0xba0] sm:$0xff]  ;;  %v1201_v27 = vld [vmem:[%s5044_s27 + $0xbb0] sm:$0xff] }
  0xa3   : > { %v1203_v28 = vld [vmem:[%s5044_s27 + $0xbc0] sm:$0xff]  ;;  %1200 = vst [vmem:[%s5049_s10 + $0x5d0] sm:$0xff] %v1199_v26  ;;  %1202 = vst [vmem:[%s5049_s10 + $0x5d8] sm:$0xff] %v1201_v27  ;;  %v1205_v29 = vld [vmem:[%s5044_s27 + $0xbd0] sm:$0xff] }
  0xa4   : > { %1204 = vst [vmem:[%s5049_s10 + $0x5e0] sm:$0xff] %v1203_v28  ;;  %v1207_v30 = vld [vmem:[%s5044_s27 + $0xbe0] sm:$0xff]  ;;  %v1209_v31 = vld [vmem:[%s5044_s27 + $0xbf0] sm:$0xff]  ;;  %1206 = vst [vmem:[%s5049_s10 + $0x5e8] sm:$0xff] %v1205_v29 }
  0xa5   : > { %1208 = vst [vmem:[%s5049_s10 + $0x5f0] sm:$0xff] %v1207_v30  ;;  %1210 = vst [vmem:[%s5049_s10 + $0x5f8] sm:$0xff] %v1209_v31  ;;  %v1211_v32 = vld [vmem:[%s5044_s27 + $0xc00] sm:$0xff]  ;;  %v1213_v33 = vld [vmem:[%s5044_s27 + $0xc10] sm:$0xff] }
  0xa6   : > { %v1215_v34 = vld [vmem:[%s5044_s27 + $0xc20] sm:$0xff]  ;;  %1212 = vst [vmem:[%s5049_s10 + $0x600] sm:$0xff] %v1211_v32  ;;  %1214 = vst [vmem:[%s5049_s10 + $0x608] sm:$0xff] %v1213_v33  ;;  %v1217_v35 = vld [vmem:[%s5044_s27 + $0xc30] sm:$0xff] }
  0xa7   : > { %1216 = vst [vmem:[%s5049_s10 + $0x610] sm:$0xff] %v1215_v34  ;;  %v1219_v36 = vld [vmem:[%s5044_s27 + $0xc40] sm:$0xff]  ;;  %v1221_v37 = vld [vmem:[%s5044_s27 + $0xc50] sm:$0xff]  ;;  %1218 = vst [vmem:[%s5049_s10 + $0x618] sm:$0xff] %v1217_v35 }
  0xa8   : > { %1220 = vst [vmem:[%s5049_s10 + $0x620] sm:$0xff] %v1219_v36  ;;  %1222 = vst [vmem:[%s5049_s10 + $0x628] sm:$0xff] %v1221_v37  ;;  %v1223_v38 = vld [vmem:[%s5044_s27 + $0xc60] sm:$0xff]  ;;  %v1225_v39 = vld [vmem:[%s5044_s27 + $0xc70] sm:$0xff] }
  0xa9   : > { %v1227_v40 = vld [vmem:[%s5044_s27 + $0xc80] sm:$0xff]  ;;  %1224 = vst [vmem:[%s5049_s10 + $0x630] sm:$0xff] %v1223_v38  ;;  %1226 = vst [vmem:[%s5049_s10 + $0x638] sm:$0xff] %v1225_v39  ;;  %v1229_v41 = vld [vmem:[%s5044_s27 + $0xc90] sm:$0xff] }
  0xaa   : > { %1228 = vst [vmem:[%s5049_s10 + $0x640] sm:$0xff] %v1227_v40  ;;  %v1231_v42 = vld [vmem:[%s5044_s27 + $0xca0] sm:$0xff]  ;;  %v1233_v43 = vld [vmem:[%s5044_s27 + $0xcb0] sm:$0xff]  ;;  %1230 = vst [vmem:[%s5049_s10 + $0x648] sm:$0xff] %v1229_v41 }
  0xab   : > { %1232 = vst [vmem:[%s5049_s10 + $0x650] sm:$0xff] %v1231_v42  ;;  %1234 = vst [vmem:[%s5049_s10 + $0x658] sm:$0xff] %v1233_v43  ;;  %v1235_v44 = vld [vmem:[%s5044_s27 + $0xcc0] sm:$0xff]  ;;  %v1237_v45 = vld [vmem:[%s5044_s27 + $0xcd0] sm:$0xff] }
  0xac   : > { %v1239_v46 = vld [vmem:[%s5044_s27 + $0xce0] sm:$0xff]  ;;  %1236 = vst [vmem:[%s5049_s10 + $0x660] sm:$0xff] %v1235_v44  ;;  %1238 = vst [vmem:[%s5049_s10 + $0x668] sm:$0xff] %v1237_v45  ;;  %v1241_v47 = vld [vmem:[%s5044_s27 + $0xcf0] sm:$0xff] }
  0xad   : > { %1240 = vst [vmem:[%s5049_s10 + $0x670] sm:$0xff] %v1239_v46  ;;  %v1243_v48 = vld [vmem:[%s5044_s27 + $0xd00] sm:$0xff]  ;;  %v1245_v49 = vld [vmem:[%s5044_s27 + $0xd10] sm:$0xff]  ;;  %1242 = vst [vmem:[%s5049_s10 + $0x678] sm:$0xff] %v1241_v47 }
  0xae   : > { %1244 = vst [vmem:[%s5049_s10 + $0x680] sm:$0xff] %v1243_v48  ;;  %1246 = vst [vmem:[%s5049_s10 + $0x688] sm:$0xff] %v1245_v49  ;;  %v1247_v50 = vld [vmem:[%s5044_s27 + $0xd20] sm:$0xff]  ;;  %v1249_v51 = vld [vmem:[%s5044_s27 + $0xd30] sm:$0xff] }
  0xaf   : > { %v1251_v52 = vld [vmem:[%s5044_s27 + $0xd40] sm:$0xff]  ;;  %1248 = vst [vmem:[%s5049_s10 + $0x690] sm:$0xff] %v1247_v50  ;;  %1250 = vst [vmem:[%s5049_s10 + $0x698] sm:$0xff] %v1249_v51  ;;  %v1253_v53 = vld [vmem:[%s5044_s27 + $0xd50] sm:$0xff] }
  0xb0   : > { %1252 = vst [vmem:[%s5049_s10 + $0x6a0] sm:$0xff] %v1251_v52  ;;  %v1255_v54 = vld [vmem:[%s5044_s27 + $0xd60] sm:$0xff]  ;;  %v1257_v55 = vld [vmem:[%s5044_s27 + $0xd70] sm:$0xff]  ;;  %1254 = vst [vmem:[%s5049_s10 + $0x6a8] sm:$0xff] %v1253_v53 }
  0xb1   : > { %1256 = vst [vmem:[%s5049_s10 + $0x6b0] sm:$0xff] %v1255_v54  ;;  %1258 = vst [vmem:[%s5049_s10 + $0x6b8] sm:$0xff] %v1257_v55  ;;  %v1259_v56 = vld [vmem:[%s5044_s27 + $0xd80] sm:$0xff]  ;;  %v1261_v57 = vld [vmem:[%s5044_s27 + $0xd90] sm:$0xff] }
  0xb2   : > { %v1263_v58 = vld [vmem:[%s5044_s27 + $0xda0] sm:$0xff]  ;;  %1260 = vst [vmem:[%s5049_s10 + $0x6c0] sm:$0xff] %v1259_v56  ;;  %1262 = vst [vmem:[%s5049_s10 + $0x6c8] sm:$0xff] %v1261_v57  ;;  %v1265_v59 = vld [vmem:[%s5044_s27 + $0xdb0] sm:$0xff] }
  0xb3   : > { %1264 = vst [vmem:[%s5049_s10 + $0x6d0] sm:$0xff] %v1263_v58  ;;  %v1267_v60 = vld [vmem:[%s5044_s27 + $0xdc0] sm:$0xff]  ;;  %v1269_v61 = vld [vmem:[%s5044_s27 + $0xdd0] sm:$0xff]  ;;  %1266 = vst [vmem:[%s5049_s10 + $0x6d8] sm:$0xff] %v1265_v59 }
  0xb4   : > { %1268 = vst [vmem:[%s5049_s10 + $0x6e0] sm:$0xff] %v1267_v60  ;;  %1270 = vst [vmem:[%s5049_s10 + $0x6e8] sm:$0xff] %v1269_v61  ;;  %v1271_v62 = vld [vmem:[%s5044_s27 + $0xde0] sm:$0xff]  ;;  %v1273_v63 = vld [vmem:[%s5044_s27 + $0xdf0] sm:$0xff] }
  0xb5   : > { %v1275_v0 = vld [vmem:[%s5044_s27 + $0xe00] sm:$0xff]  ;;  %1272 = vst [vmem:[%s5049_s10 + $0x6f0] sm:$0xff] %v1271_v62  ;;  %1274 = vst [vmem:[%s5049_s10 + $0x6f8] sm:$0xff] %v1273_v63  ;;  %v1277_v1 = vld [vmem:[%s5044_s27 + $0xe10] sm:$0xff] }
  0xb6   : > { %1276 = vst [vmem:[%s5049_s10 + $0x700] sm:$0xff] %v1275_v0  ;;  %v1279_v2 = vld [vmem:[%s5044_s27 + $0xe20] sm:$0xff]  ;;  %v1281_v3 = vld [vmem:[%s5044_s27 + $0xe30] sm:$0xff]  ;;  %1278 = vst [vmem:[%s5049_s10 + $0x708] sm:$0xff] %v1277_v1 }
  0xb7   : > { %1280 = vst [vmem:[%s5049_s10 + $0x710] sm:$0xff] %v1279_v2  ;;  %1282 = vst [vmem:[%s5049_s10 + $0x718] sm:$0xff] %v1281_v3  ;;  %v1283_v4 = vld [vmem:[%s5044_s27 + $0xe40] sm:$0xff]  ;;  %v1285_v5 = vld [vmem:[%s5044_s27 + $0xe50] sm:$0xff] }
  0xb8   : > { %v1287_v6 = vld [vmem:[%s5044_s27 + $0xe60] sm:$0xff]  ;;  %1284 = vst [vmem:[%s5049_s10 + $0x720] sm:$0xff] %v1283_v4  ;;  %1286 = vst [vmem:[%s5049_s10 + $0x728] sm:$0xff] %v1285_v5  ;;  %v1289_v7 = vld [vmem:[%s5044_s27 + $0xe70] sm:$0xff] }
  0xb9   : > { %1288 = vst [vmem:[%s5049_s10 + $0x730] sm:$0xff] %v1287_v6  ;;  %v1291_v8 = vld [vmem:[%s5044_s27 + $0xe80] sm:$0xff]  ;;  %v1293_v9 = vld [vmem:[%s5044_s27 + $0xe90] sm:$0xff]  ;;  %1290 = vst [vmem:[%s5049_s10 + $0x738] sm:$0xff] %v1289_v7 }
  0xba   : > { %1292 = vst [vmem:[%s5049_s10 + $0x740] sm:$0xff] %v1291_v8  ;;  %1294 = vst [vmem:[%s5049_s10 + $0x748] sm:$0xff] %v1293_v9  ;;  %v1295_v10 = vld [vmem:[%s5044_s27 + $0xea0] sm:$0xff]  ;;  %v1297_v11 = vld [vmem:[%s5044_s27 + $0xeb0] sm:$0xff] }
  0xbb   : > { %v1299_v12 = vld [vmem:[%s5044_s27 + $0xec0] sm:$0xff]  ;;  %1296 = vst [vmem:[%s5049_s10 + $0x750] sm:$0xff] %v1295_v10  ;;  %1298 = vst [vmem:[%s5049_s10 + $0x758] sm:$0xff] %v1297_v11  ;;  %v1301_v13 = vld [vmem:[%s5044_s27 + $0xed0] sm:$0xff] }
  0xbc   : > { %1300 = vst [vmem:[%s5049_s10 + $0x760] sm:$0xff] %v1299_v12  ;;  %v1303_v14 = vld [vmem:[%s5044_s27 + $0xee0] sm:$0xff]  ;;  %v1305_v15 = vld [vmem:[%s5044_s27 + $0xef0] sm:$0xff]  ;;  %1302 = vst [vmem:[%s5049_s10 + $0x768] sm:$0xff] %v1301_v13 }
  0xbd   : > { %1304 = vst [vmem:[%s5049_s10 + $0x770] sm:$0xff] %v1303_v14  ;;  %1306 = vst [vmem:[%s5049_s10 + $0x778] sm:$0xff] %v1305_v15  ;;  %v1307_v16 = vld [vmem:[%s5044_s27 + $0xf00] sm:$0xff]  ;;  %v1309_v17 = vld [vmem:[%s5044_s27 + $0xf10] sm:$0xff] }
  0xbe   : > { %v1311_v18 = vld [vmem:[%s5044_s27 + $0xf20] sm:$0xff]  ;;  %1308 = vst [vmem:[%s5049_s10 + $0x780] sm:$0xff] %v1307_v16  ;;  %1310 = vst [vmem:[%s5049_s10 + $0x788] sm:$0xff] %v1309_v17  ;;  %v1313_v19 = vld [vmem:[%s5044_s27 + $0xf30] sm:$0xff] }
  0xbf   : > { %1312 = vst [vmem:[%s5049_s10 + $0x790] sm:$0xff] %v1311_v18  ;;  %v1315_v20 = vld [vmem:[%s5044_s27 + $0xf40] sm:$0xff]  ;;  %v1317_v21 = vld [vmem:[%s5044_s27 + $0xf50] sm:$0xff]  ;;  %1314 = vst [vmem:[%s5049_s10 + $0x798] sm:$0xff] %v1313_v19 }
  0xc0   : > { %1316 = vst [vmem:[%s5049_s10 + $0x7a0] sm:$0xff] %v1315_v20  ;;  %1318 = vst [vmem:[%s5049_s10 + $0x7a8] sm:$0xff] %v1317_v21  ;;  %v1319_v22 = vld [vmem:[%s5044_s27 + $0xf60] sm:$0xff]  ;;  %v1321_v23 = vld [vmem:[%s5044_s27 + $0xf70] sm:$0xff] }
  0xc1   : > { %v1323_v24 = vld [vmem:[%s5044_s27 + $0xf80] sm:$0xff]  ;;  %1320 = vst [vmem:[%s5049_s10 + $0x7b0] sm:$0xff] %v1319_v22  ;;  %1322 = vst [vmem:[%s5049_s10 + $0x7b8] sm:$0xff] %v1321_v23  ;;  %v1325_v25 = vld [vmem:[%s5044_s27 + $0xf90] sm:$0xff] }
  0xc2   : > { %1324 = vst [vmem:[%s5049_s10 + $0x7c0] sm:$0xff] %v1323_v24  ;;  %v1327_v26 = vld [vmem:[%s5044_s27 + $0xfa0] sm:$0xff]  ;;  %v1329_v27 = vld [vmem:[%s5044_s27 + $0xfb0] sm:$0xff]  ;;  %1326 = vst [vmem:[%s5049_s10 + $0x7c8] sm:$0xff] %v1325_v25 }
  0xc3   : > { %1328 = vst [vmem:[%s5049_s10 + $0x7d0] sm:$0xff] %v1327_v26  ;;  %1330 = vst [vmem:[%s5049_s10 + $0x7d8] sm:$0xff] %v1329_v27  ;;  %v1331_v28 = vld [vmem:[%s5044_s27 + $0xfc0] sm:$0xff]  ;;  %v1333_v29 = vld [vmem:[%s5044_s27 + $0xfd0] sm:$0xff] }
  0xc4   : > { %v1335_v30 = vld [vmem:[%s5044_s27 + $0xfe0] sm:$0xff]  ;;  %1332 = vst [vmem:[%s5049_s10 + $0x7e0] sm:$0xff] %v1331_v28  ;;  %1334 = vst [vmem:[%s5049_s10 + $0x7e8] sm:$0xff] %v1333_v29  ;;  %v1337_v31 = vld [vmem:[%s5044_s27 + $0xff0] sm:$0xff] }
  0xc5   : > { %1336 = vst [vmem:[%s5049_s10 + $0x7f0] sm:$0xff] %v1335_v30  ;;  %1338 = vst [vmem:[%s5049_s10 + $0x7f8] sm:$0xff] %v1337_v31 }
  0xc6 PF: > { %p3913_p0 = scmp.ge.s32.totalorder %s4833_s25, 1  ;;  %p1343_p1 = scmp.lt.s32.totalorder %s4833_s25, 5 }
  0xc8   : > { %p1344_p2 = pnand %p3913_p0, %p1343_p1 }
  0xc9   : > { %s1350_s0 = sand.u32 (!%p1344_p2), 1, %s4809_s19   ;;  %s1357_s28 = sand.u32 (!%p1344_p2), 1, %s4801_s17  }
  0xca   : > { %1347 = sbr.rel (%p1344_p2) target bundleno = 740 (0x2e4), region = 81  ;;  %s3914_s11 = sshll.u32 (!%p1344_p2), %s1350_s0, 8 }
  0xcb   : > { %s3915_s26 = sshll.u32 (!%p1344_p2), %s1357_s28, 11  ;;  %s1378_s5 = sand.u32 (!%p1344_p2), 1, %s4793_s15  }
  0xcc   : > { %s3917_s29 = sshll.u32 (!%p1344_p2), %s4821_s22, 1  ;;  %s3916_s27 = sshll.u32 (!%p1344_p2), %s1378_s5, 6 }
  0xcd   : > { %p1400_p3 = scmp.lt.s32.totalorder (!%p1344_p2), %s3917_s29, 3  ;;  %s5576_s19 = scalar_lea.vmem (!%p1344_p2), [#allocation3], %s3914_s11 }
  0xce   : > { %s5578_s17 = scalar_lea.vmem (!%p1344_p2), [#allocation4], %s3915_s26  ;;  %s5580_s15 = scalar_lea.vmem (!%p1344_p2), [#allocation5], %s3916_s27 }
  0xcf   : > { %p3919_p4 = scmp.ne.s32.totalorder (!%p1344_p2), %s4817_s21, 0 }
  0xd1   : > { %s6020_s29 = smov (!%p1400_p3, %s3917_s29), 3  ;;  %1412 = sbr.rel (%p3919_p4) target bundleno = 216 (0xd8), region = 93 }
  0xd2   : > { %s1402_s6 = scalar_lea.vmem %s5988_s3, %s6020_s29  ;;  %s1407_s1 = scalar_lea.vmem %s5989_s4, %s6020_s29  ;;  %v4835_v32 = vmov (!%p3919_p4), 0.0  }
  0xd3   : > { %1413 = vst [vmem:[#allocation2] sm:$0xff] (!%p3919_p4), %v4835_v32  ;;  %1414 = vst [vmem:[#allocation2 + $0x8] sm:$0xff] (!%p3919_p4), %v4835_v32 }
  0xd4   : > { %1415 = vst [vmem:[#allocation2 + $0x10] sm:$0xff] (!%p3919_p4), %v4835_v32  ;;  %1416 = vst [vmem:[#allocation2 + $0x18] sm:$0xff] (!%p3919_p4), %v4835_v32 }
  0xd5   : > { %1417 = vst [vmem:[#allocation2 + $0x20] sm:$0xff] (!%p3919_p4), %v4835_v32  ;;  %1418 = vst [vmem:[#allocation2 + $0x28] sm:$0xff] (!%p3919_p4), %v4835_v32 }
  0xd6   : > { %1419 = vst [vmem:[#allocation2 + $0x30] sm:$0xff] (!%p3919_p4), %v4835_v32  ;;  %1420 = vst [vmem:[#allocation2 + $0x38] sm:$0xff] (!%p3919_p4), %v4835_v32 }
  0xd8 PF: > { %v4363_v33 = vld [vmem:[%s5578_s17 + $0x4] ss:$8 sps:$4 sm:$0xff]   ;;  %v4367_v35 = vld [vmem:[%s5578_s17] ss:$8 sps:$4 sm:$0xff]   ;;  %v4369_v37 = vld [vmem:[%s5578_s17 + $0x14] ss:$8 sps:$4 sm:$0xff]  }
  0xd9   : > { %v4365_v34 = vld [vmem:[%s5578_s17 + $0x404] ss:$8 sps:$4 sm:$0xff]   ;;  %3157 = vmatprep.subr.bf16.mxu1 %v4363_v33  ;;  %v4368_v36 = vld [vmem:[%s5578_s17 + $0x400] ss:$8 sps:$4 sm:$0xff]   ;;  %v4371_v38 = vld [vmem:[%s5578_s17 + $0x414] ss:$8 sps:$4 sm:$0xff]  }
  0xda   : > { %3369 = vmatprep.subr.bf16.mxu0 %v4365_v34  ;;  %3158 = vmatpush1.bf16.msra.mxu1 %v4367_v35  ;;  %v4373_v39 = vld [vmem:[%s5578_s17 + $0x10] ss:$8 sps:$4 sm:$0xff]   ;;  %v4375_v41 = vld [vmem:[%s5578_s17 + $0x24] ss:$8 sps:$4 sm:$0xff]   ;;  %v4379_v43 = vld [vmem:[%s5578_s17 + $0x20] ss:$8 sps:$4 sm:$0xff]  }
  0xdb   : > { %3370 = vmatpush1.bf16.msra.mxu0 %v4368_v36  ;;  %3159 = vmatprep.subr.bf16.mxu1 %v4369_v37  ;;  %v4374_v40 = vld [vmem:[%s5578_s17 + $0x410] ss:$8 sps:$4 sm:$0xff]   ;;  %v4377_v42 = vld [vmem:[%s5578_s17 + $0x424] ss:$8 sps:$4 sm:$0xff]   ;;  %v4380_v44 = vld [vmem:[%s5578_s17 + $0x420] ss:$8 sps:$4 sm:$0xff]  }
  0xdc   : > { %3371 = vmatprep.subr.bf16.mxu0 %v4371_v38  ;;  %v4381_v45 = vld [vmem:[%s5578_s17 + $0x34] ss:$8 sps:$4 sm:$0xff]   ;;  %v4385_v47 = vld [vmem:[%s5578_s17 + $0x30] ss:$8 sps:$4 sm:$0xff]   ;;  %v4387_v49 = vld [vmem:[%s5578_s17 + $0x44] ss:$8 sps:$4 sm:$0xff]  }
  0xdd   : > { %v4383_v46 = vld [vmem:[%s5578_s17 + $0x434] ss:$8 sps:$4 sm:$0xff]   ;;  %v4386_v48 = vld [vmem:[%s5578_s17 + $0x430] ss:$8 sps:$4 sm:$0xff]   ;;  %v4389_v50 = vld [vmem:[%s5578_s17 + $0x444] ss:$8 sps:$4 sm:$0xff]  }
  0xde   : > { %3160 = vmatpush1.bf16.msra.mxu1 %v4373_v39  ;;  %v4391_v51 = vld [vmem:[%s5578_s17 + $0x40] ss:$8 sps:$4 sm:$0xff]   ;;  %v4393_v53 = vld [vmem:[%s5578_s17 + $0x54] ss:$8 sps:$4 sm:$0xff]   ;;  %v4397_v55 = vld [vmem:[%s5578_s17 + $0x50] ss:$8 sps:$4 sm:$0xff]  }
  0xdf   : > { %3372 = vmatpush1.bf16.msra.mxu0 %v4374_v40  ;;  %3161 = vmatprep.subr.bf16.mxu1 %v4375_v41  ;;  %v4392_v52 = vld [vmem:[%s5578_s17 + $0x440] ss:$8 sps:$4 sm:$0xff]   ;;  %v4395_v54 = vld [vmem:[%s5578_s17 + $0x454] ss:$8 sps:$4 sm:$0xff]   ;;  %v4398_v56 = vld [vmem:[%s5578_s17 + $0x450] ss:$8 sps:$4 sm:$0xff]  }
  0xe0   : > { %3373 = vmatprep.subr.bf16.mxu0 %v4377_v42  ;;  %v4399_v57 = vld [vmem:[%s5578_s17 + $0x64] ss:$8 sps:$4 sm:$0xff]   ;;  %v4403_v59 = vld [vmem:[%s5578_s17 + $0x60] ss:$8 sps:$4 sm:$0xff]   ;;  %v4405_v61 = vld [vmem:[%s5578_s17 + $0x74] ss:$8 sps:$4 sm:$0xff]  }
  0xe1   : > { %v4401_v58 = vld [vmem:[%s5578_s17 + $0x464] ss:$8 sps:$4 sm:$0xff]   ;;  %v4404_v60 = vld [vmem:[%s5578_s17 + $0x460] ss:$8 sps:$4 sm:$0xff]   ;;  %v4407_v62 = vld [vmem:[%s5578_s17 + $0x474] ss:$8 sps:$4 sm:$0xff]  }
  0xe2   : > { %3162 = vmatpush1.bf16.msra.mxu1 %v4379_v43  ;;  %v4409_v63 = vld [vmem:[%s5578_s17 + $0x70] ss:$8 sps:$4 sm:$0xff]   ;;  %v4411_v1 = vld [vmem:[%s5578_s17 + $0x84] ss:$8 sps:$4 sm:$0xff]   ;;  %v4415_v3 = vld [vmem:[%s5578_s17 + $0x80] ss:$8 sps:$4 sm:$0xff]  }
  0xe3   : > { %3374 = vmatpush1.bf16.msra.mxu0 %v4380_v44  ;;  %3163 = vmatprep.subr.bf16.mxu1 %v4381_v45  ;;  %v4410_v0 = vld [vmem:[%s5578_s17 + $0x470] ss:$8 sps:$4 sm:$0xff]   ;;  %v4413_v2 = vld [vmem:[%s5578_s17 + $0x484] ss:$8 sps:$4 sm:$0xff]   ;;  %v4416_v4 = vld [vmem:[%s5578_s17 + $0x480] ss:$8 sps:$4 sm:$0xff]  }
  0xe4   : > { %3375 = vmatprep.subr.bf16.mxu0 %v4383_v46  ;;  %v4417_v5 = vld [vmem:[%s5578_s17 + $0x94] ss:$8 sps:$4 sm:$0xff]   ;;  %v4421_v7 = vld [vmem:[%s5578_s17 + $0x90] ss:$8 sps:$4 sm:$0xff]   ;;  %v4423_v9 = vld [vmem:[%s5578_s17 + $0xa4] ss:$8 sps:$4 sm:$0xff]  }
  0xe5   : > { %v4419_v6 = vld [vmem:[%s5578_s17 + $0x494] ss:$8 sps:$4 sm:$0xff]   ;;  %v4422_v8 = vld [vmem:[%s5578_s17 + $0x490] ss:$8 sps:$4 sm:$0xff]   ;;  %v4425_v10 = vld [vmem:[%s5578_s17 + $0x4a4] ss:$8 sps:$4 sm:$0xff]  }
  0xe6   : > { %3164 = vmatpush1.bf16.msra.mxu1 %v4385_v47  ;;  %v4427_v11 = vld [vmem:[%s5578_s17 + $0xa0] ss:$8 sps:$4 sm:$0xff]   ;;  %v4429_v13 = vld [vmem:[%s5578_s17 + $0xb4] ss:$8 sps:$4 sm:$0xff]   ;;  %v4433_v15 = vld [vmem:[%s5578_s17 + $0xb0] ss:$8 sps:$4 sm:$0xff]  }
  0xe7   : > { %3376 = vmatpush1.bf16.msra.mxu0 %v4386_v48  ;;  %3165 = vmatprep.subr.bf16.mxu1 %v4387_v49  ;;  %v4428_v12 = vld [vmem:[%s5578_s17 + $0x4a0] ss:$8 sps:$4 sm:$0xff]   ;;  %v4431_v14 = vld [vmem:[%s5578_s17 + $0x4b4] ss:$8 sps:$4 sm:$0xff]   ;;  %v4434_v16 = vld [vmem:[%s5578_s17 + $0x4b0] ss:$8 sps:$4 sm:$0xff]  }
  0xe8   : > { %3377 = vmatprep.subr.bf16.mxu0 %v4389_v50  ;;  %v1429_v17 = vld [vmem:[%s5576_s19] sm:$0xff]  ;;  %v4441_v27 = vld [vmem:[%s5578_s17 + $0xd4] ss:$8 sps:$4 sm:$0xff]   ;;  %v4445_v29 = vld [vmem:[%s5578_s17 + $0xd0] ss:$8 sps:$4 sm:$0xff]   ;;  %p4208_p5 = scmp.ne.s32.totalorder %s4817_s21, 1 }
  0xe9   : > { %v1437_v18 = vld [vmem:[%s5576_s19 + $0x40] sm:$0xff]  ;;  %v4443_v28 = vld [vmem:[%s5578_s17 + $0x4d4] ss:$8 sps:$4 sm:$0xff]   ;;  %v4446_v30 = vld [vmem:[%s5578_s17 + $0x4d0] ss:$8 sps:$4 sm:$0xff]  }
  0xea   : > { %3166 = vmatpush1.bf16.msra.mxu1 %v4391_v51  ;;  %v4435_v19 = vld [vmem:[%s5578_s17 + $0xc4] ss:$8 sps:$4 sm:$0xff]   ;;  %v3921_v21 = vcombine.high %v1429_v17, %v1437_v18  ;;  %v4439_v25 = vld [vmem:[%s5578_s17 + $0xc0] ss:$8 sps:$4 sm:$0xff]   ;;  %v4453_v35 = vld [vmem:[%s5578_s17 + $0xf4] ss:$8 sps:$4 sm:$0xff]   ;;  %v3920_v41 = vcombine.low %v1429_v17, %v1437_v18 }
  0xeb   : > { %3378 = vmatpush1.bf16.msra.mxu0 %v4392_v52  ;;  %3167 = vmatprep.subr.bf16.mxu1 %v4393_v53  ;;  %v4437_v20 = vld [vmem:[%s5578_s17 + $0x4c4] ss:$8 sps:$4 sm:$0xff]   ;;  %v4440_v26 = vld [vmem:[%s5578_s17 + $0x4c0] ss:$8 sps:$4 sm:$0xff]   ;;  %v4455_v36 = vld [vmem:[%s5578_s17 + $0x4f4] ss:$8 sps:$4 sm:$0xff]  }
  0xec   : > { %3379 = vmatprep.subr.bf16.mxu0 %v4395_v54  ;;  %v1433_v22 = vld [vmem:[%s5576_s19 + $0x20] sm:$0xff]  ;;  %3189 = vmatprep.mubr.bf16.mxu1 %v3921_v21  ;;  %v4457_v37 = vld [vmem:[%s5578_s17 + $0xf0] ss:$8 sps:$4 sm:$0xff]   ;;  %v4467_v45 = vld [vmem:[%s5578_s17 + $0x114] ss:$8 sps:$4 sm:$0xff]  }
  0xed   : > { %v1441_v23 = vld [vmem:[%s5576_s19 + $0x60] sm:$0xff]  ;;  %v4458_v38 = vld [vmem:[%s5578_s17 + $0x4f0] ss:$8 sps:$4 sm:$0xff]   ;;  %v4470_v46 = vld [vmem:[%s5578_s17 + $0x514] ss:$8 sps:$4 sm:$0xff]  }
  0xee   : > { %3168 = vmatpush1.bf16.msra.mxu1 %v4397_v55  ;;  %v3929_v24 = vcombine.high %v1433_v22, %v1441_v23  ;;  %v4447_v31 = vld [vmem:[%s5578_s17 + $0xe4] ss:$8 sps:$4 sm:$0xff]   ;;  %v4451_v33 = vld [vmem:[%s5578_s17 + $0xe0] ss:$8 sps:$4 sm:$0xff]   ;;  %v3928_v43 = vcombine.low %v1433_v22, %v1441_v23  ;;  %v4465_v47 = vld [vmem:[%s5578_s17 + $0x110] ss:$8 sps:$4 sm:$0xff]  }
  0xef   : > { %3380 = vmatpush1.bf16.msra.mxu0 %v4398_v56  ;;  %3169 = vmatprep.subr.bf16.mxu1 %v4399_v57  ;;  %v4449_v32 = vld [vmem:[%s5578_s17 + $0x4e4] ss:$8 sps:$4 sm:$0xff]   ;;  %v4452_v34 = vld [vmem:[%s5578_s17 + $0x4e0] ss:$8 sps:$4 sm:$0xff]   ;;  %v4468_v48 = vld [vmem:[%s5578_s17 + $0x510] ss:$8 sps:$4 sm:$0xff]  }
  0xf0   : > { %3381 = vmatprep.subr.bf16.mxu0 %v4401_v58  ;;  %3401 = vmatprep.mubr.bf16.mxu0 %v3929_v24  ;;  %v4461_v39 = vld [vmem:[%s5578_s17 + $0x104] ss:$8 sps:$4 sm:$0xff]   ;;  %v4459_v42 = vld [vmem:[%s5578_s17 + $0x100] ss:$8 sps:$4 sm:$0xff]   ;;  %v4479_v53 = vld [vmem:[%s5578_s17 + $0x134] ss:$8 sps:$4 sm:$0xff]  }
  0xf1   : > { %v4464_v40 = vld [vmem:[%s5578_s17 + $0x504] ss:$8 sps:$4 sm:$0xff]   ;;  %v4462_v44 = vld [vmem:[%s5578_s17 + $0x500] ss:$8 sps:$4 sm:$0xff]   ;;  %v4482_v54 = vld [vmem:[%s5578_s17 + $0x534] ss:$8 sps:$4 sm:$0xff]  }
  0xf2   : > { %3170 = vmatpush1.bf16.msra.mxu1 %v4403_v59  ;;  %v4473_v49 = vld [vmem:[%s5578_s17 + $0x124] ss:$8 sps:$4 sm:$0xff]   ;;  %v4471_v51 = vld [vmem:[%s5578_s17 + $0x120] ss:$8 sps:$4 sm:$0xff]   ;;  %v4477_v55 = vld [vmem:[%s5578_s17 + $0x130] ss:$8 sps:$4 sm:$0xff]  }
  0xf3   : > { %3382 = vmatpush1.bf16.msra.mxu0 %v4404_v60  ;;  %3171 = vmatprep.subr.bf16.mxu1 %v4405_v61  ;;  %v4476_v50 = vld [vmem:[%s5578_s17 + $0x524] ss:$8 sps:$4 sm:$0xff]   ;;  %v4474_v52 = vld [vmem:[%s5578_s17 + $0x520] ss:$8 sps:$4 sm:$0xff]   ;;  %v4480_v56 = vld [vmem:[%s5578_s17 + $0x530] ss:$8 sps:$4 sm:$0xff]  }
  0xf4   : > { %3383 = vmatprep.subr.bf16.mxu0 %v4407_v62  ;;  %v4485_v57 = vld [vmem:[%s5578_s17 + $0x144] ss:$8 sps:$4 sm:$0xff]   ;;  %v4483_v59 = vld [vmem:[%s5578_s17 + $0x140] ss:$8 sps:$4 sm:$0xff]   ;;  %v4491_v61 = vld [vmem:[%s5578_s17 + $0x154] ss:$8 sps:$4 sm:$0xff]  }
  0xf5   : > { %v4488_v58 = vld [vmem:[%s5578_s17 + $0x544] ss:$8 sps:$4 sm:$0xff]   ;;  %v4486_v60 = vld [vmem:[%s5578_s17 + $0x540] ss:$8 sps:$4 sm:$0xff]   ;;  %v4494_v62 = vld [vmem:[%s5578_s17 + $0x554] ss:$8 sps:$4 sm:$0xff]  }
  0xf6   : > { %3172 = vmatpush1.bf16.msra.mxu1 %v4409_v63  ;;  %v1445_v63 = vld [vmem:[%s5576_s19 + $0x80] sm:$0xff]  ;;  %v5694_v18 = vld [vmem:[%s5576_s19 + $0x28] sm:$0xff]  ;;  %v4504_v21 = vld [vmem:[%s5578_s17 + $0x570] ss:$8 sps:$4 sm:$0xff]  }
  0xf7   : > { %3384 = vmatpush1.bf16.msra.mxu0 %v4410_v0  ;;  %3173 = vmatprep.subr.bf16.mxu1 %v4411_v1  ;;  %v1453_v0 = vld [vmem:[%s5576_s19 + $0xc0] sm:$0xff]  ;;  %v4489_v1 = vld [vmem:[%s5578_s17 + $0x150] ss:$8 sps:$4 sm:$0xff]  }
  0xf8   : > { %3385 = vmatprep.subr.bf16.mxu0 %v4413_v2  ;;  %v3937_v2 = vcombine.high %v1445_v63, %v1453_v0  ;;  %v4509_v23 = vld [vmem:[%s5578_s17 + $0x184] ss:$8 sps:$4 sm:$0xff]  }
  0xf9   : > { %v4512_v24 = vld [vmem:[%s5578_s17 + $0x584] ss:$8 sps:$4 sm:$0xff]  }
  0xfa   : > { %3174 = vmatpush1.bf16.msra.mxu1 %v4415_v3  ;;  %v4492_v3 = vld [vmem:[%s5578_s17 + $0x550] ss:$8 sps:$4 sm:$0xff]  }
  0xfb   : > { %3386 = vmatpush1.bf16.msra.mxu0 %v4416_v4  ;;  %3175 = vmatprep.subr.bf16.mxu1 %v4417_v5  ;;  %v1449_v4 = vld [vmem:[%s5576_s19 + $0xa0] sm:$0xff] }
  0xfc   : > { %3387 = vmatprep.subr.bf16.mxu0 %v4419_v6  ;;  %v1457_v5 = vld [vmem:[%s5576_s19 + $0xe0] sm:$0xff]  ;;  %v3936_v6 = vcombine.low %v1445_v63, %v1453_v0  ;;  %v4563_v63 = vld [vmem:[%s5578_s17 + $0x214] ss:$8 sps:$4 sm:$0xff]  }
  0xfd   : > { %v4566_v0 = vld [vmem:[%s5578_s17 + $0x614] ss:$8 sps:$4 sm:$0xff]  }
  0xfe   : > { %3176 = vmatpush1.bf16.msra.mxu1 %v4421_v7  ;;  %v4497_v7 = vld [vmem:[%s5578_s17 + $0x164] ss:$8 sps:$4 sm:$0xff]  }
  0xff   : > { %3388 = vmatpush1.bf16.msra.mxu0 %v4422_v8  ;;  %3177 = vmatprep.subr.bf16.mxu1 %v4423_v9  ;;  %v3945_v8 = vcombine.high %v1449_v4, %v1457_v5  ;;  %v3944_v9 = vcombine.low %v1449_v4, %v1457_v5  ;;  %v4561_v5 = vld [vmem:[%s5578_s17 + $0x210] ss:$8 sps:$4 sm:$0xff]  }
 0x100   : > { %3389 = vmatprep.subr.bf16.mxu0 %v4425_v10  ;;  %v4500_v10 = vld [vmem:[%s5578_s17 + $0x564] ss:$8 sps:$4 sm:$0xff]  }
 0x102   : > { %3178 = vmatpush1.bf16.msra.mxu1 %v4427_v11  ;;  %v4495_v11 = vld [vmem:[%s5578_s17 + $0x160] ss:$8 sps:$4 sm:$0xff]  }
 0x103   : > { %3390 = vmatpush1.bf16.msra.mxu0 %v4428_v12  ;;  %3179 = vmatprep.subr.bf16.mxu1 %v4429_v13  ;;  %v4498_v12 = vld [vmem:[%s5578_s17 + $0x560] ss:$8 sps:$4 sm:$0xff]  }
 0x104   : > { %3391 = vmatprep.subr.bf16.mxu0 %v4431_v14  ;;  %v5684_v13 = vld [vmem:[%s5576_s19 + $0x8] sm:$0xff] }
 0x105   : > { %v5687_v14 = vld [vmem:[%s5576_s19 + $0x48] sm:$0xff] }
 0x106   : > { %3180 = vmatpush1.bf16.msra.mxu1 %v4433_v15  ;;  %v4503_v15 = vld [vmem:[%s5578_s17 + $0x174] ss:$8 sps:$4 sm:$0xff]   ;;  %v3923_v17 = vcombine.high %v5684_v13, %v5687_v14 }
 0x107   : > { %3392 = vmatpush1.bf16.msra.mxu0 %v4434_v16  ;;  %3181 = vmatprep.subr.bf16.mxu1 %v4435_v19  ;;  %v4506_v16 = vld [vmem:[%s5578_s17 + $0x574] ss:$8 sps:$4 sm:$0xff]   ;;  %v5697_v19 = vld [vmem:[%s5576_s19 + $0x68] sm:$0xff] }
 0x108   : > { %3393 = vmatprep.subr.bf16.mxu0 %v4437_v20  ;;  %v4501_v20 = vld [vmem:[%s5578_s17 + $0x170] ss:$8 sps:$4 sm:$0xff]   ;;  %v3931_v22 = vcombine.high %v5694_v18, %v5697_v19 }
 0x10a   : > { %3182 = vmatpush1.bf16.msra.mxu1 %v4439_v25  ;;  %v4507_v25 = vld [vmem:[%s5578_s17 + $0x180] ss:$8 sps:$4 sm:$0xff]  }
 0x10b   : > { %3394 = vmatpush1.bf16.msra.mxu0 %v4440_v26  ;;  %3183 = vmatprep.subr.bf16.mxu1 %v4441_v27  ;;  %v4510_v26 = vld [vmem:[%s5578_s17 + $0x580] ss:$8 sps:$4 sm:$0xff]   ;;  %v4515_v27 = vld [vmem:[%s5578_s17 + $0x194] ss:$8 sps:$4 sm:$0xff]  }
 0x10c   : > { %3395 = vmatprep.subr.bf16.mxu0 %v4443_v28  ;;  %v4518_v28 = vld [vmem:[%s5578_s17 + $0x594] ss:$8 sps:$4 sm:$0xff]  }
 0x10e   : > { %3184 = vmatpush1.bf16.msra.mxu1 %v4445_v29  ;;  %v4513_v29 = vld [vmem:[%s5578_s17 + $0x190] ss:$8 sps:$4 sm:$0xff]  }
 0x10f   : > { %3396 = vmatpush1.bf16.msra.mxu0 %v4446_v30  ;;  %3185 = vmatprep.subr.bf16.mxu1 %v4447_v31  ;;  %v4516_v30 = vld [vmem:[%s5578_s17 + $0x590] ss:$8 sps:$4 sm:$0xff]   ;;  %v4521_v31 = vld [vmem:[%s5578_s17 + $0x1a4] ss:$8 sps:$4 sm:$0xff]  }
 0x110   : > { %3397 = vmatprep.subr.bf16.mxu0 %v4449_v32  ;;  %v4524_v32 = vld [vmem:[%s5578_s17 + $0x5a4] ss:$8 sps:$4 sm:$0xff]  }
 0x112   : > { %3186 = vmatpush1.bf16.msra.mxu1 %v4451_v33  ;;  %v4519_v33 = vld [vmem:[%s5578_s17 + $0x1a0] ss:$8 sps:$4 sm:$0xff]  }
 0x113   : > { %3398 = vmatpush1.bf16.msra.mxu0 %v4452_v34  ;;  %3187 = vmatprep.subr.bf16.mxu1 %v4453_v35  ;;  %v4522_v34 = vld [vmem:[%s5578_s17 + $0x5a0] ss:$8 sps:$4 sm:$0xff]   ;;  %v4527_v35 = vld [vmem:[%s5578_s17 + $0x1b4] ss:$8 sps:$4 sm:$0xff]  }
 0x114   : > { %3399 = vmatprep.subr.bf16.mxu0 %v4455_v36  ;;  %v4530_v36 = vld [vmem:[%s5578_s17 + $0x5b4] ss:$8 sps:$4 sm:$0xff]  }
 0x116   : > { %3188 = vmatpush1.bf16.msra.mxu1 %v4457_v37  ;;  %v4525_v37 = vld [vmem:[%s5578_s17 + $0x1b0] ss:$8 sps:$4 sm:$0xff]  }
 0x117   : > { %3400 = vmatpush1.bf16.msra.mxu0 %v4458_v38  ;;  %3210 = vmatprep.subr.bf16.mxu1 %v4461_v39  ;;  %v4528_v38 = vld [vmem:[%s5578_s17 + $0x5b0] ss:$8 sps:$4 sm:$0xff]   ;;  %v4533_v39 = vld [vmem:[%s5578_s17 + $0x1c4] ss:$8 sps:$4 sm:$0xff]  }
 0x118   : > { %3422 = vmatprep.subr.bf16.mxu0 %v4464_v40  ;;  %v4536_v40 = vld [vmem:[%s5578_s17 + $0x5c4] ss:$8 sps:$4 sm:$0xff]  }
 0x119   : > { %3190 = vmatmul.mubr.bf16.vlgmr.msra.gmra.mrb[0].mxu1 %v3920_v41  ;;  %v4531_v41 = vld [vmem:[%s5578_s17 + $0x1c0] ss:$8 sps:$4 sm:$0xff]  }
 0x11a   : > { %3402 = vmatmul.mubr.bf16.vlgmr.msra.gmra.mrb[0].mxu0 %v3928_v43  ;;  %3211 = vmatpush1.bf16.msra.mxu1 %v4459_v42  ;;  %v4534_v42 = vld [vmem:[%s5578_s17 + $0x5c0] ss:$8 sps:$4 sm:$0xff]   ;;  %v4539_v43 = vld [vmem:[%s5578_s17 + $0x1d4] ss:$8 sps:$4 sm:$0xff]  }
 0x11b   : > { %3423 = vmatpush1.bf16.msra.mxu0 %v4462_v44  ;;  %3212 = vmatprep.subr.bf16.mxu1 %v4467_v45  ;;  %v4542_v44 = vld [vmem:[%s5578_s17 + $0x5d4] ss:$8 sps:$4 sm:$0xff]   ;;  %v4537_v45 = vld [vmem:[%s5578_s17 + $0x1d0] ss:$8 sps:$4 sm:$0xff]  }
 0x11c   : > { %3424 = vmatprep.subr.bf16.mxu0 %v4470_v46  ;;  %3199 = vmatprep.mubr.bf16.mxu1 %v3937_v2  ;;  %v4540_v46 = vld [vmem:[%s5578_s17 + $0x5d0] ss:$8 sps:$4 sm:$0xff]   ;;  %v1458_v2 = vld [vmem:[%s5576_s19 + $0xe8] sm:$0xff] }
 0x11d   : > { %3411 = vmatprep.mubr.bf16.mxu0 %v3945_v8  ;;  %v4572_v8 = vld [vmem:[%s5578_s17 + $0x624] ss:$8 sps:$4 sm:$0xff]  }
 0x11e   : > { %3213 = vmatpush1.bf16.msra.mxu1 %v4465_v47  ;;  %v4545_v47 = vld [vmem:[%s5578_s17 + $0x1e4] ss:$8 sps:$4 sm:$0xff]  }
 0x11f   : > { %3425 = vmatpush1.bf16.msra.mxu0 %v4468_v48  ;;  %3214 = vmatprep.subr.bf16.mxu1 %v4473_v49  ;;  %v4548_v48 = vld [vmem:[%s5578_s17 + $0x5e4] ss:$8 sps:$4 sm:$0xff]   ;;  %v4543_v49 = vld [vmem:[%s5578_s17 + $0x1e0] ss:$8 sps:$4 sm:$0xff]  }
 0x120   : > { %3426 = vmatprep.subr.bf16.mxu0 %v4476_v50  ;;  %v4546_v50 = vld [vmem:[%s5578_s17 + $0x5e0] ss:$8 sps:$4 sm:$0xff]  }
 0x121   : > { %3200 = vmatmul.mubr.bf16.gmra.mrb[4].mxu1 %v3936_v6  ;;  %v4564_v6 = vld [vmem:[%s5578_s17 + $0x610] ss:$8 sps:$4 sm:$0xff]  }
 0x122   : > { %3215 = vmatpush1.bf16.msra.mxu1 %v4471_v51  ;;  %3412 = vmatmul.mubr.bf16.gmra.mrb[4].mxu0 %v3944_v9  ;;  %v4551_v51 = vld [vmem:[%s5578_s17 + $0x1f4] ss:$8 sps:$4 sm:$0xff]   ;;  %v4567_v9 = vld [vmem:[%s5578_s17 + $0x220] ss:$8 sps:$4 sm:$0xff]  }
 0x123   : > { %3427 = vmatpush1.bf16.msra.mxu0 %v4474_v52  ;;  %3216 = vmatprep.subr.bf16.mxu1 %v4479_v53  ;;  %v4554_v52 = vld [vmem:[%s5578_s17 + $0x5f4] ss:$8 sps:$4 sm:$0xff]   ;;  %v4549_v53 = vld [vmem:[%s5578_s17 + $0x1f0] ss:$8 sps:$4 sm:$0xff]  }
 0x124   : > { %3428 = vmatprep.subr.bf16.mxu0 %v4482_v54  ;;  %3242 = vmatprep.mubr.bf16.mxu1 %v3923_v17  ;;  %v4552_v54 = vld [vmem:[%s5578_s17 + $0x5f0] ss:$8 sps:$4 sm:$0xff]   ;;  %v4575_v17 = vld [vmem:[%s5578_s17 + $0x234] ss:$8 sps:$4 sm:$0xff]  }
 0x125   : > { %3454 = vmatprep.mubr.bf16.mxu0 %v3931_v22  ;;  %v4576_v22 = vld [vmem:[%s5578_s17 + $0x630] ss:$8 sps:$4 sm:$0xff]  }
 0x126   : > { %3217 = vmatpush1.bf16.msra.mxu1 %v4477_v55  ;;  %v4557_v55 = vld [vmem:[%s5578_s17 + $0x204] ss:$8 sps:$4 sm:$0xff]  }
 0x127   : > { %3429 = vmatpush1.bf16.msra.mxu0 %v4480_v56  ;;  %3218 = vmatprep.subr.bf16.mxu1 %v4485_v57  ;;  %v4560_v56 = vld [vmem:[%s5578_s17 + $0x604] ss:$8 sps:$4 sm:$0xff]   ;;  %v4555_v57 = vld [vmem:[%s5578_s17 + $0x200] ss:$8 sps:$4 sm:$0xff]  }
 0x128   : > { %3430 = vmatprep.subr.bf16.mxu0 %v4488_v58  ;;  %v4558_v58 = vld [vmem:[%s5578_s17 + $0x600] ss:$8 sps:$4 sm:$0xff]  }
 0x12a   : > { %3219 = vmatpush1.bf16.msra.mxu1 %v4483_v59  ;;  %v1446_v59 = vld [vmem:[%s5576_s19 + $0x88] sm:$0xff] }
 0x12b   : > { %3431 = vmatpush1.bf16.msra.mxu0 %v4486_v60  ;;  %3220 = vmatprep.subr.bf16.mxu1 %v4491_v61  ;;  %v3922_v60 = vcombine.low %v5684_v13, %v5687_v14  ;;  %v3930_v61 = vcombine.low %v5694_v18, %v5697_v19  ;;  %v5759_v14 = vld [vmem:[%s5576_s19 + $0x50] sm:$0xff] }
 0x12c   : > { %3432 = vmatprep.subr.bf16.mxu0 %v4494_v62  ;;  %v1454_v62 = vld [vmem:[%s5576_s19 + $0xc8] sm:$0xff]  ;;  %v4578_v18 = vld [vmem:[%s5578_s17 + $0x634] ss:$8 sps:$4 sm:$0xff]  }
 0x12e   : > { %3221 = vmatpush1.bf16.msra.mxu1 %v4489_v1  ;;  %v1450_v1 = vld [vmem:[%s5576_s19 + $0xa8] sm:$0xff] }
 0x12f   : > { %3433 = vmatpush1.bf16.msra.mxu0 %v4492_v3  ;;  %3222 = vmatprep.subr.bf16.mxu1 %v4497_v7  ;;  %v3939_v3 = vcombine.high %v1446_v59, %v1454_v62  ;;  %v3947_v4 = vcombine.high %v1450_v1, %v1458_v2  ;;  %v4569_v7 = vld [vmem:[%s5578_s17 + $0x224] ss:$8 sps:$4 sm:$0xff]   ;;  %v3946_v13 = vcombine.low %v1450_v1, %v1458_v2  ;;  %v4639_v1 = vld [vmem:[%s5578_s17 + $0x2e0] ss:$8 sps:$4 sm:$0xff]  }
 0x130   : > { %3434 = vmatprep.subr.bf16.mxu0 %v4500_v10  ;;  %v4570_v10 = vld [vmem:[%s5578_s17 + $0x620] ss:$8 sps:$4 sm:$0xff]  }
 0x131   : > { %v4642_v2 = vld [vmem:[%s5578_s17 + $0x6e0] ss:$8 sps:$4 sm:$0xff]  }
 0x132   : > { %3223 = vmatpush1.bf16.msra.mxu1 %v4495_v11  ;;  %v5756_v11 = vld [vmem:[%s5576_s19 + $0x10] sm:$0xff] }
 0x133   : > { %3435 = vmatpush1.bf16.msra.mxu0 %v4498_v12  ;;  %3224 = vmatprep.subr.bf16.mxu1 %v4503_v15  ;;  %v3938_v12 = vcombine.low %v1446_v59, %v1454_v62  ;;  %v5762_v15 = vld [vmem:[%s5576_s19 + $0x30] sm:$0xff]  ;;  %v3925_v19 = vcombine.high %v5756_v11, %v5759_v14 }
 0x134   : > { %3436 = vmatprep.subr.bf16.mxu0 %v4506_v16  ;;  %v5765_v16 = vld [vmem:[%s5576_s19 + $0x70] sm:$0xff] }
 0x135   : > { %v4635_v59 = vld [vmem:[%s5578_s17 + $0x2d4] ss:$8 sps:$4 sm:$0xff]   ;;  %v4636_v62 = vld [vmem:[%s5578_s17 + $0x6d0] ss:$8 sps:$4 sm:$0xff]  }
 0x136   : > { %3225 = vmatpush1.bf16.msra.mxu1 %v4501_v20  ;;  %v3933_v20 = vcombine.high %v5762_v15, %v5765_v16 }
 0x137   : > { %3437 = vmatpush1.bf16.msra.mxu0 %v4504_v21  ;;  %3226 = vmatprep.subr.bf16.mxu1 %v4509_v23  ;;  %v4573_v21 = vld [vmem:[%s5578_s17 + $0x230] ss:$8 sps:$4 sm:$0xff]   ;;  %v4581_v23 = vld [vmem:[%s5578_s17 + $0x244] ss:$8 sps:$4 sm:$0xff]  }
 0x138   : > { %3438 = vmatprep.subr.bf16.mxu0 %v4512_v24  ;;  %v4584_v24 = vld [vmem:[%s5578_s17 + $0x644] ss:$8 sps:$4 sm:$0xff]  }
 0x13a   : > { %3227 = vmatpush1.bf16.msra.mxu1 %v4507_v25  ;;  %v4579_v25 = vld [vmem:[%s5578_s17 + $0x240] ss:$8 sps:$4 sm:$0xff]  }
 0x13b   : > { %3439 = vmatpush1.bf16.msra.mxu0 %v4510_v26  ;;  %3228 = vmatprep.subr.bf16.mxu1 %v4515_v27  ;;  %v4582_v26 = vld [vmem:[%s5578_s17 + $0x640] ss:$8 sps:$4 sm:$0xff]   ;;  %v4587_v27 = vld [vmem:[%s5578_s17 + $0x254] ss:$8 sps:$4 sm:$0xff]  }
 0x13c   : > { %3440 = vmatprep.subr.bf16.mxu0 %v4518_v28  ;;  %v4590_v28 = vld [vmem:[%s5578_s17 + $0x654] ss:$8 sps:$4 sm:$0xff]  }
 0x13e   : > { %3229 = vmatpush1.bf16.msra.mxu1 %v4513_v29  ;;  %v4585_v29 = vld [vmem:[%s5578_s17 + $0x250] ss:$8 sps:$4 sm:$0xff]  }
 0x13f   : > { %3441 = vmatpush1.bf16.msra.mxu0 %v4516_v30  ;;  %3230 = vmatprep.subr.bf16.mxu1 %v4521_v31  ;;  %v4588_v30 = vld [vmem:[%s5578_s17 + $0x650] ss:$8 sps:$4 sm:$0xff]   ;;  %v4593_v31 = vld [vmem:[%s5578_s17 + $0x264] ss:$8 sps:$4 sm:$0xff]  }
 0x140   : > { %3442 = vmatprep.subr.bf16.mxu0 %v4524_v32  ;;  %v4596_v32 = vld [vmem:[%s5578_s17 + $0x664] ss:$8 sps:$4 sm:$0xff]  }
 0x142   : > { %3231 = vmatpush1.bf16.msra.mxu1 %v4519_v33  ;;  %v4591_v33 = vld [vmem:[%s5578_s17 + $0x260] ss:$8 sps:$4 sm:$0xff]  }
 0x143   : > { %3443 = vmatpush1.bf16.msra.mxu0 %v4522_v34  ;;  %3232 = vmatprep.subr.bf16.mxu1 %v4527_v35  ;;  %v4594_v34 = vld [vmem:[%s5578_s17 + $0x660] ss:$8 sps:$4 sm:$0xff]   ;;  %v4599_v35 = vld [vmem:[%s5578_s17 + $0x274] ss:$8 sps:$4 sm:$0xff]  }
 0x144   : > { %3444 = vmatprep.subr.bf16.mxu0 %v4530_v36  ;;  %v4602_v36 = vld [vmem:[%s5578_s17 + $0x674] ss:$8 sps:$4 sm:$0xff]  }
 0x146   : > { %3233 = vmatpush1.bf16.msra.mxu1 %v4525_v37  ;;  %v4597_v37 = vld [vmem:[%s5578_s17 + $0x270] ss:$8 sps:$4 sm:$0xff]  }
 0x147   : > { %3445 = vmatpush1.bf16.msra.mxu0 %v4528_v38  ;;  %3234 = vmatprep.subr.bf16.mxu1 %v4533_v39  ;;  %v4600_v38 = vld [vmem:[%s5578_s17 + $0x670] ss:$8 sps:$4 sm:$0xff]   ;;  %v4605_v39 = vld [vmem:[%s5578_s17 + $0x284] ss:$8 sps:$4 sm:$0xff]  }
 0x148   : > { %3446 = vmatprep.subr.bf16.mxu0 %v4536_v40  ;;  %v4608_v40 = vld [vmem:[%s5578_s17 + $0x684] ss:$8 sps:$4 sm:$0xff]  }
 0x14a   : > { %3235 = vmatpush1.bf16.msra.mxu1 %v4531_v41  ;;  %v4603_v41 = vld [vmem:[%s5578_s17 + $0x280] ss:$8 sps:$4 sm:$0xff]  }
 0x14b   : > { %3447 = vmatpush1.bf16.msra.mxu0 %v4534_v42  ;;  %3236 = vmatprep.subr.bf16.mxu1 %v4539_v43  ;;  %v4606_v42 = vld [vmem:[%s5578_s17 + $0x680] ss:$8 sps:$4 sm:$0xff]   ;;  %v4611_v43 = vld [vmem:[%s5578_s17 + $0x294] ss:$8 sps:$4 sm:$0xff]  }
 0x14c   : > { %3448 = vmatprep.subr.bf16.mxu0 %v4542_v44  ;;  %v4614_v44 = vld [vmem:[%s5578_s17 + $0x694] ss:$8 sps:$4 sm:$0xff]  }
 0x14e   : > { %3237 = vmatpush1.bf16.msra.mxu1 %v4537_v45  ;;  %v4609_v45 = vld [vmem:[%s5578_s17 + $0x290] ss:$8 sps:$4 sm:$0xff]  }
 0x14f   : > { %3449 = vmatpush1.bf16.msra.mxu0 %v4540_v46  ;;  %3238 = vmatprep.subr.bf16.mxu1 %v4545_v47  ;;  %v4612_v46 = vld [vmem:[%s5578_s17 + $0x690] ss:$8 sps:$4 sm:$0xff]   ;;  %v4617_v47 = vld [vmem:[%s5578_s17 + $0x2a4] ss:$8 sps:$4 sm:$0xff]  }
 0x150   : > { %3450 = vmatprep.subr.bf16.mxu0 %v4548_v48  ;;  %v4620_v48 = vld [vmem:[%s5578_s17 + $0x6a4] ss:$8 sps:$4 sm:$0xff]  }
 0x152   : > { %3239 = vmatpush1.bf16.msra.mxu1 %v4543_v49  ;;  %v4615_v49 = vld [vmem:[%s5578_s17 + $0x2a0] ss:$8 sps:$4 sm:$0xff]  }
 0x153   : > { %3451 = vmatpush1.bf16.msra.mxu0 %v4546_v50  ;;  %3240 = vmatprep.subr.bf16.mxu1 %v4551_v51  ;;  %v4618_v50 = vld [vmem:[%s5578_s17 + $0x6a0] ss:$8 sps:$4 sm:$0xff]   ;;  %v4623_v51 = vld [vmem:[%s5578_s17 + $0x2b4] ss:$8 sps:$4 sm:$0xff]  }
 0x154   : > { %3452 = vmatprep.subr.bf16.mxu0 %v4554_v52  ;;  %v4626_v52 = vld [vmem:[%s5578_s17 + $0x6b4] ss:$8 sps:$4 sm:$0xff]  }
 0x156   : > { %3241 = vmatpush1.bf16.msra.mxu1 %v4549_v53  ;;  %v4621_v53 = vld [vmem:[%s5578_s17 + $0x2b0] ss:$8 sps:$4 sm:$0xff]  }
 0x157   : > { %3453 = vmatpush1.bf16.msra.mxu0 %v4552_v54  ;;  %3263 = vmatprep.subr.bf16.mxu1 %v4557_v55  ;;  %v4624_v54 = vld [vmem:[%s5578_s17 + $0x6b0] ss:$8 sps:$4 sm:$0xff]   ;;  %v4629_v55 = vld [vmem:[%s5578_s17 + $0x2c4] ss:$8 sps:$4 sm:$0xff]  }
 0x158   : > { %3475 = vmatprep.subr.bf16.mxu0 %v4560_v56  ;;  %v4632_v56 = vld [vmem:[%s5578_s17 + $0x6c4] ss:$8 sps:$4 sm:$0xff]  }
 0x159   : > { %3243 = vmatmul.mubr.bf16.vlgmr.msra.gmra.mrb[0].mxu1 %v3922_v60  ;;  %v4638_v60 = vld [vmem:[%s5578_s17 + $0x6d4] ss:$8 sps:$4 sm:$0xff]  }
 0x15a   : > { %3455 = vmatmul.mubr.bf16.vlgmr.msra.gmra.mrb[0].mxu0 %v3930_v61  ;;  %3264 = vmatpush1.bf16.msra.mxu1 %v4555_v57  ;;  %v4627_v57 = vld [vmem:[%s5578_s17 + $0x2c0] ss:$8 sps:$4 sm:$0xff]   ;;  %v4633_v61 = vld [vmem:[%s5578_s17 + $0x2d0] ss:$8 sps:$4 sm:$0xff]  }
 0x15b   : > { %3476 = vmatpush1.bf16.msra.mxu0 %v4558_v58  ;;  %3265 = vmatprep.subr.bf16.mxu1 %v4563_v63  ;;  %v4630_v58 = vld [vmem:[%s5578_s17 + $0x6c0] ss:$8 sps:$4 sm:$0xff]   ;;  %v4641_v63 = vld [vmem:[%s5578_s17 + $0x2e4] ss:$8 sps:$4 sm:$0xff]  }
 0x15c   : > { %3477 = vmatprep.subr.bf16.mxu0 %v4566_v0  ;;  %3252 = vmatprep.mubr.bf16.mxu1 %v3939_v3  ;;  %v4644_v0 = vld [vmem:[%s5578_s17 + $0x6e4] ss:$8 sps:$4 sm:$0xff]   ;;  %v4647_v3 = vld [vmem:[%s5578_s17 + $0x2f4] ss:$8 sps:$4 sm:$0xff]  }
 0x15d   : > { %3464 = vmatprep.mubr.bf16.mxu0 %v3947_v4  ;;  %v4650_v4 = vld [vmem:[%s5578_s17 + $0x6f4] ss:$8 sps:$4 sm:$0xff]  }
 0x15e   : > { %3266 = vmatpush1.bf16.msra.mxu1 %v4561_v5  ;;  %v4645_v5 = vld [vmem:[%s5578_s17 + $0x2f0] ss:$8 sps:$4 sm:$0xff]  }
 0x15f   : > { %3478 = vmatpush1.bf16.msra.mxu0 %v4564_v6  ;;  %3267 = vmatprep.subr.bf16.mxu1 %v4569_v7  ;;  %v4648_v6 = vld [vmem:[%s5578_s17 + $0x6f0] ss:$8 sps:$4 sm:$0xff]   ;;  %v4653_v7 = vld [vmem:[%s5578_s17 + $0x304] ss:$8 sps:$4 sm:$0xff]  }
 0x160   : > { %3479 = vmatprep.subr.bf16.mxu0 %v4572_v8  ;;  %v4656_v8 = vld [vmem:[%s5578_s17 + $0x704] ss:$8 sps:$4 sm:$0xff]  }
 0x161   : > { %3253 = vmatmul.mubr.bf16.gmra.mrb[4].mxu1 %v3938_v12  ;;  %v3932_v12 = vcombine.low %v5762_v15, %v5765_v16  ;;  %v4657_v15 = vld [vmem:[%s5578_s17 + $0x310] ss:$8 sps:$4 sm:$0xff]  }
 0x162   : > { %3465 = vmatmul.mubr.bf16.gmra.mrb[4].mxu0 %v3946_v13  ;;  %3268 = vmatpush1.bf16.msra.mxu1 %v4567_v9  ;;  %v1447_v9 = vld [vmem:[%s5576_s19 + $0x90] sm:$0xff] }
 0x163   : > { %3480 = vmatpush1.bf16.msra.mxu0 %v4570_v10  ;;  %3269 = vmatprep.subr.bf16.mxu1 %v4575_v17  ;;  %v3924_v10 = vcombine.low %v5756_v11, %v5759_v14  ;;  %v1455_v13 = vld [vmem:[%s5576_s19 + $0xd0] sm:$0xff] }
 0x164   : > { %3481 = vmatprep.subr.bf16.mxu0 %v4578_v18  ;;  %3295 = vmatprep.mubr.bf16.mxu1 %v3925_v19  ;;  %v1451_v17 = vld [vmem:[%s5576_s19 + $0xb0] sm:$0xff]  ;;  %v4651_v19 = vld [vmem:[%s5578_s17 + $0x300] ss:$8 sps:$4 sm:$0xff]   ;;  %v3941_v11 = vcombine.high %v1447_v9, %v1455_v13 }
 0x165   : > { %3507 = vmatprep.mubr.bf16.mxu0 %v3933_v20  ;;  %v1459_v18 = vld [vmem:[%s5576_s19 + $0xf0] sm:$0xff]  ;;  %v4654_v20 = vld [vmem:[%s5578_s17 + $0x700] ss:$8 sps:$4 sm:$0xff]  }
 0x166   : > { %3270 = vmatpush1.bf16.msra.mxu1 %v4573_v21  ;;  %v4659_v21 = vld [vmem:[%s5578_s17 + $0x314] ss:$8 sps:$4 sm:$0xff]   ;;  %v3949_v14 = vcombine.high %v1451_v17, %v1459_v18  ;;  %v4660_v16 = vld [vmem:[%s5578_s17 + $0x710] ss:$8 sps:$4 sm:$0xff]  }
 0x167   : > { %3482 = vmatpush1.bf16.msra.mxu0 %v4576_v22  ;;  %3271 = vmatprep.subr.bf16.mxu1 %v4581_v23  ;;  %v4662_v22 = vld [vmem:[%s5578_s17 + $0x714] ss:$8 sps:$4 sm:$0xff]   ;;  %v4665_v23 = vld [vmem:[%s5578_s17 + $0x324] ss:$8 sps:$4 sm:$0xff]  }
 0x168   : > { %3483 = vmatprep.subr.bf16.mxu0 %v4584_v24  ;;  %v4668_v24 = vld [vmem:[%s5578_s17 + $0x724] ss:$8 sps:$4 sm:$0xff]  }
 0x16a   : > { %3272 = vmatpush1.bf16.msra.mxu1 %v4579_v25  ;;  %v5842_v25 = vld [vmem:[%s5576_s19 + $0x18] sm:$0xff] }
 0x16b   : > { %3484 = vmatpush1.bf16.msra.mxu0 %v4582_v26  ;;  %3273 = vmatprep.subr.bf16.mxu1 %v4587_v27  ;;  %v3940_v26 = vcombine.low %v1447_v9, %v1455_v13  ;;  %v3948_v27 = vcombine.low %v1451_v17, %v1459_v18  ;;  %v4723_v9 = vld [vmem:[%s5578_s17 + $0x3c0] ss:$8 sps:$4 sm:$0xff]   ;;  %v4734_v13 = vld [vmem:[%s5578_s17 + $0x7d4] ss:$8 sps:$4 sm:$0xff]   ;;  %v4729_v17 = vld [vmem:[%s5578_s17 + $0x3d0] ss:$8 sps:$4 sm:$0xff]  }
 0x16c   : > { %3485 = vmatprep.subr.bf16.mxu0 %v4590_v28  ;;  %v5845_v28 = vld [vmem:[%s5576_s19 + $0x58] sm:$0xff] }
 0x16d   : > { %v4732_v18 = vld [vmem:[%s5578_s17 + $0x7d0] ss:$8 sps:$4 sm:$0xff]  }
 0x16e   : > { %3274 = vmatpush1.bf16.msra.mxu1 %v4585_v29  ;;  %v5848_v29 = vld [vmem:[%s5576_s19 + $0x38] sm:$0xff] }
 0x16f   : > { %3486 = vmatpush1.bf16.msra.mxu0 %v4588_v30  ;;  %3275 = vmatprep.subr.bf16.mxu1 %v4593_v31  ;;  %v5851_v30 = vld [vmem:[%s5576_s19 + $0x78] sm:$0xff]  ;;  %v4663_v31 = vld [vmem:[%s5578_s17 + $0x320] ss:$8 sps:$4 sm:$0xff]  }
 0x170   : > { %3487 = vmatprep.subr.bf16.mxu0 %v4596_v32  ;;  %v4666_v32 = vld [vmem:[%s5578_s17 + $0x720] ss:$8 sps:$4 sm:$0xff]  }
 0x172   : > { %3276 = vmatpush1.bf16.msra.mxu1 %v4591_v33  ;;  %v4671_v33 = vld [vmem:[%s5578_s17 + $0x334] ss:$8 sps:$4 sm:$0xff]  }
 0x173   : > { %3488 = vmatpush1.bf16.msra.mxu0 %v4594_v34  ;;  %3277 = vmatprep.subr.bf16.mxu1 %v4599_v35  ;;  %v4674_v34 = vld [vmem:[%s5578_s17 + $0x734] ss:$8 sps:$4 sm:$0xff]   ;;  %v3927_v35 = vcombine.high %v5842_v25, %v5845_v28 }
 0x174   : > { %3489 = vmatprep.subr.bf16.mxu0 %v4602_v36  ;;  %v3935_v36 = vcombine.high %v5848_v29, %v5851_v30 }
 0x176   : > { %3278 = vmatpush1.bf16.msra.mxu1 %v4597_v37  ;;  %v4669_v37 = vld [vmem:[%s5578_s17 + $0x330] ss:$8 sps:$4 sm:$0xff]  }
 0x177   : > { %3490 = vmatpush1.bf16.msra.mxu0 %v4600_v38  ;;  %3279 = vmatprep.subr.bf16.mxu1 %v4605_v39  ;;  %v4672_v38 = vld [vmem:[%s5578_s17 + $0x730] ss:$8 sps:$4 sm:$0xff]   ;;  %v4677_v39 = vld [vmem:[%s5578_s17 + $0x344] ss:$8 sps:$4 sm:$0xff]  }
 0x178   : > { %3491 = vmatprep.subr.bf16.mxu0 %v4608_v40  ;;  %v4680_v40 = vld [vmem:[%s5578_s17 + $0x744] ss:$8 sps:$4 sm:$0xff]  }
 0x17a   : > { %3280 = vmatpush1.bf16.msra.mxu1 %v4603_v41  ;;  %v4675_v41 = vld [vmem:[%s5578_s17 + $0x340] ss:$8 sps:$4 sm:$0xff]  }
 0x17b   : > { %3492 = vmatpush1.bf16.msra.mxu0 %v4606_v42  ;;  %3281 = vmatprep.subr.bf16.mxu1 %v4611_v43  ;;  %v4678_v42 = vld [vmem:[%s5578_s17 + $0x740] ss:$8 sps:$4 sm:$0xff]   ;;  %v4683_v43 = vld [vmem:[%s5578_s17 + $0x354] ss:$8 sps:$4 sm:$0xff]  }
 0x17c   : > { %3493 = vmatprep.subr.bf16.mxu0 %v4614_v44  ;;  %v4686_v44 = vld [vmem:[%s5578_s17 + $0x754] ss:$8 sps:$4 sm:$0xff]  }
 0x17e   : > { %3282 = vmatpush1.bf16.msra.mxu1 %v4609_v45  ;;  %v4681_v45 = vld [vmem:[%s5578_s17 + $0x350] ss:$8 sps:$4 sm:$0xff]  }
 0x17f   : > { %3494 = vmatpush1.bf16.msra.mxu0 %v4612_v46  ;;  %3283 = vmatprep.subr.bf16.mxu1 %v4617_v47  ;;  %v4684_v46 = vld [vmem:[%s5578_s17 + $0x750] ss:$8 sps:$4 sm:$0xff]   ;;  %v4689_v47 = vld [vmem:[%s5578_s17 + $0x364] ss:$8 sps:$4 sm:$0xff]  }
 0x180   : > { %3495 = vmatprep.subr.bf16.mxu0 %v4620_v48  ;;  %v4692_v48 = vld [vmem:[%s5578_s17 + $0x764] ss:$8 sps:$4 sm:$0xff]  }
 0x182   : > { %3284 = vmatpush1.bf16.msra.mxu1 %v4615_v49  ;;  %v4687_v49 = vld [vmem:[%s5578_s17 + $0x360] ss:$8 sps:$4 sm:$0xff]  }
 0x183   : > { %3496 = vmatpush1.bf16.msra.mxu0 %v4618_v50  ;;  %3285 = vmatprep.subr.bf16.mxu1 %v4623_v51  ;;  %v4690_v50 = vld [vmem:[%s5578_s17 + $0x760] ss:$8 sps:$4 sm:$0xff]   ;;  %v4695_v51 = vld [vmem:[%s5578_s17 + $0x374] ss:$8 sps:$4 sm:$0xff]  }
 0x184   : > { %3497 = vmatprep.subr.bf16.mxu0 %v4626_v52  ;;  %v4698_v52 = vld [vmem:[%s5578_s17 + $0x774] ss:$8 sps:$4 sm:$0xff]  }
 0x186   : > { %3286 = vmatpush1.bf16.msra.mxu1 %v4621_v53  ;;  %v4693_v53 = vld [vmem:[%s5578_s17 + $0x370] ss:$8 sps:$4 sm:$0xff]  }
 0x187   : > { %3498 = vmatpush1.bf16.msra.mxu0 %v4624_v54  ;;  %3287 = vmatprep.subr.bf16.mxu1 %v4629_v55  ;;  %v4696_v54 = vld [vmem:[%s5578_s17 + $0x770] ss:$8 sps:$4 sm:$0xff]   ;;  %v4701_v55 = vld [vmem:[%s5578_s17 + $0x384] ss:$8 sps:$4 sm:$0xff]  }
 0x188   : > { %3499 = vmatprep.subr.bf16.mxu0 %v4632_v56  ;;  %v4704_v56 = vld [vmem:[%s5578_s17 + $0x784] ss:$8 sps:$4 sm:$0xff]  }
 0x18a   : > { %3288 = vmatpush1.bf16.msra.mxu1 %v4627_v57  ;;  %v4699_v57 = vld [vmem:[%s5578_s17 + $0x380] ss:$8 sps:$4 sm:$0xff]  }
 0x18b   : > { %3500 = vmatpush1.bf16.msra.mxu0 %v4630_v58  ;;  %3289 = vmatprep.subr.bf16.mxu1 %v4635_v59  ;;  %v4702_v58 = vld [vmem:[%s5578_s17 + $0x780] ss:$8 sps:$4 sm:$0xff]   ;;  %v4707_v59 = vld [vmem:[%s5578_s17 + $0x394] ss:$8 sps:$4 sm:$0xff]  }
 0x18c   : > { %3501 = vmatprep.subr.bf16.mxu0 %v4638_v60  ;;  %v4710_v60 = vld [vmem:[%s5578_s17 + $0x794] ss:$8 sps:$4 sm:$0xff]  }
 0x18e   : > { %3290 = vmatpush1.bf16.msra.mxu1 %v4633_v61  ;;  %v4705_v61 = vld [vmem:[%s5578_s17 + $0x390] ss:$8 sps:$4 sm:$0xff]  }
 0x18f   : > { %3502 = vmatpush1.bf16.msra.mxu0 %v4636_v62  ;;  %3291 = vmatprep.subr.bf16.mxu1 %v4641_v63  ;;  %v4708_v62 = vld [vmem:[%s5578_s17 + $0x790] ss:$8 sps:$4 sm:$0xff]   ;;  %v4713_v63 = vld [vmem:[%s5578_s17 + $0x3a4] ss:$8 sps:$4 sm:$0xff]  }
 0x190   : > { %3503 = vmatprep.subr.bf16.mxu0 %v4644_v0  ;;  %v4716_v0 = vld [vmem:[%s5578_s17 + $0x7a4] ss:$8 sps:$4 sm:$0xff]  }
 0x192   : > { %3292 = vmatpush1.bf16.msra.mxu1 %v4639_v1  ;;  %v4711_v1 = vld [vmem:[%s5578_s17 + $0x3a0] ss:$8 sps:$4 sm:$0xff]  }
 0x193   : > { %3504 = vmatpush1.bf16.msra.mxu0 %v4642_v2  ;;  %3293 = vmatprep.subr.bf16.mxu1 %v4647_v3  ;;  %v4714_v2 = vld [vmem:[%s5578_s17 + $0x7a0] ss:$8 sps:$4 sm:$0xff]   ;;  %v4719_v3 = vld [vmem:[%s5578_s17 + $0x3b4] ss:$8 sps:$4 sm:$0xff]  }
 0x194   : > { %3505 = vmatprep.subr.bf16.mxu0 %v4650_v4  ;;  %v4722_v4 = vld [vmem:[%s5578_s17 + $0x7b4] ss:$8 sps:$4 sm:$0xff]  }
 0x196   : > { %3294 = vmatpush1.bf16.msra.mxu1 %v4645_v5  ;;  %v4717_v5 = vld [vmem:[%s5578_s17 + $0x3b0] ss:$8 sps:$4 sm:$0xff]  }
 0x197   : > { %3506 = vmatpush1.bf16.msra.mxu0 %v4648_v6  ;;  %3316 = vmatprep.subr.bf16.mxu1 %v4653_v7  ;;  %v4720_v6 = vld [vmem:[%s5578_s17 + $0x7b0] ss:$8 sps:$4 sm:$0xff]   ;;  %v4725_v7 = vld [vmem:[%s5578_s17 + $0x3c4] ss:$8 sps:$4 sm:$0xff]  }
 0x198   : > { %3528 = vmatprep.subr.bf16.mxu0 %v4656_v8  ;;  %v4728_v8 = vld [vmem:[%s5578_s17 + $0x7c4] ss:$8 sps:$4 sm:$0xff]  }
 0x199   : > { %3296 = vmatmul.mubr.bf16.vlgmr.msra.gmra.mrb[0].mxu1 %v3924_v10  ;;  %v4726_v10 = vld [vmem:[%s5578_s17 + $0x7c0] ss:$8 sps:$4 sm:$0xff]  }
 0x19a   : > { %3508 = vmatmul.mubr.bf16.vlgmr.msra.gmra.mrb[0].mxu0 %v3932_v12  ;;  %3317 = vmatpush1.bf16.msra.mxu1 %v4651_v19  ;;  %v4731_v12 = vld [vmem:[%s5578_s17 + $0x3d4] ss:$8 sps:$4 sm:$0xff]   ;;  %v4737_v19 = vld [vmem:[%s5578_s17 + $0x3e4] ss:$8 sps:$4 sm:$0xff]  }
 0x19b   : > { %3529 = vmatpush1.bf16.msra.mxu0 %v4654_v20  ;;  %3318 = vmatprep.subr.bf16.mxu1 %v4659_v21  ;;  %v4740_v20 = vld [vmem:[%s5578_s17 + $0x7e4] ss:$8 sps:$4 sm:$0xff]   ;;  %v4735_v21 = vld [vmem:[%s5578_s17 + $0x3e0] ss:$8 sps:$4 sm:$0xff]  }
 0x19c   : > { %3530 = vmatprep.subr.bf16.mxu0 %v4662_v22  ;;  %3305 = vmatprep.mubr.bf16.mxu1 %v3941_v11  ;;  %v4738_v22 = vld [vmem:[%s5578_s17 + $0x7e0] ss:$8 sps:$4 sm:$0xff]   ;;  %v4743_v11 = vld [vmem:[%s5578_s17 + $0x3f4] ss:$8 sps:$4 sm:$0xff]  }
 0x19d   : > { %3517 = vmatprep.mubr.bf16.mxu0 %v3949_v14  ;;  %v4746_v14 = vld [vmem:[%s5578_s17 + $0x7f4] ss:$8 sps:$4 sm:$0xff]  }
 0x19e   : > { %3319 = vmatpush1.bf16.msra.mxu1 %v4657_v15  ;;  %v4741_v15 = vld [vmem:[%s5578_s17 + $0x3f0] ss:$8 sps:$4 sm:$0xff]  }
 0x19f   : > { %3531 = vmatpush1.bf16.msra.mxu0 %v4660_v16  ;;  %3320 = vmatprep.subr.bf16.mxu1 %v4665_v23  ;;  %v4744_v16 = vld [vmem:[%s5578_s17 + $0x7f0] ss:$8 sps:$4 sm:$0xff]  }
 0x1a0   : > { %3532 = vmatprep.subr.bf16.mxu0 %v4668_v24  ;;  %v1448_v23 = vld [vmem:[%s5576_s19 + $0x98] sm:$0xff] }
 0x1a1   : > { %3306 = vmatmul.mubr.bf16.gmra.mrb[4].mxu1 %v3940_v26  ;;  %v1456_v24 = vld [vmem:[%s5576_s19 + $0xd8] sm:$0xff] }
 0x1a2   : > { %3518 = vmatmul.mubr.bf16.gmra.mrb[4].mxu0 %v3948_v27  ;;  %3321 = vmatpush1.bf16.msra.mxu1 %v4663_v31  ;;  %v1452_v26 = vld [vmem:[%s5576_s19 + $0xb8] sm:$0xff]  ;;  %v3926_v31 = vcombine.low %v5842_v25, %v5845_v28  ;;  %v1422_v28 = vld [vmem:[#allocation2 + $0x8] sm:$0xff] }
 0x1a3   : > { %3533 = vmatpush1.bf16.msra.mxu0 %v4666_v32  ;;  %3322 = vmatprep.subr.bf16.mxu1 %v4671_v33  ;;  %v1460_v27 = vld [vmem:[%s5576_s19 + $0xf8] sm:$0xff]  ;;  %v3934_v32 = vcombine.low %v5848_v29, %v5851_v30  ;;  %v3943_v33 = vcombine.high %v1448_v23, %v1456_v24 }
 0x1a4   : > { %3534 = vmatprep.subr.bf16.mxu0 %v4674_v34  ;;  %3348 = vmatprep.mubr.bf16.mxu1 %v3927_v35  ;;  %v3951_v34 = vcombine.high %v1452_v26, %v1460_v27  ;;  %v3942_v35 = vcombine.low %v1448_v23, %v1456_v24 }
 0x1a5   : > { %3560 = vmatprep.mubr.bf16.mxu0 %v3935_v36  ;;  %v3950_v36 = vcombine.low %v1452_v26, %v1460_v27 }
 0x1a6   : > { %3323 = vmatpush1.bf16.msra.mxu1 %v4669_v37 }
 0x1a7   : > { %3535 = vmatpush1.bf16.msra.mxu0 %v4672_v38  ;;  %3324 = vmatprep.subr.bf16.mxu1 %v4677_v39  ;;  %v1421_v38 = vld [vmem:[#allocation2] sm:$0xff] }
 0x1a8   : > { %3536 = vmatprep.subr.bf16.mxu0 %v4680_v40 }
 0x1aa   : > { %3325 = vmatpush1.bf16.msra.mxu1 %v4675_v41 }
 0x1ab   : > { %3537 = vmatpush1.bf16.msra.mxu0 %v4678_v42  ;;  %3326 = vmatprep.subr.bf16.mxu1 %v4683_v43  ;;  %v1423_v42 = vld [vmem:[#allocation2 + $0x10] sm:$0xff] }
 0x1ac   : > { %3538 = vmatprep.subr.bf16.mxu0 %v4686_v44 }
 0x1ae   : > { %3327 = vmatpush1.bf16.msra.mxu1 %v4681_v45 }
 0x1af   : > { %3539 = vmatpush1.bf16.msra.mxu0 %v4684_v46  ;;  %3328 = vmatprep.subr.bf16.mxu1 %v4689_v47  ;;  %v1424_v47 = vld [vmem:[#allocation2 + $0x18] sm:$0xff] }
 0x1b0   : > { %3540 = vmatprep.subr.bf16.mxu0 %v4692_v48 }
 0x1b2   : > { %3329 = vmatpush1.bf16.msra.mxu1 %v4687_v49 }
 0x1b3   : > { %3541 = vmatpush1.bf16.msra.mxu0 %v4690_v50  ;;  %3330 = vmatprep.subr.bf16.mxu1 %v4695_v51 }
 0x1b4   : > { %3542 = vmatprep.subr.bf16.mxu0 %v4698_v52 }
 0x1b6   : > { %3331 = vmatpush1.bf16.msra.mxu1 %v4693_v53 }
 0x1b7   : > { %3543 = vmatpush1.bf16.msra.mxu0 %v4696_v54  ;;  %3332 = vmatprep.subr.bf16.mxu1 %v4701_v55  ;;  %v1425_v54 = vld [vmem:[#allocation2 + $0x20] sm:$0xff] }
 0x1b8   : > { %3544 = vmatprep.subr.bf16.mxu0 %v4704_v56 }
 0x1ba   : > { %3333 = vmatpush1.bf16.msra.mxu1 %v4699_v57 }
 0x1bb   : > { %3545 = vmatpush1.bf16.msra.mxu0 %v4702_v58  ;;  %3334 = vmatprep.subr.bf16.mxu1 %v4707_v59  ;;  %v1426_v58 = vld [vmem:[#allocation2 + $0x28] sm:$0xff] }
 0x1bc   : > { %3546 = vmatprep.subr.bf16.mxu0 %v4710_v60 }
 0x1be   : > { %3335 = vmatpush1.bf16.msra.mxu1 %v4705_v61 }
 0x1bf   : > { %3547 = vmatpush1.bf16.msra.mxu0 %v4708_v62  ;;  %3336 = vmatprep.subr.bf16.mxu1 %v4713_v63  ;;  %v1427_v62 = vld [vmem:[#allocation2 + $0x30] sm:$0xff] }
 0x1c0   : > { %3548 = vmatprep.subr.bf16.mxu0 %v4716_v0 }
 0x1c2   : > { %3337 = vmatpush1.bf16.msra.mxu1 %v4711_v1 }
 0x1c3   : > { %3549 = vmatpush1.bf16.msra.mxu0 %v4714_v2  ;;  %3338 = vmatprep.subr.bf16.mxu1 %v4719_v3  ;;  %v1428_v3 = vld [vmem:[#allocation2 + $0x38] sm:$0xff] }
 0x1c4   : > { %3550 = vmatprep.subr.bf16.mxu0 %v4722_v4 }
 0x1c6   : > { %3339 = vmatpush1.bf16.msra.mxu1 %v4717_v5 }
 0x1c7   : > { %3551 = vmatpush1.bf16.msra.mxu0 %v4720_v6  ;;  %3340 = vmatprep.subr.bf16.mxu1 %v4725_v7 }
 0x1c8   : > { %3552 = vmatprep.subr.bf16.mxu0 %v4728_v8 }
 0x1ca   : > { %3341 = vmatpush1.bf16.msra.mxu1 %v4723_v9 }
 0x1cb   : > { %3553 = vmatpush1.bf16.msra.mxu0 %v4726_v10  ;;  %3342 = vmatprep.subr.bf16.mxu1 %v4731_v12 }
 0x1cc   : > { %3554 = vmatprep.subr.bf16.mxu0 %v4734_v13 }
 0x1ce   : > { %3343 = vmatpush1.bf16.msra.mxu1 %v4729_v17 }
 0x1cf   : > { %3555 = vmatpush1.bf16.msra.mxu0 %v4732_v18  ;;  %3344 = vmatprep.subr.bf16.mxu1 %v4737_v19 }
 0x1d0   : > { %3556 = vmatprep.subr.bf16.mxu0 %v4740_v20 }
 0x1d2   : > { %3345 = vmatpush1.bf16.msra.mxu1 %v4735_v21 }
 0x1d3   : > { %3557 = vmatpush1.bf16.msra.mxu0 %v4738_v22  ;;  %3346 = vmatprep.subr.bf16.mxu1 %v4743_v11 }
 0x1d4   : > { %3558 = vmatprep.subr.bf16.mxu0 %v4746_v14 }
 0x1d6   : > { %3347 = vmatpush1.bf16.msra.mxu1 %v4741_v15 }
 0x1d7   : > { %3559 = vmatpush1.bf16.msra.mxu0 %v4744_v16 }
 0x1d9   : > { %3349 = vmatmul.mubr.bf16.vlgmr.msra.gmra.mrb[0].mxu1 %v3926_v31 }
 0x1da   : > { %3561 = vmatmul.mubr.bf16.vlgmr.msra.gmra.mrb[0].mxu0 %v3934_v32  ;;  %3358 = vmatprep.mubr.bf16.mxu1 %v3943_v33 }
 0x1db   : > { %3570 = vmatprep.mubr.bf16.mxu0 %v3951_v34 }
 0x1e1   : > { %3359 = vmatmul.mubr.bf16.gmra.mrb[4].mxu1 %v3942_v35 }
 0x1e2   : > { %3571 = vmatmul.mubr.bf16.gmra.mrb[4].mxu0 %v3950_v36 }
 0x2ac   : > { %v3350_v37 = vpop.f32.mrb[0].mxu1 }
 0x2ad   : > { %v3562_v39 = vpop.f32.mrb[0].mxu0  ;;  %v3352_v25 = vpop.f32.mrb[1].mxu1 }
 0x2ae   : > { %v4217_v40 = vadd.f32 %v3562_v39, %v3350_v37  ;;  %v3564_v41 = vpop.f32.mrb[1].mxu0  ;;  %v3354_v30 = vpop.f32.mrb[2].mxu1 }
 0x2af   : > { %v4218_v29 = vadd.f32 %v3564_v41, %v3352_v25  ;;  %v3566_v43 = vpop.f32.mrb[2].mxu0  ;;  %v3356_v46 = vpop.f32.mrb[3].mxu1 }
 0x2b0   : > { %v3581_v44 = vadd.f32 %v4217_v40, %v1421_v38  ;;  %v4219_v45 = vadd.f32 %v3566_v43, %v3354_v30  ;;  %v3568_v48 = vpop.f32.mrb[3].mxu0  ;;  %v4836_v43 = vmov (!%p4208_p5), 1966171168  }
 0x2b1   : > { %v3582_v49 = vadd.f32 %v4218_v29, %v1422_v28  ;;  %v4220_v50 = vadd.f32 %v3568_v48, %v3356_v46 }
 0x2b2   : > { %3589 = vst [vmem:[#allocation2] sm:$0xff] %v3581_v44  ;;  %v3583_v51 = vadd.f32 %v4219_v45, %v1423_v42  ;;  %v3639_v44 = vunpack.c.l.s4 (!%p4208_p5), %v4836_v43  ;;  %v3641_v45 = vlaneseq (!%p4208_p5) }
 0x2b3   : > { %3590 = vst [vmem:[#allocation2 + $0x8] sm:$0xff] %v3582_v49  ;;  %v3584_v52 = vadd.f32 %v4220_v50, %v1424_v47 }
 0x2b4   : > { %3591 = vst [vmem:[#allocation2 + $0x10] sm:$0xff] %v3583_v51  ;;  %v3360_v53 = vpop.f32.mrb[4].mxu1  ;;  %vm3655_vm0 = vcmp.lt.s32.totalorder (!%p4208_p5), %v3641_v45, 256 }
 0x2b5   : > { %3592 = vst [vmem:[#allocation2 + $0x18] sm:$0xff] %v3584_v52  ;;  %v3572_v55 = vpop.f32.mrb[4].mxu0  ;;  %v3362_v57 = vpop.f32.mrb[5].mxu1 }
 0x2b6   : > { %v4221_v56 = vadd.f32 %v3572_v55, %v3360_v53  ;;  %v3574_v59 = vpop.f32.mrb[5].mxu0  ;;  %v3364_v61 = vpop.f32.mrb[6].mxu1  ;;  %v3642_v55 = vshrl.u32 (!%p4208_p5), %v3641_v45, 7 }
 0x2b7   : > { %v4222_v60 = vadd.f32 %v3574_v59, %v3362_v57  ;;  %v3576_v63 = vpop.f32.mrb[6].mxu0  ;;  %v3366_v2 = vpop.f32.mrb[7].mxu1  ;;  %3600 = sbr.rel (%p4208_p5) target bundleno = 732 (0x2dc), region = 97 }
 0x2b8   : > { %v3585_v0 = vadd.f32 %v4221_v56, %v1425_v54  ;;  %v4223_v1 = vadd.f32 %v3576_v63, %v3364_v61  ;;  %v3578_v4 = vpop.f32.mrb[7].mxu0  ;;  %v3640_v54 = vunpack.c.0.s8 (!%p4208_p5), %v3639_v44 }
 0x2b9   : > { %v3586_v5 = vadd.f32 %v4222_v60, %v1426_v58  ;;  %v4224_v6 = vadd.f32 %v3578_v4, %v3366_v2  ;;  %v3601_v9 = vld [vmem:[#allocation2] sm:$0xff] (!%p4208_p5) }
 0x2ba   : > { %3593 = vst [vmem:[#allocation2 + $0x20] sm:$0xff] %v3585_v0  ;;  %v3587_v7 = vadd.f32 %v4223_v1, %v1427_v62  ;;  %v3602_v10 = vld [vmem:[#allocation2 + $0x8] sm:$0xff] (!%p4208_p5)  ;;  %3609 = vst [vmem:[%s5580_s15] sm:$0xff] (!%p4208_p5), %v3601_v9  ;;  %v3658_v13 = vmul.f32 (!%p4208_p5), %v3601_v9, %v3601_v9  ;;  %v3643_v63 = vsub.s32 (!%p4208_p5), %v3640_v54, %v3642_v55 }
 0x2bb   : > { %3594 = vst [vmem:[#allocation2 + $0x28] sm:$0xff] %v3586_v5  ;;  %v3588_v8 = vadd.f32 %v4224_v6, %v1428_v3  ;;  %v3603_v12 = vld [vmem:[#allocation2 + $0x10] sm:$0xff] (!%p4208_p5)  ;;  %3610 = vst [vmem:[%s5580_s15 + $0x8] sm:$0xff] (!%p4208_p5), %v3602_v10  ;;  %v3659_v17 = vmul.f32 (!%p4208_p5), %v3602_v10, %v3602_v10 }
 0x2bc   : > { %3595 = vst [vmem:[#allocation2 + $0x30] sm:$0xff] %v3587_v7  ;;  %3611 = vst [vmem:[%s5580_s15 + $0x10] sm:$0xff] (!%p4208_p5), %v3603_v12  ;;  %v3617_v18 = vadd.f32 (!%p4208_p5), %v3603_v12, %v3601_v9  ;;  %v3660_v19 = vmul.f32 (!%p4208_p5), %v3603_v12, %v3603_v12  ;;  %v3604_v20 = vld [vmem:[#allocation2 + $0x18] sm:$0xff] (!%p4208_p5) }
 0x2bd   : > { %3596 = vst [vmem:[#allocation2 + $0x38] sm:$0xff] %v3588_v8  ;;  %3612 = vst [vmem:[%s5580_s15 + $0x18] sm:$0xff] (!%p4208_p5), %v3604_v20  ;;  %v3626_v11 = vadd.f32 (!%p4208_p5), %v3604_v20, %v3602_v10  ;;  %v3661_v14 = vmul.f32 (!%p4208_p5), %v3604_v20, %v3604_v20 }
 0x2be   : > { %v3666_v26 = vadd.f32 %v3660_v19, %v3658_v13 }
 0x2bf   : > { %v3675_v32 = vadd.f32 %v3661_v14, %v3659_v17 }
 0x2c1   : > { %v3605_v21 = vld [vmem:[#allocation2 + $0x20] sm:$0xff] }
 0x2c2   : > { %v3606_v22 = vld [vmem:[#allocation2 + $0x28] sm:$0xff]  ;;  %3613 = vst [vmem:[%s5580_s15 + $0x20] sm:$0xff] %v3605_v21  ;;  %v3662_v15 = vmul.f32 %v3605_v21, %v3605_v21  ;;  %v3618_v27 = vadd.f32 %v3617_v18, %v3605_v21 }
 0x2c3   : > { %3614 = vst [vmem:[%s5580_s15 + $0x28] sm:$0xff] %v3606_v22  ;;  %v3663_v16 = vmul.f32 %v3606_v22, %v3606_v22  ;;  %v3607_v23 = vld [vmem:[#allocation2 + $0x30] sm:$0xff]  ;;  %v3627_v33 = vadd.f32 %v3626_v11, %v3606_v22 }
 0x2c4   : > { %v3608_v24 = vld [vmem:[#allocation2 + $0x38] sm:$0xff]  ;;  %3615 = vst [vmem:[%s5580_s15 + $0x30] sm:$0xff] %v3607_v23  ;;  %v3664_v31 = vmul.f32 %v3607_v23, %v3607_v23  ;;  %v3667_v35 = vadd.f32 %v3666_v26, %v3662_v15  ;;  %v3619_v36 = vadd.f32 %v3618_v27, %v3607_v23 }
 0x2c5   : > { %3616 = vst [vmem:[%s5580_s15 + $0x38] sm:$0xff] %v3608_v24  ;;  %v3665_v34 = vmul.f32 %v3608_v24, %v3608_v24  ;;  %v3676_v37 = vadd.f32 %v3675_v32, %v3663_v16  ;;  %v3628_v38 = vadd.f32 %v3627_v33, %v3608_v24 }
 0x2c6   : > { %v3620_v39 = vrot.slane %v3619_v36, 4  ;;  %v3668_v40 = vadd.f32 %v3667_v35, %v3664_v31 }
 0x2c7   : > { %v3629_v25 = vrot.slane %v3628_v38, 4  ;;  %v3677_v28 = vadd.f32 %v3676_v37, %v3665_v34 }
 0x2c8   : > { %v3621_v41 = vadd.f32 %v3620_v39, %v3619_v36  ;;  %v3669_v29 = vrot.slane %v3668_v40, 4 }
 0x2c9   : > { %v3630_v30 = vadd.f32 %v3629_v25, %v3628_v38  ;;  %v3678_v42 = vrot.slane %v3677_v28, 4 }
 0x2ca   : > { %v3622_v46 = vrot.slane %v3621_v41, 2  ;;  %v3670_v47 = vadd.f32 %v3669_v29, %v3668_v40 }
 0x2cb   : > { %v3631_v48 = vrot.slane %v3630_v30, 2  ;;  %v3679_v49 = vadd.f32 %v3678_v42, %v3677_v28 }
 0x2cc   : > { %v3623_v50 = vadd.f32 %v3622_v46, %v3621_v41  ;;  %v3671_v51 = vrot.slane %v3670_v47, 2 }
 0x2cd   : > { %v3632_v52 = vadd.f32 %v3631_v48, %v3630_v30  ;;  %v3680_v53 = vrot.slane %v3679_v49, 2 }
 0x2ce   : > { %v3624_v56 = vrot.slane %v3623_v50, 1  ;;  %v3672_v57 = vadd.f32 %v3671_v51, %v3670_v47 }
 0x2cf   : > { %v3633_v58 = vrot.slane %v3632_v52, 1  ;;  %v3681_v59 = vadd.f32 %v3680_v53, %v3679_v49 }
 0x2d0   : > { %v3625_v60 = vadd.f32 %v3624_v56, %v3623_v50  ;;  %v3673_v61 = vrot.slane %v3672_v57, 1 }
 0x2d1   : > { %v3634_v62 = vadd.f32 %v3633_v58, %v3632_v52  ;;  %v3682_v0 = vrot.slane %v3681_v59, 1 }
 0x2d2   : > { %v3674_v1 = vadd.f32 %v3673_v61, %v3672_v57 }
 0x2d3   : > { %v3637_v2 = vcombine.low %v3625_v60, %v3634_v62  ;;  %v3683_v3 = vadd.f32 %v3682_v0, %v3681_v59 }
 0x2d5   : > { %v3644_v4 = vrot.slane %v3637_v2, %v3643_v63  ;;  %v3686_v5 = vcombine.low %v3674_v1, %v3683_v3 }
 0x2d7   : > { %v3651_v6 = vrot.slane %v3644_v4, %v3643_v63  ;;  %v3693_v7 = vrot.slane %v3686_v5, %v3643_v63 }
 0x2d9   : > { %3657 = vst.msk [vmem:[%s1402_s6] sm:$0x3] %vm3655_vm0, %v3651_v6  ;;  %v3700_v8 = vrot.slane %v3693_v7, %v3643_v63 }
 0x2db   : > { %3702 = vst.msk [vmem:[%s1407_s1] sm:$0x3] %vm3655_vm0, %v3700_v8 }
 0x2dc PF: > { %3717 = sbr.rel (!%p4956_p12) target bundleno = 740 (0x2e4), region = 101  ;;  %s4216_s26 = sshll.u32 (%p4956_p12), %s4821_s22, 4  ;;  %v3744_v17 = vld [vmem:[%s5580_s15 + $0x20] sm:$0xff] (%p4956_p12)  ;;  %v3746_v18 = vld [vmem:[%s5580_s15 + $0x28] sm:$0xff] (%p4956_p12)  ;;  %v3748_v19 = vld [vmem:[%s5580_s15 + $0x30] sm:$0xff] (%p4956_p12) }
 0x2dd   : > { %s3723_s1 = scalar_lea.vmem (%p4956_p12), %s5987_s2, %s4216_s26  ;;  %v3750_v20 = vld [vmem:[%s5580_s15 + $0x38] sm:$0xff] (%p4956_p12) }
 0x2de   : > { %3745 = vst [vmem:[%s3723_s1 + $0x40] sm:$0xff] (%p4956_p12), %v3744_v17  ;;  %3747 = vst [vmem:[%s3723_s1 + $0x48] sm:$0xff] (%p4956_p12), %v3746_v18 }
 0x2df   : > { %v3736_v9 = vld [vmem:[%s5580_s15] sm:$0xff] (%p4956_p12)  ;;  %3749 = vst [vmem:[%s3723_s1 + $0x60] sm:$0xff] (%p4956_p12), %v3748_v19  ;;  %3751 = vst [vmem:[%s3723_s1 + $0x68] sm:$0xff] (%p4956_p12), %v3750_v20 }
 0x2e0   : > { %v3738_v10 = vld [vmem:[%s5580_s15 + $0x8] sm:$0xff] (%p4956_p12)  ;;  %3737 = vst [vmem:[%s3723_s1] sm:$0xff] (%p4956_p12), %v3736_v9 }
 0x2e1   : > { %v3740_v12 = vld [vmem:[%s5580_s15 + $0x10] sm:$0xff] (%p4956_p12)  ;;  %3739 = vst [vmem:[%s3723_s1 + $0x8] sm:$0xff] (%p4956_p12), %v3738_v10 }
 0x2e2   : > { %v3742_v13 = vld [vmem:[%s5580_s15 + $0x18] sm:$0xff] (%p4956_p12)  ;;  %3741 = vst [vmem:[%s3723_s1 + $0x20] sm:$0xff] (%p4956_p12), %v3740_v12 }
 0x2e3   : > { %3743 = vst [vmem:[%s3723_s1 + $0x28] sm:$0xff] %v3742_v13 }
 0x2e4 PF: > { %s15_s25 = sadd.s32 1, %s4833_s25   ;;  %s6001_s14 = sld [smem:[#allocation6_spill]] }
 0x2e5   : > { %p12_p6 = scmp.ge.s32.totalorder %s15_s25, 6   ;;  %s6002_s27 = sld [smem:[#allocation7_spill]] }
 0x2e6   : > { %s6003_s15 = smov %s4797_s16  ;;  %s6004_s16 = smov %s4954_s13 }
 0x2e7   : > { %s6005_s17 = smov %s4805_s18  ;;  %s6006_s18 = smov %s4951_s12 }
 0x2e8   : > { %s6007_s19 = smov %s4813_s20  ;;  %s6008_s20 = smov %s4937_s7 }
 0x2e9   : > { %s6009_s21 = smov %s4825_s23  ;;  %s6010_s22 = smov %s4829_s24 }
 0x2ea   : > { %s6011_s23 = smov %s6001_s14  ;;  %14 = sbr.rel (!%p12_p6) target bundleno = 9 (0x9), region = 187 }
 0x2eb   : > { %s6012_s24 = smov %s6002_s27 }

// kernel: lpips_with_discriminator_forward.11
= control target key start
LH: loop header
LB: loop body
LE: loop exit
PB: predicated region body
PF: predicated region fallthrough
CT: control target
= control target key end

     0   :  { %s109_s0 = inlined_call_operand.vmem [shape: f32[8,128], index: 0, kind: input, shape index: {}]   ;;  %s110_s1 = inlined_call_operand.vmem [shape: f32[8,128], index: 1, kind: input, shape index: {}]   ;;  %s111_s2 = inlined_call_operand.hbm [shape: f32[1,1], index: 2, kind: output, shape index: {}]  }
   0x1   :  { %v13_v0 = vld [vmem:[%s110_s1] sm:$0xff] }
   0x2   :  { %7 = vsyncpa [#allocation3], 0  ;;  %v15_v1 = vmul.f32 1.442695, %v13_v0  ;;  %v12_v2 = vld [vmem:[%s109_s0] sm:$0xff]  ;;  %s63_s0 = scalar_lea.hbm %s111_s2, 16 }
   0x3   :  { %v14_v3 = vmul.f32 %v12_v2, %v12_v2  ;;  %p64_p0 = scmp.ne.s32.totalorder %s111_s2, %s63_s0  ;;  %p67_p1 = scmp.lt.u32.totalorder %s63_s0, %s111_s2 }
   0x4   :  { %61 = vpow2.f32 %v15_v1 }
   0x5   :  { %p69_p2 = pnand %p67_p1, %p64_p0 }
   0xe   :  { %v62_v4 = vpop.eup %61 }
   0xf   :  { %v17_v5 = vadd.f32 %v62_v4, %v14_v3 }
  0x11   :  { %v57_v6 = vadd.f32 -1.0, %v17_v5 }
  0x13   :  { %v19_v7 = vsub.f32 %v57_v6, %v13_v0 }
  0x15   :  { %20 = vadd.xlane.f32.xlu0 %v19_v7 }
  0xa2   :  { %v21_v8 = vpop.xlane.xlu0 %20 }
  0xa3   :  { %v22_v9 = vrot.slane %v21_v8, 4 }
  0xa5   :  { %v23_v10 = vadd.f32 %v22_v9, %v21_v8 }
  0xa7   :  { %v24_v11 = vrot.slane %v23_v10, 2 }
  0xa9   :  { %v25_v12 = vadd.f32 %v24_v11, %v23_v10 }
  0xab   :  { %v26_v13 = vrot.slane %v25_v12, 1 }
  0xad   :  { %v27_v14 = vadd.f32 %v26_v13, %v25_v12 }
  0xaf   :  { %58 = vpush %v27_v14 }
  0xe0   :  { %s59_s1 = spop %58 }
  0xe1   :  { %s29_s13 = smul.f32 0.5, %s59_s1 }
  0xe3   :  { %35 = sst [smem:[#allocation2]] %s29_s13 }
  0xe4   :  { %72 = shalt.err (!%p69_p2)
}
  0xe5   :  { %s75_s20 = smov [#allocation2]  }
  0xe6   :  { %51 = dma.smem_to_hbm %s75_s20, 16, %s111_s2, [#allocation3]  }
  0xe7   :  { %73 = dma.done.wait [#allocation3], 16  }
  0xe8   :  { %74 = vsyncadd [#allocation3], 4294967280 }
  0xe9   :  { %55 = sfence }
  0xea   :  { %56 = vsyncpa [#allocation3], 1 }

</bundles_post_ra>
